<compile_context>
chip_gen: v7x
topology: tpu7x:2x2x1
jax: 0.10.0
libtpu: 0.0.40
codegen_flags: <defaults>
</compile_context>

<pallas_src>
import jax
import jax.numpy as jnp
from jax.experimental import pallas as pl
from jax.experimental.pallas import tpu as pltpu


# ----------------------------------------------------------------------------
# Fused Model kernel
# ----------------------------------------------------------------------------
def make_model_forward(B, T, output_len, F=37, HE=64, HD=128, A=10, C=11):
    """Build a fused Pallas forward pass for the PyTorch `Model`."""
    G = 4 * HE          # encoder per-direction gate width (i, f, g, o)

    def kernel(x_ref,                                   # (T*B, F) time-major input
               wlin_ref, blin_ref,                      # encoder Linear
               wih_ref, benc_ref, whh_ref,              # encoder BiLSTM ([fwd|bwd] concatenated)
               w1a_ref, w1b_ref, b1_ref,                # attention linear1 (feats part / c part)
               w2_ref, b2_ref,                          # attention linear2
               wdec_ref, bdec_ref,                      # decoder LSTM ([W_ih^T; W_hh^T], b_ih+b_hh)
               wcls_ref, bcls_ref,                      # decoder classifier Linear
               out_ref,                                 # (output_len, B, C)
               ff_ref, fb_ref, gin_ref):                # scratch: fwd/bwd hidden states, hoisted gates
        f32 = jnp.float32

        # ---------------- Encoder: Linear + ReLU ----------------
        y = jnp.dot(x_ref[...], wlin_ref[...], preferred_element_type=f32) + blin_ref[...]
        y = jnp.maximum(y, 0.0)                                              # (T*B, HE)

        # Hoisted input-to-hidden projection for BOTH directions in one matmul.
        # cols [0:G] = forward gates (i,f,g,o), cols [G:2G] = backward gates.
        gin_ref[...] = jnp.dot(y, wih_ref[...], preferred_element_type=f32) + benc_ref[...]

        # -------- BiLSTM recurrence: merged fwd/bwd, fully unrolled --------
        # Stacked state: rows [0:B] forward, rows [B:2B] backward.
        h = jnp.zeros((2 * B, HE), f32)
        c = jnp.zeros((2 * B, HE), f32)
        for t in range(T):
            tb = T - 1 - t
            rec = jnp.dot(h, whh_ref[...], preferred_element_type=f32)       # (2B, 2G)
            gf = gin_ref[t * B:(t + 1) * B, 0:G] + rec[0:B, 0:G]
            gb = gin_ref[tb * B:(tb + 1) * B, G:2 * G] + rec[B:2 * B, G:2 * G]
            gates = jnp.concatenate([gf, gb], axis=0)                        # (2B, G)
            i_g = jax.nn.sigmoid(gates[:, 0:HE])
            f_g = jax.nn.sigmoid(gates[:, HE:2 * HE])
            g_g = jnp.tanh(gates[:, 2 * HE:3 * HE])
            o_g = jax.nn.sigmoid(gates[:, 3 * HE:4 * HE])
            c = f_g * c + i_g * g_g
            h = o_g * jnp.tanh(c)
            ff_ref[t] = h[0:B, :]          # forward hidden state for time t
            fb_ref[tb] = h[B:2 * B, :]     # backward hidden state for time tb

        # ------- Attention precompute (hoisted out of the decoder loop) -------
        ff3 = ff_ref[...]                                                    # (T, B, HE)
        fb3 = fb_ref[...]                                                    # (T, B, HE)
        ff2d = jnp.concatenate([ff3[t] for t in range(T)], axis=0)           # (T*B, HE)
        fb2d = jnp.concatenate([fb3[t] for t in range(T)], axis=0)           # (T*B, HE)
        # linear1 applied to the (constant) feats part once:
        apre2d = (jnp.dot(ff2d, w1a_ref[0:HE, :], preferred_element_type=f32)
                  + jnp.dot(fb2d, w1a_ref[HE:2 * HE, :], preferred_element_type=f32)
                  + b1_ref[...])                                             # (T*B, A)
        apre3 = jnp.concatenate(
            [apre2d[t * B:(t + 1) * B, :][None] for t in range(T)], axis=0)  # (T, B, A)
        w2row = w2_ref[...][None, :, :]                                      # (1, 1, A)

        # ---------------- Attention + decoder loop (unrolled) ----------------
        h_d = jnp.zeros((B, HD), f32)
        c_d = jnp.zeros((B, HD), f32)
        for step in range(output_len):
            # attention over T, conditioned on the decoder cell state c_d
            u = jnp.dot(c_d, w1b_ref[...], preferred_element_type=f32)       # (B, A)
            att = jnp.tanh(apre3 + u[None, :, :])                            # (T, B, A)
            logit = jnp.sum(att * w2row, axis=-1, keepdims=True) + b2_ref[...]   # (T, B, 1)
            m = jnp.max(logit, axis=0, keepdims=True)
            e = jnp.exp(logit - m)
            sc = e / jnp.sum(e, axis=0, keepdims=True)                       # softmax over T
            # context = sum_t scores * feats
            ctx_f = jnp.sum(ff3 * sc, axis=0)                                # (B, HE)
            ctx_b = jnp.sum(fb3 * sc, axis=0)                                # (B, HE)
            # decoder LSTM cell (input/hidden projections fused into one matmul)
            z = jnp.concatenate([ctx_f, ctx_b, h_d], axis=1)                 # (B, 2HE+HD)
            gd = jnp.dot(z, wdec_ref[...], preferred_element_type=f32) + bdec_ref[...]  # (B, 4HD)
            di = jax.nn.sigmoid(gd[:, 0:HD])
            df = jax.nn.sigmoid(gd[:, HD:2 * HD])
            dg = jnp.tanh(gd[:, 2 * HD:3 * HD])
            do = jax.nn.sigmoid(gd[:, 3 * HD:4 * HD])
            c_d = df * c_d + di * dg
            h_d = do * jnp.tanh(c_d)
            # classifier + softmax (decoder output)
            cls = jnp.dot(h_d, wcls_ref[...], preferred_element_type=f32) + bcls_ref[...]  # (B, C)
            m2 = jnp.max(cls, axis=-1, keepdims=True)
            e2 = jnp.exp(cls - m2)
            out_ref[step] = e2 / jnp.sum(e2, axis=-1, keepdims=True)

    vmem = pl.BlockSpec(memory_space=pltpu.MemorySpace.VMEM)

    def forward(x, p):
        # x: (B, T, F) batch-first (PyTorch layout) -> time-major 2D for the kernel
        x_tm = jnp.transpose(x, (1, 0, 2)).reshape(T * B, F)
        out_tb = pl.pallas_call(
            kernel,
            out_shape=jax.ShapeDtypeStruct((output_len, B, C), jnp.float32),
            in_specs=[vmem] * 15,
            out_specs=vmem,
            scratch_shapes=[
                pltpu.VMEM((T, B, HE), jnp.float32),       # forward hidden states
                pltpu.VMEM((T, B, HE), jnp.float32),       # backward hidden states
                pltpu.VMEM((T * B, 8 * HE), jnp.float32),  # hoisted input-to-hidden gates
            ],
        )(x_tm,
          p["w_lin"], p["b_lin"],
          p["wih_enc"], p["b_enc"], p["whh_enc"],
          p["w1a"], p["w1b"], p["b1"],
          p["w2"], p["b2"],
          p["w_dec"], p["b_dec"],
          p["w_cls"], p["b_cls"])
        return jnp.transpose(out_tb, (1, 0, 2))            # (B, output_len, C)

    return forward


# ----------------------------------------------------------------------------
# Parameters (stored directly in the fused layouts the kernel expects)
# ----------------------------------------------------------------------------
def init_params(key, F=37, HE=64, HD=128, A=10, C=11):
    ks = jax.random.split(key, 14)
    s = 0.2
    n = lambda k, shp: s * jax.random.normal(k, shp, jnp.float32)
    return {
        # Encoder Linear (stored transposed: (F, HE)), bias (1, HE)
        "w_lin": n(ks[0], (F, HE)),
        "b_lin": n(ks[1], (1, HE)),
        # Encoder BiLSTM: W_ih^T / W_hh^T with the two directions concatenated along
        # columns [fwd | bwd]; gate order inside each direction is i,f,g,o.
        # Bias = (b_ih + b_hh), same column layout.  (torch weights would be
        # transposed and biases summed when loading real checkpoints.)
        "wih_enc": n(ks[2], (HE, 8 * HE)),
        "whh_enc": n(ks[3], (HE, 8 * HE)),
        "b_enc":   n(ks[4], (1, 8 * HE)),
        # Attention linear1 (256 -> 10), split: rows for feats vs rows for decoder_c.
        "w1a": n(ks[5], (2 * HE, A)),
        "w1b": n(ks[6], (HD, A)),
        "b1":  n(ks[7], (1, A)),
        # Attention linear2 (10 -> 1)
        "w2": n(ks[8], (1, A)),
        "b2": n(ks[9], (1, 1)),
        # Decoder LSTM: [W_ih^T ; W_hh^T] stacked -> (2HE+HD, 4*HD); bias summed.
        "w_dec": n(ks[10], (2 * HE + HD, 4 * HD)),
        "b_dec": n(ks[11], (1, 4 * HD)),
        # Decoder classifier Linear (128 -> 11), transposed.
        "w_cls": n(ks[12], (HD, C)),
        "b_cls": n(ks[13], (1, C)),
    }


# ----------------------------------------------------------------------------
# Pure-JAX reference (same semantics as the PyTorch Model.forward)
# ----------------------------------------------------------------------------
def reference_forward(x, p, output_len):
    hp = jax.lax.Precision.HIGHEST
    B, T, F = x.shape
    HE = p["w_lin"].shape[1]
    HD = p["w_dec"].shape[1] // 4
    G = 4 * HE

    def lstm_cell(h, c, xt, wih, whh, b, H):
        g = jnp.dot(xt, wih, precision=hp) + jnp.dot(h, whh, precision=hp) + b
        i = jax.nn.sigmoid(g[:, 0:H])
        f = jax.nn.sigmoid(g[:, H:2 * H])
        gg = jnp.tanh(g[:, 2 * H:3 * H])
        o = jax.nn.sigmoid(g[:, 3 * H:4 * H])
        c = f * c + i * gg
        return o * jnp.tanh(c), c

    # Encoder
    y = jax.nn.relu(jnp.dot(x.reshape(B * T, F), p["w_lin"], precision=hp)
                    + p["b_lin"]).reshape(B, T, HE)
    wih_f, wih_b = p["wih_enc"][:, :G], p["wih_enc"][:, G:]
    whh_f, whh_b = p["whh_enc"][:, :G], p["whh_enc"][:, G:]
    b_f, b_b = p["b_enc"][:, :G], p["b_enc"][:, G:]

    h = jnp.zeros((B, HE)); c = jnp.zeros((B, HE)); fwd = []
    for t in range(T):
        h, c = lstm_cell(h, c, y[:, t, :], wih_f, whh_f, b_f, HE)
        fwd.append(h)
    h = jnp.zeros((B, HE)); c = jnp.zeros((B, HE)); bwd = [None] * T
    for t in range(T - 1, -1, -1):
        h, c = lstm_cell(h, c, y[:, t, :], wih_b, whh_b, b_b, HE)
        bwd[t] = h
    feats = jnp.stack([jnp.concatenate([fwd[t], bwd[t]], axis=-1) for t in range(T)], axis=1)

    # Attention + decoder loop
    w1 = jnp.concatenate([p["w1a"], p["w1b"]], axis=0)
    h_d = jnp.zeros((B, HD)); c_d = jnp.zeros((B, HD)); outs = []
    for _ in range(output_len):
        c_rep = jnp.broadcast_to(c_d[:, None, :], (B, T, HD))
        fin = jnp.concatenate([feats, c_rep], axis=-1)
        att = jnp.tanh(jnp.dot(fin, w1, precision=hp) + p["b1"])
        logit = jnp.dot(att, p["w2"].T, precision=hp) + p["b2"]
        sc = jax.nn.softmax(logit, axis=1)
        ctx = jnp.sum(feats * sc, axis=1)
        h_d, c_d = lstm_cell(h_d, c_d, ctx,
                             p["w_dec"][:2 * HE, :], p["w_dec"][2 * HE:, :],
                             p["b_dec"], HD)
        cls = jnp.dot(h_d, p["w_cls"], precision=hp) + p["b_cls"]
        outs.append(jax.nn.softmax(cls, axis=-1))
    return jnp.stack(outs, axis=1)


if __name__ == "__main__":
    B, T, F = 2, 8, 37
    OUTPUT_LEN = 4

    key = jax.random.PRNGKey(0)
    kx, kp = jax.random.split(key)
    x = jax.random.normal(kx, (B, T, F), dtype=jnp.float32)
    params = init_params(kp, F=F)

    forward = jax.jit(make_model_forward(B, T, OUTPUT_LEN, F=F))
    out = jax.block_until_ready(forward(x, params))

    assert out.shape == (B, OUTPUT_LEN, 11), out.shape
    assert out.dtype == jnp.float32
    # each (batch, step) row is a softmax distribution over the 11 classes
    assert bool(jnp.all(jnp.abs(jnp.sum(out, axis=-1) - 1.0) < 1e-4))
    # numerical check against the pure-JAX reference of the same module
    ref = reference_forward(x, params, OUTPUT_LEN)
    assert bool(jnp.allclose(out, ref, rtol=1e-2, atol=1e-2)), float(jnp.max(jnp.abs(out - ref)))
    # TODO(synk): Model.scores_for_paint (eval-time host-side numpy stash) is a side
    # effect, not part of the returned tensor, and is not replicated here.
    print("KERNEL_OK")
</pallas_src>

<mosaic_0001>
module attributes {stable_mosaic.version = 11 : i64} {
  func.func @kernel(%arg0: memref<16x37xf32, #tpu.memory_space<vmem>>, %arg1: memref<37x64xf32, #tpu.memory_space<vmem>>, %arg2: memref<1x64xf32, #tpu.memory_space<vmem>>, %arg3: memref<64x512xf32, #tpu.memory_space<vmem>>, %arg4: memref<1x512xf32, #tpu.memory_space<vmem>>, %arg5: memref<64x512xf32, #tpu.memory_space<vmem>>, %arg6: memref<128x10xf32, #tpu.memory_space<vmem>>, %arg7: memref<128x10xf32, #tpu.memory_space<vmem>>, %arg8: memref<1x10xf32, #tpu.memory_space<vmem>>, %arg9: memref<1x10xf32, #tpu.memory_space<vmem>>, %arg10: memref<1x1xf32, #tpu.memory_space<vmem>>, %arg11: memref<256x512xf32, #tpu.memory_space<vmem>>, %arg12: memref<1x512xf32, #tpu.memory_space<vmem>>, %arg13: memref<128x11xf32, #tpu.memory_space<vmem>>, %arg14: memref<1x11xf32, #tpu.memory_space<vmem>>, %arg15: memref<4x2x11xf32, #tpu.memory_space<vmem>>, %arg16: memref<8x2x64xf32, #tpu.memory_space<vmem>>, %arg17: memref<8x2x64xf32, #tpu.memory_space<vmem>>, %arg18: memref<16x512xf32, #tpu.memory_space<vmem>>) attributes {dimension_semantics = [], scalar_prefetch = 0 : i64, scratch_operands = 3 : i64, tpu.core_type = #tpu.core_type<tc>} {
    %c0 = arith.constant 0 : index
    %c0_0 = arith.constant 0 : index
    %0 = vector.load %arg0[%c0, %c0_0] : memref<16x37xf32, #tpu.memory_space<vmem>>, vector<16x37xf32>
    %c0_1 = arith.constant 0 : index
    %c0_2 = arith.constant 0 : index
    %1 = vector.load %arg1[%c0_1, %c0_2] : memref<37x64xf32, #tpu.memory_space<vmem>>, vector<37x64xf32>
    %cst = arith.constant dense<0.000000e+00> : vector<16x64xf32>
    %2 = tpu.matmul %0, %1, %cst {dimension_numbers = #tpu.dot_dimension_numbers<[1], [0], [0], [1], [0, 0, 1, 1], [], []>} : vector<16x37xf32>, vector<37x64xf32>, vector<16x64xf32> -> vector<16x64xf32>
    %c0_3 = arith.constant 0 : index
    %c0_4 = arith.constant 0 : index
    %3 = vector.load %arg2[%c0_3, %c0_4] : memref<1x64xf32, #tpu.memory_space<vmem>>, vector<1x64xf32>
    %4 = vector.broadcast %3 : vector<1x64xf32> to vector<16x64xf32>
    %5 = arith.addf %2, %4 : vector<16x64xf32>
    %cst_5 = arith.constant 0.000000e+00 : f32
    %6 = vector.broadcast %cst_5 : f32 to vector<16x64xf32>
    %7 = arith.maximumf %5, %6 : vector<16x64xf32>
    %c0_6 = arith.constant 0 : index
    %c0_7 = arith.constant 0 : index
    %8 = vector.load %arg3[%c0_6, %c0_7] : memref<64x512xf32, #tpu.memory_space<vmem>>, vector<64x512xf32>
    %cst_8 = arith.constant dense<0.000000e+00> : vector<16x512xf32>
    %9 = tpu.matmul %7, %8, %cst_8 {dimension_numbers = #tpu.dot_dimension_numbers<[1], [0], [0], [1], [0, 0, 1, 1], [], []>} : vector<16x64xf32>, vector<64x512xf32>, vector<16x512xf32> -> vector<16x512xf32>
    %c0_9 = arith.constant 0 : index
    %c0_10 = arith.constant 0 : index
    %10 = vector.load %arg4[%c0_9, %c0_10] : memref<1x512xf32, #tpu.memory_space<vmem>>, vector<1x512xf32>
    %11 = vector.broadcast %10 : vector<1x512xf32> to vector<16x512xf32>
    %12 = arith.addf %9, %11 : vector<16x512xf32>
    %c0_11 = arith.constant 0 : index
    %c0_12 = arith.constant 0 : index
    %13 = vector.load %arg18[%c0_11, %c0_12] : memref<16x512xf32, #tpu.memory_space<vmem>>, vector<16x512xf32>
    tpu.vector_store %arg18[%c0_11, %c0_12], %12 {strides = array<i32>} : memref<16x512xf32, #tpu.memory_space<vmem>>, vector<16x512xf32>,
    %cst_13 = arith.constant 0.000000e+00 : f32
    %14 = vector.broadcast %cst_13 : f32 to vector<4x64xf32>
    %cst_14 = arith.constant 0.000000e+00 : f32
    %15 = vector.broadcast %cst_14 : f32 to vector<4x64xf32>
    %c0_15 = arith.constant 0 : index
    %c0_16 = arith.constant 0 : index
    %16 = vector.load %arg5[%c0_15, %c0_16] : memref<64x512xf32, #tpu.memory_space<vmem>>, vector<64x512xf32>
    %cst_17 = arith.constant dense<0.000000e+00> : vector<4x512xf32>
    %17 = tpu.matmul %14, %16, %cst_17 {dimension_numbers = #tpu.dot_dimension_numbers<[1], [0], [0], [1], [0, 0, 1, 1], [], []>} : vector<4x64xf32>, vector<64x512xf32>, vector<4x512xf32> -> vector<4x512xf32>
    %c0_18 = arith.constant 0 : index
    %c0_19 = arith.constant 0 : index
    %18 = vector.load %arg18[%c0_18, %c0_19] : memref<16x512xf32, #tpu.memory_space<vmem>>, vector<2x256xf32>
    %19 = vector.extract_strided_slice %17 {offsets = [0, 0], sizes = [2, 256], strides = [1, 1]} : vector<4x512xf32> to vector<2x256xf32>
    %20 = arith.addf %18, %19 : vector<2x256xf32>
    %c14 = arith.constant 14 : index
    %c256 = arith.constant 256 : index
    %21 = vector.load %arg18[%c14, %c256] : memref<16x512xf32, #tpu.memory_space<vmem>>, vector<2x256xf32>
    %22 = vector.extract_strided_slice %17 {offsets = [2, 256], sizes = [2, 256], strides = [1, 1]} : vector<4x512xf32> to vector<2x256xf32>
    %23 = arith.addf %21, %22 : vector<2x256xf32>
    %24 = tpu.concatenate %20, %23 in 0 : vector<2x256xf32>, vector<2x256xf32> -> vector<4x256xf32>
    %25 = vector.extract_strided_slice %24 {offsets = [0, 0], sizes = [4, 64], strides = [1, 1]} : vector<4x256xf32> to vector<4x64xf32>
    %26 = arith.negf %25 : vector<4x64xf32>
    %27 = math.exp %26 : vector<4x64xf32>
    %cst_20 = arith.constant 1.000000e+00 : f32
    %28 = vector.broadcast %cst_20 : f32 to vector<4x64xf32>
    %29 = arith.addf %28, %27 : vector<4x64xf32>
    %30 = arith.divf %28, %29 : vector<4x64xf32>
    %31 = vector.extract_strided_slice %24 {offsets = [0, 64], sizes = [4, 64], strides = [1, 1]} : vector<4x256xf32> to vector<4x64xf32>
    %32 = arith.negf %31 : vector<4x64xf32>
    %33 = math.exp %32 : vector<4x64xf32>
    %cst_21 = arith.constant 1.000000e+00 : f32
    %34 = vector.broadcast %cst_21 : f32 to vector<4x64xf32>
    %35 = arith.addf %34, %33 : vector<4x64xf32>
    %36 = arith.divf %34, %35 : vector<4x64xf32>
    %37 = vector.extract_strided_slice %24 {offsets = [0, 128], sizes = [4, 64], strides = [1, 1]} : vector<4x256xf32> to vector<4x64xf32>
    %38 = math.tanh %37 : vector<4x64xf32>
    %39 = vector.extract_strided_slice %24 {offsets = [0, 192], sizes = [4, 64], strides = [1, 1]} : vector<4x256xf32> to vector<4x64xf32>
    %40 = arith.negf %39 : vector<4x64xf32>
    %41 = math.exp %40 : vector<4x64xf32>
    %cst_22 = arith.constant 1.000000e+00 : f32
    %42 = vector.broadcast %cst_22 : f32 to vector<4x64xf32>
    %43 = arith.addf %42, %41 : vector<4x64xf32>
    %44 = arith.divf %42, %43 : vector<4x64xf32>
    %45 = arith.mulf %36, %15 : vector<4x64xf32>
    %46 = arith.mulf %30, %38 : vector<4x64xf32>
    %47 = arith.addf %45, %46 : vector<4x64xf32>
    %48 = math.tanh %47 : vector<4x64xf32>
    %49 = arith.mulf %44, %48 : vector<4x64xf32>
    %50 = vector.extract_strided_slice %49 {offsets = [0, 0], sizes = [2, 64], strides = [1, 1]} : vector<4x64xf32> to vector<2x64xf32>
    %c0_23 = arith.constant 0 : index
    %c0_24 = arith.constant 0 : index
    %c0_25 = arith.constant 0 : index
    %51 = vector.load %arg16[%c0_23, %c0_24, %c0_25] : memref<8x2x64xf32, #tpu.memory_space<vmem>>, vector<1x2x64xf32>
    %52 = vector.shape_cast %51 : vector<1x2x64xf32> to vector<2x64xf32>
    %53 = vector.shape_cast %50 : vector<2x64xf32> to vector<1x2x64xf32>
    tpu.vector_store %arg16[%c0_23, %c0_24, %c0_25], %53 {strides = array<i32>} : memref<8x2x64xf32, #tpu.memory_space<vmem>>, vector<1x2x64xf32>,
    %54 = vector.extract_strided_slice %49 {offsets = [2, 0], sizes = [2, 64], strides = [1, 1]} : vector<4x64xf32> to vector<2x64xf32>
    %c7 = arith.constant 7 : index
    %c0_26 = arith.constant 0 : index
    %c0_27 = arith.constant 0 : index
    %55 = vector.load %arg17[%c7, %c0_26, %c0_27] : memref<8x2x64xf32, #tpu.memory_space<vmem>>, vector<1x2x64xf32>
    %56 = vector.shape_cast %55 : vector<1x2x64xf32> to vector<2x64xf32>
    %57 = vector.shape_cast %54 : vector<2x64xf32> to vector<1x2x64xf32>
    tpu.vector_store %arg17[%c7, %c0_26, %c0_27], %57 {strides = array<i32>} : memref<8x2x64xf32, #tpu.memory_space<vmem>>, vector<1x2x64xf32>,
    %c0_28 = arith.constant 0 : index
    %c0_29 = arith.constant 0 : index
    %58 = vector.load %arg5[%c0_28, %c0_29] : memref<64x512xf32, #tpu.memory_space<vmem>>, vector<64x512xf32>
    %cst_30 = arith.constant dense<0.000000e+00> : vector<4x512xf32>
    %59 = tpu.matmul %49, %58, %cst_30 {dimension_numbers = #tpu.dot_dimension_numbers<[1], [0], [0], [1], [0, 0, 1, 1], [], []>} : vector<4x64xf32>, vector<64x512xf32>, vector<4x512xf32> -> vector<4x512xf32>
    %c2 = arith.constant 2 : index
    %c0_31 = arith.constant 0 : index
    %60 = vector.load %arg18[%c2, %c0_31] : memref<16x512xf32, #tpu.memory_space<vmem>>, vector<2x256xf32>
    %61 = vector.extract_strided_slice %59 {offsets = [0, 0], sizes = [2, 256], strides = [1, 1]} : vector<4x512xf32> to vector<2x256xf32>
    %62 = arith.addf %60, %61 : vector<2x256xf32>
    %c12 = arith.constant 12 : index
    %c256_32 = arith.constant 256 : index
    %63 = vector.load %arg18[%c12, %c256_32] : memref<16x512xf32, #tpu.memory_space<vmem>>, vector<2x256xf32>
    %64 = vector.extract_strided_slice %59 {offsets = [2, 256], sizes = [2, 256], strides = [1, 1]} : vector<4x512xf32> to vector<2x256xf32>
    %65 = arith.addf %63, %64 : vector<2x256xf32>
    %66 = tpu.concatenate %62, %65 in 0 : vector<2x256xf32>, vector<2x256xf32> -> vector<4x256xf32>
    %67 = vector.extract_strided_slice %66 {offsets = [0, 0], sizes = [4, 64], strides = [1, 1]} : vector<4x256xf32> to vector<4x64xf32>
    %68 = arith.negf %67 : vector<4x64xf32>
    %69 = math.exp %68 : vector<4x64xf32>
    %cst_33 = arith.constant 1.000000e+00 : f32
    %70 = vector.broadcast %cst_33 : f32 to vector<4x64xf32>
    %71 = arith.addf %70, %69 : vector<4x64xf32>
    %72 = arith.divf %70, %71 : vector<4x64xf32>
    %73 = vector.extract_strided_slice %66 {offsets = [0, 64], sizes = [4, 64], strides = [1, 1]} : vector<4x256xf32> to vector<4x64xf32>
    %74 = arith.negf %73 : vector<4x64xf32>
    %75 = math.exp %74 : vector<4x64xf32>
    %cst_34 = arith.constant 1.000000e+00 : f32
    %76 = vector.broadcast %cst_34 : f32 to vector<4x64xf32>
    %77 = arith.addf %76, %75 : vector<4x64xf32>
    %78 = arith.divf %76, %77 : vector<4x64xf32>
    %79 = vector.extract_strided_slice %66 {offsets = [0, 128], sizes = [4, 64], strides = [1, 1]} : vector<4x256xf32> to vector<4x64xf32>
    %80 = math.tanh %79 : vector<4x64xf32>
    %81 = vector.extract_strided_slice %66 {offsets = [0, 192], sizes = [4, 64], strides = [1, 1]} : vector<4x256xf32> to vector<4x64xf32>
    %82 = arith.negf %81 : vector<4x64xf32>
    %83 = math.exp %82 : vector<4x64xf32>
    %cst_35 = arith.constant 1.000000e+00 : f32
    %84 = vector.broadcast %cst_35 : f32 to vector<4x64xf32>
    %85 = arith.addf %84, %83 : vector<4x64xf32>
    %86 = arith.divf %84, %85 : vector<4x64xf32>
    %87 = arith.mulf %78, %47 : vector<4x64xf32>
    %88 = arith.mulf %72, %80 : vector<4x64xf32>
    %89 = arith.addf %87, %88 : vector<4x64xf32>
    %90 = math.tanh %89 : vector<4x64xf32>
    %91 = arith.mulf %86, %90 : vector<4x64xf32>
    %92 = vector.extract_strided_slice %91 {offsets = [0, 0], sizes = [2, 64], strides = [1, 1]} : vector<4x64xf32> to vector<2x64xf32>
    %c1 = arith.constant 1 : index
    %c0_36 = arith.constant 0 : index
    %c0_37 = arith.constant 0 : index
    %93 = vector.load %arg16[%c1, %c0_36, %c0_37] : memref<8x2x64xf32, #tpu.memory_space<vmem>>, vector<1x2x64xf32>
    %94 = vector.shape_cast %93 : vector<1x2x64xf32> to vector<2x64xf32>
    %95 = vector.shape_cast %92 : vector<2x64xf32> to vector<1x2x64xf32>
    tpu.vector_store %arg16[%c1, %c0_36, %c0_37], %95 {strides = array<i32>} : memref<8x2x64xf32, #tpu.memory_space<vmem>>, vector<1x2x64xf32>,
    %96 = vector.extract_strided_slice %91 {offsets = [2, 0], sizes = [2, 64], strides = [1, 1]} : vector<4x64xf32> to vector<2x64xf32>
    %c6 = arith.constant 6 : index
    %c0_38 = arith.constant 0 : index
    %c0_39 = arith.constant 0 : index
    %97 = vector.load %arg17[%c6, %c0_38, %c0_39] : memref<8x2x64xf32, #tpu.memory_space<vmem>>, vector<1x2x64xf32>
    %98 = vector.shape_cast %97 : vector<1x2x64xf32> to vector<2x64xf32>
    %99 = vector.shape_cast %96 : vector<2x64xf32> to vector<1x2x64xf32>
    tpu.vector_store %arg17[%c6, %c0_38, %c0_39], %99 {strides = array<i32>} : memref<8x2x64xf32, #tpu.memory_space<vmem>>, vector<1x2x64xf32>,
    %c0_40 = arith.constant 0 : index
    %c0_41 = arith.constant 0 : index
    %100 = vector.load %arg5[%c0_40, %c0_41] : memref<64x512xf32, #tpu.memory_space<vmem>>, vector<64x512xf32>
    %cst_42 = arith.constant dense<0.000000e+00> : vector<4x512xf32>
    %101 = tpu.matmul %91, %100, %cst_42 {dimension_numbers = #tpu.dot_dimension_numbers<[1], [0], [0], [1], [0, 0, 1, 1], [], []>} : vector<4x64xf32>, vector<64x512xf32>, vector<4x512xf32> -> vector<4x512xf32>
    %c4 = arith.constant 4 : index
    %c0_43 = arith.constant 0 : index
    %102 = vector.load %arg18[%c4, %c0_43] : memref<16x512xf32, #tpu.memory_space<vmem>>, vector<2x256xf32>
    %103 = vector.extract_strided_slice %101 {offsets = [0, 0], sizes = [2, 256], strides = [1, 1]} : vector<4x512xf32> to vector<2x256xf32>
    %104 = arith.addf %102, %103 : vector<2x256xf32>
    %c10 = arith.constant 10 : index
    %c256_44 = arith.constant 256 : index
    %105 = vector.load %arg18[%c10, %c256_44] : memref<16x512xf32, #tpu.memory_space<vmem>>, vector<2x256xf32>
    %106 = vector.extract_strided_slice %101 {offsets = [2, 256], sizes = [2, 256], strides = [1, 1]} : vector<4x512xf32> to vector<2x256xf32>
    %107 = arith.addf %105, %106 : vector<2x256xf32>
    %108 = tpu.concatenate %104, %107 in 0 : vector<2x256xf32>, vector<2x256xf32> -> vector<4x256xf32>
    %109 = vector.extract_strided_slice %108 {offsets = [0, 0], sizes = [4, 64], strides = [1, 1]} : vector<4x256xf32> to vector<4x64xf32>
    %110 = arith.negf %109 : vector<4x64xf32>
    %111 = math.exp %110 : vector<4x64xf32>
    %cst_45 = arith.constant 1.000000e+00 : f32
    %112 = vector.broadcast %cst_45 : f32 to vector<4x64xf32>
    %113 = arith.addf %112, %111 : vector<4x64xf32>
    %114 = arith.divf %112, %113 : vector<4x64xf32>
    %115 = vector.extract_strided_slice %108 {offsets = [0, 64], sizes = [4, 64], strides = [1, 1]} : vector<4x256xf32> to vector<4x64xf32>
    %116 = arith.negf %115 : vector<4x64xf32>
    %117 = math.exp %116 : vector<4x64xf32>
    %cst_46 = arith.constant 1.000000e+00 : f32
    %118 = vector.broadcast %cst_46 : f32 to vector<4x64xf32>
    %119 = arith.addf %118, %117 : vector<4x64xf32>
    %120 = arith.divf %118, %119 : vector<4x64xf32>
    %121 = vector.extract_strided_slice %108 {offsets = [0, 128], sizes = [4, 64], strides = [1, 1]} : vector<4x256xf32> to vector<4x64xf32>
    %122 = math.tanh %121 : vector<4x64xf32>
    %123 = vector.extract_strided_slice %108 {offsets = [0, 192], sizes = [4, 64], strides = [1, 1]} : vector<4x256xf32> to vector<4x64xf32>
    %124 = arith.negf %123 : vector<4x64xf32>
    %125 = math.exp %124 : vector<4x64xf32>
    %cst_47 = arith.constant 1.000000e+00 : f32
    %126 = vector.broadcast %cst_47 : f32 to vector<4x64xf32>
    %127 = arith.addf %126, %125 : vector<4x64xf32>
    %128 = arith.divf %126, %127 : vector<4x64xf32>
    %129 = arith.mulf %120, %89 : vector<4x64xf32>
    %130 = arith.mulf %114, %122 : vector<4x64xf32>
    %131 = arith.addf %129, %130 : vector<4x64xf32>
    %132 = math.tanh %131 : vector<4x64xf32>
    %133 = arith.mulf %128, %132 : vector<4x64xf32>
    %134 = vector.extract_strided_slice %133 {offsets = [0, 0], sizes = [2, 64], strides = [1, 1]} : vector<4x64xf32> to vector<2x64xf32>
    %c2_48 = arith.constant 2 : index
    %c0_49 = arith.constant 0 : index
    %c0_50 = arith.constant 0 : index
    %135 = vector.load %arg16[%c2_48, %c0_49, %c0_50] : memref<8x2x64xf32, #tpu.memory_space<vmem>>, vector<1x2x64xf32>
    %136 = vector.shape_cast %135 : vector<1x2x64xf32> to vector<2x64xf32>
    %137 = vector.shape_cast %134 : vector<2x64xf32> to vector<1x2x64xf32>
    tpu.vector_store %arg16[%c2_48, %c0_49, %c0_50], %137 {strides = array<i32>} : memref<8x2x64xf32, #tpu.memory_space<vmem>>, vector<1x2x64xf32>,
    %138 = vector.extract_strided_slice %133 {offsets = [2, 0], sizes = [2, 64], strides = [1, 1]} : vector<4x64xf32> to vector<2x64xf32>
    %c5 = arith.constant 5 : index
    %c0_51 = arith.constant 0 : index
    %c0_52 = arith.constant 0 : index
    %139 = vector.load %arg17[%c5, %c0_51, %c0_52] : memref<8x2x64xf32, #tpu.memory_space<vmem>>, vector<1x2x64xf32>
    %140 = vector.shape_cast %139 : vector<1x2x64xf32> to vector<2x64xf32>
    %141 = vector.shape_cast %138 : vector<2x64xf32> to vector<1x2x64xf32>
    tpu.vector_store %arg17[%c5, %c0_51, %c0_52], %141 {strides = array<i32>} : memref<8x2x64xf32, #tpu.memory_space<vmem>>, vector<1x2x64xf32>,
    %c0_53 = arith.constant 0 : index
    %c0_54 = arith.constant 0 : index
    %142 = vector.load %arg5[%c0_53, %c0_54] : memref<64x512xf32, #tpu.memory_space<vmem>>, vector<64x512xf32>
    %cst_55 = arith.constant dense<0.000000e+00> : vector<4x512xf32>
    %143 = tpu.matmul %133, %142, %cst_55 {dimension_numbers = #tpu.dot_dimension_numbers<[1], [0], [0], [1], [0, 0, 1, 1], [], []>} : vector<4x64xf32>, vector<64x512xf32>, vector<4x512xf32> -> vector<4x512xf32>
    %c6_56 = arith.constant 6 : index
    %c0_57 = arith.constant 0 : index
    %144 = vector.load %arg18[%c6_56, %c0_57] : memref<16x512xf32, #tpu.memory_space<vmem>>, vector<2x256xf32>
    %145 = vector.extract_strided_slice %143 {offsets = [0, 0], sizes = [2, 256], strides = [1, 1]} : vector<4x512xf32> to vector<2x256xf32>
    %146 = arith.addf %144, %145 : vector<2x256xf32>
    %c8 = arith.constant 8 : index
    %c256_58 = arith.constant 256 : index
    %147 = vector.load %arg18[%c8, %c256_58] : memref<16x512xf32, #tpu.memory_space<vmem>>, vector<2x256xf32>
    %148 = vector.extract_strided_slice %143 {offsets = [2, 256], sizes = [2, 256], strides = [1, 1]} : vector<4x512xf32> to vector<2x256xf32>
    %149 = arith.addf %147, %148 : vector<2x256xf32>
    %150 = tpu.concatenate %146, %149 in 0 : vector<2x256xf32>, vector<2x256xf32> -> vector<4x256xf32>
    %151 = vector.extract_strided_slice %150 {offsets = [0, 0], sizes = [4, 64], strides = [1, 1]} : vector<4x256xf32> to vector<4x64xf32>
    %152 = arith.negf %151 : vector<4x64xf32>
    %153 = math.exp %152 : vector<4x64xf32>
    %cst_59 = arith.constant 1.000000e+00 : f32
    %154 = vector.broadcast %cst_59 : f32 to vector<4x64xf32>
    %155 = arith.addf %154, %153 : vector<4x64xf32>
    %156 = arith.divf %154, %155 : vector<4x64xf32>
    %157 = vector.extract_strided_slice %150 {offsets = [0, 64], sizes = [4, 64], strides = [1, 1]} : vector<4x256xf32> to vector<4x64xf32>
    %158 = arith.negf %157 : vector<4x64xf32>
    %159 = math.exp %158 : vector<4x64xf32>
    %cst_60 = arith.constant 1.000000e+00 : f32
    %160 = vector.broadcast %cst_60 : f32 to vector<4x64xf32>
    %161 = arith.addf %160, %159 : vector<4x64xf32>
    %162 = arith.divf %160, %161 : vector<4x64xf32>
    %163 = vector.extract_strided_slice %150 {offsets = [0, 128], sizes = [4, 64], strides = [1, 1]} : vector<4x256xf32> to vector<4x64xf32>
    %164 = math.tanh %163 : vector<4x64xf32>
    %165 = vector.extract_strided_slice %150 {offsets = [0, 192], sizes = [4, 64], strides = [1, 1]} : vector<4x256xf32> to vector<4x64xf32>
    %166 = arith.negf %165 : vector<4x64xf32>
    %167 = math.exp %166 : vector<4x64xf32>
    %cst_61 = arith.constant 1.000000e+00 : f32
    %168 = vector.broadcast %cst_61 : f32 to vector<4x64xf32>
    %169 = arith.addf %168, %167 : vector<4x64xf32>
    %170 = arith.divf %168, %169 : vector<4x64xf32>
    %171 = arith.mulf %162, %131 : vector<4x64xf32>
    %172 = arith.mulf %156, %164 : vector<4x64xf32>
    %173 = arith.addf %171, %172 : vector<4x64xf32>
    %174 = math.tanh %173 : vector<4x64xf32>
    %175 = arith.mulf %170, %174 : vector<4x64xf32>
    %176 = vector.extract_strided_slice %175 {offsets = [0, 0], sizes = [2, 64], strides = [1, 1]} : vector<4x64xf32> to vector<2x64xf32>
    %c3 = arith.constant 3 : index
    %c0_62 = arith.constant 0 : index
    %c0_63 = arith.constant 0 : index
    %177 = vector.load %arg16[%c3, %c0_62, %c0_63] : memref<8x2x64xf32, #tpu.memory_space<vmem>>, vector<1x2x64xf32>
    %178 = vector.shape_cast %177 : vector<1x2x64xf32> to vector<2x64xf32>
    %179 = vector.shape_cast %176 : vector<2x64xf32> to vector<1x2x64xf32>
    tpu.vector_store %arg16[%c3, %c0_62, %c0_63], %179 {strides = array<i32>} : memref<8x2x64xf32, #tpu.memory_space<vmem>>, vector<1x2x64xf32>,
    %180 = vector.extract_strided_slice %175 {offsets = [2, 0], sizes = [2, 64], strides = [1, 1]} : vector<4x64xf32> to vector<2x64xf32>
    %c4_64 = arith.constant 4 : index
    %c0_65 = arith.constant 0 : index
    %c0_66 = arith.constant 0 : index
    %181 = vector.load %arg17[%c4_64, %c0_65, %c0_66] : memref<8x2x64xf32, #tpu.memory_space<vmem>>, vector<1x2x64xf32>
    %182 = vector.shape_cast %181 : vector<1x2x64xf32> to vector<2x64xf32>
    %183 = vector.shape_cast %180 : vector<2x64xf32> to vector<1x2x64xf32>
    tpu.vector_store %arg17[%c4_64, %c0_65, %c0_66], %183 {strides = array<i32>} : memref<8x2x64xf32, #tpu.memory_space<vmem>>, vector<1x2x64xf32>,
    %c0_67 = arith.constant 0 : index
    %c0_68 = arith.constant 0 : index
    %184 = vector.load %arg5[%c0_67, %c0_68] : memref<64x512xf32, #tpu.memory_space<vmem>>, vector<64x512xf32>
    %cst_69 = arith.constant dense<0.000000e+00> : vector<4x512xf32>
    %185 = tpu.matmul %175, %184, %cst_69 {dimension_numbers = #tpu.dot_dimension_numbers<[1], [0], [0], [1], [0, 0, 1, 1], [], []>} : vector<4x64xf32>, vector<64x512xf32>, vector<4x512xf32> -> vector<4x512xf32>
    %c8_70 = arith.constant 8 : index
    %c0_71 = arith.constant 0 : index
    %186 = vector.load %arg18[%c8_70, %c0_71] : memref<16x512xf32, #tpu.memory_space<vmem>>, vector<2x256xf32>
    %187 = vector.extract_strided_slice %185 {offsets = [0, 0], sizes = [2, 256], strides = [1, 1]} : vector<4x512xf32> to vector<2x256xf32>
    %188 = arith.addf %186, %187 : vector<2x256xf32>
    %c6_72 = arith.constant 6 : index
    %c256_73 = arith.constant 256 : index
    %189 = vector.load %arg18[%c6_72, %c256_73] : memref<16x512xf32, #tpu.memory_space<vmem>>, vector<2x256xf32>
    %190 = vector.extract_strided_slice %185 {offsets = [2, 256], sizes = [2, 256], strides = [1, 1]} : vector<4x512xf32> to vector<2x256xf32>
    %191 = arith.addf %189, %190 : vector<2x256xf32>
    %192 = tpu.concatenate %188, %191 in 0 : vector<2x256xf32>, vector<2x256xf32> -> vector<4x256xf32>
    %193 = vector.extract_strided_slice %192 {offsets = [0, 0], sizes = [4, 64], strides = [1, 1]} : vector<4x256xf32> to vector<4x64xf32>
    %194 = arith.negf %193 : vector<4x64xf32>
    %195 = math.exp %194 : vector<4x64xf32>
    %cst_74 = arith.constant 1.000000e+00 : f32
    %196 = vector.broadcast %cst_74 : f32 to vector<4x64xf32>
    %197 = arith.addf %196, %195 : vector<4x64xf32>
    %198 = arith.divf %196, %197 : vector<4x64xf32>
    %199 = vector.extract_strided_slice %192 {offsets = [0, 64], sizes = [4, 64], strides = [1, 1]} : vector<4x256xf32> to vector<4x64xf32>
    %200 = arith.negf %199 : vector<4x64xf32>
    %201 = math.exp %200 : vector<4x64xf32>
    %cst_75 = arith.constant 1.000000e+00 : f32
    %202 = vector.broadcast %cst_75 : f32 to vector<4x64xf32>
    %203 = arith.addf %202, %201 : vector<4x64xf32>
    %204 = arith.divf %202, %203 : vector<4x64xf32>
    %205 = vector.extract_strided_slice %192 {offsets = [0, 128], sizes = [4, 64], strides = [1, 1]} : vector<4x256xf32> to vector<4x64xf32>
    %206 = math.tanh %205 : vector<4x64xf32>
    %207 = vector.extract_strided_slice %192 {offsets = [0, 192], sizes = [4, 64], strides = [1, 1]} : vector<4x256xf32> to vector<4x64xf32>
    %208 = arith.negf %207 : vector<4x64xf32>
    %209 = math.exp %208 : vector<4x64xf32>
    %cst_76 = arith.constant 1.000000e+00 : f32
    %210 = vector.broadcast %cst_76 : f32 to vector<4x64xf32>
    %211 = arith.addf %210, %209 : vector<4x64xf32>
    %212 = arith.divf %210, %211 : vector<4x64xf32>
    %213 = arith.mulf %204, %173 : vector<4x64xf32>
    %214 = arith.mulf %198, %206 : vector<4x64xf32>
    %215 = arith.addf %213, %214 : vector<4x64xf32>
    %216 = math.tanh %215 : vector<4x64xf32>
    %217 = arith.mulf %212, %216 : vector<4x64xf32>
    %218 = vector.extract_strided_slice %217 {offsets = [0, 0], sizes = [2, 64], strides = [1, 1]} : vector<4x64xf32> to vector<2x64xf32>
    %c4_77 = arith.constant 4 : index
    %c0_78 = arith.constant 0 : index
    %c0_79 = arith.constant 0 : index
    %219 = vector.load %arg16[%c4_77, %c0_78, %c0_79] : memref<8x2x64xf32, #tpu.memory_space<vmem>>, vector<1x2x64xf32>
    %220 = vector.shape_cast %219 : vector<1x2x64xf32> to vector<2x64xf32>
    %221 = vector.shape_cast %218 : vector<2x64xf32> to vector<1x2x64xf32>
    tpu.vector_store %arg16[%c4_77, %c0_78, %c0_79], %221 {strides = array<i32>} : memref<8x2x64xf32, #tpu.memory_space<vmem>>, vector<1x2x64xf32>,
    %222 = vector.extract_strided_slice %217 {offsets = [2, 0], sizes = [2, 64], strides = [1, 1]} : vector<4x64xf32> to vector<2x64xf32>
    %c3_80 = arith.constant 3 : index
    %c0_81 = arith.constant 0 : index
    %c0_82 = arith.constant 0 : index
    %223 = vector.load %arg17[%c3_80, %c0_81, %c0_82] : memref<8x2x64xf32, #tpu.memory_space<vmem>>, vector<1x2x64xf32>
    %224 = vector.shape_cast %223 : vector<1x2x64xf32> to vector<2x64xf32>
    %225 = vector.shape_cast %222 : vector<2x64xf32> to vector<1x2x64xf32>
    tpu.vector_store %arg17[%c3_80, %c0_81, %c0_82], %225 {strides = array<i32>} : memref<8x2x64xf32, #tpu.memory_space<vmem>>, vector<1x2x64xf32>,
    %c0_83 = arith.constant 0 : index
    %c0_84 = arith.constant 0 : index
    %226 = vector.load %arg5[%c0_83, %c0_84] : memref<64x512xf32, #tpu.memory_space<vmem>>, vector<64x512xf32>
    %cst_85 = arith.constant dense<0.000000e+00> : vector<4x512xf32>
    %227 = tpu.matmul %217, %226, %cst_85 {dimension_numbers = #tpu.dot_dimension_numbers<[1], [0], [0], [1], [0, 0, 1, 1], [], []>} : vector<4x64xf32>, vector<64x512xf32>, vector<4x512xf32> -> vector<4x512xf32>
    %c10_86 = arith.constant 10 : index
    %c0_87 = arith.constant 0 : index
    %228 = vector.load %arg18[%c10_86, %c0_87] : memref<16x512xf32, #tpu.memory_space<vmem>>, vector<2x256xf32>
    %229 = vector.extract_strided_slice %227 {offsets = [0, 0], sizes = [2, 256], strides = [1, 1]} : vector<4x512xf32> to vector<2x256xf32>
    %230 = arith.addf %228, %229 : vector<2x256xf32>
    %c4_88 = arith.constant 4 : index
    %c256_89 = arith.constant 256 : index
    %231 = vector.load %arg18[%c4_88, %c256_89] : memref<16x512xf32, #tpu.memory_space<vmem>>, vector<2x256xf32>
    %232 = vector.extract_strided_slice %227 {offsets = [2, 256], sizes = [2, 256], strides = [1, 1]} : vector<4x512xf32> to vector<2x256xf32>
    %233 = arith.addf %231, %232 : vector<2x256xf32>
    %234 = tpu.concatenate %230, %233 in 0 : vector<2x256xf32>, vector<2x256xf32> -> vector<4x256xf32>
    %235 = vector.extract_strided_slice %234 {offsets = [0, 0], sizes = [4, 64], strides = [1, 1]} : vector<4x256xf32> to vector<4x64xf32>
    %236 = arith.negf %235 : vector<4x64xf32>
    %237 = math.exp %236 : vector<4x64xf32>
    %cst_90 = arith.constant 1.000000e+00 : f32
    %238 = vector.broadcast %cst_90 : f32 to vector<4x64xf32>
    %239 = arith.addf %238, %237 : vector<4x64xf32>
    %240 = arith.divf %238, %239 : vector<4x64xf32>
    %241 = vector.extract_strided_slice %234 {offsets = [0, 64], sizes = [4, 64], strides = [1, 1]} : vector<4x256xf32> to vector<4x64xf32>
    %242 = arith.negf %241 : vector<4x64xf32>
    %243 = math.exp %242 : vector<4x64xf32>
    %cst_91 = arith.constant 1.000000e+00 : f32
    %244 = vector.broadcast %cst_91 : f32 to vector<4x64xf32>
    %245 = arith.addf %244, %243 : vector<4x64xf32>
    %246 = arith.divf %244, %245 : vector<4x64xf32>
    %247 = vector.extract_strided_slice %234 {offsets = [0, 128], sizes = [4, 64], strides = [1, 1]} : vector<4x256xf32> to vector<4x64xf32>
    %248 = math.tanh %247 : vector<4x64xf32>
    %249 = vector.extract_strided_slice %234 {offsets = [0, 192], sizes = [4, 64], strides = [1, 1]} : vector<4x256xf32> to vector<4x64xf32>
    %250 = arith.negf %249 : vector<4x64xf32>
    %251 = math.exp %250 : vector<4x64xf32>
    %cst_92 = arith.constant 1.000000e+00 : f32
    %252 = vector.broadcast %cst_92 : f32 to vector<4x64xf32>
    %253 = arith.addf %252, %251 : vector<4x64xf32>
    %254 = arith.divf %252, %253 : vector<4x64xf32>
    %255 = arith.mulf %246, %215 : vector<4x64xf32>
    %256 = arith.mulf %240, %248 : vector<4x64xf32>
    %257 = arith.addf %255, %256 : vector<4x64xf32>
    %258 = math.tanh %257 : vector<4x64xf32>
    %259 = arith.mulf %254, %258 : vector<4x64xf32>
    %260 = vector.extract_strided_slice %259 {offsets = [0, 0], sizes = [2, 64], strides = [1, 1]} : vector<4x64xf32> to vector<2x64xf32>
    %c5_93 = arith.constant 5 : index
    %c0_94 = arith.constant 0 : index
    %c0_95 = arith.constant 0 : index
    %261 = vector.load %arg16[%c5_93, %c0_94, %c0_95] : memref<8x2x64xf32, #tpu.memory_space<vmem>>, vector<1x2x64xf32>
    %262 = vector.shape_cast %261 : vector<1x2x64xf32> to vector<2x64xf32>
    %263 = vector.shape_cast %260 : vector<2x64xf32> to vector<1x2x64xf32>
    tpu.vector_store %arg16[%c5_93, %c0_94, %c0_95], %263 {strides = array<i32>} : memref<8x2x64xf32, #tpu.memory_space<vmem>>, vector<1x2x64xf32>,
    %264 = vector.extract_strided_slice %259 {offsets = [2, 0], sizes = [2, 64], strides = [1, 1]} : vector<4x64xf32> to vector<2x64xf32>
    %c2_96 = arith.constant 2 : index
    %c0_97 = arith.constant 0 : index
    %c0_98 = arith.constant 0 : index
    %265 = vector.load %arg17[%c2_96, %c0_97, %c0_98] : memref<8x2x64xf32, #tpu.memory_space<vmem>>, vector<1x2x64xf32>
    %266 = vector.shape_cast %265 : vector<1x2x64xf32> to vector<2x64xf32>
    %267 = vector.shape_cast %264 : vector<2x64xf32> to vector<1x2x64xf32>
    tpu.vector_store %arg17[%c2_96, %c0_97, %c0_98], %267 {strides = array<i32>} : memref<8x2x64xf32, #tpu.memory_space<vmem>>, vector<1x2x64xf32>,
    %c0_99 = arith.constant 0 : index
    %c0_100 = arith.constant 0 : index
    %268 = vector.load %arg5[%c0_99, %c0_100] : memref<64x512xf32, #tpu.memory_space<vmem>>, vector<64x512xf32>
    %cst_101 = arith.constant dense<0.000000e+00> : vector<4x512xf32>
    %269 = tpu.matmul %259, %268, %cst_101 {dimension_numbers = #tpu.dot_dimension_numbers<[1], [0], [0], [1], [0, 0, 1, 1], [], []>} : vector<4x64xf32>, vector<64x512xf32>, vector<4x512xf32> -> vector<4x512xf32>
    %c12_102 = arith.constant 12 : index
    %c0_103 = arith.constant 0 : index
    %270 = vector.load %arg18[%c12_102, %c0_103] : memref<16x512xf32, #tpu.memory_space<vmem>>, vector<2x256xf32>
    %271 = vector.extract_strided_slice %269 {offsets = [0, 0], sizes = [2, 256], strides = [1, 1]} : vector<4x512xf32> to vector<2x256xf32>
    %272 = arith.addf %270, %271 : vector<2x256xf32>
    %c2_104 = arith.constant 2 : index
    %c256_105 = arith.constant 256 : index
    %273 = vector.load %arg18[%c2_104, %c256_105] : memref<16x512xf32, #tpu.memory_space<vmem>>, vector<2x256xf32>
    %274 = vector.extract_strided_slice %269 {offsets = [2, 256], sizes = [2, 256], strides = [1, 1]} : vector<4x512xf32> to vector<2x256xf32>
    %275 = arith.addf %273, %274 : vector<2x256xf32>
    %276 = tpu.concatenate %272, %275 in 0 : vector<2x256xf32>, vector<2x256xf32> -> vector<4x256xf32>
    %277 = vector.extract_strided_slice %276 {offsets = [0, 0], sizes = [4, 64], strides = [1, 1]} : vector<4x256xf32> to vector<4x64xf32>
    %278 = arith.negf %277 : vector<4x64xf32>
    %279 = math.exp %278 : vector<4x64xf32>
    %cst_106 = arith.constant 1.000000e+00 : f32
    %280 = vector.broadcast %cst_106 : f32 to vector<4x64xf32>
    %281 = arith.addf %280, %279 : vector<4x64xf32>
    %282 = arith.divf %280, %281 : vector<4x64xf32>
    %283 = vector.extract_strided_slice %276 {offsets = [0, 64], sizes = [4, 64], strides = [1, 1]} : vector<4x256xf32> to vector<4x64xf32>
    %284 = arith.negf %283 : vector<4x64xf32>
    %285 = math.exp %284 : vector<4x64xf32>
    %cst_107 = arith.constant 1.000000e+00 : f32
    %286 = vector.broadcast %cst_107 : f32 to vector<4x64xf32>
    %287 = arith.addf %286, %285 : vector<4x64xf32>
    %288 = arith.divf %286, %287 : vector<4x64xf32>
    %289 = vector.extract_strided_slice %276 {offsets = [0, 128], sizes = [4, 64], strides = [1, 1]} : vector<4x256xf32> to vector<4x64xf32>
    %290 = math.tanh %289 : vector<4x64xf32>
    %291 = vector.extract_strided_slice %276 {offsets = [0, 192], sizes = [4, 64], strides = [1, 1]} : vector<4x256xf32> to vector<4x64xf32>
    %292 = arith.negf %291 : vector<4x64xf32>
    %293 = math.exp %292 : vector<4x64xf32>
    %cst_108 = arith.constant 1.000000e+00 : f32
    %294 = vector.broadcast %cst_108 : f32 to vector<4x64xf32>
    %295 = arith.addf %294, %293 : vector<4x64xf32>
    %296 = arith.divf %294, %295 : vector<4x64xf32>
    %297 = arith.mulf %288, %257 : vector<4x64xf32>
    %298 = arith.mulf %282, %290 : vector<4x64xf32>
    %299 = arith.addf %297, %298 : vector<4x64xf32>
    %300 = math.tanh %299 : vector<4x64xf32>
    %301 = arith.mulf %296, %300 : vector<4x64xf32>
    %302 = vector.extract_strided_slice %301 {offsets = [0, 0], sizes = [2, 64], strides = [1, 1]} : vector<4x64xf32> to vector<2x64xf32>
    %c6_109 = arith.constant 6 : index
    %c0_110 = arith.constant 0 : index
    %c0_111 = arith.constant 0 : index
    %303 = vector.load %arg16[%c6_109, %c0_110, %c0_111] : memref<8x2x64xf32, #tpu.memory_space<vmem>>, vector<1x2x64xf32>
    %304 = vector.shape_cast %303 : vector<1x2x64xf32> to vector<2x64xf32>
    %305 = vector.shape_cast %302 : vector<2x64xf32> to vector<1x2x64xf32>
    tpu.vector_store %arg16[%c6_109, %c0_110, %c0_111], %305 {strides = array<i32>} : memref<8x2x64xf32, #tpu.memory_space<vmem>>, vector<1x2x64xf32>,
    %306 = vector.extract_strided_slice %301 {offsets = [2, 0], sizes = [2, 64], strides = [1, 1]} : vector<4x64xf32> to vector<2x64xf32>
    %c1_112 = arith.constant 1 : index
    %c0_113 = arith.constant 0 : index
    %c0_114 = arith.constant 0 : index
    %307 = vector.load %arg17[%c1_112, %c0_113, %c0_114] : memref<8x2x64xf32, #tpu.memory_space<vmem>>, vector<1x2x64xf32>
    %308 = vector.shape_cast %307 : vector<1x2x64xf32> to vector<2x64xf32>
    %309 = vector.shape_cast %306 : vector<2x64xf32> to vector<1x2x64xf32>
    tpu.vector_store %arg17[%c1_112, %c0_113, %c0_114], %309 {strides = array<i32>} : memref<8x2x64xf32, #tpu.memory_space<vmem>>, vector<1x2x64xf32>,
    %c0_115 = arith.constant 0 : index
    %c0_116 = arith.constant 0 : index
    %310 = vector.load %arg5[%c0_115, %c0_116] : memref<64x512xf32, #tpu.memory_space<vmem>>, vector<64x512xf32>
    %cst_117 = arith.constant dense<0.000000e+00> : vector<4x512xf32>
    %311 = tpu.matmul %301, %310, %cst_117 {dimension_numbers = #tpu.dot_dimension_numbers<[1], [0], [0], [1], [0, 0, 1, 1], [], []>} : vector<4x64xf32>, vector<64x512xf32>, vector<4x512xf32> -> vector<4x512xf32>
    %c14_118 = arith.constant 14 : index
    %c0_119 = arith.constant 0 : index
    %312 = vector.load %arg18[%c14_118, %c0_119] : memref<16x512xf32, #tpu.memory_space<vmem>>, vector<2x256xf32>
    %313 = vector.extract_strided_slice %311 {offsets = [0, 0], sizes = [2, 256], strides = [1, 1]} : vector<4x512xf32> to vector<2x256xf32>
    %314 = arith.addf %312, %313 : vector<2x256xf32>
    %c0_120 = arith.constant 0 : index
    %c256_121 = arith.constant 256 : index
    %315 = vector.load %arg18[%c0_120, %c256_121] : memref<16x512xf32, #tpu.memory_space<vmem>>, vector<2x256xf32>
    %316 = vector.extract_strided_slice %311 {offsets = [2, 256], sizes = [2, 256], strides = [1, 1]} : vector<4x512xf32> to vector<2x256xf32>
    %317 = arith.addf %315, %316 : vector<2x256xf32>
    %318 = tpu.concatenate %314, %317 in 0 : vector<2x256xf32>, vector<2x256xf32> -> vector<4x256xf32>
    %319 = vector.extract_strided_slice %318 {offsets = [0, 0], sizes = [4, 64], strides = [1, 1]} : vector<4x256xf32> to vector<4x64xf32>
    %320 = arith.negf %319 : vector<4x64xf32>
    %321 = math.exp %320 : vector<4x64xf32>
    %cst_122 = arith.constant 1.000000e+00 : f32
    %322 = vector.broadcast %cst_122 : f32 to vector<4x64xf32>
    %323 = arith.addf %322, %321 : vector<4x64xf32>
    %324 = arith.divf %322, %323 : vector<4x64xf32>
    %325 = vector.extract_strided_slice %318 {offsets = [0, 64], sizes = [4, 64], strides = [1, 1]} : vector<4x256xf32> to vector<4x64xf32>
    %326 = arith.negf %325 : vector<4x64xf32>
    %327 = math.exp %326 : vector<4x64xf32>
    %cst_123 = arith.constant 1.000000e+00 : f32
    %328 = vector.broadcast %cst_123 : f32 to vector<4x64xf32>
    %329 = arith.addf %328, %327 : vector<4x64xf32>
    %330 = arith.divf %328, %329 : vector<4x64xf32>
    %331 = vector.extract_strided_slice %318 {offsets = [0, 128], sizes = [4, 64], strides = [1, 1]} : vector<4x256xf32> to vector<4x64xf32>
    %332 = math.tanh %331 : vector<4x64xf32>
    %333 = vector.extract_strided_slice %318 {offsets = [0, 192], sizes = [4, 64], strides = [1, 1]} : vector<4x256xf32> to vector<4x64xf32>
    %334 = arith.negf %333 : vector<4x64xf32>
    %335 = math.exp %334 : vector<4x64xf32>
    %cst_124 = arith.constant 1.000000e+00 : f32
    %336 = vector.broadcast %cst_124 : f32 to vector<4x64xf32>
    %337 = arith.addf %336, %335 : vector<4x64xf32>
    %338 = arith.divf %336, %337 : vector<4x64xf32>
    %339 = arith.mulf %330, %299 : vector<4x64xf32>
    %340 = arith.mulf %324, %332 : vector<4x64xf32>
    %341 = arith.addf %339, %340 : vector<4x64xf32>
    %342 = math.tanh %341 : vector<4x64xf32>
    %343 = arith.mulf %338, %342 : vector<4x64xf32>
    %344 = vector.extract_strided_slice %343 {offsets = [0, 0], sizes = [2, 64], strides = [1, 1]} : vector<4x64xf32> to vector<2x64xf32>
    %c7_125 = arith.constant 7 : index
    %c0_126 = arith.constant 0 : index
    %c0_127 = arith.constant 0 : index
    %345 = vector.load %arg16[%c7_125, %c0_126, %c0_127] : memref<8x2x64xf32, #tpu.memory_space<vmem>>, vector<1x2x64xf32>
    %346 = vector.shape_cast %345 : vector<1x2x64xf32> to vector<2x64xf32>
    %347 = vector.shape_cast %344 : vector<2x64xf32> to vector<1x2x64xf32>
    tpu.vector_store %arg16[%c7_125, %c0_126, %c0_127], %347 {strides = array<i32>} : memref<8x2x64xf32, #tpu.memory_space<vmem>>, vector<1x2x64xf32>,
    %348 = vector.extract_strided_slice %343 {offsets = [2, 0], sizes = [2, 64], strides = [1, 1]} : vector<4x64xf32> to vector<2x64xf32>
    %c0_128 = arith.constant 0 : index
    %c0_129 = arith.constant 0 : index
    %c0_130 = arith.constant 0 : index
    %349 = vector.load %arg17[%c0_128, %c0_129, %c0_130] : memref<8x2x64xf32, #tpu.memory_space<vmem>>, vector<1x2x64xf32>
    %350 = vector.shape_cast %349 : vector<1x2x64xf32> to vector<2x64xf32>
    %351 = vector.shape_cast %348 : vector<2x64xf32> to vector<1x2x64xf32>
    tpu.vector_store %arg17[%c0_128, %c0_129, %c0_130], %351 {strides = array<i32>} : memref<8x2x64xf32, #tpu.memory_space<vmem>>, vector<1x2x64xf32>,
    %c0_131 = arith.constant 0 : index
    %c0_132 = arith.constant 0 : index
    %c0_133 = arith.constant 0 : index
    %352 = vector.load %arg16[%c0_131, %c0_132, %c0_133] : memref<8x2x64xf32, #tpu.memory_space<vmem>>, vector<8x2x64xf32>
    %c0_134 = arith.constant 0 : index
    %c0_135 = arith.constant 0 : index
    %c0_136 = arith.constant 0 : index
    %353 = vector.load %arg17[%c0_134, %c0_135, %c0_136] : memref<8x2x64xf32, #tpu.memory_space<vmem>>, vector<8x2x64xf32>
    %354 = vector.extract_strided_slice %352 {offsets = [0, 0, 0], sizes = [1, 2, 64], strides = [1, 1, 1]} : vector<8x2x64xf32> to vector<1x2x64xf32>
    %355 = vector.shape_cast %354 : vector<1x2x64xf32> to vector<2x64xf32>
    %356 = vector.extract_strided_slice %352 {offsets = [1, 0, 0], sizes = [1, 2, 64], strides = [1, 1, 1]} : vector<8x2x64xf32> to vector<1x2x64xf32>
    %357 = vector.shape_cast %356 : vector<1x2x64xf32> to vector<2x64xf32>
    %358 = vector.extract_strided_slice %352 {offsets = [2, 0, 0], sizes = [1, 2, 64], strides = [1, 1, 1]} : vector<8x2x64xf32> to vector<1x2x64xf32>
    %359 = vector.shape_cast %358 : vector<1x2x64xf32> to vector<2x64xf32>
    %360 = vector.extract_strided_slice %352 {offsets = [3, 0, 0], sizes = [1, 2, 64], strides = [1, 1, 1]} : vector<8x2x64xf32> to vector<1x2x64xf32>
    %361 = vector.shape_cast %360 : vector<1x2x64xf32> to vector<2x64xf32>
    %362 = vector.extract_strided_slice %352 {offsets = [4, 0, 0], sizes = [1, 2, 64], strides = [1, 1, 1]} : vector<8x2x64xf32> to vector<1x2x64xf32>
    %363 = vector.shape_cast %362 : vector<1x2x64xf32> to vector<2x64xf32>
    %364 = vector.extract_strided_slice %352 {offsets = [5, 0, 0], sizes = [1, 2, 64], strides = [1, 1, 1]} : vector<8x2x64xf32> to vector<1x2x64xf32>
    %365 = vector.shape_cast %364 : vector<1x2x64xf32> to vector<2x64xf32>
    %366 = vector.extract_strided_slice %352 {offsets = [6, 0, 0], sizes = [1, 2, 64], strides = [1, 1, 1]} : vector<8x2x64xf32> to vector<1x2x64xf32>
    %367 = vector.shape_cast %366 : vector<1x2x64xf32> to vector<2x64xf32>
    %368 = vector.extract_strided_slice %352 {offsets = [7, 0, 0], sizes = [1, 2, 64], strides = [1, 1, 1]} : vector<8x2x64xf32> to vector<1x2x64xf32>
    %369 = vector.shape_cast %368 : vector<1x2x64xf32> to vector<2x64xf32>
    %370 = tpu.concatenate %355, %357, %359, %361, %363, %365, %367, %369 in 0 : vector<2x64xf32>, vector<2x64xf32>, vector<2x64xf32>, vector<2x64xf32>, vector<2x64xf32>, vector<2x64xf32>, vector<2x64xf32>, vector<2x64xf32> -> vector<16x64xf32>
    %371 = vector.extract_strided_slice %353 {offsets = [0, 0, 0], sizes = [1, 2, 64], strides = [1, 1, 1]} : vector<8x2x64xf32> to vector<1x2x64xf32>
    %372 = vector.shape_cast %371 : vector<1x2x64xf32> to vector<2x64xf32>
    %373 = vector.extract_strided_slice %353 {offsets = [1, 0, 0], sizes = [1, 2, 64], strides = [1, 1, 1]} : vector<8x2x64xf32> to vector<1x2x64xf32>
    %374 = vector.shape_cast %373 : vector<1x2x64xf32> to vector<2x64xf32>
    %375 = vector.extract_strided_slice %353 {offsets = [2, 0, 0], sizes = [1, 2, 64], strides = [1, 1, 1]} : vector<8x2x64xf32> to vector<1x2x64xf32>
    %376 = vector.shape_cast %375 : vector<1x2x64xf32> to vector<2x64xf32>
    %377 = vector.extract_strided_slice %353 {offsets = [3, 0, 0], sizes = [1, 2, 64], strides = [1, 1, 1]} : vector<8x2x64xf32> to vector<1x2x64xf32>
    %378 = vector.shape_cast %377 : vector<1x2x64xf32> to vector<2x64xf32>
    %379 = vector.extract_strided_slice %353 {offsets = [4, 0, 0], sizes = [1, 2, 64], strides = [1, 1, 1]} : vector<8x2x64xf32> to vector<1x2x64xf32>
    %380 = vector.shape_cast %379 : vector<1x2x64xf32> to vector<2x64xf32>
    %381 = vector.extract_strided_slice %353 {offsets = [5, 0, 0], sizes = [1, 2, 64], strides = [1, 1, 1]} : vector<8x2x64xf32> to vector<1x2x64xf32>
    %382 = vector.shape_cast %381 : vector<1x2x64xf32> to vector<2x64xf32>
    %383 = vector.extract_strided_slice %353 {offsets = [6, 0, 0], sizes = [1, 2, 64], strides = [1, 1, 1]} : vector<8x2x64xf32> to vector<1x2x64xf32>
    %384 = vector.shape_cast %383 : vector<1x2x64xf32> to vector<2x64xf32>
    %385 = vector.extract_strided_slice %353 {offsets = [7, 0, 0], sizes = [1, 2, 64], strides = [1, 1, 1]} : vector<8x2x64xf32> to vector<1x2x64xf32>
    %386 = vector.shape_cast %385 : vector<1x2x64xf32> to vector<2x64xf32>
    %387 = tpu.concatenate %372, %374, %376, %378, %380, %382, %384, %386 in 0 : vector<2x64xf32>, vector<2x64xf32>, vector<2x64xf32>, vector<2x64xf32>, vector<2x64xf32>, vector<2x64xf32>, vector<2x64xf32>, vector<2x64xf32> -> vector<16x64xf32>
    %c0_137 = arith.constant 0 : index
    %c0_138 = arith.constant 0 : index
    %388 = vector.load %arg6[%c0_137, %c0_138] : memref<128x10xf32, #tpu.memory_space<vmem>>, vector<64x10xf32>
    %cst_139 = arith.constant dense<0.000000e+00> : vector<16x10xf32>
    %389 = tpu.matmul %370, %388, %cst_139 {dimension_numbers = #tpu.dot_dimension_numbers<[1], [0], [0], [1], [0, 0, 1, 1], [], []>} : vector<16x64xf32>, vector<64x10xf32>, vector<16x10xf32> -> vector<16x10xf32>
    %c64 = arith.constant 64 : index
    %c0_140 = arith.constant 0 : index
    %390 = vector.load %arg6[%c64, %c0_140] : memref<128x10xf32, #tpu.memory_space<vmem>>, vector<64x10xf32>
    %cst_141 = arith.constant dense<0.000000e+00> : vector<16x10xf32>
    %391 = tpu.matmul %387, %390, %cst_141 {dimension_numbers = #tpu.dot_dimension_numbers<[1], [0], [0], [1], [0, 0, 1, 1], [], []>} : vector<16x64xf32>, vector<64x10xf32>, vector<16x10xf32> -> vector<16x10xf32>
    %392 = arith.addf %389, %391 : vector<16x10xf32>
    %c0_142 = arith.constant 0 : index
    %c0_143 = arith.constant 0 : index
    %393 = vector.load %arg8[%c0_142, %c0_143] : memref<1x10xf32, #tpu.memory_space<vmem>>, vector<1x10xf32>
    %394 = vector.broadcast %393 : vector<1x10xf32> to vector<16x10xf32>
    %395 = arith.addf %392, %394 : vector<16x10xf32>
    %396 = vector.extract_strided_slice %395 {offsets = [0, 0], sizes = [2, 10], strides = [1, 1]} : vector<16x10xf32> to vector<2x10xf32>
    %397 = vector.shape_cast %396 : vector<2x10xf32> to vector<1x2x10xf32>
    %398 = vector.extract_strided_slice %395 {offsets = [2, 0], sizes = [2, 10], strides = [1, 1]} : vector<16x10xf32> to vector<2x10xf32>
    %399 = vector.shape_cast %398 : vector<2x10xf32> to vector<1x2x10xf32>
    %400 = vector.extract_strided_slice %395 {offsets = [4, 0], sizes = [2, 10], strides = [1, 1]} : vector<16x10xf32> to vector<2x10xf32>
    %401 = vector.shape_cast %400 : vector<2x10xf32> to vector<1x2x10xf32>
    %402 = vector.extract_strided_slice %395 {offsets = [6, 0], sizes = [2, 10], strides = [1, 1]} : vector<16x10xf32> to vector<2x10xf32>
    %403 = vector.shape_cast %402 : vector<2x10xf32> to vector<1x2x10xf32>
    %404 = vector.extract_strided_slice %395 {offsets = [8, 0], sizes = [2, 10], strides = [1, 1]} : vector<16x10xf32> to vector<2x10xf32>
    %405 = vector.shape_cast %404 : vector<2x10xf32> to vector<1x2x10xf32>
    %406 = vector.extract_strided_slice %395 {offsets = [10, 0], sizes = [2, 10], strides = [1, 1]} : vector<16x10xf32> to vector<2x10xf32>
    %407 = vector.shape_cast %406 : vector<2x10xf32> to vector<1x2x10xf32>
    %408 = vector.extract_strided_slice %395 {offsets = [12, 0], sizes = [2, 10], strides = [1, 1]} : vector<16x10xf32> to vector<2x10xf32>
    %409 = vector.shape_cast %408 : vector<2x10xf32> to vector<1x2x10xf32>
    %410 = vector.extract_strided_slice %395 {offsets = [14, 0], sizes = [2, 10], strides = [1, 1]} : vector<16x10xf32> to vector<2x10xf32>
    %411 = vector.shape_cast %410 : vector<2x10xf32> to vector<1x2x10xf32>
    %412 = tpu.concatenate %397, %399, %401, %403, %405, %407, %409, %411 in 0 : vector<1x2x10xf32>, vector<1x2x10xf32>, vector<1x2x10xf32>, vector<1x2x10xf32>, vector<1x2x10xf32>, vector<1x2x10xf32>, vector<1x2x10xf32>, vector<1x2x10xf32> -> vector<8x2x10xf32>
    %c0_144 = arith.constant 0 : index
    %c0_145 = arith.constant 0 : index
    %413 = vector.load %arg9[%c0_144, %c0_145] : memref<1x10xf32, #tpu.memory_space<vmem>>, vector<1x10xf32>
    %414 = vector.shape_cast %413 : vector<1x10xf32> to vector<1x1x10xf32>
    %cst_146 = arith.constant 0.000000e+00 : f32
    %415 = vector.broadcast %cst_146 : f32 to vector<2x128xf32>
    %cst_147 = arith.constant 0.000000e+00 : f32
    %416 = vector.broadcast %cst_147 : f32 to vector<2x128xf32>
    %c0_148 = arith.constant 0 : index
    %c0_149 = arith.constant 0 : index
    %417 = vector.load %arg7[%c0_148, %c0_149] : memref<128x10xf32, #tpu.memory_space<vmem>>, vector<128x10xf32>
    %cst_150 = arith.constant dense<0.000000e+00> : vector<2x10xf32>
    %418 = tpu.matmul %416, %417, %cst_150 {dimension_numbers = #tpu.dot_dimension_numbers<[1], [0], [0], [1], [0, 0, 1, 1], [], []>} : vector<2x128xf32>, vector<128x10xf32>, vector<2x10xf32> -> vector<2x10xf32>
    %419 = vector.shape_cast %418 : vector<2x10xf32> to vector<1x2x10xf32>
    %420 = vector.broadcast %419 : vector<1x2x10xf32> to vector<8x2x10xf32>
    %421 = arith.addf %412, %420 : vector<8x2x10xf32>
    %422 = math.tanh %421 : vector<8x2x10xf32>
    %423 = vector.broadcast %414 : vector<1x1x10xf32> to vector<8x2x10xf32>
    %424 = arith.mulf %422, %423 : vector<8x2x10xf32>
    %cst_151 = arith.constant dense<0.000000e+00> : vector<8x2xf32>
    %425 = vector.multi_reduction <add>, %424, %cst_151 [2] : vector<8x2x10xf32> to vector<8x2xf32>
    %426 = vector.shape_cast %425 : vector<8x2xf32> to vector<8x2x1xf32>
    %c0_152 = arith.constant 0 : index
    %c0_153 = arith.constant 0 : index
    %427 = vector.load %arg10[%c0_152, %c0_153] : memref<1x1xf32, #tpu.memory_space<vmem>>, vector<1x1xf32>
    %428 = vector.shape_cast %427 : vector<1x1xf32> to vector<1x1x1xf32>
    %429 = vector.broadcast %428 : vector<1x1x1xf32> to vector<8x2x1xf32>
    %430 = arith.addf %426, %429 : vector<8x2x1xf32>
    %cst_154 = arith.constant dense<0xFF800000> : vector<2x1xf32>
    %431 = vector.multi_reduction <maximumf>, %430, %cst_154 [0] : vector<8x2x1xf32> to vector<2x1xf32>
    %432 = vector.shape_cast %431 : vector<2x1xf32> to vector<1x2x1xf32>
    %433 = vector.broadcast %432 : vector<1x2x1xf32> to vector<8x2x1xf32>
    %434 = arith.subf %430, %433 : vector<8x2x1xf32>
    %435 = math.exp %434 : vector<8x2x1xf32>
    %cst_155 = arith.constant dense<0.000000e+00> : vector<2x1xf32>
    %436 = vector.multi_reduction <add>, %435, %cst_155 [0] : vector<8x2x1xf32> to vector<2x1xf32>
    %437 = vector.shape_cast %436 : vector<2x1xf32> to vector<1x2x1xf32>
    %438 = vector.broadcast %437 : vector<1x2x1xf32> to vector<8x2x1xf32>
    %439 = arith.divf %435, %438 : vector<8x2x1xf32>
    %440 = vector.broadcast %439 : vector<8x2x1xf32> to vector<8x2x64xf32>
    %441 = arith.mulf %352, %440 : vector<8x2x64xf32>
    %cst_156 = arith.constant dense<0.000000e+00> : vector<2x64xf32>
    %442 = vector.multi_reduction <add>, %441, %cst_156 [0] : vector<8x2x64xf32> to vector<2x64xf32>
    %443 = vector.broadcast %439 : vector<8x2x1xf32> to vector<8x2x64xf32>
    %444 = arith.mulf %353, %443 : vector<8x2x64xf32>
    %cst_157 = arith.constant dense<0.000000e+00> : vector<2x64xf32>
    %445 = vector.multi_reduction <add>, %444, %cst_157 [0] : vector<8x2x64xf32> to vector<2x64xf32>
    %446 = tpu.concatenate %442, %445, %415 in 1 : vector<2x64xf32>, vector<2x64xf32>, vector<2x128xf32> -> vector<2x256xf32>
    %c0_158 = arith.constant 0 : index
    %c0_159 = arith.constant 0 : index
    %447 = vector.load %arg11[%c0_158, %c0_159] : memref<256x512xf32, #tpu.memory_space<vmem>>, vector<256x512xf32>
    %cst_160 = arith.constant dense<0.000000e+00> : vector<2x512xf32>
    %448 = tpu.matmul %446, %447, %cst_160 {dimension_numbers = #tpu.dot_dimension_numbers<[1], [0], [0], [1], [0, 0, 1, 1], [], []>} : vector<2x256xf32>, vector<256x512xf32>, vector<2x512xf32> -> vector<2x512xf32>
    %c0_161 = arith.constant 0 : index
    %c0_162 = arith.constant 0 : index
    %449 = vector.load %arg12[%c0_161, %c0_162] : memref<1x512xf32, #tpu.memory_space<vmem>>, vector<1x512xf32>
    %450 = vector.broadcast %449 : vector<1x512xf32> to vector<2x512xf32>
    %451 = arith.addf %448, %450 : vector<2x512xf32>
    %452 = vector.extract_strided_slice %451 {offsets = [0, 0], sizes = [2, 128], strides = [1, 1]} : vector<2x512xf32> to vector<2x128xf32>
    %453 = arith.negf %452 : vector<2x128xf32>
    %454 = math.exp %453 : vector<2x128xf32>
    %cst_163 = arith.constant 1.000000e+00 : f32
    %455 = vector.broadcast %cst_163 : f32 to vector<2x128xf32>
    %456 = arith.addf %455, %454 : vector<2x128xf32>
    %457 = arith.divf %455, %456 : vector<2x128xf32>
    %458 = vector.extract_strided_slice %451 {offsets = [0, 128], sizes = [2, 128], strides = [1, 1]} : vector<2x512xf32> to vector<2x128xf32>
    %459 = arith.negf %458 : vector<2x128xf32>
    %460 = math.exp %459 : vector<2x128xf32>
    %cst_164 = arith.constant 1.000000e+00 : f32
    %461 = vector.broadcast %cst_164 : f32 to vector<2x128xf32>
    %462 = arith.addf %461, %460 : vector<2x128xf32>
    %463 = arith.divf %461, %462 : vector<2x128xf32>
    %464 = vector.extract_strided_slice %451 {offsets = [0, 256], sizes = [2, 128], strides = [1, 1]} : vector<2x512xf32> to vector<2x128xf32>
    %465 = math.tanh %464 : vector<2x128xf32>
    %466 = vector.extract_strided_slice %451 {offsets = [0, 384], sizes = [2, 128], strides = [1, 1]} : vector<2x512xf32> to vector<2x128xf32>
    %467 = arith.negf %466 : vector<2x128xf32>
    %468 = math.exp %467 : vector<2x128xf32>
    %cst_165 = arith.constant 1.000000e+00 : f32
    %469 = vector.broadcast %cst_165 : f32 to vector<2x128xf32>
    %470 = arith.addf %469, %468 : vector<2x128xf32>
    %471 = arith.divf %469, %470 : vector<2x128xf32>
    %472 = arith.mulf %463, %416 : vector<2x128xf32>
    %473 = arith.mulf %457, %465 : vector<2x128xf32>
    %474 = arith.addf %472, %473 : vector<2x128xf32>
    %475 = math.tanh %474 : vector<2x128xf32>
    %476 = arith.mulf %471, %475 : vector<2x128xf32>
    %c0_166 = arith.constant 0 : index
    %c0_167 = arith.constant 0 : index
    %477 = vector.load %arg13[%c0_166, %c0_167] : memref<128x11xf32, #tpu.memory_space<vmem>>, vector<128x11xf32>
    %cst_168 = arith.constant dense<0.000000e+00> : vector<2x11xf32>
    %478 = tpu.matmul %476, %477, %cst_168 {dimension_numbers = #tpu.dot_dimension_numbers<[1], [0], [0], [1], [0, 0, 1, 1], [], []>} : vector<2x128xf32>, vector<128x11xf32>, vector<2x11xf32> -> vector<2x11xf32>
    %c0_169 = arith.constant 0 : index
    %c0_170 = arith.constant 0 : index
    %479 = vector.load %arg14[%c0_169, %c0_170] : memref<1x11xf32, #tpu.memory_space<vmem>>, vector<1x11xf32>
    %480 = vector.broadcast %479 : vector<1x11xf32> to vector<2x11xf32>
    %481 = arith.addf %478, %480 : vector<2x11xf32>
    %cst_171 = arith.constant dense<0xFF800000> : vector<2xf32>
    %482 = vector.multi_reduction <maximumf>, %481, %cst_171 [1] : vector<2x11xf32> to vector<2xf32>
    %483 = vector.shape_cast %482 : vector<2xf32> to vector<2x1xf32>
    %484 = vector.broadcast %483 : vector<2x1xf32> to vector<2x11xf32>
    %485 = arith.subf %481, %484 : vector<2x11xf32>
    %486 = math.exp %485 : vector<2x11xf32>
    %cst_172 = arith.constant dense<0.000000e+00> : vector<2xf32>
    %487 = vector.multi_reduction <add>, %486, %cst_172 [1] : vector<2x11xf32> to vector<2xf32>
    %488 = vector.shape_cast %487 : vector<2xf32> to vector<2x1xf32>
    %489 = vector.broadcast %488 : vector<2x1xf32> to vector<2x11xf32>
    %490 = arith.divf %486, %489 : vector<2x11xf32>
    %c0_173 = arith.constant 0 : index
    %c0_174 = arith.constant 0 : index
    %c0_175 = arith.constant 0 : index
    %491 = vector.load %arg15[%c0_173, %c0_174, %c0_175] : memref<4x2x11xf32, #tpu.memory_space<vmem>>, vector<1x2x11xf32>
    %492 = vector.shape_cast %491 : vector<1x2x11xf32> to vector<2x11xf32>
    %493 = vector.shape_cast %490 : vector<2x11xf32> to vector<1x2x11xf32>
    tpu.vector_store %arg15[%c0_173, %c0_174, %c0_175], %493 {strides = array<i32>} : memref<4x2x11xf32, #tpu.memory_space<vmem>>, vector<1x2x11xf32>,
    %c0_176 = arith.constant 0 : index
    %c0_177 = arith.constant 0 : index
    %494 = vector.load %arg7[%c0_176, %c0_177] : memref<128x10xf32, #tpu.memory_space<vmem>>, vector<128x10xf32>
    %cst_178 = arith.constant dense<0.000000e+00> : vector<2x10xf32>
    %495 = tpu.matmul %474, %494, %cst_178 {dimension_numbers = #tpu.dot_dimension_numbers<[1], [0], [0], [1], [0, 0, 1, 1], [], []>} : vector<2x128xf32>, vector<128x10xf32>, vector<2x10xf32> -> vector<2x10xf32>
    %496 = vector.shape_cast %495 : vector<2x10xf32> to vector<1x2x10xf32>
    %497 = vector.broadcast %496 : vector<1x2x10xf32> to vector<8x2x10xf32>
    %498 = arith.addf %412, %497 : vector<8x2x10xf32>
    %499 = math.tanh %498 : vector<8x2x10xf32>
    %500 = vector.broadcast %414 : vector<1x1x10xf32> to vector<8x2x10xf32>
    %501 = arith.mulf %499, %500 : vector<8x2x10xf32>
    %cst_179 = arith.constant dense<0.000000e+00> : vector<8x2xf32>
    %502 = vector.multi_reduction <add>, %501, %cst_179 [2] : vector<8x2x10xf32> to vector<8x2xf32>
    %503 = vector.shape_cast %502 : vector<8x2xf32> to vector<8x2x1xf32>
    %c0_180 = arith.constant 0 : index
    %c0_181 = arith.constant 0 : index
    %504 = vector.load %arg10[%c0_180, %c0_181] : memref<1x1xf32, #tpu.memory_space<vmem>>, vector<1x1xf32>
    %505 = vector.shape_cast %504 : vector<1x1xf32> to vector<1x1x1xf32>
    %506 = vector.broadcast %505 : vector<1x1x1xf32> to vector<8x2x1xf32>
    %507 = arith.addf %503, %506 : vector<8x2x1xf32>
    %cst_182 = arith.constant dense<0xFF800000> : vector<2x1xf32>
    %508 = vector.multi_reduction <maximumf>, %507, %cst_182 [0] : vector<8x2x1xf32> to vector<2x1xf32>
    %509 = vector.shape_cast %508 : vector<2x1xf32> to vector<1x2x1xf32>
    %510 = vector.broadcast %509 : vector<1x2x1xf32> to vector<8x2x1xf32>
    %511 = arith.subf %507, %510 : vector<8x2x1xf32>
    %512 = math.exp %511 : vector<8x2x1xf32>
    %cst_183 = arith.constant dense<0.000000e+00> : vector<2x1xf32>
    %513 = vector.multi_reduction <add>, %512, %cst_183 [0] : vector<8x2x1xf32> to vector<2x1xf32>
    %514 = vector.shape_cast %513 : vector<2x1xf32> to vector<1x2x1xf32>
    %515 = vector.broadcast %514 : vector<1x2x1xf32> to vector<8x2x1xf32>
    %516 = arith.divf %512, %515 : vector<8x2x1xf32>
    %517 = vector.broadcast %516 : vector<8x2x1xf32> to vector<8x2x64xf32>
    %518 = arith.mulf %352, %517 : vector<8x2x64xf32>
    %cst_184 = arith.constant dense<0.000000e+00> : vector<2x64xf32>
    %519 = vector.multi_reduction <add>, %518, %cst_184 [0] : vector<8x2x64xf32> to vector<2x64xf32>
    %520 = vector.broadcast %516 : vector<8x2x1xf32> to vector<8x2x64xf32>
    %521 = arith.mulf %353, %520 : vector<8x2x64xf32>
    %cst_185 = arith.constant dense<0.000000e+00> : vector<2x64xf32>
    %522 = vector.multi_reduction <add>, %521, %cst_185 [0] : vector<8x2x64xf32> to vector<2x64xf32>
    %523 = tpu.concatenate %519, %522, %476 in 1 : vector<2x64xf32>, vector<2x64xf32>, vector<2x128xf32> -> vector<2x256xf32>
    %c0_186 = arith.constant 0 : index
    %c0_187 = arith.constant 0 : index
    %524 = vector.load %arg11[%c0_186, %c0_187] : memref<256x512xf32, #tpu.memory_space<vmem>>, vector<256x512xf32>
    %cst_188 = arith.constant dense<0.000000e+00> : vector<2x512xf32>
    %525 = tpu.matmul %523, %524, %cst_188 {dimension_numbers = #tpu.dot_dimension_numbers<[1], [0], [0], [1], [0, 0, 1, 1], [], []>} : vector<2x256xf32>, vector<256x512xf32>, vector<2x512xf32> -> vector<2x512xf32>
    %c0_189 = arith.constant 0 : index
    %c0_190 = arith.constant 0 : index
    %526 = vector.load %arg12[%c0_189, %c0_190] : memref<1x512xf32, #tpu.memory_space<vmem>>, vector<1x512xf32>
    %527 = vector.broadcast %526 : vector<1x512xf32> to vector<2x512xf32>
    %528 = arith.addf %525, %527 : vector<2x512xf32>
    %529 = vector.extract_strided_slice %528 {offsets = [0, 0], sizes = [2, 128], strides = [1, 1]} : vector<2x512xf32> to vector<2x128xf32>
    %530 = arith.negf %529 : vector<2x128xf32>
    %531 = math.exp %530 : vector<2x128xf32>
    %cst_191 = arith.constant 1.000000e+00 : f32
    %532 = vector.broadcast %cst_191 : f32 to vector<2x128xf32>
    %533 = arith.addf %532, %531 : vector<2x128xf32>
    %534 = arith.divf %532, %533 : vector<2x128xf32>
    %535 = vector.extract_strided_slice %528 {offsets = [0, 128], sizes = [2, 128], strides = [1, 1]} : vector<2x512xf32> to vector<2x128xf32>
    %536 = arith.negf %535 : vector<2x128xf32>
    %537 = math.exp %536 : vector<2x128xf32>
    %cst_192 = arith.constant 1.000000e+00 : f32
    %538 = vector.broadcast %cst_192 : f32 to vector<2x128xf32>
    %539 = arith.addf %538, %537 : vector<2x128xf32>
    %540 = arith.divf %538, %539 : vector<2x128xf32>
    %541 = vector.extract_strided_slice %528 {offsets = [0, 256], sizes = [2, 128], strides = [1, 1]} : vector<2x512xf32> to vector<2x128xf32>
    %542 = math.tanh %541 : vector<2x128xf32>
    %543 = vector.extract_strided_slice %528 {offsets = [0, 384], sizes = [2, 128], strides = [1, 1]} : vector<2x512xf32> to vector<2x128xf32>
    %544 = arith.negf %543 : vector<2x128xf32>
    %545 = math.exp %544 : vector<2x128xf32>
    %cst_193 = arith.constant 1.000000e+00 : f32
    %546 = vector.broadcast %cst_193 : f32 to vector<2x128xf32>
    %547 = arith.addf %546, %545 : vector<2x128xf32>
    %548 = arith.divf %546, %547 : vector<2x128xf32>
    %549 = arith.mulf %540, %474 : vector<2x128xf32>
    %550 = arith.mulf %534, %542 : vector<2x128xf32>
    %551 = arith.addf %549, %550 : vector<2x128xf32>
    %552 = math.tanh %551 : vector<2x128xf32>
    %553 = arith.mulf %548, %552 : vector<2x128xf32>
    %c0_194 = arith.constant 0 : index
    %c0_195 = arith.constant 0 : index
    %554 = vector.load %arg13[%c0_194, %c0_195] : memref<128x11xf32, #tpu.memory_space<vmem>>, vector<128x11xf32>
    %cst_196 = arith.constant dense<0.000000e+00> : vector<2x11xf32>
    %555 = tpu.matmul %553, %554, %cst_196 {dimension_numbers = #tpu.dot_dimension_numbers<[1], [0], [0], [1], [0, 0, 1, 1], [], []>} : vector<2x128xf32>, vector<128x11xf32>, vector<2x11xf32> -> vector<2x11xf32>
    %c0_197 = arith.constant 0 : index
    %c0_198 = arith.constant 0 : index
    %556 = vector.load %arg14[%c0_197, %c0_198] : memref<1x11xf32, #tpu.memory_space<vmem>>, vector<1x11xf32>
    %557 = vector.broadcast %556 : vector<1x11xf32> to vector<2x11xf32>
    %558 = arith.addf %555, %557 : vector<2x11xf32>
    %cst_199 = arith.constant dense<0xFF800000> : vector<2xf32>
    %559 = vector.multi_reduction <maximumf>, %558, %cst_199 [1] : vector<2x11xf32> to vector<2xf32>
    %560 = vector.shape_cast %559 : vector<2xf32> to vector<2x1xf32>
    %561 = vector.broadcast %560 : vector<2x1xf32> to vector<2x11xf32>
    %562 = arith.subf %558, %561 : vector<2x11xf32>
    %563 = math.exp %562 : vector<2x11xf32>
    %cst_200 = arith.constant dense<0.000000e+00> : vector<2xf32>
    %564 = vector.multi_reduction <add>, %563, %cst_200 [1] : vector<2x11xf32> to vector<2xf32>
    %565 = vector.shape_cast %564 : vector<2xf32> to vector<2x1xf32>
    %566 = vector.broadcast %565 : vector<2x1xf32> to vector<2x11xf32>
    %567 = arith.divf %563, %566 : vector<2x11xf32>
    %c1_201 = arith.constant 1 : index
    %c0_202 = arith.constant 0 : index
    %c0_203 = arith.constant 0 : index
    %568 = vector.load %arg15[%c1_201, %c0_202, %c0_203] : memref<4x2x11xf32, #tpu.memory_space<vmem>>, vector<1x2x11xf32>
    %569 = vector.shape_cast %568 : vector<1x2x11xf32> to vector<2x11xf32>
    %570 = vector.shape_cast %567 : vector<2x11xf32> to vector<1x2x11xf32>
    tpu.vector_store %arg15[%c1_201, %c0_202, %c0_203], %570 {strides = array<i32>} : memref<4x2x11xf32, #tpu.memory_space<vmem>>, vector<1x2x11xf32>,
    %c0_204 = arith.constant 0 : index
    %c0_205 = arith.constant 0 : index
    %571 = vector.load %arg7[%c0_204, %c0_205] : memref<128x10xf32, #tpu.memory_space<vmem>>, vector<128x10xf32>
    %cst_206 = arith.constant dense<0.000000e+00> : vector<2x10xf32>
    %572 = tpu.matmul %551, %571, %cst_206 {dimension_numbers = #tpu.dot_dimension_numbers<[1], [0], [0], [1], [0, 0, 1, 1], [], []>} : vector<2x128xf32>, vector<128x10xf32>, vector<2x10xf32> -> vector<2x10xf32>
    %573 = vector.shape_cast %572 : vector<2x10xf32> to vector<1x2x10xf32>
    %574 = vector.broadcast %573 : vector<1x2x10xf32> to vector<8x2x10xf32>
    %575 = arith.addf %412, %574 : vector<8x2x10xf32>
    %576 = math.tanh %575 : vector<8x2x10xf32>
    %577 = vector.broadcast %414 : vector<1x1x10xf32> to vector<8x2x10xf32>
    %578 = arith.mulf %576, %577 : vector<8x2x10xf32>
    %cst_207 = arith.constant dense<0.000000e+00> : vector<8x2xf32>
    %579 = vector.multi_reduction <add>, %578, %cst_207 [2] : vector<8x2x10xf32> to vector<8x2xf32>
    %580 = vector.shape_cast %579 : vector<8x2xf32> to vector<8x2x1xf32>
    %c0_208 = arith.constant 0 : index
    %c0_209 = arith.constant 0 : index
    %581 = vector.load %arg10[%c0_208, %c0_209] : memref<1x1xf32, #tpu.memory_space<vmem>>, vector<1x1xf32>
    %582 = vector.shape_cast %581 : vector<1x1xf32> to vector<1x1x1xf32>
    %583 = vector.broadcast %582 : vector<1x1x1xf32> to vector<8x2x1xf32>
    %584 = arith.addf %580, %583 : vector<8x2x1xf32>
    %cst_210 = arith.constant dense<0xFF800000> : vector<2x1xf32>
    %585 = vector.multi_reduction <maximumf>, %584, %cst_210 [0] : vector<8x2x1xf32> to vector<2x1xf32>
    %586 = vector.shape_cast %585 : vector<2x1xf32> to vector<1x2x1xf32>
    %587 = vector.broadcast %586 : vector<1x2x1xf32> to vector<8x2x1xf32>
    %588 = arith.subf %584, %587 : vector<8x2x1xf32>
    %589 = math.exp %588 : vector<8x2x1xf32>
    %cst_211 = arith.constant dense<0.000000e+00> : vector<2x1xf32>
    %590 = vector.multi_reduction <add>, %589, %cst_211 [0] : vector<8x2x1xf32> to vector<2x1xf32>
    %591 = vector.shape_cast %590 : vector<2x1xf32> to vector<1x2x1xf32>
    %592 = vector.broadcast %591 : vector<1x2x1xf32> to vector<8x2x1xf32>
    %593 = arith.divf %589, %592 : vector<8x2x1xf32>
    %594 = vector.broadcast %593 : vector<8x2x1xf32> to vector<8x2x64xf32>
    %595 = arith.mulf %352, %594 : vector<8x2x64xf32>
    %cst_212 = arith.constant dense<0.000000e+00> : vector<2x64xf32>
    %596 = vector.multi_reduction <add>, %595, %cst_212 [0] : vector<8x2x64xf32> to vector<2x64xf32>
    %597 = vector.broadcast %593 : vector<8x2x1xf32> to vector<8x2x64xf32>
    %598 = arith.mulf %353, %597 : vector<8x2x64xf32>
    %cst_213 = arith.constant dense<0.000000e+00> : vector<2x64xf32>
    %599 = vector.multi_reduction <add>, %598, %cst_213 [0] : vector<8x2x64xf32> to vector<2x64xf32>
    %600 = tpu.concatenate %596, %599, %553 in 1 : vector<2x64xf32>, vector<2x64xf32>, vector<2x128xf32> -> vector<2x256xf32>
    %c0_214 = arith.constant 0 : index
    %c0_215 = arith.constant 0 : index
    %601 = vector.load %arg11[%c0_214, %c0_215] : memref<256x512xf32, #tpu.memory_space<vmem>>, vector<256x512xf32>
    %cst_216 = arith.constant dense<0.000000e+00> : vector<2x512xf32>
    %602 = tpu.matmul %600, %601, %cst_216 {dimension_numbers = #tpu.dot_dimension_numbers<[1], [0], [0], [1], [0, 0, 1, 1], [], []>} : vector<2x256xf32>, vector<256x512xf32>, vector<2x512xf32> -> vector<2x512xf32>
    %c0_217 = arith.constant 0 : index
    %c0_218 = arith.constant 0 : index
    %603 = vector.load %arg12[%c0_217, %c0_218] : memref<1x512xf32, #tpu.memory_space<vmem>>, vector<1x512xf32>
    %604 = vector.broadcast %603 : vector<1x512xf32> to vector<2x512xf32>
    %605 = arith.addf %602, %604 : vector<2x512xf32>
    %606 = vector.extract_strided_slice %605 {offsets = [0, 0], sizes = [2, 128], strides = [1, 1]} : vector<2x512xf32> to vector<2x128xf32>
    %607 = arith.negf %606 : vector<2x128xf32>
    %608 = math.exp %607 : vector<2x128xf32>
    %cst_219 = arith.constant 1.000000e+00 : f32
    %609 = vector.broadcast %cst_219 : f32 to vector<2x128xf32>
    %610 = arith.addf %609, %608 : vector<2x128xf32>
    %611 = arith.divf %609, %610 : vector<2x128xf32>
    %612 = vector.extract_strided_slice %605 {offsets = [0, 128], sizes = [2, 128], strides = [1, 1]} : vector<2x512xf32> to vector<2x128xf32>
    %613 = arith.negf %612 : vector<2x128xf32>
    %614 = math.exp %613 : vector<2x128xf32>
    %cst_220 = arith.constant 1.000000e+00 : f32
    %615 = vector.broadcast %cst_220 : f32 to vector<2x128xf32>
    %616 = arith.addf %615, %614 : vector<2x128xf32>
    %617 = arith.divf %615, %616 : vector<2x128xf32>
    %618 = vector.extract_strided_slice %605 {offsets = [0, 256], sizes = [2, 128], strides = [1, 1]} : vector<2x512xf32> to vector<2x128xf32>
    %619 = math.tanh %618 : vector<2x128xf32>
    %620 = vector.extract_strided_slice %605 {offsets = [0, 384], sizes = [2, 128], strides = [1, 1]} : vector<2x512xf32> to vector<2x128xf32>
    %621 = arith.negf %620 : vector<2x128xf32>
    %622 = math.exp %621 : vector<2x128xf32>
    %cst_221 = arith.constant 1.000000e+00 : f32
    %623 = vector.broadcast %cst_221 : f32 to vector<2x128xf32>
    %624 = arith.addf %623, %622 : vector<2x128xf32>
    %625 = arith.divf %623, %624 : vector<2x128xf32>
    %626 = arith.mulf %617, %551 : vector<2x128xf32>
    %627 = arith.mulf %611, %619 : vector<2x128xf32>
    %628 = arith.addf %626, %627 : vector<2x128xf32>
    %629 = math.tanh %628 : vector<2x128xf32>
    %630 = arith.mulf %625, %629 : vector<2x128xf32>
    %c0_222 = arith.constant 0 : index
    %c0_223 = arith.constant 0 : index
    %631 = vector.load %arg13[%c0_222, %c0_223] : memref<128x11xf32, #tpu.memory_space<vmem>>, vector<128x11xf32>
    %cst_224 = arith.constant dense<0.000000e+00> : vector<2x11xf32>
    %632 = tpu.matmul %630, %631, %cst_224 {dimension_numbers = #tpu.dot_dimension_numbers<[1], [0], [0], [1], [0, 0, 1, 1], [], []>} : vector<2x128xf32>, vector<128x11xf32>, vector<2x11xf32> -> vector<2x11xf32>
    %c0_225 = arith.constant 0 : index
    %c0_226 = arith.constant 0 : index
    %633 = vector.load %arg14[%c0_225, %c0_226] : memref<1x11xf32, #tpu.memory_space<vmem>>, vector<1x11xf32>
    %634 = vector.broadcast %633 : vector<1x11xf32> to vector<2x11xf32>
    %635 = arith.addf %632, %634 : vector<2x11xf32>
    %cst_227 = arith.constant dense<0xFF800000> : vector<2xf32>
    %636 = vector.multi_reduction <maximumf>, %635, %cst_227 [1] : vector<2x11xf32> to vector<2xf32>
    %637 = vector.shape_cast %636 : vector<2xf32> to vector<2x1xf32>
    %638 = vector.broadcast %637 : vector<2x1xf32> to vector<2x11xf32>
    %639 = arith.subf %635, %638 : vector<2x11xf32>
    %640 = math.exp %639 : vector<2x11xf32>
    %cst_228 = arith.constant dense<0.000000e+00> : vector<2xf32>
    %641 = vector.multi_reduction <add>, %640, %cst_228 [1] : vector<2x11xf32> to vector<2xf32>
    %642 = vector.shape_cast %641 : vector<2xf32> to vector<2x1xf32>
    %643 = vector.broadcast %642 : vector<2x1xf32> to vector<2x11xf32>
    %644 = arith.divf %640, %643 : vector<2x11xf32>
    %c2_229 = arith.constant 2 : index
    %c0_230 = arith.constant 0 : index
    %c0_231 = arith.constant 0 : index
    %645 = vector.load %arg15[%c2_229, %c0_230, %c0_231] : memref<4x2x11xf32, #tpu.memory_space<vmem>>, vector<1x2x11xf32>
    %646 = vector.shape_cast %645 : vector<1x2x11xf32> to vector<2x11xf32>
    %647 = vector.shape_cast %644 : vector<2x11xf32> to vector<1x2x11xf32>
    tpu.vector_store %arg15[%c2_229, %c0_230, %c0_231], %647 {strides = array<i32>} : memref<4x2x11xf32, #tpu.memory_space<vmem>>, vector<1x2x11xf32>,
    %c0_232 = arith.constant 0 : index
    %c0_233 = arith.constant 0 : index
    %648 = vector.load %arg7[%c0_232, %c0_233] : memref<128x10xf32, #tpu.memory_space<vmem>>, vector<128x10xf32>
    %cst_234 = arith.constant dense<0.000000e+00> : vector<2x10xf32>
    %649 = tpu.matmul %628, %648, %cst_234 {dimension_numbers = #tpu.dot_dimension_numbers<[1], [0], [0], [1], [0, 0, 1, 1], [], []>} : vector<2x128xf32>, vector<128x10xf32>, vector<2x10xf32> -> vector<2x10xf32>
    %650 = vector.shape_cast %649 : vector<2x10xf32> to vector<1x2x10xf32>
    %651 = vector.broadcast %650 : vector<1x2x10xf32> to vector<8x2x10xf32>
    %652 = arith.addf %412, %651 : vector<8x2x10xf32>
    %653 = math.tanh %652 : vector<8x2x10xf32>
    %654 = vector.broadcast %414 : vector<1x1x10xf32> to vector<8x2x10xf32>
    %655 = arith.mulf %653, %654 : vector<8x2x10xf32>
    %cst_235 = arith.constant dense<0.000000e+00> : vector<8x2xf32>
    %656 = vector.multi_reduction <add>, %655, %cst_235 [2] : vector<8x2x10xf32> to vector<8x2xf32>
    %657 = vector.shape_cast %656 : vector<8x2xf32> to vector<8x2x1xf32>
    %c0_236 = arith.constant 0 : index
    %c0_237 = arith.constant 0 : index
    %658 = vector.load %arg10[%c0_236, %c0_237] : memref<1x1xf32, #tpu.memory_space<vmem>>, vector<1x1xf32>
    %659 = vector.shape_cast %658 : vector<1x1xf32> to vector<1x1x1xf32>
    %660 = vector.broadcast %659 : vector<1x1x1xf32> to vector<8x2x1xf32>
    %661 = arith.addf %657, %660 : vector<8x2x1xf32>
    %cst_238 = arith.constant dense<0xFF800000> : vector<2x1xf32>
    %662 = vector.multi_reduction <maximumf>, %661, %cst_238 [0] : vector<8x2x1xf32> to vector<2x1xf32>
    %663 = vector.shape_cast %662 : vector<2x1xf32> to vector<1x2x1xf32>
    %664 = vector.broadcast %663 : vector<1x2x1xf32> to vector<8x2x1xf32>
    %665 = arith.subf %661, %664 : vector<8x2x1xf32>
    %666 = math.exp %665 : vector<8x2x1xf32>
    %cst_239 = arith.constant dense<0.000000e+00> : vector<2x1xf32>
    %667 = vector.multi_reduction <add>, %666, %cst_239 [0] : vector<8x2x1xf32> to vector<2x1xf32>
    %668 = vector.shape_cast %667 : vector<2x1xf32> to vector<1x2x1xf32>
    %669 = vector.broadcast %668 : vector<1x2x1xf32> to vector<8x2x1xf32>
    %670 = arith.divf %666, %669 : vector<8x2x1xf32>
    %671 = vector.broadcast %670 : vector<8x2x1xf32> to vector<8x2x64xf32>
    %672 = arith.mulf %352, %671 : vector<8x2x64xf32>
    %cst_240 = arith.constant dense<0.000000e+00> : vector<2x64xf32>
    %673 = vector.multi_reduction <add>, %672, %cst_240 [0] : vector<8x2x64xf32> to vector<2x64xf32>
    %674 = vector.broadcast %670 : vector<8x2x1xf32> to vector<8x2x64xf32>
    %675 = arith.mulf %353, %674 : vector<8x2x64xf32>
    %cst_241 = arith.constant dense<0.000000e+00> : vector<2x64xf32>
    %676 = vector.multi_reduction <add>, %675, %cst_241 [0] : vector<8x2x64xf32> to vector<2x64xf32>
    %677 = tpu.concatenate %673, %676, %630 in 1 : vector<2x64xf32>, vector<2x64xf32>, vector<2x128xf32> -> vector<2x256xf32>
    %c0_242 = arith.constant 0 : index
    %c0_243 = arith.constant 0 : index
    %678 = vector.load %arg11[%c0_242, %c0_243] : memref<256x512xf32, #tpu.memory_space<vmem>>, vector<256x512xf32>
    %cst_244 = arith.constant dense<0.000000e+00> : vector<2x512xf32>
    %679 = tpu.matmul %677, %678, %cst_244 {dimension_numbers = #tpu.dot_dimension_numbers<[1], [0], [0], [1], [0, 0, 1, 1], [], []>} : vector<2x256xf32>, vector<256x512xf32>, vector<2x512xf32> -> vector<2x512xf32>
    %c0_245 = arith.constant 0 : index
    %c0_246 = arith.constant 0 : index
    %680 = vector.load %arg12[%c0_245, %c0_246] : memref<1x512xf32, #tpu.memory_space<vmem>>, vector<1x512xf32>
    %681 = vector.broadcast %680 : vector<1x512xf32> to vector<2x512xf32>
    %682 = arith.addf %679, %681 : vector<2x512xf32>
    %683 = vector.extract_strided_slice %682 {offsets = [0, 0], sizes = [2, 128], strides = [1, 1]} : vector<2x512xf32> to vector<2x128xf32>
    %684 = arith.negf %683 : vector<2x128xf32>
    %685 = math.exp %684 : vector<2x128xf32>
    %cst_247 = arith.constant 1.000000e+00 : f32
    %686 = vector.broadcast %cst_247 : f32 to vector<2x128xf32>
    %687 = arith.addf %686, %685 : vector<2x128xf32>
    %688 = arith.divf %686, %687 : vector<2x128xf32>
    %689 = vector.extract_strided_slice %682 {offsets = [0, 128], sizes = [2, 128], strides = [1, 1]} : vector<2x512xf32> to vector<2x128xf32>
    %690 = arith.negf %689 : vector<2x128xf32>
    %691 = math.exp %690 : vector<2x128xf32>
    %cst_248 = arith.constant 1.000000e+00 : f32
    %692 = vector.broadcast %cst_248 : f32 to vector<2x128xf32>
    %693 = arith.addf %692, %691 : vector<2x128xf32>
    %694 = arith.divf %692, %693 : vector<2x128xf32>
    %695 = vector.extract_strided_slice %682 {offsets = [0, 256], sizes = [2, 128], strides = [1, 1]} : vector<2x512xf32> to vector<2x128xf32>
    %696 = math.tanh %695 : vector<2x128xf32>
    %697 = vector.extract_strided_slice %682 {offsets = [0, 384], sizes = [2, 128], strides = [1, 1]} : vector<2x512xf32> to vector<2x128xf32>
    %698 = arith.negf %697 : vector<2x128xf32>
    %699 = math.exp %698 : vector<2x128xf32>
    %cst_249 = arith.constant 1.000000e+00 : f32
    %700 = vector.broadcast %cst_249 : f32 to vector<2x128xf32>
    %701 = arith.addf %700, %699 : vector<2x128xf32>
    %702 = arith.divf %700, %701 : vector<2x128xf32>
    %703 = arith.mulf %694, %628 : vector<2x128xf32>
    %704 = arith.mulf %688, %696 : vector<2x128xf32>
    %705 = arith.addf %703, %704 : vector<2x128xf32>
    %706 = math.tanh %705 : vector<2x128xf32>
    %707 = arith.mulf %702, %706 : vector<2x128xf32>
    %c0_250 = arith.constant 0 : index
    %c0_251 = arith.constant 0 : index
    %708 = vector.load %arg13[%c0_250, %c0_251] : memref<128x11xf32, #tpu.memory_space<vmem>>, vector<128x11xf32>
    %cst_252 = arith.constant dense<0.000000e+00> : vector<2x11xf32>
    %709 = tpu.matmul %707, %708, %cst_252 {dimension_numbers = #tpu.dot_dimension_numbers<[1], [0], [0], [1], [0, 0, 1, 1], [], []>} : vector<2x128xf32>, vector<128x11xf32>, vector<2x11xf32> -> vector<2x11xf32>
    %c0_253 = arith.constant 0 : index
    %c0_254 = arith.constant 0 : index
    %710 = vector.load %arg14[%c0_253, %c0_254] : memref<1x11xf32, #tpu.memory_space<vmem>>, vector<1x11xf32>
    %711 = vector.broadcast %710 : vector<1x11xf32> to vector<2x11xf32>
    %712 = arith.addf %709, %711 : vector<2x11xf32>
    %cst_255 = arith.constant dense<0xFF800000> : vector<2xf32>
    %713 = vector.multi_reduction <maximumf>, %712, %cst_255 [1] : vector<2x11xf32> to vector<2xf32>
    %714 = vector.shape_cast %713 : vector<2xf32> to vector<2x1xf32>
    %715 = vector.broadcast %714 : vector<2x1xf32> to vector<2x11xf32>
    %716 = arith.subf %712, %715 : vector<2x11xf32>
    %717 = math.exp %716 : vector<2x11xf32>
    %cst_256 = arith.constant dense<0.000000e+00> : vector<2xf32>
    %718 = vector.multi_reduction <add>, %717, %cst_256 [1] : vector<2x11xf32> to vector<2xf32>
    %719 = vector.shape_cast %718 : vector<2xf32> to vector<2x1xf32>
    %720 = vector.broadcast %719 : vector<2x1xf32> to vector<2x11xf32>
    %721 = arith.divf %717, %720 : vector<2x11xf32>
    %c3_257 = arith.constant 3 : index
    %c0_258 = arith.constant 0 : index
    %c0_259 = arith.constant 0 : index
    %722 = vector.load %arg15[%c3_257, %c0_258, %c0_259] : memref<4x2x11xf32, #tpu.memory_space<vmem>>, vector<1x2x11xf32>
    %723 = vector.shape_cast %722 : vector<1x2x11xf32> to vector<2x11xf32>
    %724 = vector.shape_cast %721 : vector<2x11xf32> to vector<1x2x11xf32>
    tpu.vector_store %arg15[%c3_257, %c0_258, %c0_259], %724 {strides = array<i32>} : memref<4x2x11xf32, #tpu.memory_space<vmem>>, vector<1x2x11xf32>,
    return
  }
}

</mosaic_0001>

<bundles_post_ra>
// kernel: forward.1
= control target key start
LH: loop header
LB: loop body
LE: loop exit
PB: predicated region body
PF: predicated region fallthrough
CT: control target
= control target key end

     0   :  { %s9357_s0 = inlined_call_operand.vmem [shape: f32[16,37], index: 0, kind: input, shape index: {}]   ;;  %s9358_s1 = inlined_call_operand.hbm [shape: f32[37,64], index: 1, kind: input, shape index: {}]   ;;  %s9359_s2 = inlined_call_operand.vmem [shape: f32[1,64], index: 2, kind: input, shape index: {}]   ;;  %s9360_s3 = inlined_call_operand.vmem [shape: f32[64,512], index: 3, kind: input, shape index: {}]   ;;  %s9361_s4 = inlined_call_operand.hbm [shape: f32[1,512], index: 4, kind: input, shape index: {}]   ;;  %s9362_s5 = inlined_call_operand.vmem [shape: f32[64,512], index: 5, kind: input, shape index: {}]   ;;  %s9363_s6 = inlined_call_operand.vmem [shape: f32[128,10], index: 6, kind: input, shape index: {}]   ;;  %s9364_s7 = inlined_call_operand.vmem [shape: f32[128,10], index: 7, kind: input, shape index: {}]   ;;  %s9365_s8 = inlined_call_operand.hbm [shape: f32[1,10], index: 8, kind: input, shape index: {}]   ;;  %s9366_s9 = inlined_call_operand.hbm [shape: f32[1,10], index: 9, kind: input, shape index: {}]   ;;  %s9367_s10 = inlined_call_operand.<no memory space> [shape: f32[1,1], index: 10, kind: input, shape index: {}]   ;;  %s9368_s11 = inlined_call_operand.hbm [shape: f32[256,512], index: 11, kind: input, shape index: {}]   ;;  %s9369_s12 = inlined_call_operand.hbm [shape: f32[1,512], index: 12, kind: input, shape index: {}]   ;;  %s9370_s13 = inlined_call_operand.vmem [shape: f32[128,11], index: 13, kind: input, shape index: {}]   ;;  %s9371_s14 = inlined_call_operand.hbm [shape: f32[1,11], index: 14, kind: input, shape index: {}]   ;;  %s9372_s15 = inlined_call_operand.vmem [shape: f32[4,2,11], index: 15, kind: output, shape index: {}]  }
   0x1   :  { %v20_v0 = vstv %s9367_s10 }
   0x2   :  { %21 = vst [vmem:[#allocation5] sm:$0x1] %v20_v0 }
   0x3   :  { %22 = vsyncpa [#allocation7], 0 }
   0x4   :  { %23 = vsyncpa [#allocation9], 0 }
   0x5   :  { %24 = vsyncpa [#allocation12], 0 }
   0x6   :  { %25 = vsyncpa [#allocation15], 0  ;;  %s7661_s20 = smov [#allocation8]   ;;  %s7662_s22 = smov [#allocation11]  }
   0x7   :  { %s50_s21 = sshll.u32 %s7661_s20, 4  ;;  %s76_s23 = sshll.u32 %s7662_s22, 4  ;;  %s51_s21 = int_to_ptr.vmem [resolvable:$true] %s50_s21  ;;  %s77_s23 = int_to_ptr.vmem [resolvable:$true] %s76_s23 }
   0x8   :  { %s7499_s26 = scalar_lea.hbm %s9361_s4, 64 }
   0x9   :  { %p7500_p0 = scmp.ne.s32.totalorder %s9361_s4, %s7499_s26  ;;  %p7503_p1 = scmp.lt.u32.totalorder %s7499_s26, %s9361_s4 }
   0xb   :  { %p7505_p2 = pnand %p7503_p1, %p7500_p0 }
   0xd   :  { %7508 = shalt.err (!%p7505_p2)
}
   0xe   :  { %s7509_s30 = scalar_lea.vmem %s51_s21, 64  ;;  %p7514_p4 = scmp.lt.s32.totalorder %s51_s21, %s51_s21 }
   0xf   :  { %p7510_p3 = scmp.ne.s32.totalorder %s51_s21, %s7509_s30  ;;  %p7515_p5 = scmp.lt.s32.totalorder %s7509_s30, %s7509_s30 }
  0x11   :  { %p7516_p6 = por %p7515_p5, %p7514_p4 }
  0x13   :  { %p7517_p7 = pnand %p7516_p6, %p7510_p3 }
  0x15   :  { %7520 = shalt.err (!%p7517_p7)
}
  0x16   :  { %53 = dma.hbm_to_vmem [thread:$0]  %s9361_s4, 64, %s51_s21, [#allocation9]  }
  0x17   :  { %s7521_s20 = scalar_lea.hbm %s9366_s9, 16 }
  0x18   :  { %p7522_p8 = scmp.ne.s32.totalorder %s9366_s9, %s7521_s20  ;;  %p7525_p9 = scmp.lt.u32.totalorder %s7521_s20, %s9366_s9 }
  0x1a   :  { %p7527_p10 = pnand %p7525_p9, %p7522_p8 }
  0x1c   :  { %7530 = shalt.err (!%p7527_p10)
}
  0x1d   :  { %s7531_s27 = scalar_lea.vmem %s77_s23, 16  ;;  %s7535_s28 = scalar_lea.vmem %s77_s23, 32 }
  0x1e   :  { %p7532_p11 = scmp.ne.s32.totalorder %s77_s23, %s7531_s27  ;;  %p7536_p12 = scmp.lt.s32.totalorder %s77_s23, %s77_s23 }
  0x1f   :  { %p7537_p13 = scmp.lt.s32.totalorder %s7535_s28, %s7531_s27 }
  0x21   :  { %p7538_p0 = por %p7537_p13, %p7536_p12 }
  0x23   :  { %p7539_p1 = pnand %p7538_p0, %p7532_p11 }
  0x25   :  { %7542 = shalt.err (!%p7539_p1)
}
  0x26   :  { %79 = dma.hbm_to_vmem [thread:$0]  %s9366_s9, 16, %s77_s23, [#allocation12]  }
  0x27   :  { %s7663_s10 = smov [#allocation14]   ;;  %s7664_s30 = smov [#allocation6]  }
  0x28   :  { %s100_s29 = sshll.u32 %s7663_s10, 4  ;;  %s33_s16 = sshll.u32 %s7664_s30, 4  ;;  %s101_s29 = int_to_ptr.vmem [resolvable:$true] %s100_s29  ;;  %s7784_s16 = int_to_ptr.vmem [resolvable:$true] %s33_s16 }
  0x29   :  { %s7543_s19 = scalar_lea.hbm %s9369_s12, 64 }
  0x2a   :  { %p7544_p2 = scmp.ne.s32.totalorder %s9369_s12, %s7543_s19  ;;  %p7547_p3 = scmp.lt.u32.totalorder %s7543_s19, %s9369_s12 }
  0x2c   :  { %p7549_p4 = pnand %p7547_p3, %p7544_p2 }
  0x2e   :  { %7552 = shalt.err (!%p7549_p4)
}
  0x2f   :  { %s7553_s9 = scalar_lea.vmem %s101_s29, 64  ;;  %p7558_p6 = scmp.lt.s32.totalorder %s101_s29, %s101_s29 }
  0x30   :  { %p7554_p5 = scmp.ne.s32.totalorder %s101_s29, %s7553_s9  ;;  %p7559_p7 = scmp.lt.s32.totalorder %s7553_s9, %s7553_s9 }
  0x32   :  { %p7560_p8 = por %p7559_p7, %p7558_p6 }
  0x34   :  { %p7561_p9 = pnand %p7560_p8, %p7554_p5 }
  0x36   :  { %7564 = shalt.err (!%p7561_p9)
}
  0x37   :  { %103 = dma.hbm_to_vmem [thread:$0]  %s9369_s12, 64, %s101_s29, [#allocation15]  }
  0x38   :  { %s7565_s4 = scalar_lea.hbm %s9358_s1, 640 }
  0x39   :  { %p7566_p10 = scmp.ne.s32.totalorder %s9358_s1, %s7565_s4  ;;  %p7569_p11 = scmp.lt.u32.totalorder %s7565_s4, %s9358_s1 }
  0x3b   :  { %p7571_p12 = pnand %p7569_p11, %p7566_p10 }
  0x3d   :  { %7574 = shalt.err (!%p7571_p12)
}
  0x3e   :  { %s7575_s18 = scalar_lea.vmem %s7784_s16, 640  ;;  %p7580_p0 = scmp.lt.s32.totalorder %s7784_s16, %s7784_s16 }
  0x3f   :  { %p7576_p13 = scmp.ne.s32.totalorder %s7784_s16, %s7575_s18  ;;  %p7581_p1 = scmp.lt.s32.totalorder %s7575_s18, %s7575_s18 }
  0x41   :  { %p7582_p2 = por %p7581_p1, %p7580_p0 }
  0x43   :  { %p7583_p3 = pnand %p7582_p2, %p7576_p13 }
  0x45   :  { %7586 = shalt.err (!%p7583_p3)
}
  0x46   :  { %s7665_s12 = smov 128   ;;  %s7666_s29 = smov 8  }
  0x47   :  { %39 = dma.hbm_to_vmem [thread:$0]  %s9358_s1, 640, %s7784_s16, [#allocation7], %s7665_s12, %s7665_s12, %s7666_s29  }
  0x48   :  { %s7667_s22 = smov [#allocation10]   ;;  %s7668_s25 = smov [#allocation13]  }
  0x49   :  { %s66_s24 = sshll.u32 %s7667_s22, 4  ;;  %s87_s9 = sshll.u32 %s7668_s25, 4  ;;  %s67_s24 = int_to_ptr.vmem [resolvable:$true] %s66_s24  ;;  %s7815_s9 = int_to_ptr.vmem [resolvable:$true] %s87_s9 }
  0x4a   :  { %s7587_s27 = scalar_lea.hbm %s9365_s8, 16 }
  0x4b   :  { %p7588_p4 = scmp.ne.s32.totalorder %s9365_s8, %s7587_s27  ;;  %p7591_p5 = scmp.lt.u32.totalorder %s7587_s27, %s9365_s8 }
  0x4d   :  { %p7593_p6 = pnand %p7591_p5, %p7588_p4 }
  0x4f   :  { %7596 = shalt.err (!%p7593_p6)
}
  0x50   :  { %s7597_s1 = scalar_lea.vmem %s67_s24, 16  ;;  %s7601_s16 = scalar_lea.vmem %s67_s24, 32 }
  0x51   :  { %p7598_p7 = scmp.ne.s32.totalorder %s67_s24, %s7597_s1  ;;  %p7602_p8 = scmp.lt.s32.totalorder %s67_s24, %s67_s24 }
  0x52   :  { %p7603_p9 = scmp.lt.s32.totalorder %s7601_s16, %s7597_s1 }
  0x54   :  { %p7604_p10 = por %p7603_p9, %p7602_p8 }
  0x56   :  { %p7605_p11 = pnand %p7604_p10, %p7598_p7 }
  0x58   :  { %7608 = shalt.err (!%p7605_p11)
}
  0x59   :  { %69 = dma.hbm_to_vmem [thread:$0]  %s9365_s8, 16, %s67_s24, [#allocation9]  }
  0x5a   :  { %s7609_s29 = scalar_lea.hbm %s9368_s11, 16384 }
  0x5b   :  { %p7610_p12 = scmp.ne.s32.totalorder %s9368_s11, %s7609_s29  ;;  %p7613_p13 = scmp.lt.u32.totalorder %s7609_s29, %s9368_s11 }
  0x5d   :  { %p7615_p0 = pnand %p7613_p13, %p7610_p12 }
  0x5f   :  { %7618 = shalt.err (!%p7615_p0)
}
  0x60   :  { %s7619_s23 = scalar_lea.vmem %s7815_s9, 16384  ;;  %p7624_p2 = scmp.lt.s32.totalorder %s7815_s9, %s7815_s9 }
  0x61   :  { %p7620_p1 = scmp.ne.s32.totalorder %s7815_s9, %s7619_s23  ;;  %p7625_p3 = scmp.lt.s32.totalorder %s7619_s23, %s7619_s23 }
  0x63   :  { %p7626_p4 = por %p7625_p3, %p7624_p2 }
  0x65   :  { %p7627_p5 = pnand %p7626_p4, %p7620_p1 }
  0x67   :  { %7630 = shalt.err (!%p7627_p5)
}
  0x68   :  { %s7669_s8 = smov 512   ;;  %s7670_s24 = smov 32  }
  0x69   :  { %93 = dma.hbm_to_vmem [thread:$0]  %s9368_s11, 16384, %s7815_s9, [#allocation12], %s7669_s8, %s7669_s8, %s7670_s24  }
  0x6a   :  { %s7671_s28 = smov [#allocation16]   ;;  %s7631_s1 = scalar_lea.hbm %s9371_s14, 16 }
  0x6b   :  { %s112_s4 = sshll.u32 %s7671_s28, 4  ;;  %p7632_p6 = scmp.ne.s32.totalorder %s9371_s14, %s7631_s1  ;;  %s113_s4 = int_to_ptr.vmem [resolvable:$true] %s112_s4 }
  0x6c   :  { %p7635_p7 = scmp.lt.u32.totalorder %s7631_s1, %s9371_s14 }
  0x6e   :  { %p7637_p8 = pnand %p7635_p7, %p7632_p6 }
  0x70   :  { %7640 = shalt.err (!%p7637_p8)
}
  0x71   :  { %s7641_s12 = scalar_lea.vmem %s113_s4, 16  ;;  %s7645_s11 = scalar_lea.vmem %s113_s4, 32 }
  0x72   :  { %p7642_p9 = scmp.ne.s32.totalorder %s113_s4, %s7641_s12  ;;  %p7646_p10 = scmp.lt.s32.totalorder %s113_s4, %s113_s4 }
  0x73   :  { %p7647_p11 = scmp.lt.s32.totalorder %s7645_s11, %s7641_s12 }
  0x75   :  { %p7648_p12 = por %p7647_p11, %p7646_p10 }
  0x77   :  { %p7649_p13 = pnand %p7648_p12, %p7642_p9 }
  0x79   :  { %7652 = shalt.err (!%p7649_p13)
}
  0x7a   :  { %115 = dma.hbm_to_vmem [thread:$0]  %s9371_s14, 16, %s113_s4, [#allocation15]  }
  0x7b   :  { %7653 = dma.done.wait [#allocation7], 640  }
  0x7c   :  { %7654 = vsyncadd [#allocation7], 4294966656 }
  0x7d   :  { %7655 = dma.done.wait [#allocation9], 80  }
  0x7e   :  { %7656 = vsyncadd [#allocation9], 4294967216 }
  0x7f   :  { %7657 = dma.done.wait [#allocation12], 16400  }
  0x80   :  { %7658 = vsyncadd [#allocation12], 4294950896 }
  0x81   :  { %7659 = dma.done.wait [#allocation15], 80  }
  0x82   :  { %7660 = vsyncadd [#allocation15], 4294967216  ;;  %vm151_vm0 = vcmask 302080   ;;  %v139_v1 = vld [vmem:[#allocation6] sm:$0xff]  ;;  %v140_v2 = vld [vmem:[#allocation6 + $0x8] sm:$0xff]  ;;  %vm158_vm1 = vcmask 1044480  }
  0x83   :  { %v141_v3 = vld [vmem:[#allocation6 + $0x10] sm:$0xff]  ;;  %v6081_v4 = vpack.c.bf16 %v140_v2, %v139_v1  ;;  %v142_v5 = vld [vmem:[#allocation6 + $0x18] sm:$0xff]  ;;  %v143_v8 = vld [vmem:[#allocation6 + $0x20] sm:$0x1f]  ;;  %v7672_v49 = vmov 0.0   ;;  %vm293_vm2 = vcmask 523264  }
  0x84   :  { %v137_v6 = vld [vmem:[%s9357_s0] sm:$0xff]  ;;  %v6085_v7 = vpack.c.bf16 %v142_v5, %v141_v3  ;;  %v240_v9 = vld [vmem:[%s9360_s3 + $0x8] sm:$0xff]  ;;  %v242_v43 = vld [vmem:[%s9360_s3 + $0x18] sm:$0xff]  ;;  %561 = vmatprep.mubr.f32.mxu1 %v7672_v49  ;;  %vm659_vm3 = vcmask 1041408   ;;  %s7673_s28 = smov 64   ;;  %vm688_vm4 = vcmask 517120  }
  0x85   :  { %5760 = vmatprep.mubr.msk.f32.mxu0 %vm151_vm0, %v137_v6  ;;  %6082 = vmatprep.subr.bf16.mxu0 %v6081_v4  ;;  %v244_v10 = vld [vmem:[%s9360_s3 + $0x28] sm:$0xff]  ;;  %v239_v11 = vld [vmem:[%s9360_s3] sm:$0xff]  ;;  %v246_v44 = vld [vmem:[%s9360_s3 + $0x38] sm:$0xff]  ;;  %vm691_vm5 = vcmask 519170   ;;  %vm7675_vm6 = vmmov 0   ;;  %vm2371_vm7 = vcmask 1043456  }
  0x86   :  { %6084 = vmatpush3.bf16.msra.mxu0 %v6081_v4  ;;  %v243_v12 = vld [vmem:[%s9360_s3 + $0x20] sm:$0xff]  ;;  %v248_v13 = vld [vmem:[%s9360_s3 + $0x48] sm:$0xff]  ;;  %v6089_v15 = vpack.c.bf16 %v244_v10, %v240_v9  ;;  %v6105_v46 = vpack.c.bf16 %v246_v44, %v242_v43  ;;  %v241_v0 = vld [vmem:[%s9360_s3 + $0x10] sm:$0xff]  ;;  %vm2373_vm8 = vcmask 1045504   ;;  %vm2720_vm9 = vcmask 74752  }
  0x87   :  { %6086 = vmatprep.subr.bf16.mxu0 %v6085_v7  ;;  %v252_v14 = vld [vmem:[%s9360_s3 + $0x68] sm:$0xff]  ;;  %v6091_v17 = vpack.c.bf16 %v243_v12, %v239_v11  ;;  %v247_v19 = vld [vmem:[%s9360_s3 + $0x40] sm:$0xff]  ;;  %v245_v1 = vld [vmem:[%s9360_s3 + $0x30] sm:$0xff]  ;;  %vm2760_vm10 = vcmask 1024   ;;  %vm3324_vm11 = vcmask 82944  }
  0x88   :  { %v138_v16 = vld [vmem:[%s9357_s0 + $0x8] sm:$0xff]  ;;  %v6093_v18 = vpack.c.bf16 %v252_v14, %v248_v13  ;;  %v251_v20 = vld [vmem:[%s9360_s3 + $0x60] sm:$0xff]  ;;  %v250_v3 = vld [vmem:[%s9360_s3 + $0x58] sm:$0xff]  ;;  %v6107_v6 = vpack.c.bf16 %v245_v1, %v241_v0 }
  0x89   :  { %v256_v21 = vld [vmem:[%s9360_s3 + $0x88] sm:$0xff]  ;;  %v6095_v23 = vpack.c.bf16 %v251_v20, %v247_v19  ;;  %v255_v25 = vld [vmem:[%s9360_s3 + $0x80] sm:$0xff]  ;;  %v254_v4 = vld [vmem:[%s9360_s3 + $0x78] sm:$0xff] }
  0x8a   :  { %6088 = vmatpush3.bf16.msra.mxu0 %v6085_v7  ;;  %v260_v22 = vld [vmem:[%s9360_s3 + $0xa8] sm:$0xff]  ;;  %v259_v26 = vld [vmem:[%s9360_s3 + $0xa0] sm:$0xff]  ;;  %v6109_v9 = vpack.c.bf16 %v254_v4, %v250_v3  ;;  %v249_v10 = vld [vmem:[%s9360_s3 + $0x50] sm:$0xff] }
  0x8b   :  { %5758 = vmatprep.subr.msk.mxu0 %vm158_vm1, %v143_v8  ;;  %v6097_v24 = vpack.c.bf16 %v260_v22, %v256_v21  ;;  %v6099_v27 = vpack.c.bf16 %v259_v26, %v255_v25  ;;  %v463_v28 = vld [vmem:[%s9362_s5 + $0x8] sm:$0xff]  ;;  %v462_v33 = vld [vmem:[%s9362_s5] sm:$0xff]  ;;  %v253_v11 = vld [vmem:[%s9360_s3 + $0x70] sm:$0xff] }
  0x8c   :  { %v467_v29 = vld [vmem:[%s9362_s5 + $0x28] sm:$0xff]  ;;  %v466_v35 = vld [vmem:[%s9362_s5 + $0x20] sm:$0xff]  ;;  %v258_v12 = vld [vmem:[%s9360_s3 + $0x98] sm:$0xff]  ;;  %v6111_v14 = vpack.c.bf16 %v253_v11, %v249_v10 }
  0x8d   :  { %v7908_v30 = vpack.c.bf16 %v467_v29, %v463_v28  ;;  %v264_v31 = vld [vmem:[%s9360_s3 + $0xc8] sm:$0xff]  ;;  %v263_v36 = vld [vmem:[%s9360_s3 + $0xc0] sm:$0xff]  ;;  %v7929_v38 = vpack.c.bf16 %v466_v35, %v462_v33  ;;  %v262_v13 = vld [vmem:[%s9360_s3 + $0xb8] sm:$0xff] }
  0x8e   :  { %5759 = vmatpush3.msk.msra.mxu0 %vm158_vm1, %v143_v8  ;;  %v268_v32 = vld [vmem:[%s9360_s3 + $0xe8] sm:$0xff]  ;;  %v267_v37 = vld [vmem:[%s9360_s3 + $0xe0] sm:$0xff]  ;;  %v266_v19 = vld [vmem:[%s9360_s3 + $0xd8] sm:$0xff] }
  0x8f   :  { %5761 = vmatmul.mubr.msk.f32.vlgmr.msra.gmra.mrb[0].mxu0 %vm151_vm0, %v138_v16  ;;  %6090 = vmatprep.subr.bf16.mxu0 %v6089_v15  ;;  %v6101_v34 = vpack.c.bf16 %v268_v32, %v264_v31  ;;  %v6103_v39 = vpack.c.bf16 %v267_v37, %v263_v36  ;;  %v471_v40 = vld [vmem:[%s9362_s5 + $0x48] sm:$0xff]  ;;  %v470_v45 = vld [vmem:[%s9362_s5 + $0x40] sm:$0xff]  ;;  %v6113_v16 = vpack.c.bf16 %v262_v13, %v258_v12  ;;  %v270_v20 = vld [vmem:[%s9360_s3 + $0xf8] sm:$0xff] }
  0x90   :  { %6092 = vmatpush1.bf16.msra.mxu0 %v6091_v17  ;;  %6122 = vmatprep.subr.bf16.mxu1 %v7908_v30  ;;  %v475_v41 = vld [vmem:[%s9362_s5 + $0x68] sm:$0xff]  ;;  %v474_v47 = vld [vmem:[%s9362_s5 + $0x60] sm:$0xff]  ;;  %v257_v17 = vld [vmem:[%s9360_s3 + $0x90] sm:$0xff]  ;;  %v6117_v22 = vpack.c.bf16 %v270_v20, %v266_v19 }
  0x91   :  { %6094 = vmatprep.subr.bf16.mxu0 %v6093_v18  ;;  %6124 = vmatpush1.bf16.msra.mxu1 %v7929_v38  ;;  %v7938_v42 = vpack.c.bf16 %v475_v41, %v471_v40  ;;  %v7953_v48 = vpack.c.bf16 %v474_v47, %v470_v45  ;;  %v479_v50 = vld [vmem:[%s9362_s5 + $0x88] sm:$0xff]  ;;  %v478_v53 = vld [vmem:[%s9362_s5 + $0x80] sm:$0xff]  ;;  %v261_v18 = vld [vmem:[%s9360_s3 + $0xb0] sm:$0xff] }
  0x92   :  { %364 = vmatprep.mubr.f32.mxu0 %v7672_v49  ;;  %v483_v51 = vld [vmem:[%s9362_s5 + $0xa8] sm:$0xff]  ;;  %v482_v54 = vld [vmem:[%s9362_s5 + $0xa0] sm:$0xff]  ;;  %v6115_v21 = vpack.c.bf16 %v261_v18, %v257_v17  ;;  %v465_v25 = vld [vmem:[%s9362_s5 + $0x18] sm:$0xff] }
  0x93   :  { %6126 = vmatprep.subr.bf16.mxu1 %v7938_v42  ;;  %v7964_v52 = vpack.c.bf16 %v483_v51, %v479_v50  ;;  %v7973_v55 = vpack.c.bf16 %v482_v54, %v478_v53  ;;  %v487_v56 = vld [vmem:[%s9362_s5 + $0xc8] sm:$0xff]  ;;  %v486_v59 = vld [vmem:[%s9362_s5 + $0xc0] sm:$0xff]  ;;  %v469_v26 = vld [vmem:[%s9362_s5 + $0x38] sm:$0xff] }
  0x94   :  { %6096 = vmatpush1.bf16.msra.mxu0 %v6095_v23  ;;  %v491_v57 = vld [vmem:[%s9362_s5 + $0xe8] sm:$0xff]  ;;  %v490_v60 = vld [vmem:[%s9362_s5 + $0xe0] sm:$0xff]  ;;  %v265_v23 = vld [vmem:[%s9360_s3 + $0xd0] sm:$0xff]  ;;  %v8060_v28 = vpack.c.bf16 %v469_v26, %v465_v25 }
  0x95   :  { %6098 = vmatprep.subr.bf16.mxu0 %v6097_v24  ;;  %6128 = vmatpush1.bf16.msra.mxu1 %v7953_v48  ;;  %v7982_v58 = vpack.c.bf16 %v491_v57, %v487_v56  ;;  %v7991_v61 = vpack.c.bf16 %v490_v60, %v486_v59  ;;  %v5520_v62 = vld [vmem:[%s9359_s2] ss:$0 sm:$0xff]  ;;  %v269_v24 = vld [vmem:[%s9360_s3 + $0xf0] sm:$0xff]  ;;  %v473_v32 = vld [vmem:[%s9362_s5 + $0x58] sm:$0xff]  ;;  %v273_v60 = vlaneseq }
  0x96   :  { %6130 = vmatprep.subr.bf16.mxu1 %v7964_v52  ;;  %v464_v29 = vld [vmem:[%s9362_s5 + $0x10] sm:$0xff]  ;;  %v477_v33 = vld [vmem:[%s9362_s5 + $0x78] sm:$0xff]  ;;  %v271_v0 = vld [vmem:[#allocation8] sm:$0xf] }
  0x97   :  { %v468_v31 = vld [vmem:[%s9362_s5 + $0x30] sm:$0xff]  ;;  %v8077_v35 = vpack.c.bf16 %v477_v33, %v473_v32  ;;  %v485_v40 = vld [vmem:[%s9362_s5 + $0xb8] sm:$0xff] }
  0x98   :  { %6100 = vmatpush1.bf16.msra.mxu0 %v6099_v27  ;;  %v6119_v27 = vpack.c.bf16 %v269_v24, %v265_v23  ;;  %v472_v36 = vld [vmem:[%s9362_s5 + $0x50] sm:$0xff]  ;;  %v493_v47 = vld [vmem:[%s9362_s5 + $0xf8] sm:$0xff] }
  0x99   :  { %6102 = vmatprep.subr.bf16.mxu0 %v6101_v34  ;;  %6132 = vmatpush1.bf16.msra.mxu1 %v7973_v55  ;;  %v8074_v34 = vpack.c.bf16 %v468_v31, %v464_v29  ;;  %v476_v37 = vld [vmem:[%s9362_s5 + $0x70] sm:$0xff] }
  0x9a   :  { %6134 = vmatprep.subr.bf16.mxu1 %v7982_v58  ;;  %v8094_v41 = vpack.c.bf16 %v476_v37, %v472_v36  ;;  %v480_v44 = vld [vmem:[%s9362_s5 + $0x90] sm:$0xff] }
  0x9b   :  { %v484_v45 = vld [vmem:[%s9362_s5 + $0xb0] sm:$0xff] }
  0x9c   :  { %6104 = vmatpush1.bf16.msra.mxu0 %v6103_v39  ;;  %v481_v39 = vld [vmem:[%s9362_s5 + $0x98] sm:$0xff]  ;;  %v8113_v50 = vpack.c.bf16 %v484_v45, %v480_v44  ;;  %v488_v53 = vld [vmem:[%s9362_s5 + $0xd0] sm:$0xff] }
  0x9d   :  { %6106 = vmatprep.subr.bf16.mxu0 %v6105_v46  ;;  %6136 = vmatpush1.bf16.msra.mxu1 %v7991_v61  ;;  %v8097_v43 = vpack.c.bf16 %v485_v40, %v481_v39  ;;  %v489_v46 = vld [vmem:[%s9362_s5 + $0xd8] sm:$0xff]  ;;  %v492_v54 = vld [vmem:[%s9362_s5 + $0xf0] sm:$0xff] }
  0x9e   :  { %6154 = vmatprep.subr.bf16.mxu1 %v7908_v30  ;;  %v8117_v51 = vpack.c.bf16 %v493_v47, %v489_v46  ;;  %v8126_v56 = vpack.c.bf16 %v492_v54, %v488_v53 }
  0xa0   :  { %562 = vmatmul.mubr.f32.vlgmr.msra.gmra.mrb[0].mxu1 %v7672_v49 }
  0xa1   :  { %6156 = vmatpush1.bf16.msra.mxu1 %v7929_v38  ;;  %791 = vmatprep.mubr.f32.mxu1 %v7672_v49 }
  0xa2   :  { %6158 = vmatprep.subr.bf16.mxu1 %v7938_v42 }
  0xa5   :  { %6160 = vmatpush1.bf16.msra.mxu1 %v7953_v48 }
  0xa6   :  { %6162 = vmatprep.subr.bf16.mxu1 %v7964_v52 }
  0xa9   :  { %6164 = vmatpush1.bf16.msra.mxu1 %v7973_v55 }
  0xaa   :  { %6166 = vmatprep.subr.bf16.mxu1 %v7982_v58 }
  0xad   :  { %6168 = vmatpush1.bf16.msra.mxu1 %v7991_v61 }
  0xae   :  { %6186 = vmatprep.subr.bf16.mxu1 %v7908_v30 }
 0x162   :  { %v5762_v63 = vpop.f32.mrb[0].mxu0 }
 0x163   :  { %v228_v2 = vpop.f32.mrb[1].mxu0  ;;  %v234_v7 = vadd.f32 %v5762_v63, %v5520_v62 }
 0x164   :  { %v229_v5 = vadd.f32 %v5520_v62, %v228_v2  ;;  %v274_v62 = vshrl.u32 %v273_v60, 7 }
 0x165   :  { %v238_v15 = vmax.f32 %v234_v7, 0.0 }
 0x166   :  { %v237_v8 = vmax.f32 %v229_v5, 0.0  ;;  %v8141_v63 = vsub.s32 0, %v274_v62  ;;  %v8143_v1 = vsub.s32 1, %v274_v62  ;;  %v8147_v12 = vsub.s32 2, %v274_v62 }
 0x167   :  { %v8149_v13 = vsub.s32 3, %v274_v62 }
 0x168   :  { %5524 = vmatmul.mubr.msk.f32.vlgmr.msra.gmra.mrb[2].mxu0 %vm293_vm2, %v237_v8  ;;  %v276_v2 = vrot.slane %v271_v0, %v8141_v63  ;;  %v280_v3 = vrot.slane %v271_v0, %v8143_v1 }
 0x169   :  { %6108 = vmatpush1.bf16.msra.mxu0 %v6107_v6  ;;  %370 = vmatprep.mubr.f32.mxu0 %v7672_v49 }
 0x16a   :  { %6110 = vmatprep.subr.bf16.mxu0 %v6109_v9 }
 0x16c   :  { %5525 = vmatmul.mubr.msk.f32.gmra.mrb[4].mxu0 %vm293_vm2, %v238_v15 }
 0x16d   :  { %6112 = vmatpush1.bf16.msra.mxu0 %v6111_v14  ;;  %441 = vmatprep.mubr.f32.mxu0 %v7672_v49  ;;  %v284_v14 = vrot.slane %v271_v0, %v8147_v12 }
 0x16e   :  { %6114 = vmatprep.subr.bf16.mxu0 %v6113_v16 }
 0x171   :  { %6116 = vmatpush1.bf16.msra.mxu0 %v6115_v21 }
 0x172   :  { %6118 = vmatprep.subr.bf16.mxu0 %v6117_v22 }
 0x173   :  { %v563_v57 = vpop.f32.mrb[0].mxu1 }
 0x174   :  { %v565_v59 = vpop.f32.mrb[1].mxu1 }
 0x175   :  { %6120 = vmatpush1.bf16.msra.mxu0 %v6119_v27 }
 0x176   :  { %6138 = vmatprep.subr.bf16.mxu0 %v8060_v28 }
 0x178   :  { %5526 = vmatmul.mubr.msk.f32.vlgmr.msra.gmra.mrb[6].mxu0 %vm293_vm2, %v237_v8 }
 0x179   :  { %6140 = vmatpush1.bf16.msra.mxu0 %v8074_v34  ;;  %447 = vmatprep.mubr.f32.mxu0 %v7672_v49 }
 0x17a   :  { %6142 = vmatprep.subr.bf16.mxu0 %v8077_v35 }
 0x17c   :  { %5527 = vmatmul.mubr.msk.f32.gmra.mrb[8].mxu0 %vm293_vm2, %v238_v15  ;;  %v288_v15 = vrot.slane %v271_v0, %v8149_v13 }
 0x17d   :  { %6144 = vmatpush1.bf16.msra.mxu0 %v8094_v41  ;;  %632 = vmatprep.mubr.f32.mxu0 %v7672_v49 }
 0x17e   :  { %6146 = vmatprep.subr.bf16.mxu0 %v8097_v43 }
 0x181   :  { %6148 = vmatpush1.bf16.msra.mxu0 %v8113_v50 }
 0x182   :  { %6150 = vmatprep.subr.bf16.mxu0 %v8117_v51 }
 0x185   :  { %6152 = vmatpush1.bf16.msra.mxu0 %v8126_v56 }
 0x186   :  { %6170 = vmatprep.subr.bf16.mxu0 %v8060_v28 }
 0x188   :  { %633 = vmatmul.mubr.f32.vlgmr.msra.gmra.mrb[10].mxu0 %v7672_v49 }
 0x189   :  { %6172 = vmatpush1.bf16.msra.mxu0 %v8074_v34  ;;  %862 = vmatprep.mubr.f32.mxu0 %v7672_v49 }
 0x18a   :  { %6174 = vmatprep.subr.bf16.mxu0 %v8077_v35 }
 0x18d   :  { %6176 = vmatpush1.bf16.msra.mxu0 %v8094_v41 }
 0x18e   :  { %6178 = vmatprep.subr.bf16.mxu0 %v8097_v43 }
 0x191   :  { %6180 = vmatpush1.bf16.msra.mxu0 %v8113_v50 }
 0x192   :  { %6182 = vmatprep.subr.bf16.mxu0 %v8117_v51 }
 0x195   :  { %6184 = vmatpush1.bf16.msra.mxu0 %v8126_v56 }
 0x196   :  { %6202 = vmatprep.subr.bf16.mxu0 %v8060_v28 }
 0x23b   :  { %v366_v4 = vpop.f32.mrb[2].mxu0 }
 0x23c   :  { %v367_v5 = vadd.f32 %v366_v4, %v276_v2  ;;  %v368_v6 = vpop.f32.mrb[3].mxu0 }
 0x23d   :  { %v369_v7 = vadd.f32 %v368_v6, %v280_v3 }
 0x23e   :  { %454 = vst [vmem:[#allocation4] sm:$0xff] %v367_v5 }
 0x23f   :  { %455 = vst [vmem:[#allocation4 + $0x8] sm:$0xff] %v369_v7  ;;  %v372_v8 = vpop.f32.mrb[4].mxu0 }
 0x240   :  { %v373_v9 = vadd.f32 %v372_v8, %v276_v2  ;;  %v374_v10 = vpop.f32.mrb[5].mxu0 }
 0x241   :  { %v375_v11 = vadd.f32 %v374_v10, %v280_v3 }
 0x242   :  { %458 = vst [vmem:[#allocation4 + $0x20] sm:$0xff] %v373_v9 }
 0x243   :  { %459 = vst [vmem:[#allocation4 + $0x28] sm:$0xff] %v375_v11 }
 0x245   :  { %v639_v27 = vld [vmem:[#allocation4] sm:$0x3] }
 0x246   :  { %v640_v32 = vld [vmem:[#allocation4 + $0x8] sm:$0x3]  ;;  %v641_v39 = vadd.f32 %v639_v27, %v563_v57 }
 0x247   :  { %v642_v44 = vadd.f32 %v640_v32, %v565_v59 }
 0x24b   :  { %v443_v16 = vpop.f32.mrb[6].mxu0 }
 0x24c   :  { %v444_v17 = vadd.f32 %v443_v16, %v284_v14  ;;  %v445_v18 = vpop.f32.mrb[7].mxu0 }
 0x24d   :  { %v446_v19 = vadd.f32 %v445_v18, %v288_v15 }
 0x24e   :  { %456 = vst [vmem:[#allocation4 + $0x10] sm:$0xff] %v444_v17 }
 0x24f   :  { %457 = vst [vmem:[#allocation4 + $0x18] sm:$0xff] %v446_v19  ;;  %v449_v20 = vpop.f32.mrb[8].mxu0  ;;  %v869_v19 = vld [vmem:[#allocation4] sm:$0xc] }
 0x250   :  { %v450_v21 = vadd.f32 %v449_v20, %v284_v14  ;;  %v451_v22 = vpop.f32.mrb[9].mxu0 }
 0x251   :  { %v452_v23 = vadd.f32 %v451_v22, %v288_v15 }
 0x252   :  { %460 = vst [vmem:[#allocation4 + $0x30] sm:$0xff] %v450_v21 }
 0x253   :  { %461 = vst [vmem:[#allocation4 + $0x38] sm:$0xff] %v452_v23 }
 0x259   :  { %v643_v29 = vld [vmem:[#allocation4 + $0x30] sm:$0xc0]  ;;  %v879_v20 = vld [vmem:[#allocation4 + $0x30] sm:$0x30] }
 0x25a   :  { %v644_v36 = vld [vmem:[#allocation4 + $0x38] sm:$0xc0] }
 0x25b   :  { %v634_v24 = vpop.f32.mrb[10].mxu0 }
 0x25c   :  { %v647_v25 = vrot.slane %v634_v24, 4  ;;  %v636_v26 = vpop.f32.mrb[11].mxu0 }
 0x25d   :  { %v648_v31 = vrot.slane %v636_v26, 4  ;;  %v880_v26 = vld [vmem:[#allocation4 + $0x38] sm:$0x30] }
 0x25e   :  { %v651_v33 = vadd.f32 %v647_v25, %v643_v29  ;;  %v870_v25 = vld [vmem:[#allocation4 + $0x8] sm:$0xc] }
 0x25f   :  { %v652_v37 = vadd.f32 %v648_v31, %v644_v36 }
 0x260   :  { %v655_v40 = vrot.slane %v651_v33, 4 }
 0x261   :  { %v656_v45 = vrot.slane %v652_v37, 4 }
 0x262   :  { %v660_v46 = vsel %vm659_vm3, %v641_v39, %v655_v40 }
 0x263   :  { %v5528_v47 = vmul.f32 -1.442695, %v660_v46  ;;  %v661_v53 = vsel %vm659_vm3, %v642_v44, %v656_v45 }
 0x264   :  { %v5529_v57 = vmul.f32 -1.442695, %v661_v53 }
 0x265   :  { %7133 = vpow2.f32 %v5528_v47 }
 0x266   :  { %7135 = vtanh.f32 %v661_v53 }
 0x26f   :  { %v7134_v54 = vpop.eup %7133 }
 0x270   :  { %v665_v60 = vadd.f32 1.0, %v7134_v54  ;;  %v7136_v62 = vpop.eup %7135 }
 0x272   :  { %7137 = vrcp.f32 %v665_v60 }
 0x273   :  { %7139 = vpow2.f32 %v5529_v57 }
 0x27c   :  { %v7138_v0 = vpop.eup %7137 }
 0x27d   :  { %v676_v2 = vmul.f32 %v7138_v0, %v7136_v62  ;;  %v7140_v59 = vpop.eup %7139  ;;  %v675_v4 = vmul.f32 0.0, %v7138_v0 }
 0x27e   :  { %v672_v3 = vadd.f32 1.0, %v7140_v59 }
 0x27f   :  { %678 = vrot.lane.b32.xlu0 %v676_v2, %s7673_s28 }
 0x280   :  { %7141 = vrcp.f32 %v672_v3 }
 0x28a   :  { %v7142_v7 = vpop.eup %7141 }
 0x2f1   :  { %v679_v5 = vpop.permute.xlu0 %678 }
 0x2f2   :  { %v8156_v6 = vadd.f32 %v679_v5, %v675_v4 }
 0x2f4   :  { %7143 = vtanh.f32 %v8156_v6 }
 0x2fe   :  { %v7144_v8 = vpop.eup %7143 }
 0x2ff   :  { %v683_v9 = vmul.f32 %v7144_v8, %v7142_v7  ;;  %v1110_v8 = vld [vmem:[#allocation4 + $0x8] sm:$0x30] }
 0x301   :  { %685 = vrot.lane.b32.xlu0 %v683_v9, %s7673_s28  ;;  %v1119_v9 = vld [vmem:[#allocation4 + $0x30] sm:$0xc] }
 0x373   :  { %v686_v10 = vpop.permute.xlu0 %685 }
 0x374   :  { %689 = vst.msk [vmem:[#allocation2] sm:$0x3] %vm688_vm4, %v686_v10  ;;  %5530 = vmatmul.mubr.msk.f32.vlgmr.msra.gmra.mrb[2].mxu1 %vm293_vm2, %v686_v10  ;;  %5531 = vmatmul.mubr.msk.f32.vlgmr.msra.gmra.mrb[12].mxu0 %vm293_vm2, %v686_v10 }
 0x375   :  { %692 = vst.msk [vmem:[#allocation3 + $0xc] sm:$0xc] %vm691_vm5, %v686_v10  ;;  %6188 = vmatpush1.bf16.msra.mxu1 %v7929_v38  ;;  %6204 = vmatpush1.bf16.msra.mxu0 %v8074_v34 }
 0x376   :  { %6190 = vmatprep.subr.bf16.mxu1 %v7938_v42  ;;  %6206 = vmatprep.subr.bf16.mxu0 %v8077_v35 }
 0x377   :  { %1031 = vmatprep.mubr.f32.mxu1 %v7672_v49  ;;  %1102 = vmatprep.mubr.f32.mxu0 %v7672_v49 }
 0x379   :  { %6192 = vmatpush1.bf16.msra.mxu1 %v7953_v48  ;;  %6208 = vmatpush1.bf16.msra.mxu0 %v8094_v41 }
 0x37a   :  { %6194 = vmatprep.subr.bf16.mxu1 %v7964_v52  ;;  %6210 = vmatprep.subr.bf16.mxu0 %v8097_v43 }
 0x37d   :  { %6196 = vmatpush1.bf16.msra.mxu1 %v7973_v55  ;;  %6212 = vmatpush1.bf16.msra.mxu0 %v8113_v50 }
 0x37e   :  { %6198 = vmatprep.subr.bf16.mxu1 %v7982_v58  ;;  %6214 = vmatprep.subr.bf16.mxu0 %v8117_v51 }
 0x381   :  { %6200 = vmatpush1.bf16.msra.mxu1 %v7991_v61  ;;  %6216 = vmatpush1.bf16.msra.mxu0 %v8126_v56 }
 0x382   :  { %6218 = vmatprep.subr.bf16.mxu1 %v7908_v30  ;;  %6234 = vmatprep.subr.bf16.mxu0 %v8060_v28 }
 0x447   :  { %v793_v11 = vpop.f32.mrb[2].mxu1  ;;  %v864_v14 = vpop.f32.mrb[12].mxu0 }
 0x448   :  { %v873_v15 = vrot.slane %v793_v11, 6  ;;  %v883_v16 = vrot.slane %v864_v14, 6  ;;  %v795_v17 = vpop.f32.mrb[3].mxu1  ;;  %v866_v18 = vpop.f32.mrb[13].mxu0 }
 0x449   :  { %v874_v21 = vrot.slane %v795_v17, 6  ;;  %v884_v22 = vrot.slane %v866_v18, 6 }
 0x44a   :  { %v877_v23 = vadd.f32 %v873_v15, %v869_v19  ;;  %v887_v24 = vadd.f32 %v883_v16, %v879_v20  ;;  %v1120_v15 = vld [vmem:[#allocation4 + $0x38] sm:$0xc] }
 0x44b   :  { %v878_v27 = vadd.f32 %v874_v21, %v870_v25  ;;  %v888_v29 = vadd.f32 %v884_v22, %v880_v26 }
 0x44c   :  { %v891_v31 = vrot.slane %v877_v23, 2  ;;  %v897_v30 = vrot.slane %v887_v24, 2 }
 0x44d   :  { %v892_v32 = vrot.slane %v878_v27, 2  ;;  %v898_v33 = vrot.slane %v888_v29, 2 }
 0x44e   :  { %v901_v36 = vsel %vm659_vm3, %v891_v31, %v897_v30 }
 0x44f   :  { %v5532_v37 = vmul.f32 -1.442695, %v901_v36  ;;  %v902_v39 = vsel %vm659_vm3, %v892_v32, %v898_v33 }
 0x450   :  { %v5533_v53 = vmul.f32 -1.442695, %v902_v39 }
 0x451   :  { %7145 = vpow2.f32 %v5532_v37 }
 0x452   :  { %7147 = vtanh.f32 %v902_v39 }
 0x45b   :  { %v7146_v40 = vpop.eup %7145 }
 0x45c   :  { %v906_v44 = vadd.f32 1.0, %v7146_v40  ;;  %v7148_v45 = vpop.eup %7147 }
 0x45e   :  { %7149 = vrcp.f32 %v906_v44 }
 0x45f   :  { %7151 = vpow2.f32 %v5533_v53 }
 0x468   :  { %v7150_v46 = vpop.eup %7149 }
 0x469   :  { %v917_v47 = vmul.f32 %v7150_v46, %v7148_v45  ;;  %v7152_v54 = vpop.eup %7151  ;;  %v916_v62 = vmul.f32 %v7150_v46, %v8156_v6  ;;  %v1109_v6 = vld [vmem:[#allocation4] sm:$0x30] }
 0x46a   :  { %v913_v60 = vadd.f32 1.0, %v7152_v54 }
 0x46b   :  { %919 = vrot.lane.b32.xlu1 %v917_v47, %s7673_s28  ;;  %v1337_v47 = vld [vmem:[#allocation4] sm:$0xc0] }
 0x46c   :  { %7153 = vrcp.f32 %v913_v60 }
 0x476   :  { %v7154_v57 = vpop.eup %7153 }
 0x4dd   :  { %v920_v0 = vpop.permute.xlu1 %919 }
 0x4de   :  { %v922_v2 = vadd.f32 %v920_v0, %v916_v62  ;;  %v1338_v62 = vld [vmem:[#allocation4 + $0x8] sm:$0xc0] }
 0x4e0   :  { %7155 = vtanh.f32 %v922_v2 }
 0x4ea   :  { %v7156_v59 = vpop.eup %7155 }
 0x4eb   :  { %v924_v3 = vmul.f32 %v7156_v59, %v7154_v57 }
 0x4ed   :  { %926 = vrot.lane.b32.xlu1 %v924_v3, %s7673_s28 }
 0x55f   :  { %v927_v4 = vpop.permute.xlu1 %926 }
 0x560   :  { %930 = vst.msk [vmem:[#allocation2 + $0x2] sm:$0x3] %vm688_vm4, %v927_v4  ;;  %5534 = vmatmul.mubr.msk.f32.vlgmr.msra.gmra.mrb[4].mxu1 %vm293_vm2, %v927_v4  ;;  %5535 = vmatmul.mubr.msk.f32.vlgmr.msra.gmra.mrb[14].mxu0 %vm293_vm2, %v927_v4 }
 0x561   :  { %932 = vst.msk [vmem:[#allocation3 + $0xa] sm:$0xc] %vm691_vm5, %v927_v4  ;;  %6220 = vmatpush1.bf16.msra.mxu1 %v7929_v38  ;;  %6236 = vmatpush1.bf16.msra.mxu0 %v8074_v34 }
 0x562   :  { %6222 = vmatprep.subr.bf16.mxu1 %v7938_v42  ;;  %6238 = vmatprep.subr.bf16.mxu0 %v8077_v35 }
 0x563   :  { %1259 = vmatprep.mubr.f32.mxu1 %v7672_v49  ;;  %1330 = vmatprep.mubr.f32.mxu0 %v7672_v49 }
 0x565   :  { %6224 = vmatpush1.bf16.msra.mxu1 %v7953_v48  ;;  %6240 = vmatpush1.bf16.msra.mxu0 %v8094_v41 }
 0x566   :  { %6226 = vmatprep.subr.bf16.mxu1 %v7964_v52  ;;  %6242 = vmatprep.subr.bf16.mxu0 %v8097_v43 }
 0x569   :  { %6228 = vmatpush1.bf16.msra.mxu1 %v7973_v55  ;;  %6244 = vmatpush1.bf16.msra.mxu0 %v8113_v50 }
 0x56a   :  { %6230 = vmatprep.subr.bf16.mxu1 %v7982_v58  ;;  %6246 = vmatprep.subr.bf16.mxu0 %v8117_v51 }
 0x56d   :  { %6232 = vmatpush1.bf16.msra.mxu1 %v7991_v61  ;;  %6248 = vmatpush1.bf16.msra.mxu0 %v8126_v56 }
 0x56e   :  { %6266 = vmatprep.subr.bf16.mxu0 %v8060_v28 }
 0x633   :  { %v1033_v38 = vpop.f32.mrb[4].mxu1  ;;  %v1104_v42 = vpop.f32.mrb[14].mxu0 }
 0x634   :  { %v1113_v48 = vrot.slane %v1033_v38, 4  ;;  %v1035_v52 = vpop.f32.mrb[5].mxu1  ;;  %v1106_v5 = vpop.f32.mrb[15].mxu0  ;;  %v1121_v14 = vadd.f32 %v1119_v9, %v1104_v42  ;;  %v1405_v9 = vld [vmem:[%s9362_s5 + $0x20] sm:$0xff] }
 0x635   :  { %v1114_v7 = vrot.slane %v1035_v52, 4  ;;  %v1122_v17 = vadd.f32 %v1120_v15, %v1106_v5 }
 0x636   :  { %v1117_v55 = vadd.f32 %v1113_v48, %v1109_v6  ;;  %v1402_v6 = vld [vmem:[%s9362_s5 + $0x8] sm:$0xff] }
 0x637   :  { %v1118_v10 = vadd.f32 %v1114_v7, %v1110_v8  ;;  %v1406_v7 = vld [vmem:[%s9362_s5 + $0x28] sm:$0xff] }
 0x638   :  { %v1125_v11 = vrot.slane %v1117_v55, 4  ;;  %v1401_v55 = vld [vmem:[%s9362_s5] sm:$0xff]  ;;  %v8240_v8 = vpack.c.bf16 %v1406_v7, %v1402_v6 }
 0x639   :  { %v1126_v16 = vrot.slane %v1118_v10, 4  ;;  %v1410_v10 = vld [vmem:[%s9362_s5 + $0x48] sm:$0xff] }
 0x63a   :  { %v1129_v18 = vsel %vm659_vm3, %v1125_v11, %v1121_v14  ;;  %v1414_v11 = vld [vmem:[%s9362_s5 + $0x68] sm:$0xff]  ;;  %v8251_v14 = vpack.c.bf16 %v1405_v9, %v1401_v55  ;;  %6250 = vmatprep.subr.bf16.mxu1 %v8240_v8  ;;  %v1639_v55 = vld [vmem:[%s9362_s5 + $0x50] sm:$0xff] }
 0x63b   :  { %v5536_v19 = vmul.f32 -1.442695, %v1129_v18  ;;  %v1130_v28 = vsel %vm659_vm3, %v1126_v16, %v1122_v17  ;;  %v8253_v15 = vpack.c.bf16 %v1414_v11, %v1410_v10  ;;  %v1409_v16 = vld [vmem:[%s9362_s5 + $0x40] sm:$0xff]  ;;  %v1418_v18 = vld [vmem:[%s9362_s5 + $0x88] sm:$0xff]  ;;  %v1643_v9 = vld [vmem:[%s9362_s5 + $0x70] sm:$0xff] }
 0x63c   :  { %v5537_v25 = vmul.f32 -1.442695, %v1130_v28  ;;  %v1413_v17 = vld [vmem:[%s9362_s5 + $0x60] sm:$0xff]  ;;  %v1648_v10 = vld [vmem:[%s9362_s5 + $0x98] sm:$0xff] }
 0x63d   :  { %7157 = vpow2.f32 %v5536_v19  ;;  %v1422_v19 = vld [vmem:[%s9362_s5 + $0xa8] sm:$0xff]  ;;  %v1652_v11 = vld [vmem:[%s9362_s5 + $0xb8] sm:$0xff] }
 0x63e   :  { %7159 = vtanh.f32 %v1130_v28  ;;  %v8269_v28 = vpack.c.bf16 %v1413_v17, %v1409_v16  ;;  %v8345_v16 = vpack.c.bf16 %v1643_v9, %v1639_v55  ;;  %v1647_v17 = vld [vmem:[%s9362_s5 + $0x90] sm:$0xff] }
 0x647   :  { %v7158_v20 = vpop.eup %7157 }
 0x648   :  { %v1134_v21 = vadd.f32 1.0, %v7158_v20  ;;  %v7160_v22 = vpop.eup %7159  ;;  %v8272_v20 = vpack.c.bf16 %v1422_v19, %v1418_v18  ;;  %v1654_v18 = vld [vmem:[%s9362_s5 + $0xc8] sm:$0xff] }
 0x649   :  { %v1658_v19 = vld [vmem:[%s9362_s5 + $0xe8] sm:$0xff] }
 0x64a   :  { %7161 = vrcp.f32 %v1134_v21  ;;  %v1417_v21 = vld [vmem:[%s9362_s5 + $0x80] sm:$0xff] }
 0x64b   :  { %7163 = vpow2.f32 %v5537_v25 }
 0x654   :  { %v7162_v23 = vpop.eup %7161 }
 0x655   :  { %v1145_v24 = vmul.f32 %v7162_v23, %v7160_v22  ;;  %v7164_v26 = vpop.eup %7163  ;;  %v1144_v29 = vmul.f32 %v7162_v23, %v922_v2  ;;  %v1421_v22 = vld [vmem:[%s9362_s5 + $0xa0] sm:$0xff] }
 0x656   :  { %v1141_v27 = vadd.f32 1.0, %v7164_v26  ;;  %v8281_v23 = vpack.c.bf16 %v1421_v22, %v1417_v21  ;;  %v8357_v21 = vpack.c.bf16 %v1652_v11, %v1648_v10  ;;  %v1651_v22 = vld [vmem:[%s9362_s5 + $0xb0] sm:$0xff] }
 0x657   :  { %1147 = vrot.lane.b32.xlu0 %v1145_v24, %s7673_s28 }
 0x658   :  { %7165 = vrcp.f32 %v1141_v27 }
 0x662   :  { %v7166_v32 = vpop.eup %7165 }
 0x6c9   :  { %v1148_v31 = vpop.permute.xlu0 %1147 }
 0x6ca   :  { %v8211_v30 = vadd.f32 %v1148_v31, %v1144_v29 }
 0x6cc   :  { %7167 = vtanh.f32 %v8211_v30 }
 0x6d6   :  { %v7168_v33 = vpop.eup %7167 }
 0x6d7   :  { %v1152_v36 = vmul.f32 %v7168_v33, %v7166_v32 }
 0x6d9   :  { %1154 = vrot.lane.b32.xlu1 %v1152_v36, %s7673_s28 }
 0x74b   :  { %v1155_v37 = vpop.permute.xlu1 %1154 }
 0x74c   :  { %1158 = vst.msk [vmem:[#allocation2 + $0x4] sm:$0x3] %vm688_vm4, %v1155_v37  ;;  %5538 = vmatmul.mubr.msk.f32.vlgmr.msra.gmra.mrb[6].mxu1 %vm293_vm2, %v1155_v37  ;;  %5539 = vmatmul.mubr.msk.f32.vlgmr.msra.gmra.mrb[16].mxu0 %vm293_vm2, %v1155_v37 }
 0x74d   :  { %1160 = vst.msk [vmem:[#allocation3 + $0x8] sm:$0xc] %vm691_vm5, %v1155_v37  ;;  %6268 = vmatpush1.bf16.msra.mxu0 %v8074_v34  ;;  %1499 = vmatprep.mubr.f32.mxu1 %v7672_v49 }
 0x74e   :  { %6270 = vmatprep.subr.bf16.mxu0 %v8077_v35  ;;  %1570 = vmatprep.mubr.f32.mxu0 %v7672_v49  ;;  %v1347_v35 = vld [vmem:[#allocation4 + $0x30] sm:$0x3] }
 0x74f   :  { %6252 = vmatpush1.bf16.msra.mxu1 %v8251_v14 }
 0x750   :  { %6254 = vmatprep.subr.bf16.mxu1 %v8253_v15 }
 0x751   :  { %6272 = vmatpush1.bf16.msra.mxu0 %v8094_v41 }
 0x752   :  { %6274 = vmatprep.subr.bf16.mxu0 %v8097_v43  ;;  %v1348_v43 = vld [vmem:[#allocation4 + $0x38] sm:$0x3] }
 0x753   :  { %6256 = vmatpush1.bf16.msra.mxu1 %v8269_v28 }
 0x754   :  { %6258 = vmatprep.subr.bf16.mxu1 %v8272_v20 }
 0x755   :  { %6276 = vmatpush1.bf16.msra.mxu0 %v8113_v50 }
 0x756   :  { %6278 = vmatprep.subr.bf16.mxu0 %v8117_v51 }
 0x757   :  { %6260 = vmatpush1.bf16.msra.mxu1 %v8281_v23 }
 0x758   :  { %6262 = vmatprep.subr.bf16.mxu1 %v7982_v58 }
 0x759   :  { %6280 = vmatpush1.bf16.msra.mxu0 %v8126_v56 }
 0x75b   :  { %6264 = vmatpush1.bf16.msra.mxu1 %v7991_v61 }
 0x75c   :  { %6282 = vmatprep.subr.bf16.mxu1 %v8240_v8 }
 0x81f   :  { %v1261_v39 = vpop.f32.mrb[6].mxu1  ;;  %v1332_v40 = vpop.f32.mrb[16].mxu0 }
 0x820   :  { %v1341_v44 = vrot.slane %v1261_v39, 2  ;;  %v1351_v34 = vrot.slane %v1332_v40, 2  ;;  %v1263_v45 = vpop.f32.mrb[7].mxu1  ;;  %v1334_v46 = vpop.f32.mrb[17].mxu0 }
 0x821   :  { %v1342_v53 = vrot.slane %v1263_v45, 2  ;;  %v1352_v54 = vrot.slane %v1334_v46, 2  ;;  %v1582_v46 = vld [vmem:[#allocation4 + $0x18] sm:$0xc0] }
 0x822   :  { %v1345_v60 = vadd.f32 %v1341_v44, %v1337_v47  ;;  %v1355_v41 = vadd.f32 %v1351_v34, %v1347_v35  ;;  %v1581_v44 = vld [vmem:[#allocation4 + $0x10] sm:$0xc0]  ;;  %v1577_v47 = vld [vmem:[#allocation4 + $0x20] sm:$0x3] }
 0x823   :  { %v1346_v0 = vadd.f32 %v1342_v53, %v1338_v62  ;;  %v1356_v50 = vadd.f32 %v1352_v54, %v1348_v43 }
 0x824   :  { %v1359_v2 = vrot.slane %v1345_v60, 6  ;;  %v1365_v51 = vrot.slane %v1355_v41, 6  ;;  %v1578_v60 = vld [vmem:[#allocation4 + $0x28] sm:$0x3] }
 0x825   :  { %v1360_v57 = vrot.slane %v1346_v0, 6  ;;  %v1366_v56 = vrot.slane %v1356_v50, 6 }
 0x826   :  { %v1369_v59 = vsel %vm659_vm3, %v1359_v2, %v1365_v51 }
 0x827   :  { %v5540_v3 = vmul.f32 -1.442695, %v1369_v59  ;;  %v1370_v4 = vsel %vm659_vm3, %v1360_v57, %v1366_v56 }
 0x828   :  { %v5541_v24 = vmul.f32 -1.442695, %v1370_v4 }
 0x829   :  { %7169 = vpow2.f32 %v5540_v3  ;;  %v1632_v3 = vld [vmem:[%s9362_s5 + $0x18] sm:$0xff] }
 0x82a   :  { %7171 = vtanh.f32 %v1370_v4  ;;  %v1636_v4 = vld [vmem:[%s9362_s5 + $0x38] sm:$0xff] }
 0x833   :  { %v7170_v38 = vpop.eup %7169 }
 0x834   :  { %v1374_v42 = vadd.f32 1.0, %v7170_v38  ;;  %v7172_v48 = vpop.eup %7171  ;;  %v1631_v38 = vld [vmem:[%s9362_s5 + $0x10] sm:$0xff] }
 0x836   :  { %7173 = vrcp.f32 %v1374_v42  ;;  %v8316_v42 = vpack.c.bf16 %v1636_v4, %v1632_v3  ;;  %v1816_v3 = vld [vmem:[#allocation4 + $0x18] sm:$0x30] }
 0x837   :  { %7175 = vpow2.f32 %v5541_v24  ;;  %v8362_v24 = vpack.c.bf16 %v1658_v19, %v1654_v18 }
 0x838   :  { %6298 = vmatprep.subr.bf16.mxu0 %v8316_v42 }
 0x840   :  { %v7174_v52 = vpop.eup %7173 }
 0x841   :  { %v1385_v5 = vmul.f32 %v7174_v52, %v7172_v48  ;;  %v7176_v25 = vpop.eup %7175  ;;  %v1384_v27 = vmul.f32 %v7174_v52, %v8211_v30  ;;  %v1635_v48 = vld [vmem:[%s9362_s5 + $0x30] sm:$0xff]  ;;  %v1640_v52 = vld [vmem:[%s9362_s5 + $0x58] sm:$0xff] }
 0x842   :  { %v1381_v26 = vadd.f32 1.0, %v7176_v25  ;;  %v8327_v6 = vpack.c.bf16 %v1635_v48, %v1631_v38  ;;  %v1653_v25 = vld [vmem:[%s9362_s5 + $0xc0] sm:$0xff] }
 0x843   :  { %1387 = vrot.lane.b32.xlu0 %v1385_v5, %s7673_s28  ;;  %v1644_v5 = vld [vmem:[%s9362_s5 + $0x78] sm:$0xff] }
 0x844   :  { %7177 = vrcp.f32 %v1381_v26  ;;  %v8329_v7 = vpack.c.bf16 %v1644_v5, %v1640_v52  ;;  %v1657_v26 = vld [vmem:[%s9362_s5 + $0xe0] sm:$0xff] }
 0x84e   :  { %v7178_v32 = vpop.eup %7177 }
 0x8b5   :  { %v1388_v29 = vpop.permute.xlu0 %1387 }
 0x8b6   :  { %v8289_v31 = vadd.f32 %v1388_v29, %v1384_v27  ;;  %v1656_v27 = vld [vmem:[%s9362_s5 + $0xd8] sm:$0xff] }
 0x8b7   :  { %v1660_v29 = vld [vmem:[%s9362_s5 + $0xf8] sm:$0xff] }
 0x8b8   :  { %7179 = vtanh.f32 %v8289_v31 }
 0x8c2   :  { %v7180_v33 = vpop.eup %7179 }
 0x8c3   :  { %v1392_v36 = vmul.f32 %v7180_v33, %v7178_v32  ;;  %v8376_v32 = vpack.c.bf16 %v1657_v26, %v1653_v25  ;;  %v8380_v33 = vpack.c.bf16 %v1651_v22, %v1647_v17 }
 0x8c5   :  { %1394 = vrot.lane.b32.xlu1 %v1392_v36, %s7673_s28  ;;  %v8384_v36 = vpack.c.bf16 %v1660_v29, %v1656_v27 }
 0x937   :  { %v1395_v58 = vpop.permute.xlu1 %1394 }
 0x938   :  { %1398 = vst.msk [vmem:[#allocation2 + $0x6] sm:$0x3] %vm688_vm4, %v1395_v58  ;;  %5542 = vmatmul.mubr.msk.f32.vlgmr.msra.gmra.mrb[8].mxu1 %vm293_vm2, %v1395_v58  ;;  %5543 = vmatmul.mubr.msk.f32.vlgmr.msra.gmra.mrb[18].mxu0 %vm293_vm2, %v1395_v58 }
 0x939   :  { %1400 = vst.msk [vmem:[#allocation3 + $0x6] sm:$0xc] %vm691_vm5, %v1395_v58  ;;  %6284 = vmatpush1.bf16.msra.mxu1 %v8251_v14  ;;  %1727 = vmatprep.mubr.f32.mxu1 %v7672_v49  ;;  %v1655_v58 = vld [vmem:[%s9362_s5 + $0xd0] sm:$0xff] }
 0x93a   :  { %6286 = vmatprep.subr.bf16.mxu1 %v8253_v15  ;;  %1798 = vmatprep.mubr.f32.mxu0 %v7672_v49 }
 0x93b   :  { %6300 = vmatpush1.bf16.msra.mxu0 %v8327_v6 }
 0x93c   :  { %6302 = vmatprep.subr.bf16.mxu0 %v8329_v7 }
 0x93d   :  { %6288 = vmatpush1.bf16.msra.mxu1 %v8269_v28 }
 0x93e   :  { %6290 = vmatprep.subr.bf16.mxu1 %v8272_v20 }
 0x93f   :  { %6304 = vmatpush1.bf16.msra.mxu0 %v8345_v16 }
 0x940   :  { %6306 = vmatprep.subr.bf16.mxu0 %v8357_v21 }
 0x941   :  { %6292 = vmatpush1.bf16.msra.mxu1 %v8281_v23 }
 0x942   :  { %6294 = vmatprep.subr.bf16.mxu1 %v8362_v24 }
 0x943   :  { %6308 = vmatpush1.bf16.msra.mxu0 %v8380_v33 }
 0x944   :  { %6310 = vmatprep.subr.bf16.mxu0 %v8384_v36 }
 0x945   :  { %6296 = vmatpush1.bf16.msra.mxu1 %v8376_v32 }
 0x946   :  { %6314 = vmatprep.subr.bf16.mxu1 %v8240_v8 }
 0xa0b   :  { %v1501_v61 = vpop.f32.mrb[8].mxu1  ;;  %v1572_v30 = vpop.f32.mrb[18].mxu0 }
 0xa0c   :  { %v1585_v37 = vrot.slane %v1572_v30, 4  ;;  %v1503_v39 = vpop.f32.mrb[9].mxu1  ;;  %v1574_v40 = vpop.f32.mrb[19].mxu0  ;;  %v1579_v53 = vadd.f32 %v1577_v47, %v1501_v61  ;;  %v1659_v61 = vld [vmem:[%s9362_s5 + $0xf0] sm:$0xff] }
 0xa0d   :  { %v1586_v34 = vrot.slane %v1574_v40, 4  ;;  %v1580_v41 = vadd.f32 %v1578_v60, %v1503_v39  ;;  %v8394_v30 = vpack.c.bf16 %v1659_v61, %v1655_v58 }
 0xa0e   :  { %v1589_v45 = vadd.f32 %v1585_v37, %v1581_v44 }
 0xa0f   :  { %v1590_v35 = vadd.f32 %v1586_v34, %v1582_v46  ;;  %6312 = vmatpush1.bf16.msra.mxu0 %v8394_v30 }
 0xa10   :  { %v1593_v54 = vrot.slane %v1589_v45, 4  ;;  %6330 = vmatprep.subr.bf16.mxu0 %v8316_v42 }
 0xa11   :  { %v1594_v62 = vrot.slane %v1590_v35, 4 }
 0xa12   :  { %v1597_v43 = vsel %vm659_vm3, %v1579_v53, %v1593_v54 }
 0xa13   :  { %v5544_v0 = vmul.f32 -1.442695, %v1597_v43  ;;  %v1598_v50 = vsel %vm659_vm3, %v1580_v41, %v1594_v62 }
 0xa14   :  { %v5545_v37 = vmul.f32 -1.442695, %v1598_v50 }
 0xa15   :  { %7181 = vpow2.f32 %v5544_v0  ;;  %v1805_v0 = vld [vmem:[#allocation4 + $0x20] sm:$0xc] }
 0xa16   :  { %7183 = vtanh.f32 %v1598_v50  ;;  %v1815_v50 = vld [vmem:[#allocation4 + $0x10] sm:$0x30] }
 0xa1f   :  { %v7182_v2 = vpop.eup %7181 }
 0xa20   :  { %v1602_v51 = vadd.f32 1.0, %v7182_v2  ;;  %v7184_v57 = vpop.eup %7183 }
 0xa22   :  { %7185 = vrcp.f32 %v1602_v51 }
 0xa23   :  { %7187 = vpow2.f32 %v5545_v37 }
 0xa2c   :  { %v7186_v56 = vpop.eup %7185 }
 0xa2d   :  { %v1613_v59 = vmul.f32 %v7186_v56, %v7184_v57  ;;  %v7188_v39 = vpop.eup %7187  ;;  %v1612_v44 = vmul.f32 %v7186_v56, %v8289_v31 }
 0xa2e   :  { %v1609_v40 = vadd.f32 1.0, %v7188_v39 }
 0xa2f   :  { %1615 = vrot.lane.b32.xlu0 %v1613_v59, %s7673_s28  ;;  %v1806_v59 = vld [vmem:[#allocation4 + $0x28] sm:$0xc] }
 0xa30   :  { %7189 = vrcp.f32 %v1609_v40 }
 0xa3a   :  { %v7190_v46 = vpop.eup %7189 }
 0xaa1   :  { %v1616_v34 = vpop.permute.xlu0 %1615 }
 0xaa2   :  { %v8400_v45 = vadd.f32 %v1616_v34, %v1612_v44  ;;  %v2046_v44 = vld [vmem:[#allocation4 + $0x28] sm:$0x30] }
 0xaa4   :  { %7191 = vtanh.f32 %v8400_v45 }
 0xaae   :  { %v7192_v47 = vpop.eup %7191 }
 0xaaf   :  { %v1620_v35 = vmul.f32 %v7192_v47, %v7190_v46 }
 0xab1   :  { %1622 = vrot.lane.b32.xlu1 %v1620_v35, %s7673_s28 }
 0xb23   :  { %v1623_v53 = vpop.permute.xlu1 %1622 }
 0xb24   :  { %1626 = vst.msk [vmem:[#allocation2 + $0x8] sm:$0x3] %vm688_vm4, %v1623_v53  ;;  %5546 = vmatmul.mubr.msk.f32.vlgmr.msra.gmra.mrb[10].mxu1 %vm293_vm2, %v1623_v53  ;;  %5547 = vmatmul.mubr.msk.f32.vlgmr.msra.gmra.mrb[20].mxu0 %vm293_vm2, %v1623_v53 }
 0xb25   :  { %1628 = vst.msk [vmem:[#allocation3 + $0x4] sm:$0xc] %vm691_vm5, %v1623_v53  ;;  %6316 = vmatpush1.bf16.msra.mxu1 %v8251_v14  ;;  %6332 = vmatpush1.bf16.msra.mxu0 %v8327_v6 }
 0xb26   :  { %6318 = vmatprep.subr.bf16.mxu1 %v8253_v15  ;;  %6334 = vmatprep.subr.bf16.mxu0 %v8329_v7 }
 0xb27   :  { %1967 = vmatprep.mubr.f32.mxu1 %v7672_v49  ;;  %2038 = vmatprep.mubr.f32.mxu0 %v7672_v49 }
 0xb29   :  { %6320 = vmatpush1.bf16.msra.mxu1 %v8269_v28  ;;  %6336 = vmatpush1.bf16.msra.mxu0 %v8345_v16 }
 0xb2a   :  { %6322 = vmatprep.subr.bf16.mxu1 %v8272_v20  ;;  %6338 = vmatprep.subr.bf16.mxu0 %v8357_v21 }
 0xb2d   :  { %6324 = vmatpush1.bf16.msra.mxu1 %v8281_v23  ;;  %6340 = vmatpush1.bf16.msra.mxu0 %v8380_v33 }
 0xb2e   :  { %6326 = vmatprep.subr.bf16.mxu1 %v8362_v24  ;;  %6342 = vmatprep.subr.bf16.mxu0 %v8384_v36 }
 0xb31   :  { %6328 = vmatpush1.bf16.msra.mxu1 %v8376_v32  ;;  %6344 = vmatpush1.bf16.msra.mxu0 %v8394_v30 }
 0xb32   :  { %6346 = vmatprep.subr.bf16.mxu1 %v8240_v8  ;;  %6362 = vmatprep.subr.bf16.mxu0 %v8316_v42 }
 0xbf7   :  { %v1729_v31 = vpop.f32.mrb[10].mxu1  ;;  %v1800_v54 = vpop.f32.mrb[20].mxu0 }
 0xbf8   :  { %v1809_v60 = vrot.slane %v1729_v31, 6  ;;  %v1819_v41 = vrot.slane %v1800_v54, 6  ;;  %v1731_v62 = vpop.f32.mrb[11].mxu1  ;;  %v1802_v43 = vpop.f32.mrb[21].mxu0 }
 0xbf9   :  { %v1810_v2 = vrot.slane %v1731_v62, 6  ;;  %v1820_v51 = vrot.slane %v1802_v43, 6 }
 0xbfa   :  { %v1813_v57 = vadd.f32 %v1809_v60, %v1805_v0  ;;  %v1823_v56 = vadd.f32 %v1819_v41, %v1815_v50 }
 0xbfb   :  { %v1814_v4 = vadd.f32 %v1810_v2, %v1806_v59  ;;  %v1824_v38 = vadd.f32 %v1820_v51, %v1816_v3 }
 0xbfc   :  { %v1827_v48 = vrot.slane %v1813_v57, 2  ;;  %v1833_v8 = vrot.slane %v1823_v56, 2 }
 0xbfd   :  { %v1828_v52 = vrot.slane %v1814_v4, 2  ;;  %v1834_v42 = vrot.slane %v1824_v38, 2 }
 0xbfe   :  { %v1837_v5 = vsel %vm659_vm3, %v1827_v48, %v1833_v8 }
 0xbff   :  { %v5548_v55 = vmul.f32 -1.442695, %v1837_v5  ;;  %v1838_v9 = vsel %vm659_vm3, %v1828_v52, %v1834_v42  ;;  %v2273_v42 = vld [vmem:[#allocation4 + $0x20] sm:$0xc0]  ;;  %v2283_v5 = vld [vmem:[#allocation4 + $0x10] sm:$0x3] }
 0xc00   :  { %v5549_v22 = vmul.f32 -1.442695, %v1838_v9 }
 0xc01   :  { %7193 = vpow2.f32 %v5548_v55 }
 0xc02   :  { %7195 = vtanh.f32 %v1838_v9 }
 0xc0b   :  { %v7194_v10 = vpop.eup %7193 }
 0xc0c   :  { %v1842_v11 = vadd.f32 1.0, %v7194_v10  ;;  %v7196_v17 = vpop.eup %7195 }
 0xc0e   :  { %7197 = vrcp.f32 %v1842_v11 }
 0xc0f   :  { %7199 = vpow2.f32 %v5549_v22 }
 0xc18   :  { %v7198_v18 = vpop.eup %7197 }
 0xc19   :  { %v1853_v19 = vmul.f32 %v7198_v18, %v7196_v17  ;;  %v7200_v25 = vpop.eup %7199  ;;  %v1852_v27 = vmul.f32 %v7198_v18, %v8400_v45  ;;  %v2274_v17 = vld [vmem:[#allocation4 + $0x28] sm:$0xc0]  ;;  %v2284_v18 = vld [vmem:[#allocation4 + $0x18] sm:$0x3] }
 0xc1a   :  { %v1849_v26 = vadd.f32 1.0, %v7200_v25 }
 0xc1b   :  { %1855 = vrot.lane.b32.xlu0 %v1853_v19, %s7673_s28 }
 0xc1c   :  { %7201 = vrcp.f32 %v1849_v26 }
 0xc26   :  { %v7202_v61 = vpop.eup %7201 }
 0xc8d   :  { %v1856_v29 = vpop.permute.xlu0 %1855 }
 0xc8e   :  { %v1858_v58 = vadd.f32 %v1856_v29, %v1852_v27 }
 0xc90   :  { %7203 = vtanh.f32 %v1858_v58 }
 0xc9a   :  { %v7204_v37 = vpop.eup %7203 }
 0xc9b   :  { %v1860_v39 = vmul.f32 %v7204_v37, %v7202_v61 }
 0xc9d   :  { %1862 = vrot.lane.b32.xlu1 %v1860_v39, %s7673_s28 }
 0xd0f   :  { %v1863_v40 = vpop.permute.xlu1 %1862 }
 0xd10   :  { %1866 = vst.msk [vmem:[#allocation2 + $0xa] sm:$0x3] %vm688_vm4, %v1863_v40  ;;  %5550 = vmatmul.mubr.msk.f32.vlgmr.msra.gmra.mrb[12].mxu1 %vm293_vm2, %v1863_v40  ;;  %5551 = vmatmul.mubr.msk.f32.vlgmr.msra.gmra.mrb[22].mxu0 %vm293_vm2, %v1863_v40 }
 0xd11   :  { %1868 = vst.msk [vmem:[#allocation3 + $0x2] sm:$0xc] %vm691_vm5, %v1863_v40  ;;  %6348 = vmatpush1.bf16.msra.mxu1 %v8251_v14  ;;  %6364 = vmatpush1.bf16.msra.mxu0 %v8327_v6 }
 0xd12   :  { %6350 = vmatprep.subr.bf16.mxu1 %v8253_v15  ;;  %6366 = vmatprep.subr.bf16.mxu0 %v8329_v7 }
 0xd13   :  { %2195 = vmatprep.mubr.f32.mxu1 %v7672_v49  ;;  %2266 = vmatprep.mubr.f32.mxu0 %v7672_v49 }
 0xd15   :  { %6352 = vmatpush1.bf16.msra.mxu1 %v8269_v28  ;;  %6368 = vmatpush1.bf16.msra.mxu0 %v8345_v16 }
 0xd16   :  { %6354 = vmatprep.subr.bf16.mxu1 %v8272_v20  ;;  %6370 = vmatprep.subr.bf16.mxu0 %v8357_v21  ;;  %v2045_v20 = vld [vmem:[#allocation4 + $0x20] sm:$0x30] }
 0xd19   :  { %6356 = vmatpush1.bf16.msra.mxu1 %v8281_v23  ;;  %6372 = vmatpush1.bf16.msra.mxu0 %v8380_v33  ;;  %v2055_v23 = vld [vmem:[#allocation4 + $0x10] sm:$0xc] }
 0xd1a   :  { %6358 = vmatprep.subr.bf16.mxu1 %v8362_v24  ;;  %6374 = vmatprep.subr.bf16.mxu0 %v8384_v36  ;;  %v2056_v24 = vld [vmem:[#allocation4 + $0x18] sm:$0xc] }
 0xd1d   :  { %6360 = vmatpush1.bf16.msra.mxu1 %v8376_v32  ;;  %6376 = vmatpush1.bf16.msra.mxu0 %v8394_v30 }
 0xde3   :  { %v1969_v14 = vpop.f32.mrb[12].mxu1  ;;  %v2040_v15 = vpop.f32.mrb[22].mxu0 }
 0xde4   :  { %v2049_v28 = vrot.slane %v1969_v14, 4  ;;  %v1971_v6 = vpop.f32.mrb[13].mxu1  ;;  %v2042_v7 = vpop.f32.mrb[23].mxu0  ;;  %v2057_v45 = vadd.f32 %v2055_v23, %v2040_v15  ;;  %v2412_v23 = vld [vmem:[%s9363_s6 + $0x50] sm:$0xff] }
 0xde5   :  { %v2050_v16 = vrot.slane %v1971_v6, 4  ;;  %v2058_v36 = vadd.f32 %v2056_v24, %v2042_v7  ;;  %v2410_v6 = vld [vmem:[%s9363_s6 + $0x40] sm:$0xff]  ;;  %v2411_v7 = vld [vmem:[%s9363_s6 + $0x48] sm:$0xff] }
 0xde6   :  { %v2053_v21 = vadd.f32 %v2049_v28, %v2045_v20  ;;  %v2604_v20 = vld [vmem:[%s9364_s7] sm:$0xff] }
 0xde7   :  { %v2054_v34 = vadd.f32 %v2050_v16, %v2046_v44  ;;  %v6377_v16 = vpack.c.bf16 %v2411_v7, %v2410_v6  ;;  %v2605_v44 = vld [vmem:[%s9364_s7 + $0x8] sm:$0xff] }
 0xde8   :  { %v2061_v33 = vrot.slane %v2053_v21, 4  ;;  %v7674_v21 = vmov 0.0|0.0  }
 0xde9   :  { %v2062_v46 = vrot.slane %v2054_v34, 4  ;;  %6409 = vmatprep.subr.bf16.mxu0 %v7674_v21  ;;  %v2413_v34 = vld [vmem:[%s9363_s6 + $0x58] sm:$0xff]  ;;  %6378 = vmatprep.subr.bf16.mxu1 %v6377_v16 }
 0xdea   :  { %v2065_v32 = vsel %vm659_vm3, %v2061_v33, %v2057_v45  ;;  %v6410_v33 = vpack.c.bf16 %v2605_v44, %v2604_v20  ;;  %v6381_v45 = vpack.c.bf16 %v2413_v34, %v2412_v23  ;;  %v8576_v20 = vld [vmem:[#allocation2 + $0x6] sm:$0x3]  ;;  %v2351_v44 = vld [vmem:[#allocation3 + $0xe] sm:$0x3] }
 0xdeb   :  { %v5552_v47 = vmul.f32 -1.442695, %v2065_v32  ;;  %v2066_v30 = vsel %vm659_vm3, %v2062_v46, %v2058_v36 }
 0xdec   :  { %v5553_v41 = vmul.f32 -1.442695, %v2066_v30 }
 0xded   :  { %7205 = vpow2.f32 %v5552_v47 }
 0xdee   :  { %7207 = vtanh.f32 %v2066_v30 }
 0xdf7   :  { %v7206_v35 = vpop.eup %7205 }
 0xdf8   :  { %v2070_v53 = vadd.f32 1.0, %v7206_v35  ;;  %v7208_v31 = vpop.eup %7207  ;;  %v2606_v35 = vld [vmem:[%s9364_s7 + $0x10] sm:$0xff] }
 0xdfa   :  { %7209 = vrcp.f32 %v2070_v53  ;;  %v2607_v53 = vld [vmem:[%s9364_s7 + $0x18] sm:$0xff] }
 0xdfb   :  { %7211 = vpow2.f32 %v5553_v41  ;;  %v2608_v41 = vld [vmem:[%s9364_s7 + $0x20] sm:$0xff] }
 0xe04   :  { %v7210_v54 = vpop.eup %7209 }
 0xe05   :  { %v2081_v60 = vmul.f32 %v7210_v54, %v7208_v31  ;;  %v7212_v62 = vpop.eup %7211  ;;  %v2080_v0 = vmul.f32 %v7210_v54, %v1858_v58  ;;  %v2414_v31 = vld [vmem:[%s9363_s6 + $0x60] sm:$0xff]  ;;  %v6413_v54 = vpack.c.bf16 %v2607_v53, %v2606_v35  ;;  %v2394_v53 = vrot.slane %v2351_v44, 2 }
 0xe06   :  { %v2077_v43 = vadd.f32 1.0, %v7212_v62  ;;  %v2609_v62 = vld [vmem:[%s9364_s7 + $0x28] sm:$0xff] }
 0xe07   :  { %2083 = vrot.lane.b32.xlu0 %v2081_v60, %s7673_s28  ;;  %v2415_v60 = vld [vmem:[%s9363_s6 + $0x68] sm:$0xff] }
 0xe08   :  { %7213 = vrcp.f32 %v2077_v43  ;;  %v6385_v43 = vpack.c.bf16 %v2415_v60, %v2414_v31  ;;  %v8596_v31 = vld [vmem:[#allocation2] sm:$0x3] }
 0xe12   :  { %v7214_v51 = vpop.eup %7213 }
 0xe79   :  { %v2084_v50 = vpop.permute.xlu0 %2083 }
 0xe7a   :  { %v8454_v2 = vadd.f32 %v2084_v50, %v2080_v0  ;;  %v2416_v0 = vld [vmem:[%s9363_s6 + $0x70] sm:$0xff]  ;;  %v2417_v50 = vld [vmem:[%s9363_s6 + $0x78] sm:$0xff] }
 0xe7c   :  { %7215 = vtanh.f32 %v8454_v2 }
 0xe86   :  { %v7216_v57 = vpop.eup %7215 }
 0xe87   :  { %v2088_v56 = vmul.f32 %v7216_v57, %v7214_v51  ;;  %v6389_v51 = vpack.c.bf16 %v2417_v50, %v2416_v0  ;;  %v2610_v57 = vld [vmem:[%s9364_s7 + $0x30] sm:$0xff]  ;;  %v2406_v0 = vld [vmem:[%s9363_s6 + $0x20] sm:$0xff]  ;;  %v2407_v50 = vld [vmem:[%s9363_s6 + $0x28] sm:$0xff] }
 0xe89   :  { %2090 = vrot.lane.b32.xlu1 %v2088_v56, %s7673_s28  ;;  %v2611_v56 = vld [vmem:[%s9364_s7 + $0x38] sm:$0xff] }
 0xefb   :  { %v2091_v59 = vpop.permute.xlu1 %2090 }
 0xefc   :  { %2094 = vst.msk [vmem:[#allocation2 + $0xc] sm:$0x3] %vm688_vm4, %v2091_v59  ;;  %5554 = vmatmul.mubr.msk.f32.vlgmr.msra.gmra.mrb[14].mxu1 %vm293_vm2, %v2091_v59  ;;  %5555 = vmatmul.mubr.msk.f32.vlgmr.msra.gmra.mrb[24].mxu0 %vm293_vm2, %v2091_v59 }
 0xefd   :  { %2096 = vst.msk [vmem:[#allocation3] sm:$0xc] %vm691_vm5, %v2091_v59  ;;  %6380 = vmatpush3.bf16.msra.mxu1 %v6377_v16  ;;  %6411 = vmatpush3.bf16.msra.mxu0 %v6410_v33  ;;  %v6419_v59 = vpack.c.bf16 %v2611_v56, %v2610_v57  ;;  %v2408_v57 = vld [vmem:[%s9363_s6 + $0x30] sm:$0xff]  ;;  %v2409_v56 = vld [vmem:[%s9363_s6 + $0x38] sm:$0xff] }
 0xefe   :  { %6382 = vmatprep.subr.bf16.mxu1 %v6381_v45  ;;  %6412 = vmatprep.subr.bf16.mxu0 %v7674_v21 }
 0xeff   :  { %5833 = vmatprep.mubr.msk.f32.mxu0 %vm7675_vm6, %v7672_v49 }
 0xf01   :  { %6384 = vmatpush3.bf16.msra.mxu1 %v6381_v45  ;;  %6414 = vmatpush3.bf16.msra.mxu0 %v6413_v54 }
 0xf02   :  { %6386 = vmatprep.subr.bf16.mxu1 %v6385_v43  ;;  %6415 = vmatprep.subr.bf16.mxu0 %v7674_v21 }
 0xf05   :  { %6388 = vmatpush3.bf16.msra.mxu1 %v6385_v43 }
 0xf06   :  { %6390 = vmatprep.subr.bf16.mxu1 %v6389_v51 }
 0xf09   :  { %6392 = vmatpush3.bf16.msra.mxu1 %v6389_v51  ;;  %v6401_v51 = vpack.c.bf16 %v2407_v50, %v2406_v0 }
 0xfcf   :  { %v2197_v3 = vpop.f32.mrb[14].mxu1  ;;  %v2268_v4 = vpop.f32.mrb[24].mxu0 }
 0xfd0   :  { %v2277_v38 = vrot.slane %v2197_v3, 2  ;;  %v2287_v48 = vrot.slane %v2268_v4, 2  ;;  %v2199_v8 = vpop.f32.mrb[15].mxu1  ;;  %v2270_v52 = vpop.f32.mrb[25].mxu0 }
 0xfd1   :  { %v2278_v55 = vrot.slane %v2199_v8, 2  ;;  %v2288_v9 = vrot.slane %v2270_v52, 2 }
 0xfd2   :  { %v2281_v10 = vadd.f32 %v2277_v38, %v2273_v42  ;;  %v2291_v11 = vadd.f32 %v2287_v48, %v2283_v5  ;;  %v2402_v38 = vld [vmem:[%s9363_s6] sm:$0xff]  ;;  %v2403_v48 = vld [vmem:[%s9363_s6 + $0x8] sm:$0xff] }
 0xfd3   :  { %v2282_v19 = vadd.f32 %v2278_v55, %v2274_v17  ;;  %v2292_v22 = vadd.f32 %v2288_v9, %v2284_v18  ;;  %v8524_v52 = vpack.c.bf16 %v2403_v48, %v2402_v38  ;;  %v2612_v42 = vld [vmem:[%s9364_s7 + $0x40] sm:$0xff]  ;;  %v2613_v5 = vld [vmem:[%s9364_s7 + $0x48] sm:$0xff]  ;;  %v2614_v9 = vld [vmem:[%s9364_s7 + $0x50] sm:$0xff] }
 0xfd4   :  { %v2295_v25 = vrot.slane %v2281_v10, 6  ;;  %v2301_v26 = vrot.slane %v2291_v11, 6  ;;  %v6422_v55 = vpack.c.bf16 %v2613_v5, %v2612_v42  ;;  %v2615_v10 = vld [vmem:[%s9364_s7 + $0x58] sm:$0xff]  ;;  %v2616_v17 = vld [vmem:[%s9364_s7 + $0x60] sm:$0xff]  ;;  %v2617_v18 = vld [vmem:[%s9364_s7 + $0x68] sm:$0xff] }
 0xfd5   :  { %v2296_v27 = vrot.slane %v2282_v19, 6  ;;  %v2302_v29 = vrot.slane %v2292_v22, 6  ;;  %6394 = vmatprep.subr.bf16.mxu1 %v8524_v52  ;;  %v6425_v11 = vpack.c.bf16 %v2615_v10, %v2614_v9  ;;  %v6428_v19 = vpack.c.bf16 %v2617_v18, %v2616_v17  ;;  %v2618_v22 = vld [vmem:[%s9364_s7 + $0x70] sm:$0xff]  ;;  %v8629_v42 = vld [vmem:[#allocation2 + $0x8] sm:$0x3] }
 0xfd6   :  { %v2305_v58 = vsel %vm659_vm3, %v2295_v25, %v2301_v26  ;;  %v2619_v25 = vld [vmem:[%s9364_s7 + $0x78] sm:$0xff]  ;;  %v5562_v17 = vld [vmem:[#allocation10] ss:$0 sm:$0xff] }
 0xfd7   :  { %v5556_v61 = vmul.f32 -1.442695, %v2305_v58  ;;  %v2306_v37 = vsel %vm659_vm3, %v2296_v27, %v2302_v29  ;;  %v6431_v26 = vpack.c.bf16 %v2619_v25, %v2618_v22  ;;  %v2349_v29 = vld [vmem:[#allocation3 + $0xa] sm:$0x3]  ;;  %v8562_v58 = vld [vmem:[#allocation3 + $0x8] sm:$0x3] }
 0xfd8   :  { %v5557_v24 = vmul.f32 -1.442695, %v2306_v37 }
 0xfd9   :  { %7217 = vpow2.f32 %v5556_v61  ;;  %v2350_v61 = vld [vmem:[#allocation3 + $0xc] sm:$0x3] }
 0xfda   :  { %7219 = vtanh.f32 %v2306_v37  ;;  %v8564_v37 = vld [vmem:[#allocation2 + $0x2] sm:$0x3]  ;;  %v2391_v6 = vrot.slane %v2350_v61, 4 }
 0xfdb   :  { %v2353_v23 = vrot.slane %v8564_v37, 6 }
 0xfdd   :  { %v2370_v60 = vsel %vm659_vm3, %v8596_v31, %v2353_v23 }
 0xfe3   :  { %v7218_v39 = vpop.eup %7217 }
 0xfe4   :  { %v2310_v40 = vadd.f32 1.0, %v7218_v39  ;;  %v7220_v14 = vpop.eup %7219  ;;  %v8566_v39 = vld [vmem:[#allocation3 + $0x2] sm:$0x3] }
 0xfe5   :  { %v2379_v16 = vrot.slane %v8566_v39, 6 }
 0xfe6   :  { %7221 = vrcp.f32 %v2310_v40  ;;  %v2388_v40 = vrot.slane %v2349_v29, 6 }
 0xfe7   :  { %7223 = vpow2.f32 %v5557_v24  ;;  %v2404_v24 = vld [vmem:[%s9363_s6 + $0x10] sm:$0xff] }
 0xfe8   :  { %v2399_v7 = vsel %vm659_vm3, %v8562_v58, %v2388_v40 }
 0xff0   :  { %v7222_v15 = vpop.eup %7221 }
 0xff1   :  { %v2321_v28 = vmul.f32 %v7222_v15, %v7220_v14  ;;  %v7224_v46 = vpop.eup %7223  ;;  %v2320_v32 = vmul.f32 %v7222_v15, %v8454_v2  ;;  %v6416_v2 = vpack.c.bf16 %v2609_v62, %v2608_v41  ;;  %v8568_v14 = vld [vmem:[#allocation2 + $0x4] sm:$0x3]  ;;  %v8570_v15 = vld [vmem:[#allocation3 + $0x4] sm:$0x3] }
 0xff2   :  { %v2317_v36 = vadd.f32 1.0, %v7224_v46  ;;  %v2356_v34 = vrot.slane %v8568_v14, 4  ;;  %v2382_v45 = vrot.slane %v8570_v15, 4  ;;  %v2405_v46 = vld [vmem:[%s9363_s6 + $0x18] sm:$0xff] }
 0xff3   :  { %2323 = vrot.lane.b32.xlu0 %v2321_v28, %s7673_s28  ;;  %6417 = vmatpush3.bf16.msra.mxu0 %v6416_v2  ;;  %v8572_v28 = vld [vmem:[#allocation3 + $0x6] sm:$0x3]  ;;  %v6397_v41 = vpack.c.bf16 %v2405_v46, %v2404_v24  ;;  %v5563_v46 = vld [vmem:[#allocation11] ss:$0 sm:$0xff] }
 0xff4   :  { %7225 = vrcp.f32 %v2317_v36  ;;  %6418 = vmatprep.subr.bf16.mxu0 %v7674_v21  ;;  %v2385_v36 = vrot.slane %v8572_v28, 2  ;;  %v2372_v43 = vsel %vm2371_vm7, %v2370_v60, %v2356_v34 }
 0xff7   :  { %6420 = vmatpush3.bf16.msra.mxu0 %v6419_v59  ;;  %v6405_v59 = vpack.c.bf16 %v2409_v56, %v2408_v57 }
 0xff8   :  { %6421 = vmatprep.subr.bf16.mxu0 %v7674_v21 }
 0xffb   :  { %6423 = vmatpush3.bf16.msra.mxu0 %v6422_v55 }
 0xffc   :  { %6424 = vmatprep.subr.bf16.mxu0 %v7674_v21 }
 0xffe   :  { %v7226_v3 = vpop.eup %7225 }
 0xfff   :  { %6426 = vmatpush3.bf16.msra.mxu0 %v6425_v11 }
0x1000   :  { %6427 = vmatprep.subr.bf16.mxu0 %v7674_v21 }
0x1003   :  { %6429 = vmatpush3.bf16.msra.mxu0 %v6428_v19 }
0x1004   :  { %6430 = vmatprep.subr.bf16.mxu0 %v7674_v21 }
0x1007   :  { %6432 = vmatpush3.bf16.msra.mxu0 %v6431_v26 }
0x100a   :  { %5834 = vmatmul.mubr.f32.vlgmr.msra.gmra.mrb[26].mxu0 %v7672_v49 }
0x100b   :  { %3200 = vmatprep.mubr.f32.mxu0 %v7672_v49 }
0x1065   :  { %v2324_v47 = vpop.permute.xlu0 %2323 }
0x1066   :  { %v2326_v30 = vadd.f32 %v2324_v47, %v2320_v32  ;;  %v2400_v47 = vsel %vm2371_vm7, %v2399_v7, %v2391_v6 }
0x1067   :  { %v2401_v62 = vsel %vm2373_vm8, %v2400_v47, %v2394_v53 }
0x1068   :  { %7227 = vtanh.f32 %v2326_v30  ;;  %v2359_v30 = vrot.slane %v8576_v20, 2 }
0x106a   :  { %v2374_v2 = vsel %vm2373_vm8, %v2372_v43, %v2359_v30 }
0x1072   :  { %v7228_v4 = vpop.eup %7227 }
0x1073   :  { %v2328_v8 = vmul.f32 %v7228_v4, %v7226_v3  ;;  %v8620_v3 = vld [vmem:[#allocation2 + $0xa] sm:$0x3]  ;;  %v8622_v4 = vld [vmem:[#allocation2 + $0xc] sm:$0x3] }
0x1074   :  { %v2362_v48 = vrot.slane %v8620_v3, 6 }
0x1075   :  { %2330 = vrot.lane.b32.xlu1 %v2328_v8, %s7673_s28  ;;  %v2365_v8 = vrot.slane %v8622_v4, 4 }
0x1076   :  { %v2375_v5 = vsel %vm659_vm3, %v8629_v42, %v2362_v48 }
0x1077   :  { %v2376_v55 = vsel %vm2371_vm7, %v2375_v5, %v2365_v8 }
0x10dd   :  { %v2686_v10 = vpop.f32.mrb[26].mxu0 }
0x10de   :  { %v5835_v11 = vpop.f32.mrb[27].mxu0 }
0x10df   :  { %v7676_v11 = vmov 0  }
0x10e0   :  { %7132 = vset.pattern.permute.xlu0 %v7676_v11  ;;  %7131 = vset.pattern.permute.xlu1 %v7676_v11 }
0x10e7   :  { %v2331_v27 = vpop.permute.xlu1 %2330 }
0x10e8   :  { %2334 = vst.msk [vmem:[#allocation2 + $0xe] sm:$0x3] %vm688_vm4, %v2331_v27 }
0x10e9   :  { %2335 = vst.msk [vmem:[#allocation3 - $0x2] sm:$0xc] %vm691_vm5, %v2331_v27 }
0x10ef   :  { %v8624_v38 = vld [vmem:[#allocation2 + $0xe] sm:$0x3] }
0x10f0   :  { %v8581_v33 = vld [vmem:[#allocation3] sm:$0x3] }
0x10f1   :  { %v2396_v32 = vsel %vm659_vm3, %v8581_v33, %v2379_v16 }
0x10f2   :  { %v2397_v35 = vsel %vm2371_vm7, %v2396_v32, %v2382_v45 }
0x10f3   :  { %v2398_v54 = vsel %vm2373_vm8, %v2397_v35, %v2385_v36 }
0x10f4   :  { %5779 = vmatprep.mubr.msk.f32.mxu1 %vm293_vm2, %v2398_v54 }
0x10f5   :  { %5780 = vmatmul.mubr.msk.f32.vlgmr.msra.gmra.mrb[16].mxu1 %vm293_vm2, %v2401_v62 }
0x10f6   :  { %6396 = vmatpush3.bf16.msra.mxu1 %v8524_v52  ;;  %5798 = vmatprep.mubr.msk.f32.mxu1 %vm293_vm2, %v2374_v2  ;;  %v2368_v52 = vrot.slane %v8624_v38, 2 }
0x10f7   :  { %6398 = vmatprep.subr.bf16.mxu1 %v6397_v41 }
0x10f8   :  { %v2377_v9 = vsel %vm2373_vm8, %v2376_v55, %v2368_v52 }
0x10fa   :  { %6400 = vmatpush3.bf16.msra.mxu1 %v6397_v41 }
0x10fb   :  { %6402 = vmatprep.subr.bf16.mxu1 %v6401_v51 }
0x10fe   :  { %6404 = vmatpush3.bf16.msra.mxu1 %v6401_v51 }
0x10ff   :  { %6406 = vmatprep.subr.bf16.mxu1 %v6405_v59 }
0x1102   :  { %6408 = vmatpush3.bf16.msra.mxu1 %v6405_v59 }
0x1105   :  { %5799 = vmatmul.mubr.msk.f32.vlgmr.msra.gmra.mrb[16].mxu1 %vm293_vm2, %v2377_v9 }
0x1106   :  { %3129 = vmatprep.mubr.f32.mxu1 %v7672_v49 }
0x11d8   :  { %v5800_v18 = vpop.f32.mrb[16].mxu1 }
0x11d9   :  { %v8637_v19 = vadd.f32 %v5800_v18, %v5562_v17  ;;  %v2571_v22 = vpop.f32.mrb[17].mxu1 }
0x11da   :  { %v8639_v25 = vadd.f32 %v5562_v17, %v2571_v22 }
0x11db   :  { %v2694_v26 = vadd.f32 %v2686_v10, %v8637_v19  ;;  %v8643_v27 = vrot.slane %v8637_v19, 2  ;;  %v8646_v29 = vrot.slane %v8637_v19, 4  ;;  %v8664_v24 = vrot.slane %v8637_v19, 6 }
0x11dc   :  { %v2690_v61 = vadd.f32 %v2686_v10, %v8639_v25  ;;  %v8650_v40 = vrot.slane %v8639_v25, 2  ;;  %v8653_v6 = vrot.slane %v8639_v25, 4  ;;  %v8660_v34 = vrot.slane %v8639_v25, 6 }
0x11dd   :  { %7229 = vtanh.f32 %v2694_v26  ;;  %v2695_v7 = vadd.f32 %v2686_v10, %v8643_v27  ;;  %v2696_v16 = vadd.f32 %v2686_v10, %v8646_v29  ;;  %v2697_v36 = vadd.f32 %v2686_v10, %v8664_v24 }
0x11de   :  { %7231 = vtanh.f32 %v2690_v61  ;;  %v2691_v44 = vadd.f32 %v2686_v10, %v8650_v40  ;;  %v2692_v23 = vadd.f32 %v2686_v10, %v8653_v6  ;;  %v2693_v45 = vadd.f32 %v2686_v10, %v8660_v34 }
0x11df   :  { %7233 = vtanh.f32 %v2695_v7  ;;  %v5564_v7 = vld [vmem:[#allocation5] ss:$0 sm:$0xff] }
0x11e0   :  { %7235 = vtanh.f32 %v2691_v44 }
0x11e1   :  { %7237 = vtanh.f32 %v2696_v16 }
0x11e2   :  { %7239 = vtanh.f32 %v2692_v23 }
0x11e3   :  { %7241 = vtanh.f32 %v2693_v45 }
0x11e4   :  { %7243 = vtanh.f32 %v2697_v36 }
0x11e7   :  { %v7230_v32 = vpop.eup %7229 }
0x11e8   :  { %v7232_v47 = vpop.eup %7231  ;;  %v2716_v30 = vmul.f32 %v7230_v32, %v5563_v46 }
0x11e9   :  { %v7234_v35 = vpop.eup %7233  ;;  %v2712_v53 = vmul.f32 %v7232_v47, %v5563_v46 }
0x11ea   :  { %v7236_v54 = vpop.eup %7235  ;;  %v2733_v60 = vsel %vm2720_vm9, %v2716_v30, 0.0  ;;  %v2717_v0 = vmul.f32 %v7234_v35, %v5563_v46 }
0x11eb   :  { %v7238_v41 = vpop.eup %7237  ;;  %2734 = vadd.xlane.f32.xlu1 %v2733_v60  ;;  %v2721_v62 = vsel %vm2720_vm9, %v2712_v53, 0.0  ;;  %v2713_v43 = vmul.f32 %v7236_v54, %v5563_v46 }
0x11ec   :  { %v7240_v50 = vpop.eup %7239  ;;  %2722 = vadd.xlane.f32.xlu0 %v2721_v62  ;;  %v2718_v51 = vmul.f32 %v7238_v41, %v5563_v46  ;;  %v2736_v57 = vsel %vm2720_vm9, %v2717_v0, 0.0 }
0x11ed   :  { %v2724_v2 = vsel %vm2720_vm9, %v2713_v43, 0.0  ;;  %v2714_v56 = vmul.f32 %v7240_v50, %v5563_v46  ;;  %v7242_v59 = vpop.eup %7241 }
0x11ee   :  { %v2739_v48 = vsel %vm2720_vm9, %v2718_v51, 0.0  ;;  %v2715_v52 = vmul.f32 %v7242_v59, %v5563_v46  ;;  %v7244_v5 = vpop.eup %7243 }
0x11ef   :  { %2725 = vadd.xlane.f32.xlu1 %v2724_v2  ;;  %v2727_v8 = vsel %vm2720_vm9, %v2714_v56, 0.0  ;;  %v2719_v9 = vmul.f32 %v7244_v5, %v5563_v46 }
0x11f0   :  { %2737 = vadd.xlane.f32.xlu0 %v2736_v57  ;;  %v2730_v55 = vsel %vm2720_vm9, %v2715_v52, 0.0 }
0x11f1   :  { %v2742_v10 = vsel %vm2720_vm9, %v2719_v9, 0.0 }
0x11f3   :  { %2740 = vadd.xlane.f32.xlu1 %v2739_v48 }
0x11f4   :  { %2728 = vadd.xlane.f32.xlu0 %v2727_v8 }
0x11f8   :  { %2731 = vadd.xlane.f32.xlu0 %v2730_v55 }
0x11fc   :  { %2743 = vadd.xlane.f32.xlu0 %v2742_v10 }
0x1278   :  { %v2735_v17 = vpop.xlane.xlu1 %2734 }
0x1279   :  { %v2723_v18 = vpop.xlane.xlu0 %2722  ;;  %v2756_v45 = vadd.f32 %v5564_v7, %v2735_v17 }
0x127a   :  { %v2752_v46 = vadd.f32 %v5564_v7, %v2723_v18 }
0x127b   :  { %v2765_v54 = vsel %vm2760_vm10, %v2756_v45, -inf }
0x127c   :  { %v2726_v22 = vpop.xlane.xlu1 %2725  ;;  %v2761_v41 = vsel %vm2760_vm10, %v2752_v46, -inf }
0x127d   :  { %v2738_v26 = vpop.xlane.xlu0 %2737  ;;  %v2753_v44 = vadd.f32 %v5564_v7, %v2726_v22  ;;  %v2766_v57 = vmax.f32 %v2761_v41, %v2765_v54 }
0x127e   :  { %v2757_v23 = vadd.f32 %v5564_v7, %v2738_v26 }
0x127f   :  { %v2762_v30 = vsel %vm2760_vm10, %v2753_v44, -inf }
0x1280   :  { %v2741_v16 = vpop.xlane.xlu1 %2740  ;;  %v2767_v35 = vsel %vm2760_vm10, %v2757_v23, -inf }
0x1281   :  { %v2729_v61 = vpop.xlane.xlu0 %2728  ;;  %v2758_v32 = vadd.f32 %v5564_v7, %v2741_v16  ;;  %v2768_v50 = vmax.f32 %v2762_v30, %v2767_v35 }
0x1282   :  { %v2754_v47 = vadd.f32 %v5564_v7, %v2729_v61 }
0x1283   :  { %v2769_v62 = vsel %vm2760_vm10, %v2758_v32, -inf  ;;  %v2773_v48 = vmax.f32 %v2766_v57, %v2768_v50 }
0x1284   :  { %v2763_v43 = vsel %vm2760_vm10, %v2754_v47, -inf }
0x1285   :  { %v2732_v36 = vpop.xlane.xlu0 %2731  ;;  %v2770_v56 = vmax.f32 %v2763_v43, %v2769_v62 }
0x1286   :  { %v2755_v53 = vadd.f32 %v5564_v7, %v2732_v36 }
0x1288   :  { %v2764_v2 = vsel %vm2760_vm10, %v2755_v53, -inf }
0x1289   :  { %v2744_v60 = vpop.xlane.xlu0 %2743 }
0x128a   :  { %v2759_v0 = vadd.f32 %v5564_v7, %v2744_v60 }
0x128c   :  { %v2771_v51 = vsel %vm2760_vm10, %v2759_v0, -inf }
0x128d   :  { %v2772_v59 = vmax.f32 %v2764_v2, %v2771_v51 }
0x128f   :  { %v2774_v8 = vmax.f32 %v2770_v56, %v2772_v59 }
0x1291   :  { %v2775_v52 = vmax.f32 %v2773_v48, %v2774_v8 }
0x1293   :  { %v2778_v5 = vsub.f32 %v2754_v47, %v2775_v52  ;;  %v2776_v55 = vsub.f32 %v2752_v46, %v2775_v52  ;;  %v2777_v9 = vsub.f32 %v2753_v44, %v2775_v52  ;;  %v2779_v10 = vsub.f32 %v2755_v53, %v2775_v52 }
0x1294   :  { %v2780_v18 = vsub.f32 %v2756_v45, %v2775_v52  ;;  %v2781_v26 = vsub.f32 %v2757_v23, %v2775_v52  ;;  %v2782_v7 = vsub.f32 %v2758_v32, %v2775_v52  ;;  %v2783_v36 = vsub.f32 %v2759_v0, %v2775_v52 }
0x1295   :  { %v2788_v11 = vmul.f32 1.442695, %v2778_v5  ;;  %v2784_v17 = vmul.f32 1.442695, %v2776_v55  ;;  %v2786_v22 = vmul.f32 1.442695, %v2777_v9 }
0x1296   :  { %v2790_v61 = vmul.f32 1.442695, %v2779_v10  ;;  %v2792_v16 = vmul.f32 1.442695, %v2780_v18  ;;  %v2794_v30 = vmul.f32 1.442695, %v2781_v26 }
0x1297   :  { %7245 = vpow2.f32 %v2788_v11  ;;  %v2796_v35 = vmul.f32 1.442695, %v2782_v7  ;;  %v2798_v46 = vmul.f32 1.442695, %v2783_v36  ;;  %v2920_v36 = vld [vmem:[#allocation13 + $0x28] sm:$0xff] }
0x1298   :  { %7247 = vpow2.f32 %v2784_v17 }
0x1299   :  { %7249 = vpow2.f32 %v2786_v22 }
0x129a   :  { %7251 = vpow2.f32 %v2790_v61 }
0x129b   :  { %7253 = vpow2.f32 %v2792_v16  ;;  %v2916_v16 = vld [vmem:[#allocation13 + $0x8] sm:$0xff] }
0x129c   :  { %7255 = vpow2.f32 %v2794_v30  ;;  %v2918_v30 = vld [vmem:[#allocation13 + $0x18] sm:$0xff] }
0x129d   :  { %7257 = vpow2.f32 %v2796_v35  ;;  %v6433_v35 = vpack.c.bf16 %v2920_v36, %v2916_v16  ;;  %v2942_v16 = vld [vmem:[#allocation13 + $0xd8] sm:$0xff] }
0x129e   :  { %7259 = vpow2.f32 %v2798_v46  ;;  %v2922_v46 = vld [vmem:[#allocation13 + $0x38] sm:$0xff] }
0x129f   :  { %6434 = vmatprep.subr.bf16.mxu1 %v6433_v35  ;;  %v2946_v35 = vld [vmem:[#allocation13 + $0xf8] sm:$0xff] }
0x12a1   :  { %v7246_v44 = vpop.eup %7245 }
0x12a2   :  { %v7248_v47 = vpop.eup %7247  ;;  %v2803_v60 = vsel %vm2760_vm10, %v7246_v44, 0.0 }
0x12a3   :  { %v7250_v53 = vpop.eup %7249  ;;  %v2800_v23 = vsel %vm2760_vm10, %v7248_v47, 0.0 }
0x12a4   :  { %v2801_v45 = vsel %vm2760_vm10, %v7250_v53, 0.0  ;;  %v7252_v54 = vpop.eup %7251 }
0x12a5   :  { %v2802_v32 = vadd.f32 %v2801_v45, %v2800_v23  ;;  %v7254_v41 = vpop.eup %7253  ;;  %v2805_v43 = vsel %vm2760_vm10, %v7252_v54, 0.0  ;;  %v6497_v23 = vpack.c.bf16 %v2922_v46, %v2918_v30  ;;  %v2917_v45 = vld [vmem:[#allocation13 + $0x10] sm:$0xff]  ;;  %v2939_v46 = vld [vmem:[#allocation13 + $0xc0] sm:$0xff] }
0x12a6   :  { %v7256_v0 = vpop.eup %7255  ;;  %v2807_v2 = vsel %vm2760_vm10, %v7254_v41, 0.0 }
0x12a7   :  { %v2804_v62 = vadd.f32 %v2803_v60, %v2802_v32  ;;  %v7258_v51 = vpop.eup %7257  ;;  %v2809_v56 = vsel %vm2760_vm10, %v7256_v0, 0.0  ;;  %v2924_v32 = vld [vmem:[#allocation13 + $0x48] sm:$0xff]  ;;  %6498 = vmatprep.subr.bf16.mxu0 %v6497_v23  ;;  %v2941_v23 = vld [vmem:[#allocation13 + $0xd0] sm:$0xff] }
0x12a8   :  { %v7260_v59 = vpop.eup %7259  ;;  %v2811_v8 = vsel %vm2760_vm10, %v7258_v51, 0.0 }
0x12a9   :  { %v2806_v50 = vadd.f32 %v2805_v43, %v2804_v62  ;;  %v2813_v5 = vsel %vm2760_vm10, %v7260_v59, 0.0  ;;  %v2926_v62 = vld [vmem:[#allocation13 + $0x58] sm:$0xff] }
0x12aa   :  { %v2930_v43 = vld [vmem:[#allocation13 + $0x78] sm:$0xff] }
0x12ab   :  { %v2808_v57 = vadd.f32 %v2807_v2, %v2806_v50  ;;  %v6501_v50 = vpack.c.bf16 %v2930_v43, %v2926_v62  ;;  %v2923_v2 = vld [vmem:[#allocation13 + $0x40] sm:$0xff] }
0x12ad   :  { %v2810_v48 = vadd.f32 %v2809_v56, %v2808_v57  ;;  %v2925_v57 = vld [vmem:[#allocation13 + $0x50] sm:$0xff] }
0x12af   :  { %v2812_v52 = vadd.f32 %v2811_v8, %v2810_v48  ;;  %v2932_v48 = vld [vmem:[#allocation13 + $0x88] sm:$0xff] }
0x12b0   :  { %v2936_v8 = vld [vmem:[#allocation13 + $0xa8] sm:$0xff] }
0x12b1   :  { %v2814_v55 = vadd.f32 %v2813_v5, %v2812_v52  ;;  %v6441_v5 = vpack.c.bf16 %v2936_v8, %v2932_v48  ;;  %v2958_v48 = vld [vmem:[#allocation13 + $0x158] sm:$0xff] }
0x12b2   :  { %v2962_v8 = vld [vmem:[#allocation13 + $0x178] sm:$0xff] }
0x12b3   :  { %7261 = vrcp.f32 %v2814_v55  ;;  %v2934_v55 = vld [vmem:[#allocation13 + $0x98] sm:$0xff] }
0x12bd   :  { %v7262_v9 = vpop.eup %7261 }
0x12be   :  { %v2817_v10 = vmul.f32 %v7262_v9, %v7250_v53  ;;  %v2816_v11 = vmul.f32 %v7262_v9, %v7248_v47  ;;  %v2818_v17 = vmul.f32 %v7262_v9, %v7246_v44  ;;  %v2819_v18 = vmul.f32 %v7262_v9, %v7252_v54  ;;  %v2915_v47 = vld [vmem:[#allocation13] sm:$0xff]  ;;  %v2921_v54 = vld [vmem:[#allocation13 + $0x30] sm:$0xff] }
0x12bf   :  { %v2820_v22 = vmul.f32 %v7262_v9, %v7254_v41  ;;  %v2821_v26 = vmul.f32 %v7262_v9, %v7256_v0  ;;  %v2822_v61 = vmul.f32 %v7262_v9, %v7258_v51  ;;  %v2823_v7 = vmul.f32 %v7262_v9, %v7260_v59  ;;  %v2919_v53 = vld [vmem:[#allocation13 + $0x20] sm:$0xff]  ;;  %v2928_v41 = vld [vmem:[#allocation13 + $0x68] sm:$0xff]  ;;  %v2929_v59 = vld [vmem:[#allocation13 + $0x70] sm:$0xff] }
0x12c0   :  { %2831 = vperm.xlu0 %7132, %v2817_v10   ;;  %2826 = vperm.xlu1 %7131, %v2816_v11   ;;  %v6435_v44 = vpack.c.bf16 %v2919_v53, %v2915_v47  ;;  %v6499_v60 = vpack.c.bf16 %v2921_v54, %v2917_v45  ;;  %v6437_v0 = vpack.c.bf16 %v2928_v41, %v2924_v32  ;;  %v2927_v51 = vld [vmem:[#allocation13 + $0x60] sm:$0xff]  ;;  %v2938_v9 = vld [vmem:[#allocation13 + $0xb8] sm:$0xff]  ;;  %v2948_v45 = vld [vmem:[#allocation13 + $0x108] sm:$0xff] }
0x12c1   :  { %v6439_v56 = vpack.c.bf16 %v2927_v51, %v2923_v2  ;;  %v6503_v52 = vpack.c.bf16 %v2929_v59, %v2925_v57  ;;  %v2931_v10 = vld [vmem:[#allocation13 + $0x80] sm:$0xff]  ;;  %v6505_v11 = vpack.c.bf16 %v2938_v9, %v2934_v55  ;;  %v6509_v53 = vpack.c.bf16 %v2946_v35, %v2942_v16  ;;  %v2952_v54 = vld [vmem:[#allocation13 + $0x128] sm:$0xff]  ;;  %v2950_v32 = vld [vmem:[#allocation13 + $0x118] sm:$0xff] }
0x12c2   :  { %6436 = vmatpush1.bf16.msra.mxu1 %v6435_v44  ;;  %6500 = vmatpush1.bf16.msra.mxu0 %v6499_v60  ;;  %v2943_v47 = vld [vmem:[#allocation13 + $0xe0] sm:$0xff]  ;;  %v2945_v44 = vld [vmem:[#allocation13 + $0xf0] sm:$0xff]  ;;  %v2954_v60 = vld [vmem:[#allocation13 + $0x138] sm:$0xff]  ;;  %v6449_v43 = vpack.c.bf16 %v2952_v54, %v2948_v45 }
0x12c3   :  { %6438 = vmatprep.subr.bf16.mxu1 %v6437_v0  ;;  %6502 = vmatprep.subr.bf16.mxu0 %v6501_v50  ;;  %v6447_v41 = vpack.c.bf16 %v2943_v47, %v2939_v46  ;;  %v6511_v62 = vpack.c.bf16 %v2945_v44, %v2941_v23  ;;  %v2947_v0 = vld [vmem:[#allocation13 + $0x100] sm:$0xff]  ;;  %v2949_v2 = vld [vmem:[#allocation13 + $0x110] sm:$0xff]  ;;  %v6513_v51 = vpack.c.bf16 %v2954_v60, %v2950_v32  ;;  %v2960_v59 = vld [vmem:[#allocation13 + $0x168] sm:$0xff] }
0x12c4   :  { %2836 = vperm.xlu1 %7131, %v2818_v17   ;;  %v2935_v17 = vld [vmem:[#allocation13 + $0xa0] sm:$0xff]  ;;  %v2953_v57 = vld [vmem:[#allocation13 + $0x130] sm:$0xff]  ;;  %v2972_v44 = vld [vmem:[#allocation13 + $0x1c8] sm:$0xff] }
0x12c5   :  { %v2951_v50 = vld [vmem:[#allocation13 + $0x120] sm:$0xff]  ;;  %v2965_v47 = vld [vmem:[#allocation13 + $0x190] sm:$0xff]  ;;  %v2976_v45 = vld [vmem:[#allocation13 + $0x1e8] sm:$0xff] }
0x12c6   :  { %6440 = vmatpush1.bf16.msra.mxu1 %v6439_v56  ;;  %6504 = vmatpush1.bf16.msra.mxu0 %v6503_v52  ;;  %v2956_v56 = vld [vmem:[#allocation13 + $0x148] sm:$0xff]  ;;  %v6451_v52 = vpack.c.bf16 %v2951_v50, %v2947_v0  ;;  %v2955_v9 = vld [vmem:[#allocation13 + $0x140] sm:$0xff]  ;;  %v2969_v23 = vld [vmem:[#allocation13 + $0x1b0] sm:$0xff] }
0x12c7   :  { %6442 = vmatprep.subr.bf16.mxu1 %v6441_v5  ;;  %6506 = vmatprep.subr.bf16.mxu0 %v6505_v11  ;;  %v6515_v5 = vpack.c.bf16 %v2953_v57, %v2949_v2  ;;  %v6453_v55 = vpack.c.bf16 %v2960_v59, %v2956_v56  ;;  %v2957_v11 = vld [vmem:[#allocation13 + $0x150] sm:$0xff]  ;;  %v2963_v35 = vld [vmem:[#allocation13 + $0x180] sm:$0xff]  ;;  %v2974_v54 = vld [vmem:[#allocation13 + $0x1d8] sm:$0xff] }
0x12c8   :  { %2841 = vperm.xlu1 %7131, %v2819_v18   ;;  %v2933_v18 = vld [vmem:[#allocation13 + $0x90] sm:$0xff]  ;;  %v2967_v46 = vld [vmem:[#allocation13 + $0x1a0] sm:$0xff]  ;;  %v2978_v32 = vld [vmem:[#allocation13 + $0x1f8] sm:$0xff] }
0x12c9   :  { %v6459_v60 = vpack.c.bf16 %v2967_v46, %v2963_v35  ;;  %v2975_v0 = vld [vmem:[#allocation13 + $0x1e0] sm:$0xff]  ;;  %v2973_v50 = vld [vmem:[#allocation13 + $0x1d0] sm:$0xff]  ;;  %v6525_v2 = vpack.c.bf16 %v2978_v32, %v2974_v54  ;;  %v2980_v57 = vld [vmem:[#allocation13 + $0x208] sm:$0xff] }
0x12ca   :  { %v2984_v56 = vld [vmem:[#allocation13 + $0x228] sm:$0xff]  ;;  %v2982_v59 = vld [vmem:[#allocation13 + $0x218] sm:$0xff]  ;;  %v2991_v35 = vld [vmem:[#allocation13 + $0x260] sm:$0xff] }
0x12cb   :  { %v2989_v46 = vld [vmem:[#allocation13 + $0x250] sm:$0xff]  ;;  %v3002_v54 = vld [vmem:[#allocation13 + $0x2b8] sm:$0xff] }
0x12cc   :  { %2846 = vperm.xlu1 %7131, %v2820_v22   ;;  %v2937_v22 = vld [vmem:[#allocation13 + $0xb0] sm:$0xff] }
0x12cd   :  { %v6507_v36 = vpack.c.bf16 %v2937_v22, %v2933_v18  ;;  %v2961_v18 = vld [vmem:[#allocation13 + $0x170] sm:$0xff]  ;;  %v2964_v22 = vld [vmem:[#allocation13 + $0x188] sm:$0xff] }
0x12cf   :  { %6508 = vmatpush1.bf16.msra.mxu0 %v6507_v36  ;;  %v6519_v36 = vpack.c.bf16 %v2961_v18, %v2957_v11  ;;  %v2988_v18 = vld [vmem:[#allocation13 + $0x248] sm:$0xff] }
0x12d0   :  { %2851 = vperm.xlu1 %7131, %v2821_v26   ;;  %v6443_v26 = vpack.c.bf16 %v2935_v17, %v2931_v10  ;;  %6510 = vmatprep.subr.bf16.mxu0 %v6509_v53  ;;  %v2959_v10 = vld [vmem:[#allocation13 + $0x160] sm:$0xff]  ;;  %v6517_v17 = vpack.c.bf16 %v2962_v8, %v2958_v48  ;;  %v2986_v48 = vld [vmem:[#allocation13 + $0x238] sm:$0xff] }
0x12d1   :  { %v6455_v16 = vpack.c.bf16 %v2959_v10, %v2955_v9  ;;  %v2983_v9 = vld [vmem:[#allocation13 + $0x220] sm:$0xff]  ;;  %v2981_v10 = vld [vmem:[#allocation13 + $0x210] sm:$0xff]  ;;  %v6529_v11 = vpack.c.bf16 %v2986_v48, %v2982_v59  ;;  %v3010_v59 = vld [vmem:[#allocation13 + $0x2f8] sm:$0xff] }
0x12d2   :  { %6444 = vmatpush1.bf16.msra.mxu1 %v6443_v26  ;;  %v2968_v26 = vld [vmem:[#allocation13 + $0x1a8] sm:$0xff] }
0x12d3   :  { %6512 = vmatpush1.bf16.msra.mxu0 %v6511_v62  ;;  %v6461_v62 = vpack.c.bf16 %v2976_v45, %v2972_v44  ;;  %v3000_v44 = vld [vmem:[#allocation13 + $0x2a8] sm:$0xff]  ;;  %v2998_v45 = vld [vmem:[#allocation13 + $0x298] sm:$0xff] }
0x12d4   :  { %2856 = vperm.xlu1 %7131, %v2822_v61   ;;  %v2940_v61 = vld [vmem:[#allocation13 + $0xc8] sm:$0xff]  ;;  %6514 = vmatprep.subr.bf16.mxu0 %v6513_v51  ;;  %v2977_v51 = vld [vmem:[#allocation13 + $0x1f0] sm:$0xff] }
0x12d7   :  { %6516 = vmatpush1.bf16.msra.mxu0 %v6515_v5  ;;  %v6465_v5 = vpack.c.bf16 %v2984_v56, %v2980_v57  ;;  %v3008_v57 = vld [vmem:[#allocation13 + $0x2e8] sm:$0xff]  ;;  %v3006_v56 = vld [vmem:[#allocation13 + $0x2d8] sm:$0xff] }
0x12d8   :  { %2861 = vperm.xlu1 %7131, %v2823_v7   ;;  %v2944_v7 = vld [vmem:[#allocation13 + $0xe8] sm:$0xff]  ;;  %6518 = vmatprep.subr.bf16.mxu0 %v6517_v17  ;;  %v2985_v17 = vld [vmem:[#allocation13 + $0x230] sm:$0xff] }
0x12d9   :  { %v6445_v30 = vpack.c.bf16 %v2944_v7, %v2940_v61  ;;  %v2966_v61 = vld [vmem:[#allocation13 + $0x198] sm:$0xff] }
0x12da   :  { %v2970_v7 = vld [vmem:[#allocation13 + $0x1b8] sm:$0xff] }
0x12db   :  { %6446 = vmatprep.subr.bf16.mxu1 %v6445_v30  ;;  %v6457_v30 = vpack.c.bf16 %v2968_v26, %v2964_v22  ;;  %v6521_v53 = vpack.c.bf16 %v2970_v7, %v2966_v61  ;;  %6520 = vmatpush1.bf16.msra.mxu0 %v6519_v36  ;;  %v2992_v22 = vld [vmem:[#allocation13 + $0x268] sm:$0xff]  ;;  %v2990_v26 = vld [vmem:[#allocation13 + $0x258] sm:$0xff] }
0x12dc   :  { %6448 = vmatpush1.bf16.msra.mxu1 %v6447_v41  ;;  %v6523_v41 = vpack.c.bf16 %v2969_v23, %v2965_v47  ;;  %v2994_v61 = vld [vmem:[#allocation13 + $0x278] sm:$0xff]  ;;  %v6469_v36 = vpack.c.bf16 %v2992_v22, %v2988_v18  ;;  %v2996_v23 = vld [vmem:[#allocation13 + $0x288] sm:$0xff] }
0x12dd   :  { %6450 = vmatprep.subr.bf16.mxu1 %v6449_v43  ;;  %v2971_v43 = vld [vmem:[#allocation13 + $0x1c0] sm:$0xff]  ;;  %6522 = vmatprep.subr.bf16.mxu0 %v6521_v53  ;;  %v6533_v47 = vpack.c.bf16 %v2994_v61, %v2990_v26  ;;  %v2993_v53 = vld [vmem:[#allocation13 + $0x270] sm:$0xff]  ;;  %v3016_v18 = vld [vmem:[#allocation13 + $0x328] sm:$0xff] }
0x12de   :  { %v6463_v8 = vpack.c.bf16 %v2975_v0, %v2971_v43  ;;  %v2999_v43 = vld [vmem:[#allocation13 + $0x2a0] sm:$0xff]  ;;  %v2997_v0 = vld [vmem:[#allocation13 + $0x290] sm:$0xff]  ;;  %v3014_v22 = vld [vmem:[#allocation13 + $0x318] sm:$0xff] }
0x12df   :  { %6524 = vmatpush1.bf16.msra.mxu0 %v6523_v41  ;;  %v6473_v41 = vpack.c.bf16 %v3000_v44, %v2996_v23  ;;  %v3018_v26 = vld [vmem:[#allocation13 + $0x338] sm:$0xff]  ;;  %v3024_v23 = vld [vmem:[#allocation13 + $0x368] sm:$0xff] }
0x12e0   :  { %6452 = vmatpush1.bf16.msra.mxu1 %v6451_v52  ;;  %v6527_v52 = vpack.c.bf16 %v2977_v51, %v2973_v50  ;;  %6526 = vmatprep.subr.bf16.mxu0 %v6525_v2  ;;  %v6537_v50 = vpack.c.bf16 %v3002_v54, %v2998_v45  ;;  %v3001_v2 = vld [vmem:[#allocation13 + $0x2b0] sm:$0xff]  ;;  %v3004_v51 = vld [vmem:[#allocation13 + $0x2c8] sm:$0xff]  ;;  %v3022_v44 = vld [vmem:[#allocation13 + $0x358] sm:$0xff] }
0x12e1   :  { %6454 = vmatprep.subr.bf16.mxu1 %v6453_v55  ;;  %v2979_v55 = vld [vmem:[#allocation13 + $0x200] sm:$0xff]  ;;  %v3026_v45 = vld [vmem:[#allocation13 + $0x378] sm:$0xff] }
0x12e2   :  { %v6467_v7 = vpack.c.bf16 %v2983_v9, %v2979_v55  ;;  %v3007_v55 = vld [vmem:[#allocation13 + $0x2e0] sm:$0xff]  ;;  %v3005_v9 = vld [vmem:[#allocation13 + $0x2d0] sm:$0xff] }
0x12e3   :  { %6528 = vmatpush1.bf16.msra.mxu0 %v6527_v52  ;;  %v6477_v52 = vpack.c.bf16 %v3008_v57, %v3004_v51  ;;  %v3032_v51 = vld [vmem:[#allocation13 + $0x3a8] sm:$0xff]  ;;  %v3030_v57 = vld [vmem:[#allocation13 + $0x398] sm:$0xff] }
0x12e4   :  { %6456 = vmatpush1.bf16.msra.mxu1 %v6455_v16  ;;  %v6531_v16 = vpack.c.bf16 %v2985_v17, %v2981_v10  ;;  %6530 = vmatprep.subr.bf16.mxu0 %v6529_v11  ;;  %v6541_v10 = vpack.c.bf16 %v3010_v59, %v3006_v56  ;;  %v3009_v11 = vld [vmem:[#allocation13 + $0x2f0] sm:$0xff]  ;;  %v3012_v17 = vld [vmem:[#allocation13 + $0x308] sm:$0xff]  ;;  %v3034_v56 = vld [vmem:[#allocation13 + $0x3b8] sm:$0xff] }
0x12e5   :  { %6458 = vmatprep.subr.bf16.mxu1 %v6457_v30  ;;  %v2987_v30 = vld [vmem:[#allocation13 + $0x240] sm:$0xff] }
0x12e6   :  { %v6471_v32 = vpack.c.bf16 %v2991_v35, %v2987_v30  ;;  %v3015_v30 = vld [vmem:[#allocation13 + $0x320] sm:$0xff]  ;;  %v3013_v35 = vld [vmem:[#allocation13 + $0x310] sm:$0xff] }
0x12e7   :  { %6532 = vmatpush1.bf16.msra.mxu0 %v6531_v16  ;;  %v6481_v16 = vpack.c.bf16 %v3016_v18, %v3012_v17  ;;  %v3040_v17 = vld [vmem:[#allocation13 + $0x3e8] sm:$0xff]  ;;  %v3038_v18 = vld [vmem:[#allocation13 + $0x3d8] sm:$0xff] }
0x12e8   :  { %6460 = vmatpush1.bf16.msra.mxu1 %v6459_v60  ;;  %v6535_v60 = vpack.c.bf16 %v2993_v53, %v2989_v46  ;;  %6534 = vmatprep.subr.bf16.mxu0 %v6533_v47  ;;  %v6545_v46 = vpack.c.bf16 %v3018_v26, %v3014_v22  ;;  %v3017_v47 = vld [vmem:[#allocation13 + $0x330] sm:$0xff]  ;;  %v3020_v53 = vld [vmem:[#allocation13 + $0x348] sm:$0xff]  ;;  %v3042_v22 = vld [vmem:[#allocation13 + $0x3f8] sm:$0xff] }
0x12e9   :  { %6462 = vmatprep.subr.bf16.mxu1 %v6461_v62  ;;  %v2995_v62 = vld [vmem:[#allocation13 + $0x280] sm:$0xff] }
0x12ea   :  { %v6475_v48 = vpack.c.bf16 %v2999_v43, %v2995_v62  ;;  %v3023_v62 = vld [vmem:[#allocation13 + $0x360] sm:$0xff]  ;;  %v3021_v43 = vld [vmem:[#allocation13 + $0x350] sm:$0xff] }
0x12eb   :  { %6536 = vmatpush1.bf16.msra.mxu0 %v6535_v60  ;;  %v6485_v60 = vpack.c.bf16 %v3024_v23, %v3020_v53 }
0x12ec   :  { %6464 = vmatpush1.bf16.msra.mxu1 %v6463_v8  ;;  %v6539_v8 = vpack.c.bf16 %v3001_v2, %v2997_v0  ;;  %6538 = vmatprep.subr.bf16.mxu0 %v6537_v50  ;;  %v6549_v0 = vpack.c.bf16 %v3026_v45, %v3022_v44  ;;  %v3025_v50 = vld [vmem:[#allocation13 + $0x370] sm:$0xff]  ;;  %v3028_v2 = vld [vmem:[#allocation13 + $0x388] sm:$0xff] }
0x12ed   :  { %6466 = vmatprep.subr.bf16.mxu1 %v6465_v5  ;;  %v3003_v5 = vld [vmem:[#allocation13 + $0x2c0] sm:$0xff] }
0x12ee   :  { %v6479_v61 = vpack.c.bf16 %v3007_v55, %v3003_v5  ;;  %v3031_v5 = vld [vmem:[#allocation13 + $0x3a0] sm:$0xff]  ;;  %v3029_v55 = vld [vmem:[#allocation13 + $0x390] sm:$0xff] }
0x12ef   :  { %6540 = vmatpush1.bf16.msra.mxu0 %v6539_v8  ;;  %v6489_v8 = vpack.c.bf16 %v3032_v51, %v3028_v2 }
0x12f0   :  { %6468 = vmatpush1.bf16.msra.mxu1 %v6467_v7  ;;  %v6543_v7 = vpack.c.bf16 %v3009_v11, %v3005_v9  ;;  %6542 = vmatprep.subr.bf16.mxu0 %v6541_v10  ;;  %v6553_v9 = vpack.c.bf16 %v3034_v56, %v3030_v57  ;;  %v3033_v10 = vld [vmem:[#allocation13 + $0x3b0] sm:$0xff]  ;;  %v3036_v11 = vld [vmem:[#allocation13 + $0x3c8] sm:$0xff] }
0x12f1   :  { %6470 = vmatprep.subr.bf16.mxu1 %v6469_v36  ;;  %v3011_v36 = vld [vmem:[#allocation13 + $0x300] sm:$0xff] }
0x12f2   :  { %v6483_v54 = vpack.c.bf16 %v3015_v30, %v3011_v36  ;;  %v3039_v36 = vld [vmem:[#allocation13 + $0x3e0] sm:$0xff]  ;;  %v6557_v30 = vpack.c.bf16 %v3042_v22, %v3038_v18 }
0x12f3   :  { %6544 = vmatpush1.bf16.msra.mxu0 %v6543_v7  ;;  %v6493_v7 = vpack.c.bf16 %v3040_v17, %v3036_v11  ;;  %v7445_v17 = vld [vmem:[#allocation3 + $0xa] sm:$0x3] }
0x12f4   :  { %6472 = vmatpush1.bf16.msra.mxu1 %v6471_v32  ;;  %v6547_v32 = vpack.c.bf16 %v3017_v47, %v3013_v35  ;;  %6546 = vmatprep.subr.bf16.mxu0 %v6545_v46  ;;  %v3037_v35 = vld [vmem:[#allocation13 + $0x3d0] sm:$0xff] }
0x12f5   :  { %6474 = vmatprep.subr.bf16.mxu1 %v6473_v41  ;;  %v3019_v41 = vld [vmem:[#allocation13 + $0x340] sm:$0xff]  ;;  %v3041_v46 = vld [vmem:[#allocation13 + $0x3f0] sm:$0xff] }
0x12f6   :  { %v6487_v59 = vpack.c.bf16 %v3023_v62, %v3019_v41  ;;  %v6559_v53 = vpack.c.bf16 %v3041_v46, %v3037_v35 }
0x12f7   :  { %6548 = vmatpush1.bf16.msra.mxu0 %v6547_v32 }
0x12f8   :  { %6476 = vmatpush1.bf16.msra.mxu1 %v6475_v48  ;;  %v6551_v48 = vpack.c.bf16 %v3025_v50, %v3021_v43  ;;  %6550 = vmatprep.subr.bf16.mxu0 %v6549_v0 }
0x12f9   :  { %6478 = vmatprep.subr.bf16.mxu1 %v6477_v52  ;;  %v3027_v52 = vld [vmem:[#allocation13 + $0x380] sm:$0xff] }
0x12fa   :  { %v6491_v26 = vpack.c.bf16 %v3031_v5, %v3027_v52 }
0x12fb   :  { %6552 = vmatpush1.bf16.msra.mxu0 %v6551_v48 }
0x12fc   :  { %6480 = vmatpush1.bf16.msra.mxu1 %v6479_v61  ;;  %v6555_v61 = vpack.c.bf16 %v3033_v10, %v3029_v55  ;;  %6554 = vmatprep.subr.bf16.mxu0 %v6553_v9 }
0x12fd   :  { %6482 = vmatprep.subr.bf16.mxu1 %v6481_v16  ;;  %v3035_v16 = vld [vmem:[#allocation13 + $0x3c0] sm:$0xff] }
0x12fe   :  { %v6495_v47 = vpack.c.bf16 %v3039_v36, %v3035_v16  ;;  %v7446_v36 = vld [vmem:[#allocation3 + $0xc] sm:$0x3] }
0x12ff   :  { %6556 = vmatpush1.bf16.msra.mxu0 %v6555_v61 }
0x1300   :  { %6484 = vmatpush1.bf16.msra.mxu1 %v6483_v54  ;;  %6558 = vmatprep.subr.bf16.mxu0 %v6557_v30 }
0x1301   :  { %6486 = vmatprep.subr.bf16.mxu1 %v6485_v60 }
0x1303   :  { %6560 = vmatpush1.bf16.msra.mxu0 %v6559_v53 }
0x1304   :  { %6488 = vmatpush1.bf16.msra.mxu1 %v6487_v59  ;;  %6585 = vmatprep.subr.bf16.mxu0 %v7674_v21 }
0x1305   :  { %6490 = vmatprep.subr.bf16.mxu1 %v6489_v8 }
0x1308   :  { %6492 = vmatpush1.bf16.msra.mxu1 %v6491_v26 }
0x1309   :  { %6494 = vmatprep.subr.bf16.mxu1 %v6493_v7 }
0x130c   :  { %6496 = vmatpush1.bf16.msra.mxu1 %v6495_v47 }
0x130d   :  { %6561 = vmatprep.subr.bf16.mxu1 %v7674_v21 }
0x133f   :  { %v2832_v23 = vpop.permute.xlu0 %2831  ;;  %v2827_v44 = vpop.permute.xlu1 %2826 }
0x1340   :  { %v2865_v45 = vmul.f32 %v2832_v23, %v8564_v37  ;;  %v2864_v54 = vmul.f32 %v2827_v44, %v8596_v31  ;;  %v2888_v51 = vmul.f32 %v2832_v23, %v8566_v39  ;;  %v2887_v57 = vmul.f32 %v2827_v44, %v8581_v33  ;;  %v7447_v44 = vld [vmem:[#allocation3 + $0xe] sm:$0x3] }
0x1342   :  { %v2873_v32 = vsel %vm688_vm4, %v2865_v45, 0.0  ;;  %v2872_v60 = vsel %vm688_vm4, %v2864_v54, 0.0  ;;  %v2896_v8 = vsel %vm688_vm4, %v2888_v51, 0.0  ;;  %v3339_v51 = vld [vmem:[%s9364_s7 + $0x10] sm:$0xff] }
0x1343   :  { %v2837_v41 = vpop.permute.xlu1 %2836  ;;  %v2874_v43 = vadd.f32 %v2873_v32, %v2872_v60 }
0x1344   :  { %v2866_v62 = vmul.f32 %v2837_v41, %v8568_v14  ;;  %v2889_v31 = vmul.f32 %v2837_v41, %v8570_v15  ;;  %v2895_v14 = vsel %vm688_vm4, %v2887_v57, 0.0  ;;  %v3340_v57 = vld [vmem:[%s9364_s7 + $0x18] sm:$0xff] }
0x1345   :  { %v2897_v55 = vadd.f32 %v2896_v8, %v2895_v14  ;;  %v3344_v8 = vld [vmem:[%s9364_s7 + $0x38] sm:$0xff] }
0x1346   :  { %v2875_v0 = vsel %vm688_vm4, %v2866_v62, 0.0  ;;  %v2898_v39 = vsel %vm688_vm4, %v2889_v31, 0.0  ;;  %v3341_v31 = vld [vmem:[%s9364_s7 + $0x20] sm:$0xff] }
0x1347   :  { %v2876_v50 = vadd.f32 %v2875_v0, %v2874_v43  ;;  %v2842_v2 = vpop.permute.xlu1 %2841  ;;  %v2899_v22 = vadd.f32 %v2898_v39, %v2897_v55 }
0x1348   :  { %v2867_v37 = vmul.f32 %v2842_v2, %v8576_v20  ;;  %v2890_v52 = vmul.f32 %v2842_v2, %v8572_v28 }
0x134a   :  { %v2877_v56 = vsel %vm688_vm4, %v2867_v37, 0.0  ;;  %v2900_v10 = vsel %vm688_vm4, %v2890_v52, 0.0  ;;  %v6589_v37 = vpack.c.bf16 %v3340_v57, %v3339_v51  ;;  %v3231_v52 = vld [vmem:[%s9370_s13] sm:$0xff] }
0x134b   :  { %v2878_v59 = vadd.f32 %v2877_v56, %v2876_v50  ;;  %v2847_v48 = vpop.permute.xlu1 %2846  ;;  %v2901_v26 = vadd.f32 %v2900_v10, %v2899_v22  ;;  %v3337_v50 = vld [vmem:[%s9364_s7] sm:$0xff]  ;;  %v3342_v56 = vld [vmem:[%s9364_s7 + $0x28] sm:$0xff] }
0x134c   :  { %v2868_v5 = vmul.f32 %v2847_v48, %v8629_v42  ;;  %v2891_v20 = vmul.f32 %v2847_v48, %v8562_v58  ;;  %v3343_v48 = vld [vmem:[%s9364_s7 + $0x30] sm:$0xff]  ;;  %v3235_v22 = vld [vmem:[%s9370_s13 + $0x20] sm:$0xff] }
0x134d   :  { %v6595_v14 = vpack.c.bf16 %v3344_v8, %v3343_v48 }
0x134e   :  { %v2879_v33 = vsel %vm688_vm4, %v2868_v5, 0.0  ;;  %v2902_v28 = vsel %vm688_vm4, %v2891_v20, 0.0  ;;  %v3232_v5 = vld [vmem:[%s9370_s13 + $0x8] sm:$0xff] }
0x134f   :  { %v2880_v15 = vadd.f32 %v2879_v33, %v2878_v59  ;;  %v2852_v9 = vpop.permute.xlu1 %2851  ;;  %v2903_v35 = vadd.f32 %v2902_v28, %v2901_v26  ;;  %v6592_v59 = vpack.c.bf16 %v3342_v56, %v3341_v31  ;;  %v6562_v39 = vpack.c.bf16 %v3232_v5, %v3231_v52  ;;  %v3345_v33 = vld [vmem:[%s9364_s7 + $0x40] sm:$0xff]  ;;  %v3346_v20 = vld [vmem:[%s9364_s7 + $0x48] sm:$0xff] }
0x1350   :  { %v2869_v11 = vmul.f32 %v2852_v9, %v8620_v3  ;;  %v2892_v18 = vmul.f32 %v7445_v17, %v2852_v9  ;;  %v6598_v55 = vpack.c.bf16 %v3346_v20, %v3345_v33  ;;  %v3234_v9 = vld [vmem:[%s9370_s13 + $0x18] sm:$0xff]  ;;  %v3236_v28 = vld [vmem:[%s9370_s13 + $0x28] sm:$0xff]  ;;  %v3349_v26 = vld [vmem:[%s9364_s7 + $0x60] sm:$0xff] }
0x1351   :  { %v3348_v17 = vld [vmem:[%s9364_s7 + $0x58] sm:$0xff] }
0x1352   :  { %v2881_v42 = vsel %vm688_vm4, %v2869_v11, 0.0  ;;  %v2904_v16 = vsel %vm688_vm4, %v2892_v18, 0.0  ;;  %v3347_v11 = vld [vmem:[%s9364_s7 + $0x50] sm:$0xff] }
0x1353   :  { %v2882_v61 = vadd.f32 %v2881_v42, %v2880_v15  ;;  %v2857_v7 = vpop.permute.xlu1 %2856  ;;  %v2905_v47 = vadd.f32 %v2904_v16, %v2903_v35  ;;  %v3233_v15 = vld [vmem:[%s9370_s13 + $0x10] sm:$0xff]  ;;  %v6601_v18 = vpack.c.bf16 %v3348_v17, %v3347_v11  ;;  %v6568_v42 = vpack.c.bf16 %v3236_v28, %v3235_v22  ;;  %v3352_v35 = vld [vmem:[%s9364_s7 + $0x78] sm:$0xff] }
0x1354   :  { %v2870_v58 = vmul.f32 %v2857_v7, %v8622_v4  ;;  %v2893_v30 = vmul.f32 %v7446_v36, %v2857_v7  ;;  %v6565_v10 = vpack.c.bf16 %v3234_v9, %v3233_v15  ;;  %v3237_v16 = vld [vmem:[%s9370_s13 + $0x30] sm:$0xff] }
0x1356   :  { %v2883_v46 = vsel %vm688_vm4, %v2870_v58, 0.0  ;;  %v2906_v3 = vsel %vm688_vm4, %v2893_v30, 0.0  ;;  %v3238_v58 = vld [vmem:[%s9370_s13 + $0x38] sm:$0xff]  ;;  %v3351_v30 = vld [vmem:[%s9364_s7 + $0x70] sm:$0xff] }
0x1357   :  { %v2884_v53 = vadd.f32 %v2883_v46, %v2882_v61  ;;  %v2862_v23 = vpop.permute.xlu1 %2861  ;;  %v2907_v54 = vadd.f32 %v2906_v3, %v2905_v47  ;;  %v3350_v61 = vld [vmem:[%s9364_s7 + $0x68] sm:$0xff]  ;;  %v6571_v36 = vpack.c.bf16 %v3238_v58, %v3237_v16  ;;  %v6607_v46 = vpack.c.bf16 %v3352_v35, %v3351_v30  ;;  %v3239_v3 = vld [vmem:[%s9370_s13 + $0x40] sm:$0xff] }
0x1358   :  { %v2894_v45 = vmul.f32 %v7447_v44, %v2862_v23  ;;  %v2871_v4 = vmul.f32 %v2862_v23, %v8624_v38  ;;  %v3338_v38 = vld [vmem:[%s9364_s7 + $0x8] sm:$0xff]  ;;  %v6604_v7 = vpack.c.bf16 %v3350_v61, %v3349_v26  ;;  %v3241_v23 = vld [vmem:[%s9370_s13 + $0x50] sm:$0xff]  ;;  %v3242_v44 = vld [vmem:[%s9370_s13 + $0x58] sm:$0xff] }
0x1359   :  { %v6586_v2 = vpack.c.bf16 %v3338_v38, %v3337_v50  ;;  %v3240_v47 = vld [vmem:[%s9370_s13 + $0x48] sm:$0xff] }
0x135a   :  { %v2908_v32 = vsel %vm688_vm4, %v2894_v45, 0.0  ;;  %v2885_v41 = vsel %vm688_vm4, %v2871_v4, 0.0  ;;  %v3243_v45 = vld [vmem:[%s9370_s13 + $0x60] sm:$0xff]  ;;  %v3245_v4 = vld [vmem:[%s9370_s13 + $0x70] sm:$0xff] }
0x135b   :  { %v2909_v60 = vadd.f32 %v2908_v32, %v2907_v54  ;;  %v2886_v62 = vadd.f32 %v2885_v41, %v2884_v53  ;;  %v6574_v53 = vpack.c.bf16 %v3240_v47, %v3239_v3  ;;  %v6577_v54 = vpack.c.bf16 %v3242_v44, %v3241_v23  ;;  %v3244_v32 = vld [vmem:[%s9370_s13 + $0x68] sm:$0xff]  ;;  %v3246_v41 = vld [vmem:[%s9370_s13 + $0x78] sm:$0xff] }
0x135d   :  { %2911 = vrot.lane.b32.xlu1 %v2909_v60, %s7673_s28  ;;  %v6580_v60 = vpack.c.bf16 %v3244_v32, %v3243_v45  ;;  %v7448_v32 = vld [vmem:[#allocation11] ss:$0 sm:$0xff] }
0x13cf   :  { %v2912_v43 = vpop.permute.xlu1 %2911 }
0x13d0   :  { %v2914_v0 = vsel %vm293_vm2, %v2886_v62, %v2912_v43  ;;  %v6583_v62 = vpack.c.bf16 %v3246_v41, %v3245_v4  ;;  %v3043_v43 = vld [vmem:[#allocation14] sm:$0xf] }
0x13d1   :  { %3130 = vmatmul.mubr.f32.vlgmr.msra.gmra.mrb[18].mxu1 %v2914_v0  ;;  %3201 = vmatmul.mubr.f32.vlgmr.msra.gmra.mrb[28].mxu0 %v2914_v0  ;;  %v3048_v0 = vrot.slane %v3043_v43, %v8141_v63  ;;  %v3052_v50 = vrot.slane %v3043_v43, %v8143_v1  ;;  %v3060_v48 = vrot.slane %v3043_v43, %v8149_v13 }
0x13d2   :  { %5903 = vmatprep.mubr.msk.f32.mxu0 %vm7675_vm6, %v7672_v49  ;;  %5868 = vmatprep.mubr.msk.f32.mxu1 %vm7675_vm6, %v7672_v49 }
0x13d3   :  { %6587 = vmatpush3.bf16.msra.mxu0 %v6586_v2  ;;  %6563 = vmatpush3.bf16.msra.mxu1 %v6562_v39 }
0x13d4   :  { %6588 = vmatprep.subr.bf16.mxu0 %v7674_v21  ;;  %6564 = vmatprep.subr.bf16.mxu1 %v7674_v21 }
0x13d7   :  { %6590 = vmatpush3.bf16.msra.mxu0 %v6589_v37  ;;  %6566 = vmatpush3.bf16.msra.mxu1 %v6565_v10 }
0x13d8   :  { %6591 = vmatprep.subr.bf16.mxu0 %v7674_v21  ;;  %6567 = vmatprep.subr.bf16.mxu1 %v7674_v21 }
0x13db   :  { %6593 = vmatpush3.bf16.msra.mxu0 %v6592_v59  ;;  %6569 = vmatpush3.bf16.msra.mxu1 %v6568_v42 }
0x13dc   :  { %6594 = vmatprep.subr.bf16.mxu0 %v7674_v21  ;;  %6570 = vmatprep.subr.bf16.mxu1 %v7674_v21 }
0x13df   :  { %6596 = vmatpush3.bf16.msra.mxu0 %v6595_v14  ;;  %6572 = vmatpush3.bf16.msra.mxu1 %v6571_v36  ;;  %v3056_v14 = vrot.slane %v3043_v43, %v8147_v12 }
0x13e0   :  { %6597 = vmatprep.subr.bf16.mxu0 %v7674_v21  ;;  %6573 = vmatprep.subr.bf16.mxu1 %v7674_v21 }
0x13e3   :  { %6599 = vmatpush3.bf16.msra.mxu0 %v6598_v55  ;;  %6575 = vmatpush3.bf16.msra.mxu1 %v6574_v53 }
0x13e4   :  { %6600 = vmatprep.subr.bf16.mxu0 %v7674_v21  ;;  %6576 = vmatprep.subr.bf16.mxu1 %v7674_v21 }
0x13e7   :  { %6602 = vmatpush3.bf16.msra.mxu0 %v6601_v18  ;;  %6578 = vmatpush3.bf16.msra.mxu1 %v6577_v54 }
0x13e8   :  { %6603 = vmatprep.subr.bf16.mxu0 %v7674_v21  ;;  %6579 = vmatprep.subr.bf16.mxu1 %v7674_v21 }
0x13eb   :  { %6605 = vmatpush3.bf16.msra.mxu0 %v6604_v7  ;;  %6581 = vmatpush3.bf16.msra.mxu1 %v6580_v60 }
0x13ec   :  { %6606 = vmatprep.subr.bf16.mxu0 %v7674_v21  ;;  %6582 = vmatprep.subr.bf16.mxu1 %v7674_v21 }
0x13ef   :  { %6608 = vmatpush3.bf16.msra.mxu0 %v6607_v46  ;;  %6584 = vmatpush3.bf16.msra.mxu1 %v6583_v62 }
0x14a4   :  { %v3131_v38 = vpop.f32.mrb[18].mxu1  ;;  %v3202_v2 = vpop.f32.mrb[28].mxu0 }
0x14a5   :  { %v3132_v51 = vadd.f32 %v3131_v38, %v3048_v0  ;;  %v3133_v57 = vpop.f32.mrb[19].mxu1  ;;  %v3204_v37 = vpop.f32.mrb[29].mxu0  ;;  %v3203_v5 = vadd.f32 %v3202_v2, %v3056_v14 }
0x14a6   :  { %v3134_v31 = vadd.f32 %v3133_v57, %v3052_v50  ;;  %v3205_v8 = vadd.f32 %v3204_v37, %v3060_v48 }
0x14a7   :  { %v5565_v56 = vmul.f32 -1.442695, %v3132_v51 }
0x14a8   :  { %v5566_v59 = vmul.f32 -1.442695, %v3134_v31  ;;  %v5567_v52 = vmul.f32 -1.442695, %v3205_v8 }
0x14a9   :  { %7263 = vpow2.f32 %v5565_v56 }
0x14aa   :  { %7265 = vpow2.f32 %v5566_v59 }
0x14ab   :  { %7267 = vpow2.f32 %v5567_v52 }
0x14ac   :  { %7269 = vtanh.f32 %v3203_v5 }
0x14b3   :  { %v7264_v39 = vpop.eup %7263 }
0x14b4   :  { %v7266_v33 = vpop.eup %7265  ;;  %v3210_v20 = vadd.f32 1.0, %v7264_v39 }
0x14b5   :  { %v3216_v55 = vadd.f32 1.0, %v7266_v33  ;;  %v7268_v15 = vpop.eup %7267 }
0x14b6   :  { %7271 = vrcp.f32 %v3210_v20  ;;  %v7270_v9 = vpop.eup %7269  ;;  %v3223_v17 = vadd.f32 1.0, %v7268_v15 }
0x14b7   :  { %7273 = vrcp.f32 %v3216_v55 }
0x14b8   :  { %7275 = vrcp.f32 %v3223_v17 }
0x14c0   :  { %v7272_v10 = vpop.eup %7271 }
0x14c1   :  { %v7274_v11 = vpop.eup %7273  ;;  %v3227_v18 = vmul.f32 %v7272_v10, %v7270_v9  ;;  %v5569_v10 = vld [vmem:[#allocation5] ss:$0 sm:$0xff] }
0x14c2   :  { %v3226_v22 = vmul.f32 0.0, %v7274_v11  ;;  %v7276_v42 = vpop.eup %7275 }
0x14c4   :  { %v8842_v28 = vadd.f32 %v3227_v18, %v3226_v22 }
0x14c6   :  { %7277 = vtanh.f32 %v8842_v28  ;;  %5904 = vmatmul.mubr.f32.vlgmr.msra.gmra.mrb[30].mxu0 %v8842_v28 }
0x14d0   :  { %v7278_v26 = vpop.eup %7277 }
0x14d1   :  { %v3230_v61 = vmul.f32 %v7278_v26, %v7276_v42 }
0x14d3   :  { %5869 = vmatmul.mubr.f32.vlgmr.msra.gmra.mrb[20].mxu1 %v3230_v61  ;;  %3925 = vmatprep.mubr.f32.mxu0 %v3230_v61 }
0x14d4   :  { %3854 = vmatprep.mubr.f32.mxu1 %v3230_v61 }
0x1599   :  { %v3419_v7 = vpop.f32.mrb[30].mxu0 }
0x159a   :  { %v5905_v16 = vpop.f32.mrb[31].mxu0  ;;  %v3424_v58 = vadd.f32 %v3419_v7, %v8650_v40  ;;  %v3423_v36 = vadd.f32 %v3419_v7, %v8639_v25  ;;  %v3425_v30 = vadd.f32 %v3419_v7, %v8653_v6  ;;  %v3426_v35 = vadd.f32 %v3419_v7, %v8660_v34 }
0x159b   :  { %v3427_v46 = vadd.f32 %v3419_v7, %v8637_v19  ;;  %v3428_v3 = vadd.f32 %v3419_v7, %v8643_v27  ;;  %v3429_v47 = vadd.f32 %v3419_v7, %v8646_v29  ;;  %v3430_v53 = vadd.f32 %v3419_v7, %v8664_v24 }
0x159c   :  { %7279 = vtanh.f32 %v3424_v58 }
0x159d   :  { %7281 = vtanh.f32 %v3423_v36 }
0x159e   :  { %7283 = vtanh.f32 %v3425_v30 }
0x159f   :  { %7285 = vtanh.f32 %v3426_v35 }
0x15a0   :  { %7287 = vtanh.f32 %v3427_v46 }
0x15a1   :  { %7289 = vtanh.f32 %v3428_v3 }
0x15a2   :  { %7291 = vtanh.f32 %v3429_v47 }
0x15a3   :  { %7293 = vtanh.f32 %v3430_v53 }
0x15a6   :  { %v7280_v23 = vpop.eup %7279  ;;  %v8854_v44 = vpop.f32.mrb[20].mxu1 }
0x15a7   :  { %v7282_v45 = vpop.eup %7281  ;;  %v5870_v54 = vpop.f32.mrb[21].mxu1  ;;  %v3440_v60 = vmul.f32 %v7448_v32, %v7280_v23 }
0x15a8   :  { %v7284_v4 = vpop.eup %7283  ;;  %v3439_v41 = vmul.f32 %v7448_v32, %v7282_v45 }
0x15a9   :  { %v7286_v62 = vpop.eup %7285  ;;  %v3450_v43 = vsel %vm2720_vm9, %v3440_v60, 0.0  ;;  %v3441_v0 = vmul.f32 %v7448_v32, %v7284_v4 }
0x15aa   :  { %v7288_v50 = vpop.eup %7287  ;;  %3451 = vadd.xlane.f32.xlu0 %v3450_v43  ;;  %v3447_v38 = vsel %vm2720_vm9, %v3439_v41, 0.0  ;;  %v3442_v2 = vmul.f32 %v7448_v32, %v7286_v62 }
0x15ab   :  { %v7290_v51 = vpop.eup %7289  ;;  %3448 = vadd.xlane.f32.xlu1 %v3447_v38  ;;  %v3453_v57 = vsel %vm2720_vm9, %v3441_v0, 0.0  ;;  %v3443_v37 = vmul.f32 %v7448_v32, %v7288_v50 }
0x15ac   :  { %v7292_v31 = vpop.eup %7291  ;;  %v3456_v56 = vsel %vm2720_vm9, %v3442_v2, 0.0  ;;  %v3444_v59 = vmul.f32 %v7448_v32, %v7290_v51 }
0x15ad   :  { %v7294_v48 = vpop.eup %7293  ;;  %v3459_v8 = vsel %vm2720_vm9, %v3443_v37, 0.0  ;;  %v3445_v14 = vmul.f32 %v7448_v32, %v7292_v31 }
0x15ae   :  { %3454 = vadd.xlane.f32.xlu0 %v3453_v57  ;;  %v3462_v52 = vsel %vm2720_vm9, %v3444_v59, 0.0  ;;  %v3446_v5 = vmul.f32 %v7448_v32, %v7294_v48 }
0x15af   :  { %3457 = vadd.xlane.f32.xlu1 %v3456_v56  ;;  %v3465_v39 = vsel %vm2720_vm9, %v3445_v14, 0.0 }
0x15b0   :  { %v3468_v33 = vsel %vm2720_vm9, %v3446_v5, 0.0 }
0x15b2   :  { %3460 = vadd.xlane.f32.xlu0 %v3459_v8 }
0x15b3   :  { %3463 = vadd.xlane.f32.xlu1 %v3462_v52 }
0x15b6   :  { %3466 = vadd.xlane.f32.xlu0 %v3465_v39 }
0x15b7   :  { %3469 = vadd.xlane.f32.xlu1 %v3468_v33 }
0x1637   :  { %v3452_v20 = vpop.xlane.xlu0 %3451 }
0x1638   :  { %v3449_v55 = vpop.xlane.xlu1 %3448  ;;  %v3479_v22 = vadd.f32 %v5569_v10, %v3452_v20 }
0x1639   :  { %v3478_v42 = vadd.f32 %v5569_v10, %v3449_v55 }
0x163a   :  { %v3487_v46 = vsel %vm2760_vm10, %v3479_v22, -inf }
0x163b   :  { %v3455_v15 = vpop.xlane.xlu0 %3454  ;;  %v3486_v3 = vsel %vm2760_vm10, %v3478_v42, -inf }
0x163c   :  { %v3458_v9 = vpop.xlane.xlu1 %3457  ;;  %v3480_v61 = vadd.f32 %v5569_v10, %v3455_v15 }
0x163d   :  { %v3481_v7 = vadd.f32 %v5569_v10, %v3458_v9 }
0x163e   :  { %v3488_v53 = vsel %vm2760_vm10, %v3480_v61, -inf }
0x163f   :  { %v3461_v11 = vpop.xlane.xlu0 %3460  ;;  %v3489_v32 = vsel %vm2760_vm10, %v3481_v7, -inf }
0x1640   :  { %v3482_v17 = vadd.f32 %v5569_v10, %v3461_v11  ;;  %v3464_v18 = vpop.xlane.xlu1 %3463 }
0x1641   :  { %v3483_v26 = vadd.f32 %v5569_v10, %v3464_v18 }
0x1642   :  { %v3490_v16 = vsel %vm2760_vm10, %v3482_v17, -inf }
0x1643   :  { %v3492_v58 = vsel %vm2760_vm10, %v3483_v26, -inf  ;;  %v3467_v36 = vpop.xlane.xlu0 %3466  ;;  %v3491_v23 = vmax.f32 %v3486_v3, %v3490_v16 }
0x1644   :  { %v3484_v30 = vadd.f32 %v5569_v10, %v3467_v36  ;;  %v3470_v35 = vpop.xlane.xlu1 %3469  ;;  %v3493_v45 = vmax.f32 %v3487_v46, %v3492_v58 }
0x1645   :  { %v3485_v47 = vadd.f32 %v5569_v10, %v3470_v35 }
0x1646   :  { %v3494_v54 = vsel %vm2760_vm10, %v3484_v30, -inf  ;;  %v3498_v62 = vmax.f32 %v3491_v23, %v3493_v45 }
0x1647   :  { %v3495_v60 = vmax.f32 %v3488_v53, %v3494_v54  ;;  %v3496_v4 = vsel %vm2760_vm10, %v3485_v47, -inf }
0x1648   :  { %v3497_v41 = vmax.f32 %v3489_v32, %v3496_v4 }
0x164a   :  { %v3499_v43 = vmax.f32 %v3495_v60, %v3497_v41 }
0x164c   :  { %v3500_v0 = vmax.f32 %v3498_v62, %v3499_v43 }
0x164e   :  { %v3503_v50 = vsub.f32 %v3480_v61, %v3500_v0  ;;  %v3501_v38 = vsub.f32 %v3478_v42, %v3500_v0  ;;  %v3502_v2 = vsub.f32 %v3479_v22, %v3500_v0  ;;  %v3504_v51 = vsub.f32 %v3481_v7, %v3500_v0 }
0x164f   :  { %v3505_v31 = vsub.f32 %v3482_v17, %v3500_v0  ;;  %v3506_v59 = vsub.f32 %v3483_v26, %v3500_v0  ;;  %v3507_v8 = vsub.f32 %v3484_v30, %v3500_v0  ;;  %v3508_v52 = vsub.f32 %v3485_v47, %v3500_v0 }
0x1650   :  { %v3513_v57 = vmul.f32 1.442695, %v3503_v50  ;;  %v3509_v37 = vmul.f32 1.442695, %v3501_v38  ;;  %v3511_v56 = vmul.f32 1.442695, %v3502_v2 }
0x1651   :  { %v3515_v48 = vmul.f32 1.442695, %v3504_v51  ;;  %v3517_v14 = vmul.f32 1.442695, %v3505_v31  ;;  %v3519_v5 = vmul.f32 1.442695, %v3506_v59 }
0x1652   :  { %7295 = vpow2.f32 %v3513_v57  ;;  %v3521_v39 = vmul.f32 1.442695, %v3507_v8  ;;  %v3523_v33 = vmul.f32 1.442695, %v3508_v52  ;;  %v3641_v50 = vld [vmem:[#allocation13 + $0x8] sm:$0xff]  ;;  %v3643_v2 = vld [vmem:[#allocation13 + $0x18] sm:$0xff] }
0x1653   :  { %7297 = vpow2.f32 %v3509_v37  ;;  %v3645_v38 = vld [vmem:[#allocation13 + $0x28] sm:$0xff]  ;;  %v3647_v57 = vld [vmem:[#allocation13 + $0x38] sm:$0xff]  ;;  %v3640_v37 = vld [vmem:[#allocation13] sm:$0xff] }
0x1654   :  { %7299 = vpow2.f32 %v3511_v56  ;;  %v6609_v51 = vpack.c.bf16 %v3645_v38, %v3641_v50  ;;  %v3644_v31 = vld [vmem:[#allocation13 + $0x20] sm:$0xff]  ;;  %v6673_v56 = vpack.c.bf16 %v3647_v57, %v3643_v2  ;;  %v3646_v8 = vld [vmem:[#allocation13 + $0x30] sm:$0xff]  ;;  %v3675_v50 = vld [vmem:[#allocation13 + $0x118] sm:$0xff] }
0x1655   :  { %7301 = vpow2.f32 %v3515_v48  ;;  %v6611_v59 = vpack.c.bf16 %v3644_v31, %v3640_v37  ;;  %v3642_v48 = vld [vmem:[#allocation13 + $0x10] sm:$0xff]  ;;  %v3679_v38 = vld [vmem:[#allocation13 + $0x138] sm:$0xff]  ;;  %v3672_v37 = vld [vmem:[#allocation13 + $0x100] sm:$0xff] }
0x1656   :  { %7303 = vpow2.f32 %v3517_v14  ;;  %v3649_v14 = vld [vmem:[#allocation13 + $0x48] sm:$0xff]  ;;  %6610 = vmatprep.subr.bf16.mxu1 %v6609_v51  ;;  %v6675_v52 = vpack.c.bf16 %v3646_v8, %v3642_v48  ;;  %6674 = vmatprep.subr.bf16.mxu0 %v6673_v56  ;;  %v3676_v31 = vld [vmem:[#allocation13 + $0x120] sm:$0xff]  ;;  %v3674_v56 = vld [vmem:[#allocation13 + $0x110] sm:$0xff] }
0x1657   :  { %7305 = vpow2.f32 %v3519_v5  ;;  %v3653_v5 = vld [vmem:[#allocation13 + $0x68] sm:$0xff]  ;;  %6612 = vmatpush1.bf16.msra.mxu1 %v6611_v59  ;;  %v6689_v59 = vpack.c.bf16 %v3679_v38, %v3675_v50  ;;  %v3678_v48 = vld [vmem:[#allocation13 + $0x130] sm:$0xff]  ;;  %v3707_v50 = vld [vmem:[#allocation13 + $0x218] sm:$0xff] }
0x1658   :  { %7307 = vpow2.f32 %v3521_v39  ;;  %v3651_v39 = vld [vmem:[#allocation13 + $0x58] sm:$0xff]  ;;  %6676 = vmatpush1.bf16.msra.mxu0 %v6675_v52  ;;  %v3681_v8 = vld [vmem:[#allocation13 + $0x148] sm:$0xff] }
0x1659   :  { %7309 = vpow2.f32 %v3523_v33  ;;  %v3655_v33 = vld [vmem:[#allocation13 + $0x78] sm:$0xff] }
0x165a   :  { %v3683_v52 = vld [vmem:[#allocation13 + $0x158] sm:$0xff] }
0x165b   :  { %v3711_v38 = vld [vmem:[#allocation13 + $0x238] sm:$0xff] }
0x165c   :  { %v7296_v20 = vpop.eup %7295 }
0x165d   :  { %v7298_v55 = vpop.eup %7297  ;;  %v3528_v18 = vsel %vm2760_vm10, %v7296_v20, 0.0 }
0x165e   :  { %v7300_v15 = vpop.eup %7299  ;;  %v3525_v9 = vsel %vm2760_vm10, %v7298_v55, 0.0 }
0x165f   :  { %v3526_v10 = vsel %vm2760_vm10, %v7300_v15, 0.0  ;;  %v7302_v11 = vpop.eup %7301 }
0x1660   :  { %v3527_v17 = vadd.f32 %v3526_v10, %v3525_v9  ;;  %v7304_v22 = vpop.eup %7303  ;;  %v3530_v26 = vsel %vm2760_vm10, %v7302_v11, 0.0  ;;  %v3652_v9 = vld [vmem:[#allocation13 + $0x60] sm:$0xff]  ;;  %v3650_v10 = vld [vmem:[#allocation13 + $0x50] sm:$0xff] }
0x1661   :  { %v7306_v61 = vpop.eup %7305  ;;  %v3532_v16 = vsel %vm2760_vm10, %v7304_v22, 0.0 }
0x1662   :  { %v3529_v42 = vadd.f32 %v3528_v18, %v3527_v17  ;;  %v7308_v58 = vpop.eup %7307  ;;  %v3534_v30 = vsel %vm2760_vm10, %v7306_v61, 0.0  ;;  %v3654_v17 = vld [vmem:[#allocation13 + $0x70] sm:$0xff]  ;;  %v3657_v18 = vld [vmem:[#allocation13 + $0x88] sm:$0xff] }
0x1663   :  { %v7310_v35 = vpop.eup %7309  ;;  %v3536_v3 = vsel %vm2760_vm10, %v7308_v58, 0.0 }
0x1664   :  { %v3531_v7 = vadd.f32 %v3530_v26, %v3529_v42  ;;  %v3538_v53 = vsel %vm2760_vm10, %v7310_v35, 0.0  ;;  %v6679_v42 = vpack.c.bf16 %v3654_v17, %v3650_v10  ;;  %v3689_v17 = vld [vmem:[#allocation13 + $0x188] sm:$0xff] }
0x1666   :  { %v3533_v36 = vadd.f32 %v3532_v16, %v3531_v7  ;;  %v3663_v7 = vld [vmem:[#allocation13 + $0xb8] sm:$0xff]  ;;  %v3656_v16 = vld [vmem:[#allocation13 + $0x80] sm:$0xff] }
0x1668   :  { %v3535_v46 = vadd.f32 %v3534_v30, %v3533_v36  ;;  %v3660_v36 = vld [vmem:[#allocation13 + $0xa0] sm:$0xff]  ;;  %v3658_v30 = vld [vmem:[#allocation13 + $0x90] sm:$0xff] }
0x166a   :  { %v3537_v47 = vadd.f32 %v3536_v3, %v3535_v46  ;;  %v6619_v46 = vpack.c.bf16 %v3660_v36, %v3656_v16  ;;  %v3665_v3 = vld [vmem:[#allocation13 + $0xc8] sm:$0xff]  ;;  %v3688_v16 = vld [vmem:[#allocation13 + $0x180] sm:$0xff]  ;;  %v3690_v36 = vld [vmem:[#allocation13 + $0x190] sm:$0xff] }
0x166c   :  { %v3539_v23 = vadd.f32 %v3538_v53, %v3537_v47  ;;  %v3669_v47 = vld [vmem:[#allocation13 + $0xe8] sm:$0xff]  ;;  %v3667_v53 = vld [vmem:[#allocation13 + $0xd8] sm:$0xff] }
0x166e   :  { %7311 = vrcp.f32 %v3539_v23 }
0x1678   :  { %v7312_v45 = vpop.eup %7311 }
0x1679   :  { %v3542_v54 = vmul.f32 %v7312_v45, %v7300_v15  ;;  %v3541_v32 = vmul.f32 %v7312_v45, %v7298_v55  ;;  %v3543_v60 = vmul.f32 %v7312_v45, %v7296_v20  ;;  %v3544_v4 = vmul.f32 %v7312_v45, %v7302_v11  ;;  %v3648_v15 = vld [vmem:[#allocation13 + $0x40] sm:$0xff] }
0x167a   :  { %v3545_v41 = vmul.f32 %v7312_v45, %v7304_v22  ;;  %v3546_v62 = vmul.f32 %v7312_v45, %v7306_v61  ;;  %v3547_v43 = vmul.f32 %v7312_v45, %v7308_v58  ;;  %v3548_v0 = vmul.f32 %v7312_v45, %v7310_v35  ;;  %v3661_v22 = vld [vmem:[#allocation13 + $0xa8] sm:$0xff]  ;;  %v3659_v61 = vld [vmem:[#allocation13 + $0x98] sm:$0xff]  ;;  %v3662_v35 = vld [vmem:[#allocation13 + $0xb0] sm:$0xff] }
0x167b   :  { %3556 = vperm.xlu1 %7131, %v3542_v54   ;;  %3551 = vperm.xlu0 %7132, %v3541_v32   ;;  %v6613_v20 = vpack.c.bf16 %v3653_v5, %v3649_v14  ;;  %v6677_v55 = vpack.c.bf16 %v3655_v33, %v3651_v39  ;;  %v6615_v11 = vpack.c.bf16 %v3652_v9, %v3648_v15  ;;  %v3671_v54 = vld [vmem:[#allocation13 + $0xf8] sm:$0xff]  ;;  %v3664_v32 = vld [vmem:[#allocation13 + $0xc0] sm:$0xff]  ;;  %v3685_v14 = vld [vmem:[#allocation13 + $0x168] sm:$0xff] }
0x167c   :  { %v6617_v26 = vpack.c.bf16 %v3661_v22, %v3657_v18  ;;  %v6681_v58 = vpack.c.bf16 %v3663_v7, %v3659_v61  ;;  %v6683_v23 = vpack.c.bf16 %v3662_v35, %v3658_v30  ;;  %v6621_v45 = vpack.c.bf16 %v3669_v47, %v3665_v3  ;;  %v3687_v5 = vld [vmem:[#allocation13 + $0x178] sm:$0xff]  ;;  %v3684_v15 = vld [vmem:[#allocation13 + $0x160] sm:$0xff]  ;;  %v3682_v9 = vld [vmem:[#allocation13 + $0x150] sm:$0xff] }
0x167d   :  { %6614 = vmatprep.subr.bf16.mxu1 %v6613_v20  ;;  %6678 = vmatprep.subr.bf16.mxu0 %v6677_v55  ;;  %v6627_v39 = vpack.c.bf16 %v3676_v31, %v3672_v37  ;;  %v6691_v33 = vpack.c.bf16 %v3678_v48, %v3674_v56  ;;  %v6629_v20 = vpack.c.bf16 %v3685_v14, %v3681_v8  ;;  %v3680_v55 = vld [vmem:[#allocation13 + $0x140] sm:$0xff]  ;;  %v3693_v18 = vld [vmem:[#allocation13 + $0x1a8] sm:$0xff]  ;;  %v3691_v22 = vld [vmem:[#allocation13 + $0x198] sm:$0xff] }
0x167e   :  { %6616 = vmatpush1.bf16.msra.mxu1 %v6615_v11  ;;  %6680 = vmatpush1.bf16.msra.mxu0 %v6679_v42  ;;  %v6693_v10 = vpack.c.bf16 %v3687_v5, %v3683_v52  ;;  %v3686_v11 = vld [vmem:[#allocation13 + $0x170] sm:$0xff]  ;;  %v3695_v42 = vld [vmem:[#allocation13 + $0x1b8] sm:$0xff]  ;;  %v6633_v7 = vpack.c.bf16 %v3693_v18, %v3689_v17  ;;  %v3701_v3 = vld [vmem:[#allocation13 + $0x1e8] sm:$0xff] }
0x167f   :  { %3561 = vperm.xlu1 %7131, %v3543_v60   ;;  %3566 = vperm.xlu0 %7132, %v3544_v4   ;;  %v3668_v60 = vld [vmem:[#allocation13 + $0xe0] sm:$0xff]  ;;  %v6685_v4 = vpack.c.bf16 %v3671_v54, %v3667_v53  ;;  %v6695_v61 = vpack.c.bf16 %v3686_v11, %v3682_v9  ;;  %v6697_v30 = vpack.c.bf16 %v3695_v42, %v3691_v22  ;;  %v3694_v35 = vld [vmem:[#allocation13 + $0x1b0] sm:$0xff]  ;;  %v3699_v47 = vld [vmem:[#allocation13 + $0x1d8] sm:$0xff] }
0x1680   :  { %6618 = vmatprep.subr.bf16.mxu1 %v6617_v26  ;;  %6682 = vmatprep.subr.bf16.mxu0 %v6681_v58  ;;  %v6623_v2 = vpack.c.bf16 %v3668_v60, %v3664_v32  ;;  %v6631_v26 = vpack.c.bf16 %v3684_v15, %v3680_v55  ;;  %v3692_v58 = vld [vmem:[#allocation13 + $0x1a0] sm:$0xff]  ;;  %v3703_v53 = vld [vmem:[#allocation13 + $0x1f8] sm:$0xff]  ;;  %v3706_v56 = vld [vmem:[#allocation13 + $0x210] sm:$0xff] }
0x1681   :  { %v3696_v32 = vld [vmem:[#allocation13 + $0x1c0] sm:$0xff]  ;;  %v3710_v48 = vld [vmem:[#allocation13 + $0x230] sm:$0xff]  ;;  %v3713_v8 = vld [vmem:[#allocation13 + $0x248] sm:$0xff] }
0x1682   :  { %6620 = vmatpush1.bf16.msra.mxu1 %v6619_v46  ;;  %6684 = vmatpush1.bf16.msra.mxu0 %v6683_v23  ;;  %v3697_v46 = vld [vmem:[#allocation13 + $0x1c8] sm:$0xff]  ;;  %v6635_v23 = vpack.c.bf16 %v3692_v58, %v3688_v16  ;;  %v3700_v60 = vld [vmem:[#allocation13 + $0x1e0] sm:$0xff]  ;;  %v3715_v52 = vld [vmem:[#allocation13 + $0x258] sm:$0xff] }
0x1683   :  { %3571 = vperm.xlu1 %7131, %v3545_v41   ;;  %3576 = vperm.xlu0 %7132, %v3546_v62   ;;  %v3666_v41 = vld [vmem:[#allocation13 + $0xd0] sm:$0xff]  ;;  %v6637_v54 = vpack.c.bf16 %v3701_v3, %v3697_v46  ;;  %v3704_v37 = vld [vmem:[#allocation13 + $0x200] sm:$0xff]  ;;  %v3717_v14 = vld [vmem:[#allocation13 + $0x268] sm:$0xff] }
0x1684   :  { %v3670_v62 = vld [vmem:[#allocation13 + $0xf0] sm:$0xff]  ;;  %6622 = vmatprep.subr.bf16.mxu1 %v6621_v45  ;;  %6686 = vmatprep.subr.bf16.mxu0 %v6685_v4  ;;  %v6699_v45 = vpack.c.bf16 %v3694_v35, %v3690_v36  ;;  %v3708_v31 = vld [vmem:[#allocation13 + $0x220] sm:$0xff]  ;;  %v3719_v5 = vld [vmem:[#allocation13 + $0x278] sm:$0xff] }
0x1685   :  { %v6687_v51 = vpack.c.bf16 %v3670_v62, %v3666_v41  ;;  %v3698_v4 = vld [vmem:[#allocation13 + $0x1d0] sm:$0xff]  ;;  %v6701_v41 = vpack.c.bf16 %v3703_v53, %v3699_v47  ;;  %v3712_v55 = vld [vmem:[#allocation13 + $0x240] sm:$0xff]  ;;  %v3721_v17 = vld [vmem:[#allocation13 + $0x288] sm:$0xff] }
0x1686   :  { %6624 = vmatpush1.bf16.msra.mxu1 %v6623_v2  ;;  %v3702_v62 = vld [vmem:[#allocation13 + $0x1f0] sm:$0xff]  ;;  %v6639_v2 = vpack.c.bf16 %v3700_v60, %v3696_v32  ;;  %v3716_v15 = vld [vmem:[#allocation13 + $0x260] sm:$0xff]  ;;  %v3725_v18 = vld [vmem:[#allocation13 + $0x2a8] sm:$0xff] }
0x1687   :  { %3581 = vperm.xlu1 %7131, %v3547_v43   ;;  %3586 = vperm.xlu0 %7132, %v3548_v0   ;;  %v3673_v43 = vld [vmem:[#allocation13 + $0x108] sm:$0xff]  ;;  %v3714_v9 = vld [vmem:[#allocation13 + $0x250] sm:$0xff]  ;;  %v3723_v22 = vld [vmem:[#allocation13 + $0x298] sm:$0xff] }
0x1688   :  { %v3677_v0 = vld [vmem:[#allocation13 + $0x128] sm:$0xff]  ;;  %6688 = vmatpush1.bf16.msra.mxu0 %v6687_v51  ;;  %v6703_v51 = vpack.c.bf16 %v3702_v62, %v3698_v4  ;;  %v3718_v11 = vld [vmem:[#allocation13 + $0x270] sm:$0xff]  ;;  %v3727_v42 = vld [vmem:[#allocation13 + $0x2b8] sm:$0xff] }
0x1689   :  { %v6625_v57 = vpack.c.bf16 %v3677_v0, %v3673_v43  ;;  %6690 = vmatprep.subr.bf16.mxu0 %v6689_v59  ;;  %v3705_v43 = vld [vmem:[#allocation13 + $0x208] sm:$0xff]  ;;  %v6705_v59 = vpack.c.bf16 %v3711_v38, %v3707_v50  ;;  %v3720_v16 = vld [vmem:[#allocation13 + $0x280] sm:$0xff]  ;;  %v3722_v36 = vld [vmem:[#allocation13 + $0x290] sm:$0xff] }
0x168a   :  { %v3709_v0 = vld [vmem:[#allocation13 + $0x228] sm:$0xff]  ;;  %v3724_v58 = vld [vmem:[#allocation13 + $0x2a0] sm:$0xff]  ;;  %v3726_v35 = vld [vmem:[#allocation13 + $0x2b0] sm:$0xff] }
0x168b   :  { %6626 = vmatprep.subr.bf16.mxu1 %v6625_v57  ;;  %v6641_v57 = vpack.c.bf16 %v3709_v0, %v3705_v43  ;;  %v3729_v46 = vld [vmem:[#allocation13 + $0x2c8] sm:$0xff]  ;;  %v3731_v47 = vld [vmem:[#allocation13 + $0x2d8] sm:$0xff]  ;;  %v3728_v32 = vld [vmem:[#allocation13 + $0x2c0] sm:$0xff] }
0x168c   :  { %6628 = vmatpush1.bf16.msra.mxu1 %v6627_v39  ;;  %6692 = vmatpush1.bf16.msra.mxu0 %v6691_v33  ;;  %v6643_v39 = vpack.c.bf16 %v3708_v31, %v3704_v37  ;;  %v6707_v33 = vpack.c.bf16 %v3710_v48, %v3706_v56  ;;  %v3733_v3 = vld [vmem:[#allocation13 + $0x2e8] sm:$0xff]  ;;  %v3735_v53 = vld [vmem:[#allocation13 + $0x2f8] sm:$0xff]  ;;  %v3732_v60 = vld [vmem:[#allocation13 + $0x2e0] sm:$0xff] }
0x168d   :  { %6630 = vmatprep.subr.bf16.mxu1 %v6629_v20  ;;  %6694 = vmatprep.subr.bf16.mxu0 %v6693_v10  ;;  %v6645_v20 = vpack.c.bf16 %v3717_v14, %v3713_v8  ;;  %v6709_v10 = vpack.c.bf16 %v3719_v5, %v3715_v52  ;;  %v3730_v4 = vld [vmem:[#allocation13 + $0x2d0] sm:$0xff]  ;;  %v3737_v43 = vld [vmem:[#allocation13 + $0x308] sm:$0xff]  ;;  %v3739_v50 = vld [vmem:[#allocation13 + $0x318] sm:$0xff] }
0x168e   :  { %v3734_v62 = vld [vmem:[#allocation13 + $0x2f0] sm:$0xff]  ;;  %v3741_v0 = vld [vmem:[#allocation13 + $0x328] sm:$0xff]  ;;  %v3743_v38 = vld [vmem:[#allocation13 + $0x338] sm:$0xff] }
0x168f   :  { %v3736_v37 = vld [vmem:[#allocation13 + $0x300] sm:$0xff]  ;;  %v3738_v56 = vld [vmem:[#allocation13 + $0x310] sm:$0xff]  ;;  %v3745_v8 = vld [vmem:[#allocation13 + $0x348] sm:$0xff] }
0x1690   :  { %6632 = vmatpush1.bf16.msra.mxu1 %v6631_v26  ;;  %6696 = vmatpush1.bf16.msra.mxu0 %v6695_v61  ;;  %v6647_v26 = vpack.c.bf16 %v3716_v15, %v3712_v55  ;;  %v6711_v61 = vpack.c.bf16 %v3718_v11, %v3714_v9  ;;  %v3740_v31 = vld [vmem:[#allocation13 + $0x320] sm:$0xff]  ;;  %v3742_v48 = vld [vmem:[#allocation13 + $0x330] sm:$0xff]  ;;  %v3749_v14 = vld [vmem:[#allocation13 + $0x368] sm:$0xff] }
0x1691   :  { %6634 = vmatprep.subr.bf16.mxu1 %v6633_v7  ;;  %6698 = vmatprep.subr.bf16.mxu0 %v6697_v30  ;;  %v6649_v7 = vpack.c.bf16 %v3725_v18, %v3721_v17  ;;  %v6713_v30 = vpack.c.bf16 %v3727_v42, %v3723_v22  ;;  %v3747_v52 = vld [vmem:[#allocation13 + $0x358] sm:$0xff]  ;;  %v3744_v55 = vld [vmem:[#allocation13 + $0x340] sm:$0xff]  ;;  %v3746_v9 = vld [vmem:[#allocation13 + $0x350] sm:$0xff] }
0x1692   :  { %v3751_v5 = vld [vmem:[#allocation13 + $0x378] sm:$0xff]  ;;  %v3748_v15 = vld [vmem:[#allocation13 + $0x360] sm:$0xff]  ;;  %v3750_v11 = vld [vmem:[#allocation13 + $0x370] sm:$0xff] }
0x1693   :  { %v3753_v17 = vld [vmem:[#allocation13 + $0x388] sm:$0xff]  ;;  %v3755_v22 = vld [vmem:[#allocation13 + $0x398] sm:$0xff] }
0x1694   :  { %6636 = vmatpush1.bf16.msra.mxu1 %v6635_v23  ;;  %6700 = vmatpush1.bf16.msra.mxu0 %v6699_v45  ;;  %v6651_v23 = vpack.c.bf16 %v3724_v58, %v3720_v16  ;;  %v6715_v45 = vpack.c.bf16 %v3726_v35, %v3722_v36  ;;  %v3757_v18 = vld [vmem:[#allocation13 + $0x3a8] sm:$0xff]  ;;  %v3759_v42 = vld [vmem:[#allocation13 + $0x3b8] sm:$0xff]  ;;  %v3752_v16 = vld [vmem:[#allocation13 + $0x380] sm:$0xff] }
0x1695   :  { %6638 = vmatprep.subr.bf16.mxu1 %v6637_v54  ;;  %6702 = vmatprep.subr.bf16.mxu0 %v6701_v41  ;;  %v6653_v54 = vpack.c.bf16 %v3733_v3, %v3729_v46  ;;  %v6717_v41 = vpack.c.bf16 %v3735_v53, %v3731_v47  ;;  %v3756_v58 = vld [vmem:[#allocation13 + $0x3a0] sm:$0xff]  ;;  %v3754_v36 = vld [vmem:[#allocation13 + $0x390] sm:$0xff]  ;;  %v3761_v46 = vld [vmem:[#allocation13 + $0x3c8] sm:$0xff] }
0x1696   :  { %v3758_v35 = vld [vmem:[#allocation13 + $0x3b0] sm:$0xff]  ;;  %v3765_v3 = vld [vmem:[#allocation13 + $0x3e8] sm:$0xff]  ;;  %v3763_v47 = vld [vmem:[#allocation13 + $0x3d8] sm:$0xff] }
0x1697   :  { %v3767_v53 = vld [vmem:[#allocation13 + $0x3f8] sm:$0xff] }
0x1698   :  { %6640 = vmatpush1.bf16.msra.mxu1 %v6639_v2  ;;  %6704 = vmatpush1.bf16.msra.mxu0 %v6703_v51  ;;  %v6655_v2 = vpack.c.bf16 %v3732_v60, %v3728_v32  ;;  %v6719_v51 = vpack.c.bf16 %v3734_v62, %v3730_v4  ;;  %v3760_v32 = vld [vmem:[#allocation13 + $0x3c0] sm:$0xff]  ;;  %v6733_v4 = vpack.c.bf16 %v3767_v53, %v3763_v47  ;;  %v3766_v62 = vld [vmem:[#allocation13 + $0x3f0] sm:$0xff] }
0x1699   :  { %6642 = vmatprep.subr.bf16.mxu1 %v6641_v57  ;;  %6706 = vmatprep.subr.bf16.mxu0 %v6705_v59  ;;  %v6657_v57 = vpack.c.bf16 %v3741_v0, %v3737_v43  ;;  %v6721_v59 = vpack.c.bf16 %v3743_v38, %v3739_v50  ;;  %v3764_v60 = vld [vmem:[#allocation13 + $0x3e0] sm:$0xff] }
0x169a   :  { %v6671_v43 = vpack.c.bf16 %v3764_v60, %v3760_v32  ;;  %v7458_v47 = vld [vmem:[#allocation3 + $0x8] sm:$0x3] }
0x169c   :  { %6644 = vmatpush1.bf16.msra.mxu1 %v6643_v39  ;;  %6708 = vmatpush1.bf16.msra.mxu0 %v6707_v33  ;;  %v6659_v39 = vpack.c.bf16 %v3740_v31, %v3736_v37  ;;  %v6723_v33 = vpack.c.bf16 %v3742_v48, %v3738_v56  ;;  %v7451_v31 = vld [vmem:[#allocation2] sm:$0x3] }
0x169d   :  { %6646 = vmatprep.subr.bf16.mxu1 %v6645_v20  ;;  %6710 = vmatprep.subr.bf16.mxu0 %v6709_v10  ;;  %v6661_v20 = vpack.c.bf16 %v3749_v14, %v3745_v8  ;;  %v6725_v10 = vpack.c.bf16 %v3751_v5, %v3747_v52 }
0x16a0   :  { %6648 = vmatpush1.bf16.msra.mxu1 %v6647_v26  ;;  %6712 = vmatpush1.bf16.msra.mxu0 %v6711_v61  ;;  %v6663_v26 = vpack.c.bf16 %v3748_v15, %v3744_v55  ;;  %v6727_v61 = vpack.c.bf16 %v3750_v11, %v3746_v9  ;;  %v7453_v55 = vld [vmem:[#allocation2 + $0x4] sm:$0x3]  ;;  %v7454_v9 = vld [vmem:[#allocation3 + $0x4] sm:$0x3]  ;;  %v7455_v11 = vld [vmem:[#allocation2 + $0x6] sm:$0x3] }
0x16a1   :  { %6650 = vmatprep.subr.bf16.mxu1 %v6649_v7  ;;  %6714 = vmatprep.subr.bf16.mxu0 %v6713_v30  ;;  %v6665_v7 = vpack.c.bf16 %v3757_v18, %v3753_v17  ;;  %v6729_v30 = vpack.c.bf16 %v3759_v42, %v3755_v22  ;;  %v7456_v18 = vld [vmem:[#allocation3 + $0x6] sm:$0x3] }
0x16a4   :  { %6652 = vmatpush1.bf16.msra.mxu1 %v6651_v23  ;;  %6716 = vmatpush1.bf16.msra.mxu0 %v6715_v45  ;;  %v6667_v23 = vpack.c.bf16 %v3756_v58, %v3752_v16  ;;  %v6731_v45 = vpack.c.bf16 %v3758_v35, %v3754_v36 }
0x16a5   :  { %6654 = vmatprep.subr.bf16.mxu1 %v6653_v54  ;;  %6718 = vmatprep.subr.bf16.mxu0 %v6717_v41  ;;  %v6669_v54 = vpack.c.bf16 %v3765_v3, %v3761_v46  ;;  %v3762_v41 = vld [vmem:[#allocation13 + $0x3d0] sm:$0xff] }
0x16a6   :  { %v6735_v0 = vpack.c.bf16 %v3766_v62, %v3762_v41  ;;  %v7457_v46 = vld [vmem:[#allocation2 + $0x8] sm:$0x3] }
0x16a8   :  { %6656 = vmatpush1.bf16.msra.mxu1 %v6655_v2  ;;  %6720 = vmatpush1.bf16.msra.mxu0 %v6719_v51  ;;  %v7449_v2 = vld [vmem:[#allocation2 + $0x2] sm:$0x3] }
0x16a9   :  { %6658 = vmatprep.subr.bf16.mxu1 %v6657_v57  ;;  %6722 = vmatprep.subr.bf16.mxu0 %v6721_v59  ;;  %v7450_v57 = vld [vmem:[#allocation3 + $0x2] sm:$0x3]  ;;  %v7452_v59 = vld [vmem:[#allocation3] sm:$0x3] }
0x16ac   :  { %6660 = vmatpush1.bf16.msra.mxu1 %v6659_v39  ;;  %6724 = vmatpush1.bf16.msra.mxu0 %v6723_v33 }
0x16ad   :  { %6662 = vmatprep.subr.bf16.mxu1 %v6661_v20  ;;  %6726 = vmatprep.subr.bf16.mxu0 %v6725_v10 }
0x16b0   :  { %6664 = vmatpush1.bf16.msra.mxu1 %v6663_v26  ;;  %6728 = vmatpush1.bf16.msra.mxu0 %v6727_v61 }
0x16b1   :  { %6666 = vmatprep.subr.bf16.mxu1 %v6665_v7  ;;  %6730 = vmatprep.subr.bf16.mxu0 %v6729_v30 }
0x16b4   :  { %6668 = vmatpush1.bf16.msra.mxu1 %v6667_v23  ;;  %6732 = vmatpush1.bf16.msra.mxu0 %v6731_v45  ;;  %v7459_v23 = vld [vmem:[#allocation2 + $0xa] sm:$0x3] }
0x16b5   :  { %6670 = vmatprep.subr.bf16.mxu1 %v6669_v54  ;;  %6734 = vmatprep.subr.bf16.mxu0 %v6733_v4  ;;  %v7460_v54 = vld [vmem:[#allocation3 + $0xa] sm:$0x3] }
0x16b8   :  { %6672 = vmatpush1.bf16.msra.mxu1 %v6671_v43  ;;  %6736 = vmatpush1.bf16.msra.mxu0 %v6735_v0 }
0x16b9   :  { %6737 = vmatprep.subr.bf16.mxu1 %v7674_v21  ;;  %6761 = vmatprep.subr.bf16.mxu0 %v7674_v21 }
0x16fa   :  { %v3557_v50 = vpop.permute.xlu1 %3556  ;;  %v3552_v38 = vpop.permute.xlu0 %3551 }
0x16fb   :  { %v3590_v51 = vmul.f32 %v7449_v2, %v3557_v50  ;;  %v3613_v37 = vmul.f32 %v7450_v57, %v3557_v50  ;;  %v3589_v56 = vmul.f32 %v7451_v31, %v3552_v38  ;;  %v3612_v48 = vmul.f32 %v7452_v59, %v3552_v38  ;;  %v7461_v57 = vld [vmem:[#allocation3 + $0xc] sm:$0x3]  ;;  %v7462_v31 = vld [vmem:[#allocation3 + $0xe] sm:$0x3] }
0x16fd   :  { %v3598_v8 = vsel %vm688_vm4, %v3590_v51, 0.0  ;;  %v3621_v14 = vsel %vm688_vm4, %v3613_v37, 0.0  ;;  %v3597_v52 = vsel %vm688_vm4, %v3589_v56, 0.0  ;;  %v3620_v5 = vsel %vm688_vm4, %v3612_v48, 0.0 }
0x16fe   :  { %v3599_v39 = vadd.f32 %v3598_v8, %v3597_v52  ;;  %v3562_v33 = vpop.permute.xlu1 %3561  ;;  %v3567_v20 = vpop.permute.xlu0 %3566  ;;  %v3622_v42 = vadd.f32 %v3621_v14, %v3620_v5 }
0x16ff   :  { %v3591_v15 = vmul.f32 %v7453_v55, %v3562_v33  ;;  %v3614_v10 = vmul.f32 %v7454_v9, %v3562_v33  ;;  %v3592_v17 = vmul.f32 %v7455_v11, %v3567_v20  ;;  %v3615_v22 = vmul.f32 %v7456_v18, %v3567_v20  ;;  %v7464_v55 = vld [vmem:[#allocation2 + $0xe] sm:$0x3] }
0x1701   :  { %v3600_v26 = vsel %vm688_vm4, %v3591_v15, 0.0  ;;  %v3623_v61 = vsel %vm688_vm4, %v3614_v10, 0.0  ;;  %v3602_v58 = vsel %vm688_vm4, %v3592_v17, 0.0  ;;  %v3625_v36 = vsel %vm688_vm4, %v3615_v22, 0.0  ;;  %v4062_v22 = vld [vmem:[%s9364_s7] sm:$0xff] }
0x1702   :  { %v3601_v7 = vadd.f32 %v3600_v26, %v3599_v39  ;;  %v3624_v16 = vadd.f32 %v3623_v61, %v3622_v42  ;;  %v3572_v30 = vpop.permute.xlu1 %3571  ;;  %v3577_v35 = vpop.permute.xlu0 %3576  ;;  %v7463_v39 = vld [vmem:[#allocation2 + $0xc] sm:$0x3]  ;;  %v4064_v61 = vld [vmem:[%s9364_s7 + $0x10] sm:$0xff] }
0x1703   :  { %v3593_v3 = vmul.f32 %v7457_v46, %v3572_v30  ;;  %v3616_v53 = vmul.f32 %v7458_v47, %v3572_v30  ;;  %v3594_v45 = vmul.f32 %v7459_v23, %v3577_v35  ;;  %v3617_v32 = vmul.f32 %v7460_v54, %v3577_v35  ;;  %v4063_v42 = vld [vmem:[%s9364_s7 + $0x8] sm:$0xff]  ;;  %v4068_v35 = vld [vmem:[%s9364_s7 + $0x30] sm:$0xff]  ;;  %v4069_v46 = vld [vmem:[%s9364_s7 + $0x38] sm:$0xff] }
0x1704   :  { %v3603_v60 = vadd.f32 %v3602_v58, %v3601_v7  ;;  %v3626_v4 = vadd.f32 %v3625_v36, %v3624_v16  ;;  %v6762_v26 = vpack.c.bf16 %v4063_v42, %v4062_v22  ;;  %v4065_v7 = vld [vmem:[%s9364_s7 + $0x18] sm:$0xff]  ;;  %v4066_v58 = vld [vmem:[%s9364_s7 + $0x20] sm:$0xff]  ;;  %v4067_v36 = vld [vmem:[%s9364_s7 + $0x28] sm:$0xff] }
0x1705   :  { %v3604_v41 = vsel %vm688_vm4, %v3593_v3, 0.0  ;;  %v3627_v62 = vsel %vm688_vm4, %v3616_v53, 0.0  ;;  %v3606_v2 = vsel %vm688_vm4, %v3594_v45, 0.0  ;;  %v3629_v51 = vsel %vm688_vm4, %v3617_v32, 0.0  ;;  %v3956_v47 = vld [vmem:[%s9370_s13] sm:$0xff]  ;;  %v3957_v53 = vld [vmem:[%s9370_s13 + $0x8] sm:$0xff] }
0x1706   :  { %v3605_v43 = vadd.f32 %v3604_v41, %v3603_v60  ;;  %v3628_v0 = vadd.f32 %v3627_v62, %v3626_v4  ;;  %v3582_v50 = vpop.permute.xlu1 %3581  ;;  %v3587_v38 = vpop.permute.xlu0 %3586  ;;  %v6765_v16 = vpack.c.bf16 %v4065_v7, %v4064_v61  ;;  %v6768_v30 = vpack.c.bf16 %v4067_v36, %v4066_v58  ;;  %v4070_v45 = vld [vmem:[%s9364_s7 + $0x40] sm:$0xff]  ;;  %v4071_v54 = vld [vmem:[%s9364_s7 + $0x48] sm:$0xff]  ;;  %v3958_v60 = vld [vmem:[%s9370_s13 + $0x10] sm:$0xff] }
0x1707   :  { %v3618_v37 = vmul.f32 %v7461_v57, %v3582_v50  ;;  %v3619_v56 = vmul.f32 %v7462_v31, %v3587_v38  ;;  %v3595_v33 = vmul.f32 %v7463_v39, %v3582_v50  ;;  %v3596_v15 = vmul.f32 %v7464_v55, %v3587_v38  ;;  %v3959_v4 = vld [vmem:[%s9370_s13 + $0x18] sm:$0xff]  ;;  %v4072_v62 = vld [vmem:[%s9364_s7 + $0x50] sm:$0xff]  ;;  %v3961_v38 = vld [vmem:[%s9370_s13 + $0x28] sm:$0xff] }
0x1708   :  { %v3607_v59 = vadd.f32 %v3606_v2, %v3605_v43  ;;  %v3630_v48 = vadd.f32 %v3629_v51, %v3628_v0  ;;  %v6771_v3 = vpack.c.bf16 %v4069_v46, %v4068_v35  ;;  %v6738_v23 = vpack.c.bf16 %v3957_v53, %v3956_v47  ;;  %v4073_v43 = vld [vmem:[%s9364_s7 + $0x58] sm:$0xff]  ;;  %v3960_v0 = vld [vmem:[%s9370_s13 + $0x20] sm:$0xff]  ;;  %v4075_v51 = vld [vmem:[%s9364_s7 + $0x68] sm:$0xff] }
0x1709   :  { %v3631_v8 = vsel %vm688_vm4, %v3618_v37, 0.0  ;;  %v3633_v52 = vsel %vm688_vm4, %v3619_v56, 0.0  ;;  %v3608_v20 = vsel %vm688_vm4, %v3595_v33, 0.0  ;;  %v3610_v10 = vsel %vm688_vm4, %v3596_v15, 0.0  ;;  %v4074_v2 = vld [vmem:[%s9364_s7 + $0x60] sm:$0xff]  ;;  %v3962_v37 = vld [vmem:[%s9370_s13 + $0x30] sm:$0xff] }
0x170a   :  { %v3632_v14 = vadd.f32 %v3631_v8, %v3630_v48  ;;  %v3609_v9 = vadd.f32 %v3608_v20, %v3607_v59  ;;  %v6774_v32 = vpack.c.bf16 %v4071_v54, %v4070_v45  ;;  %v6741_v41 = vpack.c.bf16 %v3959_v4, %v3958_v60  ;;  %v3963_v31 = vld [vmem:[%s9370_s13 + $0x38] sm:$0xff]  ;;  %v4076_v48 = vld [vmem:[%s9364_s7 + $0x70] sm:$0xff]  ;;  %v3968_v55 = vld [vmem:[%s9370_s13 + $0x60] sm:$0xff] }
0x170b   :  { %v6777_v50 = vpack.c.bf16 %v4073_v43, %v4072_v62  ;;  %v6744_v57 = vpack.c.bf16 %v3961_v38, %v3960_v0  ;;  %v6780_v56 = vpack.c.bf16 %v4075_v51, %v4074_v2  ;;  %v6747_v59 = vpack.c.bf16 %v3963_v31, %v3962_v37  ;;  %v4077_v8 = vld [vmem:[%s9364_s7 + $0x78] sm:$0xff]  ;;  %v3966_v33 = vld [vmem:[%s9370_s13 + $0x50] sm:$0xff] }
0x170c   :  { %v3634_v5 = vadd.f32 %v3633_v52, %v3632_v14  ;;  %v3611_v11 = vadd.f32 %v3610_v10, %v3609_v9  ;;  %v3964_v14 = vld [vmem:[%s9370_s13 + $0x40] sm:$0xff]  ;;  %v3965_v52 = vld [vmem:[%s9370_s13 + $0x48] sm:$0xff]  ;;  %v3967_v20 = vld [vmem:[%s9370_s13 + $0x58] sm:$0xff] }
0x170d   :  { %v6750_v39 = vpack.c.bf16 %v3965_v52, %v3964_v14  ;;  %v6753_v15 = vpack.c.bf16 %v3967_v20, %v3966_v33  ;;  %v3969_v9 = vld [vmem:[%s9370_s13 + $0x68] sm:$0xff]  ;;  %v3768_v22 = vld [vmem:[#allocation14] sm:$0xf] }
0x170e   :  { %3636 = vrot.lane.b32.xlu1 %v3634_v5, %s7673_s28  ;;  %v6783_v5 = vpack.c.bf16 %v4077_v8, %v4076_v48  ;;  %v6756_v10 = vpack.c.bf16 %v3969_v9, %v3968_v55  ;;  %v3773_v42 = vrot.slane %v3768_v22, %v8141_v63  ;;  %v3781_v53 = vrot.slane %v3768_v22, %v8147_v12 }
0x1780   :  { %v3637_v17 = vpop.permute.xlu1 %3636 }
0x1781   :  { %v3639_v18 = vsel %vm293_vm2, %v3611_v11, %v3637_v17  ;;  %v3970_v11 = vld [vmem:[%s9370_s13 + $0x70] sm:$0xff]  ;;  %v3971_v17 = vld [vmem:[%s9370_s13 + $0x78] sm:$0xff] }
0x1782   :  { %3855 = vmatmul.mubr.f32.vlgmr.msra.gmra.mrb[22].mxu1 %v3639_v18  ;;  %3926 = vmatmul.mubr.f32.vlgmr.msra.gmra.mrb[32].mxu0 %v3639_v18  ;;  %v6759_v18 = vpack.c.bf16 %v3971_v17, %v3970_v11 }
0x1783   :  { %5973 = vmatprep.mubr.msk.f32.mxu0 %vm7675_vm6, %v7672_v49  ;;  %5938 = vmatprep.mubr.msk.f32.mxu1 %vm7675_vm6, %v7672_v49 }
0x1784   :  { %6763 = vmatpush3.bf16.msra.mxu0 %v6762_v26  ;;  %6739 = vmatpush3.bf16.msra.mxu1 %v6738_v23  ;;  %v3777_v26 = vrot.slane %v3768_v22, %v8143_v1 }
0x1785   :  { %6764 = vmatprep.subr.bf16.mxu0 %v7674_v21  ;;  %6740 = vmatprep.subr.bf16.mxu1 %v7674_v21 }
0x1788   :  { %6766 = vmatpush3.bf16.msra.mxu0 %v6765_v16  ;;  %6742 = vmatpush3.bf16.msra.mxu1 %v6741_v41 }
0x1789   :  { %6767 = vmatprep.subr.bf16.mxu0 %v7674_v21  ;;  %6743 = vmatprep.subr.bf16.mxu1 %v7674_v21 }
0x178c   :  { %6769 = vmatpush3.bf16.msra.mxu0 %v6768_v30  ;;  %6745 = vmatpush3.bf16.msra.mxu1 %v6744_v57 }
0x178d   :  { %6770 = vmatprep.subr.bf16.mxu0 %v7674_v21  ;;  %6746 = vmatprep.subr.bf16.mxu1 %v7674_v21 }
0x1790   :  { %6772 = vmatpush3.bf16.msra.mxu0 %v6771_v3  ;;  %6748 = vmatpush3.bf16.msra.mxu1 %v6747_v59  ;;  %v3785_v3 = vrot.slane %v3768_v22, %v8149_v13 }
0x1791   :  { %6773 = vmatprep.subr.bf16.mxu0 %v7674_v21  ;;  %6749 = vmatprep.subr.bf16.mxu1 %v7674_v21 }
0x1794   :  { %6775 = vmatpush3.bf16.msra.mxu0 %v6774_v32  ;;  %6751 = vmatpush3.bf16.msra.mxu1 %v6750_v39 }
0x1795   :  { %6776 = vmatprep.subr.bf16.mxu0 %v7674_v21  ;;  %6752 = vmatprep.subr.bf16.mxu1 %v7674_v21 }
0x1798   :  { %6778 = vmatpush3.bf16.msra.mxu0 %v6777_v50  ;;  %6754 = vmatpush3.bf16.msra.mxu1 %v6753_v15 }
0x1799   :  { %6779 = vmatprep.subr.bf16.mxu0 %v7674_v21  ;;  %6755 = vmatprep.subr.bf16.mxu1 %v7674_v21 }
0x179c   :  { %6781 = vmatpush3.bf16.msra.mxu0 %v6780_v56  ;;  %6757 = vmatpush3.bf16.msra.mxu1 %v6756_v10  ;;  %v7465_v10 = vld [vmem:[#allocation11] ss:$0 sm:$0xff] }
0x179d   :  { %6782 = vmatprep.subr.bf16.mxu0 %v7674_v21  ;;  %6758 = vmatprep.subr.bf16.mxu1 %v7674_v21 }
0x17a0   :  { %6784 = vmatpush3.bf16.msra.mxu0 %v6783_v5  ;;  %6760 = vmatpush3.bf16.msra.mxu1 %v6759_v18 }
0x1855   :  { %v3856_v61 = vpop.f32.mrb[22].mxu1  ;;  %v3927_v7 = vpop.f32.mrb[32].mxu0 }
0x1856   :  { %v3857_v16 = vadd.f32 %v3856_v61, %v3773_v42  ;;  %v3858_v58 = vpop.f32.mrb[23].mxu1  ;;  %v3929_v36 = vpop.f32.mrb[33].mxu0  ;;  %v3928_v45 = vadd.f32 %v3927_v7, %v3781_v53 }
0x1857   :  { %v3859_v30 = vadd.f32 %v3858_v58, %v3777_v26  ;;  %v3930_v47 = vadd.f32 %v3929_v36, %v3785_v3 }
0x1858   :  { %v5570_v35 = vmul.f32 -1.442695, %v3857_v16 }
0x1859   :  { %v5571_v46 = vmul.f32 -1.442695, %v3859_v30  ;;  %v5572_v23 = vmul.f32 -1.442695, %v3930_v47 }
0x185a   :  { %7313 = vpow2.f32 %v5570_v35 }
0x185b   :  { %7315 = vpow2.f32 %v5571_v46 }
0x185c   :  { %7317 = vpow2.f32 %v5572_v23 }
0x185d   :  { %7319 = vtanh.f32 %v3928_v45 }
0x1864   :  { %v7314_v54 = vpop.eup %7313 }
0x1865   :  { %v7316_v32 = vpop.eup %7315  ;;  %v3935_v60 = vadd.f32 1.0, %v7314_v54 }
0x1866   :  { %v3941_v4 = vadd.f32 1.0, %v7316_v32  ;;  %v7318_v41 = vpop.eup %7317 }
0x1867   :  { %7321 = vrcp.f32 %v3935_v60  ;;  %v7320_v62 = vpop.eup %7319  ;;  %v3948_v50 = vadd.f32 1.0, %v7318_v41 }
0x1868   :  { %7323 = vrcp.f32 %v3941_v4 }
0x1869   :  { %7325 = vrcp.f32 %v3948_v50  ;;  %v5575_v50 = vld [vmem:[#allocation5] ss:$0 sm:$0xff] }
0x1871   :  { %v7322_v43 = vpop.eup %7321 }
0x1872   :  { %v7324_v0 = vpop.eup %7323  ;;  %v3952_v38 = vmul.f32 %v7322_v43, %v7320_v62 }
0x1873   :  { %v3951_v2 = vmul.f32 %v7324_v0, %v8842_v28  ;;  %v7326_v57 = vpop.eup %7325 }
0x1875   :  { %v9019_v51 = vadd.f32 %v3952_v38, %v3951_v2 }
0x1877   :  { %7327 = vtanh.f32 %v9019_v51  ;;  %5974 = vmatmul.mubr.f32.vlgmr.msra.gmra.mrb[34].mxu0 %v9019_v51 }
0x1881   :  { %v7328_v37 = vpop.eup %7327 }
0x1882   :  { %v3955_v31 = vmul.f32 %v7328_v37, %v7326_v57 }
0x1884   :  { %5939 = vmatmul.mubr.f32.vlgmr.msra.gmra.mrb[24].mxu1 %v3955_v31  ;;  %4650 = vmatprep.mubr.f32.mxu0 %v3955_v31 }
0x1885   :  { %4579 = vmatprep.mubr.f32.mxu1 %v3955_v31 }
0x194a   :  { %v4144_v56 = vpop.f32.mrb[34].mxu0 }
0x194b   :  { %v5975_v59 = vpop.f32.mrb[35].mxu0  ;;  %v4149_v48 = vadd.f32 %v4144_v56, %v8650_v40  ;;  %v4148_v8 = vadd.f32 %v4144_v56, %v8639_v25  ;;  %v4152_v28 = vadd.f32 %v4144_v56, %v8637_v19  ;;  %v4150_v14 = vadd.f32 %v4144_v56, %v8653_v6 }
0x194c   :  { %v4154_v52 = vadd.f32 %v4144_v56, %v8646_v29  ;;  %v4151_v5 = vadd.f32 %v4144_v56, %v8660_v34  ;;  %v4153_v39 = vadd.f32 %v4144_v56, %v8643_v27  ;;  %v4155_v33 = vadd.f32 %v4144_v56, %v8664_v24 }
0x194d   :  { %7329 = vtanh.f32 %v4149_v48 }
0x194e   :  { %7331 = vtanh.f32 %v4148_v8 }
0x194f   :  { %7333 = vtanh.f32 %v4152_v28 }
0x1950   :  { %7335 = vtanh.f32 %v4150_v14 }
0x1951   :  { %7337 = vtanh.f32 %v4154_v52 }
0x1952   :  { %7339 = vtanh.f32 %v4151_v5 }
0x1953   :  { %7341 = vtanh.f32 %v4153_v39 }
0x1954   :  { %7343 = vtanh.f32 %v4155_v33 }
0x1957   :  { %v7330_v20 = vpop.eup %7329  ;;  %v9031_v55 = vpop.f32.mrb[24].mxu1 }
0x1958   :  { %v7332_v15 = vpop.eup %7331  ;;  %v5940_v9 = vpop.f32.mrb[25].mxu1  ;;  %v4165_v11 = vmul.f32 %v7465_v10, %v7330_v20 }
0x1959   :  { %v7334_v17 = vpop.eup %7333  ;;  %v4164_v18 = vmul.f32 %v7465_v10, %v7332_v15 }
0x195a   :  { %v7336_v22 = vpop.eup %7335  ;;  %v4175_v42 = vsel %vm2720_vm9, %v4165_v11, 0.0  ;;  %v4168_v26 = vmul.f32 %v7465_v10, %v7334_v17 }
0x195b   :  { %v7338_v61 = vpop.eup %7337  ;;  %4176 = vadd.xlane.f32.xlu1 %v4175_v42  ;;  %v4172_v7 = vsel %vm2720_vm9, %v4164_v18, 0.0  ;;  %v4166_v16 = vmul.f32 %v7465_v10, %v7336_v22 }
0x195c   :  { %v7340_v58 = vpop.eup %7339  ;;  %4173 = vadd.xlane.f32.xlu0 %v4172_v7  ;;  %v4184_v36 = vsel %vm2720_vm9, %v4168_v26, 0.0  ;;  %v4170_v30 = vmul.f32 %v7465_v10, %v7338_v61 }
0x195d   :  { %v4178_v35 = vsel %vm2720_vm9, %v4166_v16, 0.0  ;;  %v4167_v46 = vmul.f32 %v7465_v10, %v7340_v58  ;;  %v7342_v3 = vpop.eup %7341 }
0x195e   :  { %v4190_v47 = vsel %vm2720_vm9, %v4170_v30, 0.0  ;;  %v4169_v23 = vmul.f32 %v7465_v10, %v7342_v3  ;;  %v7344_v45 = vpop.eup %7343 }
0x195f   :  { %4185 = vadd.xlane.f32.xlu1 %v4184_v36  ;;  %v4181_v53 = vsel %vm2720_vm9, %v4167_v46, 0.0  ;;  %v4171_v32 = vmul.f32 %v7465_v10, %v7344_v45 }
0x1960   :  { %4179 = vadd.xlane.f32.xlu0 %v4178_v35  ;;  %v4187_v54 = vsel %vm2720_vm9, %v4169_v23, 0.0 }
0x1961   :  { %v4193_v60 = vsel %vm2720_vm9, %v4171_v32, 0.0 }
0x1963   :  { %4191 = vadd.xlane.f32.xlu1 %v4190_v47 }
0x1964   :  { %4182 = vadd.xlane.f32.xlu0 %v4181_v53 }
0x1968   :  { %4188 = vadd.xlane.f32.xlu0 %v4187_v54 }
0x196c   :  { %4194 = vadd.xlane.f32.xlu0 %v4193_v60 }
0x19e8   :  { %v4177_v4 = vpop.xlane.xlu1 %4176 }
0x19e9   :  { %v4174_v41 = vpop.xlane.xlu0 %4173  ;;  %v4204_v57 = vadd.f32 %v5575_v50, %v4177_v4 }
0x19ea   :  { %v4203_v59 = vadd.f32 %v5575_v50, %v4174_v41 }
0x19eb   :  { %v4212_v52 = vsel %vm2760_vm10, %v4204_v57, -inf }
0x19ec   :  { %v4186_v62 = vpop.xlane.xlu1 %4185  ;;  %v4211_v15 = vsel %vm2760_vm10, %v4203_v59, -inf }
0x19ed   :  { %v4180_v43 = vpop.xlane.xlu0 %4179  ;;  %v4207_v37 = vadd.f32 %v5575_v50, %v4186_v62 }
0x19ee   :  { %v4205_v48 = vadd.f32 %v5575_v50, %v4180_v43 }
0x19ef   :  { %v4215_v5 = vsel %vm2760_vm10, %v4207_v37, -inf }
0x19f0   :  { %v4192_v38 = vpop.xlane.xlu1 %4191  ;;  %v4213_v9 = vsel %vm2760_vm10, %v4205_v48, -inf  ;;  %v4216_v17 = vmax.f32 %v4211_v15, %v4215_v5 }
0x19f1   :  { %v4183_v0 = vpop.xlane.xlu0 %4182  ;;  %v4209_v31 = vadd.f32 %v5575_v50, %v4192_v38 }
0x19f2   :  { %v4206_v8 = vadd.f32 %v5575_v50, %v4183_v0 }
0x19f3   :  { %v4219_v39 = vsel %vm2760_vm10, %v4209_v31, -inf }
0x19f4   :  { %v4214_v10 = vsel %vm2760_vm10, %v4206_v8, -inf  ;;  %v4220_v18 = vmax.f32 %v4213_v9, %v4219_v39 }
0x19f5   :  { %v4189_v2 = vpop.xlane.xlu0 %4188 }
0x19f6   :  { %v4208_v56 = vadd.f32 %v5575_v50, %v4189_v2 }
0x19f8   :  { %v4217_v28 = vsel %vm2760_vm10, %v4208_v56, -inf }
0x19f9   :  { %v4195_v14 = vpop.xlane.xlu0 %4194  ;;  %v4218_v20 = vmax.f32 %v4212_v52, %v4217_v28 }
0x19fa   :  { %v4210_v33 = vadd.f32 %v5575_v50, %v4195_v14 }
0x19fb   :  { %v4223_v42 = vmax.f32 %v4216_v17, %v4218_v20 }
0x19fc   :  { %v4221_v11 = vsel %vm2760_vm10, %v4210_v33, -inf }
0x19fd   :  { %v4222_v22 = vmax.f32 %v4214_v10, %v4221_v11 }
0x19ff   :  { %v4224_v26 = vmax.f32 %v4220_v18, %v4222_v22 }
0x1a01   :  { %v4225_v61 = vmax.f32 %v4223_v42, %v4224_v26 }
0x1a03   :  { %v4228_v7 = vsub.f32 %v4205_v48, %v4225_v61  ;;  %v4226_v16 = vsub.f32 %v4203_v59, %v4225_v61  ;;  %v4227_v58 = vsub.f32 %v4204_v57, %v4225_v61  ;;  %v4229_v36 = vsub.f32 %v4206_v8, %v4225_v61 }
0x1a04   :  { %v4230_v46 = vsub.f32 %v4207_v37, %v4225_v61  ;;  %v4231_v47 = vsub.f32 %v4208_v56, %v4225_v61  ;;  %v4232_v23 = vsub.f32 %v4209_v31, %v4225_v61  ;;  %v4233_v54 = vsub.f32 %v4210_v33, %v4225_v61 }
0x1a05   :  { %v4238_v30 = vmul.f32 1.442695, %v4228_v7  ;;  %v4234_v35 = vmul.f32 1.442695, %v4226_v16  ;;  %v4236_v3 = vmul.f32 1.442695, %v4227_v58 }
0x1a06   :  { %v4240_v53 = vmul.f32 1.442695, %v4229_v36  ;;  %v4242_v45 = vmul.f32 1.442695, %v4230_v46  ;;  %v4244_v32 = vmul.f32 1.442695, %v4231_v47 }
0x1a07   :  { %7345 = vpow2.f32 %v4238_v30  ;;  %v4246_v60 = vmul.f32 1.442695, %v4232_v23  ;;  %v4248_v4 = vmul.f32 1.442695, %v4233_v54  ;;  %v4366_v16 = vld [vmem:[#allocation13 + $0x8] sm:$0xff]  ;;  %v4368_v36 = vld [vmem:[#allocation13 + $0x18] sm:$0xff] }
0x1a08   :  { %7347 = vpow2.f32 %v4234_v35  ;;  %v4370_v58 = vld [vmem:[#allocation13 + $0x28] sm:$0xff]  ;;  %v4372_v35 = vld [vmem:[#allocation13 + $0x38] sm:$0xff]  ;;  %v4365_v46 = vld [vmem:[#allocation13] sm:$0xff] }
0x1a09   :  { %7349 = vpow2.f32 %v4236_v3  ;;  %v6785_v30 = vpack.c.bf16 %v4370_v58, %v4366_v16  ;;  %v4369_v3 = vld [vmem:[#allocation13 + $0x20] sm:$0xff]  ;;  %v6849_v47 = vpack.c.bf16 %v4372_v35, %v4368_v36  ;;  %v4367_v23 = vld [vmem:[#allocation13 + $0x10] sm:$0xff]  ;;  %v4374_v54 = vld [vmem:[#allocation13 + $0x48] sm:$0xff] }
0x1a0a   :  { %7351 = vpow2.f32 %v4240_v53  ;;  %v6787_v53 = vpack.c.bf16 %v4369_v3, %v4365_v46  ;;  %v4402_v16 = vld [vmem:[#allocation13 + $0x128] sm:$0xff]  ;;  %v4400_v58 = vld [vmem:[#allocation13 + $0x118] sm:$0xff]  ;;  %v4397_v3 = vld [vmem:[#allocation13 + $0x100] sm:$0xff] }
0x1a0b   :  { %7353 = vpow2.f32 %v4242_v45  ;;  %v4371_v45 = vld [vmem:[#allocation13 + $0x30] sm:$0xff]  ;;  %6786 = vmatprep.subr.bf16.mxu1 %v6785_v30  ;;  %6850 = vmatprep.subr.bf16.mxu0 %v6849_v47  ;;  %v4404_v36 = vld [vmem:[#allocation13 + $0x138] sm:$0xff]  ;;  %v4401_v47 = vld [vmem:[#allocation13 + $0x120] sm:$0xff] }
0x1a0c   :  { %7355 = vpow2.f32 %v4244_v32  ;;  %v6851_v32 = vpack.c.bf16 %v4371_v45, %v4367_v23  ;;  %6788 = vmatpush1.bf16.msra.mxu1 %v6787_v53  ;;  %v4399_v53 = vld [vmem:[#allocation13 + $0x110] sm:$0xff]  ;;  %v6865_v23 = vpack.c.bf16 %v4404_v36, %v4400_v58  ;;  %v4434_v58 = vld [vmem:[#allocation13 + $0x228] sm:$0xff]  ;;  %v4432_v36 = vld [vmem:[#allocation13 + $0x218] sm:$0xff] }
0x1a0d   :  { %7357 = vpow2.f32 %v4246_v60  ;;  %v4378_v60 = vld [vmem:[#allocation13 + $0x68] sm:$0xff]  ;;  %v4403_v45 = vld [vmem:[#allocation13 + $0x130] sm:$0xff] }
0x1a0e   :  { %7359 = vpow2.f32 %v4248_v4  ;;  %v4376_v4 = vld [vmem:[#allocation13 + $0x58] sm:$0xff]  ;;  %6852 = vmatpush1.bf16.msra.mxu0 %v6851_v32  ;;  %v4410_v32 = vld [vmem:[#allocation13 + $0x168] sm:$0xff] }
0x1a11   :  { %v7346_v41 = vpop.eup %7345 }
0x1a12   :  { %v7348_v62 = vpop.eup %7347  ;;  %v4253_v57 = vsel %vm2760_vm10, %v7346_v41, 0.0 }
0x1a13   :  { %v7350_v43 = vpop.eup %7349  ;;  %v4250_v0 = vsel %vm2760_vm10, %v7348_v62, 0.0 }
0x1a14   :  { %v4251_v50 = vsel %vm2760_vm10, %v7350_v43, 0.0  ;;  %v7352_v38 = vpop.eup %7351 }
0x1a15   :  { %v4252_v2 = vadd.f32 %v4251_v50, %v4250_v0  ;;  %v7354_v37 = vpop.eup %7353  ;;  %v4255_v56 = vsel %vm2760_vm10, %v7352_v38, 0.0  ;;  %v4373_v0 = vld [vmem:[#allocation13 + $0x40] sm:$0xff] }
0x1a16   :  { %v7356_v59 = vpop.eup %7355  ;;  %v4257_v8 = vsel %vm2760_vm10, %v7354_v37, 0.0  ;;  %v4377_v50 = vld [vmem:[#allocation13 + $0x60] sm:$0xff] }
0x1a17   :  { %v4254_v31 = vadd.f32 %v4253_v57, %v4252_v2  ;;  %v7358_v28 = vpop.eup %7357  ;;  %v4259_v52 = vsel %vm2760_vm10, %v7356_v59, 0.0  ;;  %v6791_v2 = vpack.c.bf16 %v4377_v50, %v4373_v0  ;;  %v4379_v57 = vld [vmem:[#allocation13 + $0x70] sm:$0xff]  ;;  %v4405_v0 = vld [vmem:[#allocation13 + $0x140] sm:$0xff] }
0x1a18   :  { %v7360_v5 = vpop.eup %7359  ;;  %v4261_v33 = vsel %vm2760_vm10, %v7358_v28, 0.0  ;;  %v4409_v50 = vld [vmem:[#allocation13 + $0x160] sm:$0xff] }
0x1a19   :  { %v4256_v48 = vadd.f32 %v4255_v56, %v4254_v31  ;;  %v4263_v15 = vsel %vm2760_vm10, %v7360_v5, 0.0  ;;  %v4386_v31 = vld [vmem:[#allocation13 + $0xa8] sm:$0xff] }
0x1a1b   :  { %v4258_v14 = vadd.f32 %v4257_v8, %v4256_v48  ;;  %v4384_v48 = vld [vmem:[#allocation13 + $0x98] sm:$0xff] }
0x1a1c   :  { %v4388_v8 = vld [vmem:[#allocation13 + $0xb8] sm:$0xff] }
0x1a1d   :  { %v4260_v39 = vadd.f32 %v4259_v52, %v4258_v14  ;;  %v6857_v14 = vpack.c.bf16 %v4388_v8, %v4384_v48  ;;  %v4385_v52 = vld [vmem:[#allocation13 + $0xa0] sm:$0xff]  ;;  %v6807_v48 = vpack.c.bf16 %v4409_v50, %v4405_v0 }
0x1a1e   :  { %v4437_v50 = vld [vmem:[#allocation13 + $0x240] sm:$0xff] }
0x1a1f   :  { %v4262_v20 = vadd.f32 %v4261_v33, %v4260_v39  ;;  %v4387_v39 = vld [vmem:[#allocation13 + $0xb0] sm:$0xff] }
0x1a21   :  { %v4264_v9 = vadd.f32 %v4263_v15, %v4262_v20  ;;  %v4390_v20 = vld [vmem:[#allocation13 + $0xc8] sm:$0xff] }
0x1a22   :  { %v4394_v15 = vld [vmem:[#allocation13 + $0xe8] sm:$0xff] }
0x1a23   :  { %7361 = vrcp.f32 %v4264_v9  ;;  %v4392_v9 = vld [vmem:[#allocation13 + $0xd8] sm:$0xff] }
0x1a2d   :  { %v7362_v10 = vpop.eup %7361 }
0x1a2e   :  { %v4267_v11 = vmul.f32 %v7362_v10, %v7350_v43  ;;  %v4266_v17 = vmul.f32 %v7362_v10, %v7348_v62  ;;  %v4270_v18 = vmul.f32 %v7362_v10, %v7354_v37  ;;  %v4268_v22 = vmul.f32 %v7362_v10, %v7346_v41  ;;  %v4380_v41 = vld [vmem:[#allocation13 + $0x78] sm:$0xff]  ;;  %v4382_v37 = vld [vmem:[#allocation13 + $0x88] sm:$0xff] }
0x1a2f   :  { %v4272_v42 = vmul.f32 %v7362_v10, %v7358_v28  ;;  %v4269_v26 = vmul.f32 %v7362_v10, %v7352_v38  ;;  %v4271_v61 = vmul.f32 %v7362_v10, %v7356_v59  ;;  %v4273_v7 = vmul.f32 %v7362_v10, %v7360_v5  ;;  %v4375_v38 = vld [vmem:[#allocation13 + $0x50] sm:$0xff]  ;;  %v4381_v28 = vld [vmem:[#allocation13 + $0x80] sm:$0xff] }
0x1a30   :  { %4281 = vperm.xlu0 %7132, %v4267_v11   ;;  %4276 = vperm.xlu1 %7131, %v4266_v17   ;;  %v6789_v62 = vpack.c.bf16 %v4378_v60, %v4374_v54  ;;  %v6853_v43 = vpack.c.bf16 %v4380_v41, %v4376_v4  ;;  %v6855_v56 = vpack.c.bf16 %v4379_v57, %v4375_v38  ;;  %v4383_v5 = vld [vmem:[#allocation13 + $0x90] sm:$0xff]  ;;  %v4396_v17 = vld [vmem:[#allocation13 + $0xf8] sm:$0xff]  ;;  %v4406_v54 = vld [vmem:[#allocation13 + $0x148] sm:$0xff] }
0x1a31   :  { %v6793_v59 = vpack.c.bf16 %v4386_v31, %v4382_v37  ;;  %v6795_v33 = vpack.c.bf16 %v4385_v52, %v4381_v28  ;;  %v6859_v10 = vpack.c.bf16 %v4387_v39, %v4383_v5  ;;  %v6797_v11 = vpack.c.bf16 %v4394_v15, %v4390_v20  ;;  %v4408_v60 = vld [vmem:[#allocation13 + $0x158] sm:$0xff]  ;;  %v4407_v38 = vld [vmem:[#allocation13 + $0x150] sm:$0xff]  ;;  %v4414_v37 = vld [vmem:[#allocation13 + $0x188] sm:$0xff] }
0x1a32   :  { %6790 = vmatprep.subr.bf16.mxu1 %v6789_v62  ;;  %6854 = vmatprep.subr.bf16.mxu0 %v6853_v43  ;;  %v4412_v4 = vld [vmem:[#allocation13 + $0x178] sm:$0xff]  ;;  %v6803_v41 = vpack.c.bf16 %v4401_v47, %v4397_v3  ;;  %v6867_v62 = vpack.c.bf16 %v4403_v45, %v4399_v53  ;;  %v6805_v43 = vpack.c.bf16 %v4410_v32, %v4406_v54  ;;  %v4411_v57 = vld [vmem:[#allocation13 + $0x170] sm:$0xff]  ;;  %v4418_v31 = vld [vmem:[#allocation13 + $0x1a8] sm:$0xff] }
0x1a33   :  { %6792 = vmatpush1.bf16.msra.mxu1 %v6791_v2  ;;  %6856 = vmatpush1.bf16.msra.mxu0 %v6855_v56  ;;  %v6869_v2 = vpack.c.bf16 %v4412_v4, %v4408_v60  ;;  %v4416_v56 = vld [vmem:[#allocation13 + $0x198] sm:$0xff]  ;;  %v6871_v8 = vpack.c.bf16 %v4411_v57, %v4407_v38  ;;  %v6809_v28 = vpack.c.bf16 %v4418_v31, %v4414_v37  ;;  %v4417_v52 = vld [vmem:[#allocation13 + $0x1a0] sm:$0xff]  ;;  %v4415_v5 = vld [vmem:[#allocation13 + $0x190] sm:$0xff] }
0x1a34   :  { %4296 = vperm.xlu0 %7132, %v4270_v18   ;;  %4286 = vperm.xlu1 %7131, %v4268_v22   ;;  %v4389_v18 = vld [vmem:[#allocation13 + $0xc0] sm:$0xff]  ;;  %v4422_v20 = vld [vmem:[#allocation13 + $0x1c8] sm:$0xff]  ;;  %v4435_v54 = vld [vmem:[#allocation13 + $0x230] sm:$0xff] }
0x1a35   :  { %6794 = vmatprep.subr.bf16.mxu1 %v6793_v59  ;;  %v4393_v22 = vld [vmem:[#allocation13 + $0xe0] sm:$0xff]  ;;  %6858 = vmatprep.subr.bf16.mxu0 %v6857_v14  ;;  %v4420_v59 = vld [vmem:[#allocation13 + $0x1b8] sm:$0xff]  ;;  %v4426_v15 = vld [vmem:[#allocation13 + $0x1e8] sm:$0xff] }
0x1a36   :  { %v6799_v30 = vpack.c.bf16 %v4393_v22, %v4389_v18  ;;  %v4413_v14 = vld [vmem:[#allocation13 + $0x180] sm:$0xff]  ;;  %v6873_v39 = vpack.c.bf16 %v4420_v59, %v4416_v56  ;;  %v6813_v18 = vpack.c.bf16 %v4426_v15, %v4422_v20  ;;  %v4438_v32 = vld [vmem:[#allocation13 + $0x248] sm:$0xff]  ;;  %v4440_v4 = vld [vmem:[#allocation13 + $0x258] sm:$0xff] }
0x1a37   :  { %6796 = vmatpush1.bf16.msra.mxu1 %v6795_v33  ;;  %6860 = vmatpush1.bf16.msra.mxu0 %v6859_v10  ;;  %v4419_v33 = vld [vmem:[#allocation13 + $0x1b0] sm:$0xff]  ;;  %v4428_v10 = vld [vmem:[#allocation13 + $0x1f8] sm:$0xff]  ;;  %v4421_v22 = vld [vmem:[#allocation13 + $0x1c0] sm:$0xff] }
0x1a38   :  { %4306 = vperm.xlu0 %7132, %v4272_v42   ;;  %4291 = vperm.xlu1 %7131, %v4269_v26   ;;  %v6861_v42 = vpack.c.bf16 %v4396_v17, %v4392_v9  ;;  %v4391_v26 = vld [vmem:[#allocation13 + $0xd0] sm:$0xff]  ;;  %v4424_v9 = vld [vmem:[#allocation13 + $0x1d8] sm:$0xff]  ;;  %v6875_v17 = vpack.c.bf16 %v4419_v33, %v4415_v5  ;;  %v4429_v47 = vld [vmem:[#allocation13 + $0x200] sm:$0xff] }
0x1a39   :  { %6798 = vmatprep.subr.bf16.mxu1 %v6797_v11  ;;  %v6811_v11 = vpack.c.bf16 %v4417_v52, %v4413_v14  ;;  %v4433_v53 = vld [vmem:[#allocation13 + $0x220] sm:$0xff]  ;;  %v4442_v60 = vld [vmem:[#allocation13 + $0x268] sm:$0xff]  ;;  %v4443_v37 = vld [vmem:[#allocation13 + $0x270] sm:$0xff] }
0x1a3a   :  { %6862 = vmatprep.subr.bf16.mxu0 %v6861_v42  ;;  %v4425_v42 = vld [vmem:[#allocation13 + $0x1e0] sm:$0xff]  ;;  %v6821_v0 = vpack.c.bf16 %v4442_v60, %v4438_v32  ;;  %v4446_v31 = vld [vmem:[#allocation13 + $0x288] sm:$0xff]  ;;  %v4448_v59 = vld [vmem:[#allocation13 + $0x298] sm:$0xff] }
0x1a3b   :  { %6800 = vmatpush1.bf16.msra.mxu1 %v6799_v30  ;;  %v4436_v30 = vld [vmem:[#allocation13 + $0x238] sm:$0xff]  ;;  %v4441_v38 = vld [vmem:[#allocation13 + $0x260] sm:$0xff]  ;;  %v4450_v56 = vld [vmem:[#allocation13 + $0x2a8] sm:$0xff] }
0x1a3c   :  { %4301 = vperm.xlu1 %7131, %v4271_v61   ;;  %v4395_v61 = vld [vmem:[#allocation13 + $0xf0] sm:$0xff]  ;;  %v6881_v45 = vpack.c.bf16 %v4436_v30, %v4432_v36  ;;  %v6825_v14 = vpack.c.bf16 %v4450_v56, %v4446_v31  ;;  %v4445_v52 = vld [vmem:[#allocation13 + $0x280] sm:$0xff]  ;;  %v4454_v15 = vld [vmem:[#allocation13 + $0x2c8] sm:$0xff] }
0x1a3d   :  { %v6863_v35 = vpack.c.bf16 %v4395_v61, %v4391_v26  ;;  %v4423_v26 = vld [vmem:[#allocation13 + $0x1d0] sm:$0xff]  ;;  %v6877_v61 = vpack.c.bf16 %v4428_v10, %v4424_v9  ;;  %v4449_v5 = vld [vmem:[#allocation13 + $0x2a0] sm:$0xff]  ;;  %v4458_v9 = vld [vmem:[#allocation13 + $0x2e8] sm:$0xff] }
0x1a3e   :  { %v4451_v20 = vld [vmem:[#allocation13 + $0x2b0] sm:$0xff]  ;;  %v4456_v10 = vld [vmem:[#allocation13 + $0x2d8] sm:$0xff]  ;;  %v4466_v36 = vld [vmem:[#allocation13 + $0x328] sm:$0xff] }
0x1a3f   :  { %6864 = vmatpush1.bf16.msra.mxu0 %v6863_v35  ;;  %v6815_v35 = vpack.c.bf16 %v4425_v42, %v4421_v22  ;;  %v6829_v22 = vpack.c.bf16 %v4458_v9, %v4454_v15  ;;  %v4453_v42 = vld [vmem:[#allocation13 + $0x2c0] sm:$0xff]  ;;  %v4464_v30 = vld [vmem:[#allocation13 + $0x318] sm:$0xff]  ;;  %v4467_v32 = vld [vmem:[#allocation13 + $0x330] sm:$0xff] }
0x1a40   :  { %4311 = vperm.xlu1 %7131, %v4273_v7   ;;  %v4398_v7 = vld [vmem:[#allocation13 + $0x108] sm:$0xff]  ;;  %6866 = vmatprep.subr.bf16.mxu0 %v6865_v23  ;;  %v4431_v23 = vld [vmem:[#allocation13 + $0x210] sm:$0xff] }
0x1a41   :  { %v6801_v46 = vpack.c.bf16 %v4402_v16, %v4398_v7  ;;  %v4427_v7 = vld [vmem:[#allocation13 + $0x1f0] sm:$0xff]  ;;  %v4430_v16 = vld [vmem:[#allocation13 + $0x208] sm:$0xff] }
0x1a42   :  { %v6817_v3 = vpack.c.bf16 %v4434_v58, %v4430_v16  ;;  %v4459_v16 = vld [vmem:[#allocation13 + $0x2f0] sm:$0xff]  ;;  %v4462_v58 = vld [vmem:[#allocation13 + $0x308] sm:$0xff] }
0x1a43   :  { %6802 = vmatprep.subr.bf16.mxu1 %v6801_v46  ;;  %6868 = vmatpush1.bf16.msra.mxu0 %v6867_v62  ;;  %v6879_v46 = vpack.c.bf16 %v4427_v7, %v4423_v26  ;;  %v6819_v62 = vpack.c.bf16 %v4433_v53, %v4429_v47  ;;  %v4457_v26 = vld [vmem:[#allocation13 + $0x2e0] sm:$0xff]  ;;  %v6833_v47 = vpack.c.bf16 %v4466_v36, %v4462_v58  ;;  %v4470_v60 = vld [vmem:[#allocation13 + $0x348] sm:$0xff]  ;;  %v4475_v31 = vld [vmem:[#allocation13 + $0x370] sm:$0xff] }
0x1a44   :  { %6804 = vmatpush1.bf16.msra.mxu1 %v6803_v41  ;;  %6870 = vmatprep.subr.bf16.mxu0 %v6869_v2  ;;  %v4444_v41 = vld [vmem:[#allocation13 + $0x278] sm:$0xff]  ;;  %v4439_v2 = vld [vmem:[#allocation13 + $0x250] sm:$0xff]  ;;  %v4461_v53 = vld [vmem:[#allocation13 + $0x300] sm:$0xff] }
0x1a45   :  { %6806 = vmatprep.subr.bf16.mxu1 %v6805_v43  ;;  %v6883_v43 = vpack.c.bf16 %v4435_v54, %v4431_v23  ;;  %v6885_v57 = vpack.c.bf16 %v4444_v41, %v4440_v4  ;;  %v4465_v23 = vld [vmem:[#allocation13 + $0x320] sm:$0xff]  ;;  %v4474_v4 = vld [vmem:[#allocation13 + $0x368] sm:$0xff]  ;;  %v4472_v41 = vld [vmem:[#allocation13 + $0x358] sm:$0xff] }
0x1a46   :  { %v4478_v56 = vld [vmem:[#allocation13 + $0x388] sm:$0xff]  ;;  %v4483_v15 = vld [vmem:[#allocation13 + $0x3b0] sm:$0xff] }
0x1a47   :  { %6872 = vmatpush1.bf16.msra.mxu0 %v6871_v8  ;;  %v6823_v8 = vpack.c.bf16 %v4441_v38, %v4437_v50  ;;  %v6837_v50 = vpack.c.bf16 %v4474_v4, %v4470_v60  ;;  %v4469_v38 = vld [vmem:[#allocation13 + $0x340] sm:$0xff]  ;;  %v4486_v9 = vld [vmem:[#allocation13 + $0x3c8] sm:$0xff]  ;;  %v4491_v58 = vld [vmem:[#allocation13 + $0x3f0] sm:$0xff] }
0x1a48   :  { %6808 = vmatpush1.bf16.msra.mxu1 %v6807_v48  ;;  %6874 = vmatprep.subr.bf16.mxu0 %v6873_v39  ;;  %v4452_v48 = vld [vmem:[#allocation13 + $0x2b8] sm:$0xff]  ;;  %v4447_v39 = vld [vmem:[#allocation13 + $0x290] sm:$0xff] }
0x1a49   :  { %6810 = vmatprep.subr.bf16.mxu1 %v6809_v28  ;;  %v6887_v28 = vpack.c.bf16 %v4443_v37, %v4439_v2  ;;  %v6889_v33 = vpack.c.bf16 %v4452_v48, %v4448_v59  ;;  %v4473_v2 = vld [vmem:[#allocation13 + $0x360] sm:$0xff]  ;;  %v4482_v59 = vld [vmem:[#allocation13 + $0x3a8] sm:$0xff]  ;;  %v4480_v48 = vld [vmem:[#allocation13 + $0x398] sm:$0xff] }
0x1a4b   :  { %6876 = vmatpush1.bf16.msra.mxu0 %v6875_v17  ;;  %v6827_v17 = vpack.c.bf16 %v4449_v5, %v4445_v52  ;;  %v6841_v52 = vpack.c.bf16 %v4482_v59, %v4478_v56  ;;  %v4477_v5 = vld [vmem:[#allocation13 + $0x380] sm:$0xff] }
0x1a4c   :  { %6812 = vmatpush1.bf16.msra.mxu1 %v6811_v11  ;;  %6878 = vmatprep.subr.bf16.mxu0 %v6877_v61  ;;  %v4460_v11 = vld [vmem:[#allocation13 + $0x2f8] sm:$0xff]  ;;  %v4455_v61 = vld [vmem:[#allocation13 + $0x2d0] sm:$0xff] }
0x1a4d   :  { %6814 = vmatprep.subr.bf16.mxu1 %v6813_v18  ;;  %v6891_v18 = vpack.c.bf16 %v4451_v20, %v4447_v39  ;;  %v6893_v7 = vpack.c.bf16 %v4460_v11, %v4456_v10  ;;  %v4481_v39 = vld [vmem:[#allocation13 + $0x3a0] sm:$0xff]  ;;  %v4490_v10 = vld [vmem:[#allocation13 + $0x3e8] sm:$0xff]  ;;  %v4488_v11 = vld [vmem:[#allocation13 + $0x3d8] sm:$0xff] }
0x1a4f   :  { %6880 = vmatpush1.bf16.msra.mxu0 %v6879_v46  ;;  %v6831_v46 = vpack.c.bf16 %v4457_v26, %v4453_v42  ;;  %v6845_v42 = vpack.c.bf16 %v4490_v10, %v4486_v9  ;;  %v4485_v26 = vld [vmem:[#allocation13 + $0x3c0] sm:$0xff] }
0x1a50   :  { %6816 = vmatpush1.bf16.msra.mxu1 %v6815_v35  ;;  %6882 = vmatprep.subr.bf16.mxu0 %v6881_v45  ;;  %v4468_v35 = vld [vmem:[#allocation13 + $0x338] sm:$0xff]  ;;  %v4463_v45 = vld [vmem:[#allocation13 + $0x310] sm:$0xff] }
0x1a51   :  { %6818 = vmatprep.subr.bf16.mxu1 %v6817_v3  ;;  %v6895_v3 = vpack.c.bf16 %v4459_v16, %v4455_v61  ;;  %v6897_v54 = vpack.c.bf16 %v4468_v35, %v4464_v30  ;;  %v4489_v61 = vld [vmem:[#allocation13 + $0x3e0] sm:$0xff]  ;;  %v4487_v16 = vld [vmem:[#allocation13 + $0x3d0] sm:$0xff] }
0x1a52   :  { %v6847_v36 = vpack.c.bf16 %v4489_v61, %v4485_v26  ;;  %v6911_v30 = vpack.c.bf16 %v4491_v58, %v4487_v16  ;;  %v7476_v16 = vld [vmem:[#allocation3 + $0xc] sm:$0x3] }
0x1a53   :  { %6884 = vmatpush1.bf16.msra.mxu0 %v6883_v43  ;;  %v6835_v43 = vpack.c.bf16 %v4465_v23, %v4461_v53  ;;  %v7467_v53 = vld [vmem:[#allocation3 + $0x2] sm:$0x3] }
0x1a54   :  { %6820 = vmatpush1.bf16.msra.mxu1 %v6819_v62  ;;  %6886 = vmatprep.subr.bf16.mxu0 %v6885_v57  ;;  %v4476_v62 = vld [vmem:[#allocation13 + $0x378] sm:$0xff]  ;;  %v4471_v57 = vld [vmem:[#allocation13 + $0x350] sm:$0xff] }
0x1a55   :  { %6822 = vmatprep.subr.bf16.mxu1 %v6821_v0  ;;  %v6899_v0 = vpack.c.bf16 %v4467_v32, %v4463_v45  ;;  %v6901_v37 = vpack.c.bf16 %v4476_v62, %v4472_v41  ;;  %v7468_v45 = vld [vmem:[#allocation2] sm:$0x3]  ;;  %v7469_v32 = vld [vmem:[#allocation3] sm:$0x3] }
0x1a57   :  { %6888 = vmatpush1.bf16.msra.mxu0 %v6887_v28  ;;  %v6839_v28 = vpack.c.bf16 %v4473_v2, %v4469_v38  ;;  %v7470_v2 = vld [vmem:[#allocation2 + $0x4] sm:$0x3] }
0x1a58   :  { %6824 = vmatpush1.bf16.msra.mxu1 %v6823_v8  ;;  %6890 = vmatprep.subr.bf16.mxu0 %v6889_v33  ;;  %v4484_v8 = vld [vmem:[#allocation13 + $0x3b8] sm:$0xff]  ;;  %v4479_v33 = vld [vmem:[#allocation13 + $0x390] sm:$0xff] }
0x1a59   :  { %6826 = vmatprep.subr.bf16.mxu1 %v6825_v14  ;;  %v6903_v14 = vpack.c.bf16 %v4475_v31, %v4471_v57  ;;  %v6905_v20 = vpack.c.bf16 %v4484_v8, %v4480_v48  ;;  %v7472_v8 = vld [vmem:[#allocation2 + $0x8] sm:$0x3] }
0x1a5b   :  { %6892 = vmatpush1.bf16.msra.mxu0 %v6891_v18  ;;  %v6843_v18 = vpack.c.bf16 %v4481_v39, %v4477_v5  ;;  %v7473_v5 = vld [vmem:[#allocation3 + $0x8] sm:$0x3] }
0x1a5c   :  { %6828 = vmatpush1.bf16.msra.mxu1 %v6827_v17  ;;  %6894 = vmatprep.subr.bf16.mxu0 %v6893_v7  ;;  %v4492_v17 = vld [vmem:[#allocation13 + $0x3f8] sm:$0xff] }
0x1a5d   :  { %6830 = vmatprep.subr.bf16.mxu1 %v6829_v22  ;;  %v6907_v22 = vpack.c.bf16 %v4483_v15, %v4479_v33  ;;  %v6909_v7 = vpack.c.bf16 %v4492_v17, %v4488_v11  ;;  %v7474_v33 = vld [vmem:[#allocation2 + $0x6] sm:$0x3]  ;;  %v7475_v15 = vld [vmem:[#allocation3 + $0x6] sm:$0x3] }
0x1a5f   :  { %6896 = vmatpush1.bf16.msra.mxu0 %v6895_v3  ;;  %v7466_v3 = vld [vmem:[#allocation2 + $0x2] sm:$0x3] }
0x1a60   :  { %6832 = vmatpush1.bf16.msra.mxu1 %v6831_v46  ;;  %6898 = vmatprep.subr.bf16.mxu0 %v6897_v54 }
0x1a61   :  { %6834 = vmatprep.subr.bf16.mxu1 %v6833_v47 }
0x1a63   :  { %6900 = vmatpush1.bf16.msra.mxu0 %v6899_v0 }
0x1a64   :  { %6836 = vmatpush1.bf16.msra.mxu1 %v6835_v43  ;;  %6902 = vmatprep.subr.bf16.mxu0 %v6901_v37  ;;  %v7471_v37 = vld [vmem:[#allocation3 + $0x4] sm:$0x3] }
0x1a65   :  { %6838 = vmatprep.subr.bf16.mxu1 %v6837_v50 }
0x1a67   :  { %6904 = vmatpush1.bf16.msra.mxu0 %v6903_v14 }
0x1a68   :  { %6840 = vmatpush1.bf16.msra.mxu1 %v6839_v28  ;;  %6906 = vmatprep.subr.bf16.mxu0 %v6905_v20 }
0x1a69   :  { %6842 = vmatprep.subr.bf16.mxu1 %v6841_v52 }
0x1a6b   :  { %6908 = vmatpush1.bf16.msra.mxu0 %v6907_v22 }
0x1a6c   :  { %6844 = vmatpush1.bf16.msra.mxu1 %v6843_v18  ;;  %6910 = vmatprep.subr.bf16.mxu0 %v6909_v7 }
0x1a6d   :  { %6846 = vmatprep.subr.bf16.mxu1 %v6845_v42 }
0x1a6f   :  { %6912 = vmatpush1.bf16.msra.mxu0 %v6911_v30 }
0x1a70   :  { %6848 = vmatpush1.bf16.msra.mxu1 %v6847_v36  ;;  %6937 = vmatprep.subr.bf16.mxu0 %v7674_v21  ;;  %v7477_v36 = vld [vmem:[#allocation2 + $0xa] sm:$0x3] }
0x1a71   :  { %6913 = vmatprep.subr.bf16.mxu1 %v7674_v21 }
0x1aaf   :  { %v4282_v35 = vpop.permute.xlu0 %4281  ;;  %v4277_v46 = vpop.permute.xlu1 %4276 }
0x1ab0   :  { %v4315_v47 = vmul.f32 %v7466_v3, %v4282_v35  ;;  %v4338_v23 = vmul.f32 %v7467_v53, %v4282_v35  ;;  %v4314_v54 = vmul.f32 %v7468_v45, %v4277_v46  ;;  %v4337_v60 = vmul.f32 %v7469_v32, %v4277_v46  ;;  %v7478_v35 = vld [vmem:[#allocation3 + $0xa] sm:$0x3] }
0x1ab2   :  { %v4323_v4 = vsel %vm688_vm4, %v4315_v47, 0.0  ;;  %v4322_v41 = vsel %vm688_vm4, %v4314_v54, 0.0  ;;  %v4346_v50 = vsel %vm688_vm4, %v4338_v23, 0.0  ;;  %v4345_v38 = vsel %vm688_vm4, %v4337_v60, 0.0 }
0x1ab3   :  { %v4324_v62 = vadd.f32 %v4323_v4, %v4322_v41  ;;  %v4297_v43 = vpop.permute.xlu0 %4296  ;;  %v4287_v0 = vpop.permute.xlu1 %4286  ;;  %v4347_v48 = vadd.f32 %v4346_v50, %v4345_v38  ;;  %v7479_v4 = vld [vmem:[#allocation3 + $0xe] sm:$0x3]  ;;  %v7480_v50 = vld [vmem:[#allocation2 + $0xc] sm:$0x3] }
0x1ab4   :  { %v4316_v57 = vmul.f32 %v7470_v2, %v4287_v0  ;;  %v4339_v31 = vmul.f32 %v7471_v37, %v4287_v0  ;;  %v4318_v28 = vmul.f32 %v7472_v8, %v4297_v43  ;;  %v4341_v39 = vmul.f32 %v7473_v5, %v4297_v43  ;;  %v7481_v2 = vld [vmem:[#allocation2 + $0xe] sm:$0x3]  ;;  %v4789_v5 = vld [vmem:[%s9364_s7 + $0x10] sm:$0xff] }
0x1ab6   :  { %v4325_v56 = vsel %vm688_vm4, %v4316_v57, 0.0  ;;  %v4348_v59 = vsel %vm688_vm4, %v4339_v31, 0.0  ;;  %v4329_v22 = vsel %vm688_vm4, %v4318_v28, 0.0  ;;  %v4352_v7 = vsel %vm688_vm4, %v4341_v39, 0.0  ;;  %v4787_v28 = vld [vmem:[%s9364_s7] sm:$0xff]  ;;  %v4790_v39 = vld [vmem:[%s9364_s7 + $0x18] sm:$0xff] }
0x1ab7   :  { %v4326_v14 = vadd.f32 %v4325_v56, %v4324_v62  ;;  %v4292_v52 = vpop.permute.xlu1 %4291  ;;  %v4349_v10 = vadd.f32 %v4348_v59, %v4347_v48  ;;  %v4307_v11 = vpop.permute.xlu0 %4306 }
0x1ab8   :  { %v4317_v20 = vmul.f32 %v7474_v33, %v4292_v52  ;;  %v4340_v9 = vmul.f32 %v7475_v15, %v4292_v52  ;;  %v4343_v58 = vmul.f32 %v7476_v16, %v4307_v11  ;;  %v4320_v38 = vmul.f32 %v7480_v50, %v4307_v11  ;;  %v4792_v15 = vld [vmem:[%s9364_s7 + $0x28] sm:$0xff]  ;;  %v4794_v11 = vld [vmem:[%s9364_s7 + $0x38] sm:$0xff]  ;;  %v4683_v16 = vld [vmem:[%s9370_s13 + $0x10] sm:$0xff] }
0x1ab9   :  { %v6941_v33 = vpack.c.bf16 %v4790_v39, %v4789_v5 }
0x1aba   :  { %v4327_v17 = vsel %vm688_vm4, %v4317_v20, 0.0  ;;  %v4350_v18 = vsel %vm688_vm4, %v4340_v9, 0.0  ;;  %v4356_v60 = vsel %vm688_vm4, %v4343_v58, 0.0  ;;  %v4333_v37 = vsel %vm688_vm4, %v4320_v38, 0.0  ;;  %v4791_v20 = vld [vmem:[%s9364_s7 + $0x20] sm:$0xff]  ;;  %v4684_v58 = vld [vmem:[%s9370_s13 + $0x18] sm:$0xff] }
0x1abb   :  { %v4328_v42 = vadd.f32 %v4327_v17, %v4326_v14  ;;  %v4351_v26 = vadd.f32 %v4350_v18, %v4349_v10  ;;  %v4302_v61 = vpop.permute.xlu1 %4301  ;;  %v4788_v14 = vld [vmem:[%s9364_s7 + $0x8] sm:$0xff]  ;;  %v6944_v9 = vpack.c.bf16 %v4792_v15, %v4791_v20  ;;  %v4793_v10 = vld [vmem:[%s9364_s7 + $0x30] sm:$0xff]  ;;  %v4681_v18 = vld [vmem:[%s9370_s13] sm:$0xff] }
0x1abc   :  { %v4319_v30 = vmul.f32 %v7477_v36, %v4302_v61  ;;  %v4342_v46 = vmul.f32 %v7478_v35, %v4302_v61  ;;  %v6938_v52 = vpack.c.bf16 %v4788_v14, %v4787_v28  ;;  %v6947_v17 = vpack.c.bf16 %v4794_v11, %v4793_v10  ;;  %v4796_v61 = vld [vmem:[%s9364_s7 + $0x48] sm:$0xff]  ;;  %v4798_v35 = vld [vmem:[%s9364_s7 + $0x58] sm:$0xff]  ;;  %v4493_v14 = vld [vmem:[#allocation14] sm:$0xf] }
0x1abd   :  { %v4330_v3 = vadd.f32 %v4329_v22, %v4328_v42  ;;  %v4353_v47 = vadd.f32 %v4352_v7, %v4351_v26  ;;  %v4682_v22 = vld [vmem:[%s9370_s13 + $0x8] sm:$0xff]  ;;  %v4795_v26 = vld [vmem:[%s9364_s7 + $0x40] sm:$0xff]  ;;  %v6917_v36 = vpack.c.bf16 %v4684_v58, %v4683_v16  ;;  %v4502_v5 = vrot.slane %v4493_v14, %v8143_v1 }
0x1abe   :  { %v4331_v53 = vsel %vm688_vm4, %v4319_v30, 0.0  ;;  %v4354_v23 = vsel %vm688_vm4, %v4342_v46, 0.0  ;;  %v6914_v42 = vpack.c.bf16 %v4682_v22, %v4681_v18  ;;  %v6950_v7 = vpack.c.bf16 %v4796_v61, %v4795_v26  ;;  %v4797_v30 = vld [vmem:[%s9364_s7 + $0x50] sm:$0xff]  ;;  %v4685_v46 = vld [vmem:[%s9370_s13 + $0x20] sm:$0xff] }
0x1abf   :  { %v4332_v45 = vadd.f32 %v4331_v53, %v4330_v3  ;;  %v4355_v54 = vadd.f32 %v4354_v23, %v4353_v47  ;;  %v4312_v32 = vpop.permute.xlu1 %4311  ;;  %v6953_v3 = vpack.c.bf16 %v4798_v35, %v4797_v30  ;;  %v4686_v47 = vld [vmem:[%s9370_s13 + $0x28] sm:$0xff]  ;;  %v4799_v53 = vld [vmem:[%s9364_s7 + $0x60] sm:$0xff]  ;;  %v4510_v18 = vrot.slane %v4493_v14, %v8149_v13 }
0x1ac0   :  { %v4344_v41 = vmul.f32 %v7479_v4, %v4312_v32  ;;  %v4321_v57 = vmul.f32 %v7481_v2, %v4312_v32  ;;  %v4800_v23 = vld [vmem:[%s9364_s7 + $0x68] sm:$0xff]  ;;  %v4688_v32 = vld [vmem:[%s9370_s13 + $0x38] sm:$0xff]  ;;  %v4691_v2 = vld [vmem:[%s9370_s13 + $0x50] sm:$0xff] }
0x1ac1   :  { %v4357_v62 = vadd.f32 %v4356_v60, %v4355_v54  ;;  %v4334_v31 = vadd.f32 %v4333_v37, %v4332_v45  ;;  %v6920_v45 = vpack.c.bf16 %v4686_v47, %v4685_v46  ;;  %v4687_v54 = vld [vmem:[%s9370_s13 + $0x30] sm:$0xff]  ;;  %v6956_v60 = vpack.c.bf16 %v4800_v23, %v4799_v53  ;;  %v4693_v37 = vld [vmem:[%s9370_s13 + $0x60] sm:$0xff] }
0x1ac2   :  { %v4358_v43 = vsel %vm688_vm4, %v4344_v41, 0.0  ;;  %v4335_v56 = vsel %vm688_vm4, %v4321_v57, 0.0  ;;  %v6923_v4 = vpack.c.bf16 %v4688_v32, %v4687_v54  ;;  %v4801_v41 = vld [vmem:[%s9364_s7 + $0x70] sm:$0xff]  ;;  %v4692_v57 = vld [vmem:[%s9370_s13 + $0x58] sm:$0xff] }
0x1ac3   :  { %v4359_v0 = vadd.f32 %v4358_v43, %v4357_v62  ;;  %v4336_v59 = vadd.f32 %v4335_v56, %v4334_v31  ;;  %v4802_v62 = vld [vmem:[%s9364_s7 + $0x78] sm:$0xff]  ;;  %v4689_v43 = vld [vmem:[%s9370_s13 + $0x40] sm:$0xff]  ;;  %v6929_v31 = vpack.c.bf16 %v4692_v57, %v4691_v2  ;;  %v4694_v56 = vld [vmem:[%s9370_s13 + $0x68] sm:$0xff] }
0x1ac4   :  { %v6959_v50 = vpack.c.bf16 %v4802_v62, %v4801_v41 }
0x1ac5   :  { %4361 = vrot.lane.b32.xlu0 %v4359_v0, %s7673_s28  ;;  %v4690_v0 = vld [vmem:[%s9370_s13 + $0x48] sm:$0xff] }
0x1ac6   :  { %v6926_v38 = vpack.c.bf16 %v4690_v0, %v4689_v43 }
0x1b37   :  { %v4362_v48 = vpop.permute.xlu0 %4361 }
0x1b38   :  { %v4364_v8 = vsel %vm293_vm2, %v4336_v59, %v4362_v48  ;;  %v6932_v59 = vpack.c.bf16 %v4694_v56, %v4693_v37  ;;  %v4695_v48 = vld [vmem:[%s9370_s13 + $0x70] sm:$0xff]  ;;  %v7482_v37 = vld [vmem:[#allocation11] ss:$0 sm:$0xff] }
0x1b39   :  { %4580 = vmatmul.mubr.f32.vlgmr.msra.gmra.mrb[26].mxu1 %v4364_v8  ;;  %4651 = vmatmul.mubr.f32.vlgmr.msra.gmra.mrb[36].mxu0 %v4364_v8  ;;  %v4696_v8 = vld [vmem:[%s9370_s13 + $0x78] sm:$0xff] }
0x1b3a   :  { %6043 = vmatprep.mubr.msk.f32.mxu0 %vm7675_vm6, %v7672_v49  ;;  %6008 = vmatprep.mubr.msk.f32.mxu1 %vm7675_vm6, %v7672_v49  ;;  %v6935_v28 = vpack.c.bf16 %v4696_v8, %v4695_v48 }
0x1b3b   :  { %6939 = vmatpush3.bf16.msra.mxu0 %v6938_v52  ;;  %6915 = vmatpush3.bf16.msra.mxu1 %v6914_v42  ;;  %v4498_v52 = vrot.slane %v4493_v14, %v8141_v63  ;;  %v4506_v42 = vrot.slane %v4493_v14, %v8147_v12 }
0x1b3c   :  { %6940 = vmatprep.subr.bf16.mxu0 %v7674_v21  ;;  %6916 = vmatprep.subr.bf16.mxu1 %v7674_v21 }
0x1b3f   :  { %6942 = vmatpush3.bf16.msra.mxu0 %v6941_v33  ;;  %6918 = vmatpush3.bf16.msra.mxu1 %v6917_v36 }
0x1b40   :  { %6943 = vmatprep.subr.bf16.mxu0 %v7674_v21  ;;  %6919 = vmatprep.subr.bf16.mxu1 %v7674_v21 }
0x1b43   :  { %6945 = vmatpush3.bf16.msra.mxu0 %v6944_v9  ;;  %6921 = vmatpush3.bf16.msra.mxu1 %v6920_v45 }
0x1b44   :  { %6946 = vmatprep.subr.bf16.mxu0 %v7674_v21  ;;  %6922 = vmatprep.subr.bf16.mxu1 %v7674_v21 }
0x1b47   :  { %6948 = vmatpush3.bf16.msra.mxu0 %v6947_v17  ;;  %6924 = vmatpush3.bf16.msra.mxu1 %v6923_v4 }
0x1b48   :  { %6949 = vmatprep.subr.bf16.mxu0 %v7674_v21  ;;  %6925 = vmatprep.subr.bf16.mxu1 %v7674_v21 }
0x1b4b   :  { %6951 = vmatpush3.bf16.msra.mxu0 %v6950_v7  ;;  %6927 = vmatpush3.bf16.msra.mxu1 %v6926_v38 }
0x1b4c   :  { %6952 = vmatprep.subr.bf16.mxu0 %v7674_v21  ;;  %6928 = vmatprep.subr.bf16.mxu1 %v7674_v21 }
0x1b4f   :  { %6954 = vmatpush3.bf16.msra.mxu0 %v6953_v3  ;;  %6930 = vmatpush3.bf16.msra.mxu1 %v6929_v31 }
0x1b50   :  { %6955 = vmatprep.subr.bf16.mxu0 %v7674_v21  ;;  %6931 = vmatprep.subr.bf16.mxu1 %v7674_v21 }
0x1b53   :  { %6957 = vmatpush3.bf16.msra.mxu0 %v6956_v60  ;;  %6933 = vmatpush3.bf16.msra.mxu1 %v6932_v59 }
0x1b54   :  { %6958 = vmatprep.subr.bf16.mxu0 %v7674_v21  ;;  %6934 = vmatprep.subr.bf16.mxu1 %v7674_v21 }
0x1b57   :  { %6960 = vmatpush3.bf16.msra.mxu0 %v6959_v50  ;;  %6936 = vmatpush3.bf16.msra.mxu1 %v6935_v28 }
0x1c0c   :  { %v4581_v39 = vpop.f32.mrb[26].mxu1  ;;  %v4652_v33 = vpop.f32.mrb[36].mxu0 }
0x1c0d   :  { %v4582_v20 = vadd.f32 %v4581_v39, %v4498_v52  ;;  %v4583_v15 = vpop.f32.mrb[27].mxu1  ;;  %v4654_v9 = vpop.f32.mrb[37].mxu0  ;;  %v4653_v61 = vadd.f32 %v4652_v33, %v4506_v42 }
0x1c0e   :  { %v4584_v10 = vadd.f32 %v4583_v15, %v4502_v5  ;;  %v4655_v22 = vadd.f32 %v4654_v9, %v4510_v18 }
0x1c0f   :  { %v5576_v11 = vmul.f32 -1.442695, %v4582_v20 }
0x1c10   :  { %v5577_v17 = vmul.f32 -1.442695, %v4584_v10  ;;  %v5578_v26 = vmul.f32 -1.442695, %v4655_v22 }
0x1c11   :  { %7363 = vpow2.f32 %v5576_v11 }
0x1c12   :  { %7365 = vpow2.f32 %v5577_v17 }
0x1c13   :  { %7367 = vpow2.f32 %v5578_v26 }
0x1c14   :  { %7369 = vtanh.f32 %v4653_v61 }
0x1c1b   :  { %v7364_v7 = vpop.eup %7363 }
0x1c1c   :  { %v7366_v16 = vpop.eup %7365  ;;  %v4660_v58 = vadd.f32 1.0, %v7364_v7  ;;  %v5581_v7 = vld [vmem:[#allocation5] ss:$0 sm:$0xff] }
0x1c1d   :  { %v4666_v36 = vadd.f32 1.0, %v7366_v16  ;;  %v7368_v30 = vpop.eup %7367 }
0x1c1e   :  { %7371 = vrcp.f32 %v4660_v58  ;;  %v7370_v35 = vpop.eup %7369  ;;  %v4673_v47 = vadd.f32 1.0, %v7368_v30 }
0x1c1f   :  { %7373 = vrcp.f32 %v4666_v36 }
0x1c20   :  { %7375 = vrcp.f32 %v4673_v47 }
0x1c28   :  { %v7372_v46 = vpop.eup %7371 }
0x1c29   :  { %v7374_v3 = vpop.eup %7373  ;;  %v4677_v53 = vmul.f32 %v7372_v46, %v7370_v35 }
0x1c2a   :  { %v4676_v23 = vmul.f32 %v7374_v3, %v9019_v51  ;;  %v7376_v54 = vpop.eup %7375 }
0x1c2c   :  { %v9196_v45 = vadd.f32 %v4677_v53, %v4676_v23 }
0x1c2e   :  { %7377 = vtanh.f32 %v9196_v45  ;;  %6044 = vmatmul.mubr.f32.vlgmr.msra.gmra.mrb[38].mxu0 %v9196_v45 }
0x1c38   :  { %v7378_v32 = vpop.eup %7377 }
0x1c39   :  { %v4680_v60 = vmul.f32 %v7378_v32, %v7376_v54 }
0x1c3b   :  { %6009 = vmatmul.mubr.f32.vlgmr.msra.gmra.mrb[28].mxu1 %v4680_v60  ;;  %5375 = vmatprep.mubr.f32.mxu0 %v4680_v60 }
0x1c3c   :  { %5304 = vmatprep.mubr.f32.mxu1 %v4680_v60 }
0x1d01   :  { %v4869_v4 = vpop.f32.mrb[38].mxu0 }
0x1d02   :  { %v6045_v41 = vpop.f32.mrb[39].mxu0  ;;  %v4874_v62 = vadd.f32 %v4869_v4, %v8650_v40  ;;  %v4873_v43 = vadd.f32 %v4869_v4, %v8639_v25  ;;  %v4875_v51 = vadd.f32 %v4869_v4, %v8653_v6  ;;  %v4876_v0 = vadd.f32 %v4869_v4, %v8660_v34 }
0x1d03   :  { %v4877_v50 = vadd.f32 %v4869_v4, %v8637_v19  ;;  %v4878_v38 = vadd.f32 %v4869_v4, %v8643_v27  ;;  %v4879_v2 = vadd.f32 %v4869_v4, %v8646_v29  ;;  %v4880_v40 = vadd.f32 %v4869_v4, %v8664_v24 }
0x1d04   :  { %7379 = vtanh.f32 %v4874_v62 }
0x1d05   :  { %7381 = vtanh.f32 %v4873_v43 }
0x1d06   :  { %7383 = vtanh.f32 %v4875_v51 }
0x1d07   :  { %7385 = vtanh.f32 %v4876_v0 }
0x1d08   :  { %7387 = vtanh.f32 %v4877_v50 }
0x1d09   :  { %7389 = vtanh.f32 %v4878_v38 }
0x1d0a   :  { %7391 = vtanh.f32 %v4879_v2 }
0x1d0b   :  { %7393 = vtanh.f32 %v4880_v40 }
0x1d0e   :  { %v7380_v25 = vpop.eup %7379  ;;  %v9208_v6 = vpop.f32.mrb[28].mxu1 }
0x1d0f   :  { %v7382_v34 = vpop.eup %7381  ;;  %v6010_v57 = vpop.f32.mrb[29].mxu1  ;;  %v4890_v19 = vmul.f32 %v7482_v37, %v7380_v25 }
0x1d10   :  { %v7384_v31 = vpop.eup %7383  ;;  %v4889_v56 = vmul.f32 %v7482_v37, %v7382_v34 }
0x1d11   :  { %v7386_v27 = vpop.eup %7385  ;;  %v4900_v59 = vsel %vm2720_vm9, %v4890_v19, 0.0  ;;  %v4891_v48 = vmul.f32 %v7482_v37, %v7384_v31 }
0x1d12   :  { %v7388_v8 = vpop.eup %7387  ;;  %4901 = vadd.xlane.f32.xlu0 %v4900_v59  ;;  %v4897_v29 = vsel %vm2720_vm9, %v4889_v56, 0.0  ;;  %v4892_v24 = vmul.f32 %v7482_v37, %v7386_v27 }
0x1d13   :  { %v7390_v28 = vpop.eup %7389  ;;  %4898 = vadd.xlane.f32.xlu1 %v4897_v29  ;;  %v4903_v14 = vsel %vm2720_vm9, %v4891_v48, 0.0  ;;  %v4893_v52 = vmul.f32 %v7482_v37, %v7388_v8 }
0x1d14   :  { %v7392_v5 = vpop.eup %7391  ;;  %v4906_v39 = vsel %vm2720_vm9, %v4892_v24, 0.0  ;;  %v4894_v33 = vmul.f32 %v7482_v37, %v7390_v28 }
0x1d15   :  { %v7394_v20 = vpop.eup %7393  ;;  %v4909_v15 = vsel %vm2720_vm9, %v4893_v52, 0.0  ;;  %v4895_v9 = vmul.f32 %v7482_v37, %v7392_v5 }
0x1d16   :  { %4904 = vadd.xlane.f32.xlu0 %v4903_v14  ;;  %v4912_v10 = vsel %vm2720_vm9, %v4894_v33, 0.0  ;;  %v4896_v11 = vmul.f32 %v7482_v37, %v7394_v20 }
0x1d17   :  { %4907 = vadd.xlane.f32.xlu1 %v4906_v39  ;;  %v4915_v17 = vsel %vm2720_vm9, %v4895_v9, 0.0 }
0x1d18   :  { %v4918_v18 = vsel %vm2720_vm9, %v4896_v11, 0.0 }
0x1d1a   :  { %4910 = vadd.xlane.f32.xlu0 %v4909_v15 }
0x1d1b   :  { %4913 = vadd.xlane.f32.xlu1 %v4912_v10 }
0x1d1e   :  { %4916 = vadd.xlane.f32.xlu0 %v4915_v17 }
0x1d1f   :  { %4919 = vadd.xlane.f32.xlu1 %v4918_v18 }
0x1d9f   :  { %v4902_v22 = vpop.xlane.xlu0 %4901 }
0x1da0   :  { %v4899_v42 = vpop.xlane.xlu1 %4898  ;;  %v4929_v30 = vadd.f32 %v5581_v7, %v4902_v22 }
0x1da1   :  { %v4928_v35 = vadd.f32 %v5581_v7, %v4899_v42 }
0x1da2   :  { %v4937_v4 = vsel %vm2760_vm10, %v4929_v30, -inf }
0x1da3   :  { %v4905_v26 = vpop.xlane.xlu0 %4904  ;;  %v4936_v41 = vsel %vm2760_vm10, %v4928_v35, -inf }
0x1da4   :  { %v4908_v61 = vpop.xlane.xlu1 %4907  ;;  %v4930_v3 = vadd.f32 %v5581_v7, %v4905_v26 }
0x1da5   :  { %v4931_v47 = vadd.f32 %v5581_v7, %v4908_v61 }
0x1da6   :  { %v4938_v43 = vsel %vm2760_vm10, %v4930_v3, -inf }
0x1da7   :  { %v4911_v16 = vpop.xlane.xlu0 %4910  ;;  %v4939_v38 = vsel %vm2760_vm10, %v4931_v47, -inf }
0x1da8   :  { %v4932_v58 = vadd.f32 %v5581_v7, %v4911_v16  ;;  %v4914_v36 = vpop.xlane.xlu1 %4913 }
0x1da9   :  { %v4933_v46 = vadd.f32 %v5581_v7, %v4914_v36 }
0x1daa   :  { %v4940_v53 = vsel %vm2760_vm10, %v4932_v58, -inf }
0x1dab   :  { %v4942_v23 = vsel %vm2760_vm10, %v4933_v46, -inf  ;;  %v4917_v54 = vpop.xlane.xlu0 %4916  ;;  %v4941_v51 = vmax.f32 %v4936_v41, %v4940_v53 }
0x1dac   :  { %v4934_v32 = vadd.f32 %v5581_v7, %v4917_v54  ;;  %v4920_v60 = vpop.xlane.xlu1 %4919  ;;  %v4943_v0 = vmax.f32 %v4937_v4, %v4942_v23 }
0x1dad   :  { %v4935_v62 = vadd.f32 %v5581_v7, %v4920_v60 }
0x1dae   :  { %v4944_v50 = vsel %vm2760_vm10, %v4934_v32, -inf  ;;  %v4948_v34 = vmax.f32 %v4941_v51, %v4943_v0 }
0x1daf   :  { %v4945_v2 = vmax.f32 %v4938_v43, %v4944_v50  ;;  %v4946_v40 = vsel %vm2760_vm10, %v4935_v62, -inf }
0x1db0   :  { %v4947_v25 = vmax.f32 %v4939_v38, %v4946_v40 }
0x1db2   :  { %v4949_v57 = vmax.f32 %v4945_v2, %v4947_v25  ;;  %v5568_v2 = vld [vmem:[#allocation16] ss:$0 sm:$0xff] }
0x1db3   :  { %v9235_v40 = vadd.f32 %v5568_v2, %v8854_v44  ;;  %v5579_v25 = vld [vmem:[#allocation16] ss:$0 sm:$0xff] }
0x1db4   :  { %v4950_v37 = vmax.f32 %v4948_v34, %v4949_v57  ;;  %v9238_v34 = vadd.f32 %v5579_v25, %v9208_v6  ;;  %v5090_v44 = vld [vmem:[#allocation13] sm:$0xff]  ;;  %v5096_v6 = vld [vmem:[#allocation13 + $0x30] sm:$0xff]  ;;  %v5125_v25 = vld [vmem:[#allocation13 + $0x118] sm:$0xff] }
0x1db5   :  { %v3325_v57 = vsel %vm3324_vm11, %v9235_v40, -inf }
0x1db6   :  { %v4953_v19 = vsub.f32 %v4930_v3, %v4950_v37  ;;  %v4951_v31 = vsub.f32 %v4928_v35, %v4950_v37  ;;  %v4952_v56 = vsub.f32 %v4929_v30, %v4950_v37  ;;  %v4954_v27 = vsub.f32 %v4931_v47, %v4950_v37 }
0x1db7   :  { %v4955_v8 = vsub.f32 %v4932_v58, %v4950_v37  ;;  %v4956_v24 = vsub.f32 %v4933_v46, %v4950_v37  ;;  %v4957_v14 = vsub.f32 %v4934_v32, %v4950_v37  ;;  %v4958_v5 = vsub.f32 %v4935_v62, %v4950_v37 }
0x1db8   :  { %v4963_v59 = vmul.f32 1.442695, %v4953_v19  ;;  %v4959_v48 = vmul.f32 1.442695, %v4951_v31  ;;  %v4961_v29 = vmul.f32 1.442695, %v4952_v56 }
0x1db9   :  { %v4965_v28 = vmul.f32 1.442695, %v4954_v27  ;;  %v4967_v52 = vmul.f32 1.442695, %v4955_v8  ;;  %v4969_v39 = vmul.f32 1.442695, %v4956_v24 }
0x1dba   :  { %7395 = vpow2.f32 %v4963_v59  ;;  %v4971_v33 = vmul.f32 1.442695, %v4957_v14  ;;  %v4973_v20 = vmul.f32 1.442695, %v4958_v5  ;;  %v4774_v37 = vsel %vm3324_vm11, %v9238_v34, -inf  ;;  %v5091_v19 = vld [vmem:[#allocation13 + $0x8] sm:$0xff] }
0x1dbb   :  { %7397 = vpow2.f32 %v4959_v48  ;;  %v5095_v31 = vld [vmem:[#allocation13 + $0x28] sm:$0xff]  ;;  %v5093_v56 = vld [vmem:[#allocation13 + $0x18] sm:$0xff]  ;;  %v5094_v48 = vld [vmem:[#allocation13 + $0x20] sm:$0xff] }
0x1dbc   :  { %7399 = vpow2.f32 %v4961_v29  ;;  %v6961_v27 = vpack.c.bf16 %v5095_v31, %v5091_v19  ;;  %v5097_v59 = vld [vmem:[#allocation13 + $0x38] sm:$0xff]  ;;  %v6963_v29 = vpack.c.bf16 %v5094_v48, %v5090_v44  ;;  %v5092_v24 = vld [vmem:[#allocation13 + $0x10] sm:$0xff]  ;;  %v5099_v14 = vld [vmem:[#allocation13 + $0x48] sm:$0xff] }
0x1dbd   :  { %7401 = vpow2.f32 %v4965_v28  ;;  %v7025_v8 = vpack.c.bf16 %v5097_v59, %v5093_v56  ;;  %v7027_v28 = vpack.c.bf16 %v5096_v6, %v5092_v24  ;;  %v5101_v5 = vld [vmem:[#allocation13 + $0x58] sm:$0xff]  ;;  %v5126_v31 = vld [vmem:[#allocation13 + $0x120] sm:$0xff]  ;;  %v5124_v56 = vld [vmem:[#allocation13 + $0x110] sm:$0xff] }
0x1dbe   :  { %7403 = vpow2.f32 %v4967_v52  ;;  %6962 = vmatprep.subr.bf16.mxu1 %v6961_v27  ;;  %v5103_v52 = vld [vmem:[#allocation13 + $0x68] sm:$0xff]  ;;  %v5128_v27 = vld [vmem:[#allocation13 + $0x130] sm:$0xff]  ;;  %v5137_v6 = vld [vmem:[#allocation13 + $0x178] sm:$0xff] }
0x1dbf   :  { %7405 = vpow2.f32 %v4969_v39  ;;  %7026 = vmatprep.subr.bf16.mxu0 %v7025_v8  ;;  %6964 = vmatpush1.bf16.msra.mxu1 %v6963_v29  ;;  %v6965_v39 = vpack.c.bf16 %v5103_v52, %v5099_v14  ;;  %v5131_v44 = vld [vmem:[#allocation13 + $0x148] sm:$0xff]  ;;  %v5133_v8 = vld [vmem:[#allocation13 + $0x158] sm:$0xff]  ;;  %v7043_v29 = vpack.c.bf16 %v5128_v27, %v5124_v56  ;;  %v5134_v14 = vld [vmem:[#allocation13 + $0x160] sm:$0xff] }
0x1dc0   :  { %7407 = vpow2.f32 %v4971_v33  ;;  %7028 = vmatpush1.bf16.msra.mxu0 %v7027_v28  ;;  %v5105_v33 = vld [vmem:[#allocation13 + $0x78] sm:$0xff]  ;;  %v5135_v48 = vld [vmem:[#allocation13 + $0x168] sm:$0xff]  ;;  %v5130_v28 = vld [vmem:[#allocation13 + $0x140] sm:$0xff]  ;;  %v7045_v52 = vpack.c.bf16 %v5137_v6, %v5133_v8 }
0x1dc1   :  { %7409 = vpow2.f32 %v4973_v20  ;;  %v5098_v20 = vld [vmem:[#allocation13 + $0x40] sm:$0xff]  ;;  %6966 = vmatprep.subr.bf16.mxu1 %v6965_v39  ;;  %v6981_v24 = vpack.c.bf16 %v5135_v48, %v5131_v44  ;;  %v5136_v39 = vld [vmem:[#allocation13 + $0x170] sm:$0xff]  ;;  %v5171_v6 = vld [vmem:[#allocation13 + $0x288] sm:$0xff] }
0x1dc2   :  { %v5162_v44 = vld [vmem:[#allocation13 + $0x240] sm:$0xff]  ;;  %v5164_v8 = vld [vmem:[#allocation13 + $0x250] sm:$0xff] }
0x1dc3   :  { %v5166_v48 = vld [vmem:[#allocation13 + $0x260] sm:$0xff] }
0x1dc4   :  { %v7396_v15 = vpop.eup %7395 }
0x1dc5   :  { %v7398_v9 = vpop.eup %7397  ;;  %v4978_v42 = vsel %vm2760_vm10, %v7396_v15, 0.0 }
0x1dc6   :  { %v7400_v10 = vpop.eup %7399  ;;  %v4975_v11 = vsel %vm2760_vm10, %v7398_v9, 0.0 }
0x1dc7   :  { %v4976_v17 = vsel %vm2760_vm10, %v7400_v10, 0.0  ;;  %v7402_v18 = vpop.eup %7401 }
0x1dc8   :  { %v4977_v22 = vadd.f32 %v4976_v17, %v4975_v11  ;;  %v7404_v26 = vpop.eup %7403  ;;  %v4980_v7 = vsel %vm2760_vm10, %v7402_v18, 0.0  ;;  %v5100_v11 = vld [vmem:[#allocation13 + $0x50] sm:$0xff] }
0x1dc9   :  { %v7406_v16 = vpop.eup %7405  ;;  %v4982_v36 = vsel %vm2760_vm10, %v7404_v26, 0.0  ;;  %v5104_v17 = vld [vmem:[#allocation13 + $0x70] sm:$0xff] }
0x1dca   :  { %v4979_v61 = vadd.f32 %v4978_v42, %v4977_v22  ;;  %v7408_v30 = vpop.eup %7407  ;;  %v4984_v46 = vsel %vm2760_vm10, %v7406_v16, 0.0  ;;  %v5107_v22 = vld [vmem:[#allocation13 + $0x88] sm:$0xff] }
0x1dcb   :  { %v7410_v3 = vpop.eup %7409  ;;  %v4986_v53 = vsel %vm2760_vm10, %v7408_v30, 0.0  ;;  %v5111_v42 = vld [vmem:[#allocation13 + $0xa8] sm:$0xff] }
0x1dcc   :  { %v4981_v58 = vadd.f32 %v4980_v7, %v4979_v61  ;;  %v4988_v54 = vsel %vm2760_vm10, %v7410_v3, 0.0  ;;  %v6969_v61 = vpack.c.bf16 %v5111_v42, %v5107_v22  ;;  %v5113_v7 = vld [vmem:[#allocation13 + $0xb8] sm:$0xff]  ;;  %v5142_v22 = vld [vmem:[#allocation13 + $0x1a0] sm:$0xff]  ;;  %v5140_v42 = vld [vmem:[#allocation13 + $0x190] sm:$0xff] }
0x1dce   :  { %v4983_v35 = vadd.f32 %v4982_v36, %v4981_v58  ;;  %v5110_v58 = vld [vmem:[#allocation13 + $0xa0] sm:$0xff] }
0x1dd0   :  { %v4985_v47 = vadd.f32 %v4984_v46, %v4983_v35  ;;  %v5108_v35 = vld [vmem:[#allocation13 + $0x90] sm:$0xff] }
0x1dd1   :  { %v5112_v46 = vld [vmem:[#allocation13 + $0xb0] sm:$0xff] }
0x1dd2   :  { %v4987_v23 = vadd.f32 %v4986_v53, %v4985_v47  ;;  %v7035_v47 = vpack.c.bf16 %v5112_v46, %v5108_v35  ;;  %v5119_v53 = vld [vmem:[#allocation13 + $0xe8] sm:$0xff] }
0x1dd4   :  { %v4989_v32 = vadd.f32 %v4988_v54, %v4987_v23  ;;  %v5117_v23 = vld [vmem:[#allocation13 + $0xd8] sm:$0xff] }
0x1dd5   :  { %v5121_v54 = vld [vmem:[#allocation13 + $0xf8] sm:$0xff] }
0x1dd6   :  { %7411 = vrcp.f32 %v4989_v32 }
0x1de0   :  { %v7412_v60 = vpop.eup %7411 }
0x1de1   :  { %v4992_v4 = vmul.f32 %v7412_v60, %v7400_v10  ;;  %v4991_v41 = vmul.f32 %v7412_v60, %v7398_v9  ;;  %v4993_v62 = vmul.f32 %v7412_v60, %v7396_v15  ;;  %v4994_v43 = vmul.f32 %v7412_v60, %v7402_v18  ;;  %v5102_v15 = vld [vmem:[#allocation13 + $0x60] sm:$0xff] }
0x1de2   :  { %v4995_v51 = vmul.f32 %v7412_v60, %v7404_v26  ;;  %v4996_v0 = vmul.f32 %v7412_v60, %v7406_v16  ;;  %v4997_v50 = vmul.f32 %v7412_v60, %v7408_v30  ;;  %v4998_v38 = vmul.f32 %v7412_v60, %v7410_v3  ;;  %v5109_v26 = vld [vmem:[#allocation13 + $0x98] sm:$0xff]  ;;  %v5106_v16 = vld [vmem:[#allocation13 + $0x80] sm:$0xff]  ;;  %v5115_v3 = vld [vmem:[#allocation13 + $0xc8] sm:$0xff] }
0x1de3   :  { %5006 = vperm.xlu1 %7131, %v4992_v4   ;;  %5001 = vperm.xlu0 %7132, %v4991_v41   ;;  %v7029_v9 = vpack.c.bf16 %v5105_v33, %v5101_v5  ;;  %v6967_v10 = vpack.c.bf16 %v5102_v15, %v5098_v20  ;;  %v7031_v18 = vpack.c.bf16 %v5104_v17, %v5100_v11  ;;  %v5114_v4 = vld [vmem:[#allocation13 + $0xc0] sm:$0xff]  ;;  %v5132_v5 = vld [vmem:[#allocation13 + $0x150] sm:$0xff]  ;;  %v5139_v33 = vld [vmem:[#allocation13 + $0x188] sm:$0xff] }
0x1de4   :  { %v7033_v36 = vpack.c.bf16 %v5113_v7, %v5109_v26  ;;  %v6971_v30 = vpack.c.bf16 %v5110_v58, %v5106_v16  ;;  %v6973_v32 = vpack.c.bf16 %v5119_v53, %v5115_v3  ;;  %v7037_v60 = vpack.c.bf16 %v5121_v54, %v5117_v23  ;;  %v5118_v41 = vld [vmem:[#allocation13 + $0xe0] sm:$0xff]  ;;  %v5143_v20 = vld [vmem:[#allocation13 + $0x1a8] sm:$0xff]  ;;  %v5141_v15 = vld [vmem:[#allocation13 + $0x198] sm:$0xff] }
0x1de5   :  { %7030 = vmatprep.subr.bf16.mxu0 %v7029_v9  ;;  %6968 = vmatpush1.bf16.msra.mxu1 %v6967_v10  ;;  %v5145_v9 = vld [vmem:[#allocation13 + $0x1b8] sm:$0xff]  ;;  %v6983_v10 = vpack.c.bf16 %v5134_v14, %v5130_v28  ;;  %v7047_v11 = vpack.c.bf16 %v5136_v39, %v5132_v5  ;;  %v6985_v17 = vpack.c.bf16 %v5143_v20, %v5139_v33  ;;  %v5147_v7 = vld [vmem:[#allocation13 + $0x1c8] sm:$0xff]  ;;  %v5146_v3 = vld [vmem:[#allocation13 + $0x1c0] sm:$0xff] }
0x1de6   :  { %7032 = vmatpush1.bf16.msra.mxu0 %v7031_v18  ;;  %6970 = vmatprep.subr.bf16.mxu1 %v6969_v61  ;;  %v5138_v18 = vld [vmem:[#allocation13 + $0x180] sm:$0xff]  ;;  %v7049_v26 = vpack.c.bf16 %v5145_v9, %v5141_v15  ;;  %v5144_v61 = vld [vmem:[#allocation13 + $0x1b0] sm:$0xff]  ;;  %v5151_v16 = vld [vmem:[#allocation13 + $0x1e8] sm:$0xff]  ;;  %v6999_v5 = vpack.c.bf16 %v5166_v48, %v5162_v44 }
0x1de7   :  { %5011 = vperm.xlu1 %7131, %v4993_v62   ;;  %5016 = vperm.xlu0 %7132, %v4994_v43   ;;  %v5116_v62 = vld [vmem:[#allocation13 + $0xd0] sm:$0xff]  ;;  %v6975_v43 = vpack.c.bf16 %v5118_v41, %v5114_v4  ;;  %v5149_v58 = vld [vmem:[#allocation13 + $0x1d8] sm:$0xff]  ;;  %v7051_v35 = vpack.c.bf16 %v5144_v61, %v5140_v42  ;;  %v6989_v46 = vpack.c.bf16 %v5151_v16, %v5147_v7  ;;  %v5175_v28 = vld [vmem:[#allocation13 + $0x2a8] sm:$0xff] }
0x1de8   :  { %7034 = vmatprep.subr.bf16.mxu0 %v7033_v36  ;;  %v5153_v36 = vld [vmem:[#allocation13 + $0x1f8] sm:$0xff]  ;;  %v5148_v53 = vld [vmem:[#allocation13 + $0x1d0] sm:$0xff]  ;;  %v7001_v33 = vpack.c.bf16 %v5175_v28, %v5171_v6  ;;  %v5170_v20 = vld [vmem:[#allocation13 + $0x280] sm:$0xff] }
0x1de9   :  { %6972 = vmatpush1.bf16.msra.mxu1 %v6971_v30  ;;  %v6987_v30 = vpack.c.bf16 %v5142_v22, %v5138_v18  ;;  %v7053_v23 = vpack.c.bf16 %v5153_v36, %v5149_v58  ;;  %v5152_v54 = vld [vmem:[#allocation13 + $0x1f0] sm:$0xff]  ;;  %v5157_v4 = vld [vmem:[#allocation13 + $0x218] sm:$0xff]  ;;  %v5174_v15 = vld [vmem:[#allocation13 + $0x2a0] sm:$0xff] }
0x1dea   :  { %7036 = vmatpush1.bf16.msra.mxu0 %v7035_v47  ;;  %6974 = vmatprep.subr.bf16.mxu1 %v6973_v32  ;;  %v5150_v47 = vld [vmem:[#allocation13 + $0x1e0] sm:$0xff]  ;;  %v5155_v32 = vld [vmem:[#allocation13 + $0x208] sm:$0xff]  ;;  %v5161_v41 = vld [vmem:[#allocation13 + $0x238] sm:$0xff] }
0x1deb   :  { %5021 = vperm.xlu1 %7131, %v4995_v51   ;;  %5026 = vperm.xlu0 %7132, %v4996_v0   ;;  %v5120_v51 = vld [vmem:[#allocation13 + $0xf0] sm:$0xff]  ;;  %v5123_v0 = vld [vmem:[#allocation13 + $0x108] sm:$0xff]  ;;  %v5173_v14 = vld [vmem:[#allocation13 + $0x298] sm:$0xff] }
0x1dec   :  { %7038 = vmatprep.subr.bf16.mxu0 %v7037_v60  ;;  %v5159_v60 = vld [vmem:[#allocation13 + $0x228] sm:$0xff]  ;;  %v5172_v9 = vld [vmem:[#allocation13 + $0x290] sm:$0xff]  ;;  %v5181_v22 = vld [vmem:[#allocation13 + $0x2d8] sm:$0xff] }
0x1ded   :  { %6976 = vmatpush1.bf16.msra.mxu1 %v6975_v43  ;;  %v7055_v43 = vpack.c.bf16 %v5152_v54, %v5148_v53  ;;  %v5183_v18 = vld [vmem:[#allocation13 + $0x2e8] sm:$0xff]  ;;  %v5185_v42 = vld [vmem:[#allocation13 + $0x2f8] sm:$0xff]  ;;  %v5178_v16 = vld [vmem:[#allocation13 + $0x2c0] sm:$0xff] }
0x1dee   :  { %v5182_v58 = vld [vmem:[#allocation13 + $0x2e0] sm:$0xff]  ;;  %v5180_v36 = vld [vmem:[#allocation13 + $0x2d0] sm:$0xff]  ;;  %v5193_v53 = vld [vmem:[#allocation13 + $0x338] sm:$0xff] }
0x1def   :  { %5031 = vperm.xlu1 %7131, %v4997_v50   ;;  %5036 = vperm.xlu0 %7132, %v4998_v38   ;;  %v5127_v50 = vld [vmem:[#allocation13 + $0x128] sm:$0xff]  ;;  %v7039_v38 = vpack.c.bf16 %v5120_v51, %v5116_v62  ;;  %v6991_v62 = vpack.c.bf16 %v5150_v47, %v5146_v3  ;;  %v6993_v51 = vpack.c.bf16 %v5159_v60, %v5155_v32  ;;  %v5189_v47 = vld [vmem:[#allocation13 + $0x318] sm:$0xff]  ;;  %v5186_v60 = vld [vmem:[#allocation13 + $0x300] sm:$0xff] }
0x1df0   :  { %v6977_v2 = vpack.c.bf16 %v5127_v50, %v5123_v0  ;;  %v5154_v0 = vld [vmem:[#allocation13 + $0x200] sm:$0xff]  ;;  %v5191_v3 = vld [vmem:[#allocation13 + $0x328] sm:$0xff]  ;;  %v5205_v48 = vld [vmem:[#allocation13 + $0x398] sm:$0xff] }
0x1df1   :  { %7040 = vmatpush1.bf16.msra.mxu0 %v7039_v38  ;;  %v5158_v50 = vld [vmem:[#allocation13 + $0x220] sm:$0xff]  ;;  %v5156_v38 = vld [vmem:[#allocation13 + $0x210] sm:$0xff]  ;;  %v5207_v44 = vld [vmem:[#allocation13 + $0x3a8] sm:$0xff] }
0x1df2   :  { %6978 = vmatprep.subr.bf16.mxu1 %v6977_v2  ;;  %v7057_v2 = vpack.c.bf16 %v5161_v41, %v5157_v4  ;;  %v6995_v56 = vpack.c.bf16 %v5158_v50, %v5154_v0  ;;  %v5190_v4 = vld [vmem:[#allocation13 + $0x320] sm:$0xff]  ;;  %v5188_v41 = vld [vmem:[#allocation13 + $0x310] sm:$0xff]  ;;  %v5199_v0 = vld [vmem:[#allocation13 + $0x368] sm:$0xff] }
0x1df3   :  { %v5197_v50 = vld [vmem:[#allocation13 + $0x358] sm:$0xff]  ;;  %v5202_v28 = vld [vmem:[#allocation13 + $0x380] sm:$0xff] }
0x1e0e   :  { %3326 = vmax.xlane.f32.xlu0 %v3325_v57  ;;  %v5129_v57 = vld [vmem:[#allocation13 + $0x138] sm:$0xff] }
0x1e0f   :  { %v7041_v19 = vpack.c.bf16 %v5129_v57, %v5125_v25  ;;  %v5160_v25 = vld [vmem:[#allocation13 + $0x230] sm:$0xff]  ;;  %v5163_v57 = vld [vmem:[#allocation13 + $0x248] sm:$0xff] }
0x1e10   :  { %v7059_v27 = vpack.c.bf16 %v5160_v25, %v5156_v38  ;;  %v5201_v38 = vld [vmem:[#allocation13 + $0x378] sm:$0xff] }
0x1e11   :  { %7042 = vmatprep.subr.bf16.mxu0 %v7041_v19  ;;  %v5165_v19 = vld [vmem:[#allocation13 + $0x258] sm:$0xff] }
0x1e12   :  { %4775 = vmax.xlane.f32.xlu0 %v4774_v37  ;;  %v5122_v37 = vld [vmem:[#allocation13 + $0x100] sm:$0xff]  ;;  %7044 = vmatpush1.bf16.msra.mxu0 %v7043_v29 }
0x1e13   :  { %v6979_v59 = vpack.c.bf16 %v5126_v31, %v5122_v37  ;;  %7046 = vmatprep.subr.bf16.mxu0 %v7045_v52  ;;  %v5167_v37 = vld [vmem:[#allocation13 + $0x268] sm:$0xff]  ;;  %v5169_v31 = vld [vmem:[#allocation13 + $0x278] sm:$0xff] }
0x1e14   :  { %v7061_v29 = vpack.c.bf16 %v5169_v31, %v5165_v19  ;;  %v5177_v52 = vld [vmem:[#allocation13 + $0x2b8] sm:$0xff]  ;;  %v5198_v19 = vld [vmem:[#allocation13 + $0x360] sm:$0xff]  ;;  %v5196_v31 = vld [vmem:[#allocation13 + $0x350] sm:$0xff] }
0x1e15   :  { %6980 = vmatpush1.bf16.msra.mxu1 %v6979_v59  ;;  %v6997_v59 = vpack.c.bf16 %v5167_v37, %v5163_v57  ;;  %v5194_v37 = vld [vmem:[#allocation13 + $0x340] sm:$0xff] }
0x1e16   :  { %6982 = vmatprep.subr.bf16.mxu1 %v6981_v24  ;;  %7048 = vmatpush1.bf16.msra.mxu0 %v7047_v11  ;;  %v5168_v24 = vld [vmem:[#allocation13 + $0x270] sm:$0xff] }
0x1e17   :  { %7050 = vmatprep.subr.bf16.mxu0 %v7049_v26  ;;  %v7063_v39 = vpack.c.bf16 %v5168_v24, %v5164_v8  ;;  %v5176_v11 = vld [vmem:[#allocation13 + $0x2b0] sm:$0xff]  ;;  %v7003_v26 = vpack.c.bf16 %v5174_v15, %v5170_v20  ;;  %v5209_v8 = vld [vmem:[#allocation13 + $0x3b8] sm:$0xff]  ;;  %v5215_v20 = vld [vmem:[#allocation13 + $0x3e8] sm:$0xff] }
0x1e18   :  { %v7067_v61 = vpack.c.bf16 %v5176_v11, %v5172_v9  ;;  %v5213_v15 = vld [vmem:[#allocation13 + $0x3d8] sm:$0xff]  ;;  %v5210_v11 = vld [vmem:[#allocation13 + $0x3c0] sm:$0xff] }
0x1e19   :  { %6984 = vmatpush1.bf16.msra.mxu1 %v6983_v10  ;;  %v7065_v10 = vpack.c.bf16 %v5177_v52, %v5173_v14  ;;  %v5206_v14 = vld [vmem:[#allocation13 + $0x3a0] sm:$0xff]  ;;  %v5204_v52 = vld [vmem:[#allocation13 + $0x390] sm:$0xff]  ;;  %v5217_v9 = vld [vmem:[#allocation13 + $0x3f8] sm:$0xff] }
0x1e1a   :  { %6986 = vmatprep.subr.bf16.mxu1 %v6985_v17  ;;  %7052 = vmatpush1.bf16.msra.mxu0 %v7051_v35  ;;  %v5179_v17 = vld [vmem:[#allocation13 + $0x2c8] sm:$0xff]  ;;  %v5184_v35 = vld [vmem:[#allocation13 + $0x2f0] sm:$0xff] }
0x1e1b   :  { %7054 = vmatprep.subr.bf16.mxu0 %v7053_v23  ;;  %v7005_v7 = vpack.c.bf16 %v5183_v18, %v5179_v17  ;;  %v7007_v23 = vpack.c.bf16 %v5182_v58, %v5178_v16  ;;  %v7071_v54 = vpack.c.bf16 %v5184_v35, %v5180_v36  ;;  %v7085_v16 = vpack.c.bf16 %v5217_v9, %v5213_v15  ;;  %v7483_v58 = vld [vmem:[#allocation2 + $0x2] sm:$0x3] }
0x1e1d   :  { %6988 = vmatpush1.bf16.msra.mxu1 %v6987_v30  ;;  %v7069_v30 = vpack.c.bf16 %v5185_v42, %v5181_v22  ;;  %v5214_v22 = vld [vmem:[#allocation13 + $0x3e0] sm:$0xff]  ;;  %v5212_v42 = vld [vmem:[#allocation13 + $0x3d0] sm:$0xff] }
0x1e1e   :  { %6990 = vmatprep.subr.bf16.mxu1 %v6989_v46  ;;  %7056 = vmatpush1.bf16.msra.mxu0 %v7055_v43  ;;  %v5187_v46 = vld [vmem:[#allocation13 + $0x308] sm:$0xff]  ;;  %v5192_v43 = vld [vmem:[#allocation13 + $0x330] sm:$0xff] }
0x1e1f   :  { %7058 = vmatprep.subr.bf16.mxu0 %v7057_v2  ;;  %v7009_v32 = vpack.c.bf16 %v5191_v3, %v5187_v46  ;;  %v7011_v2 = vpack.c.bf16 %v5190_v4, %v5186_v60  ;;  %v7075_v25 = vpack.c.bf16 %v5192_v43, %v5188_v41  ;;  %v7485_v46 = vld [vmem:[#allocation2] sm:$0x3] }
0x1e21   :  { %6992 = vmatpush1.bf16.msra.mxu1 %v6991_v62  ;;  %v7073_v62 = vpack.c.bf16 %v5193_v53, %v5189_v47  ;;  %v7486_v47 = vld [vmem:[#allocation3] sm:$0x3] }
0x1e22   :  { %6994 = vmatprep.subr.bf16.mxu1 %v6993_v51  ;;  %7060 = vmatpush1.bf16.msra.mxu0 %v7059_v27  ;;  %v5195_v51 = vld [vmem:[#allocation13 + $0x348] sm:$0xff]  ;;  %v5200_v27 = vld [vmem:[#allocation13 + $0x370] sm:$0xff] }
0x1e23   :  { %7062 = vmatprep.subr.bf16.mxu0 %v7061_v29  ;;  %v7013_v57 = vpack.c.bf16 %v5199_v0, %v5195_v51  ;;  %v7015_v29 = vpack.c.bf16 %v5198_v19, %v5194_v37  ;;  %v7079_v24 = vpack.c.bf16 %v5200_v27, %v5196_v31  ;;  %v7487_v0 = vld [vmem:[#allocation2 + $0x4] sm:$0x3]  ;;  %v7490_v37 = vld [vmem:[#allocation3 + $0x6] sm:$0x3] }
0x1e25   :  { %6996 = vmatpush1.bf16.msra.mxu1 %v6995_v56  ;;  %v7077_v56 = vpack.c.bf16 %v5201_v38, %v5197_v50  ;;  %v7488_v38 = vld [vmem:[#allocation3 + $0x4] sm:$0x3] }
0x1e26   :  { %6998 = vmatprep.subr.bf16.mxu1 %v6997_v59  ;;  %7064 = vmatpush1.bf16.msra.mxu0 %v7063_v39  ;;  %v5203_v59 = vld [vmem:[#allocation13 + $0x388] sm:$0xff]  ;;  %v5208_v39 = vld [vmem:[#allocation13 + $0x3b0] sm:$0xff] }
0x1e27   :  { %7066 = vmatprep.subr.bf16.mxu0 %v7065_v10  ;;  %v7017_v6 = vpack.c.bf16 %v5207_v44, %v5203_v59  ;;  %v7019_v10 = vpack.c.bf16 %v5206_v14, %v5202_v28  ;;  %v7083_v17 = vpack.c.bf16 %v5208_v39, %v5204_v52  ;;  %v7492_v14 = vld [vmem:[#allocation3 + $0x8] sm:$0x3] }
0x1e29   :  { %7000 = vmatpush1.bf16.msra.mxu1 %v6999_v5  ;;  %v7081_v5 = vpack.c.bf16 %v5209_v8, %v5205_v48 }
0x1e2a   :  { %7002 = vmatprep.subr.bf16.mxu1 %v7001_v33  ;;  %7068 = vmatpush1.bf16.msra.mxu0 %v7067_v61  ;;  %v5211_v33 = vld [vmem:[#allocation13 + $0x3c8] sm:$0xff] }
0x1e2b   :  { %7070 = vmatprep.subr.bf16.mxu0 %v7069_v30  ;;  %v7021_v18 = vpack.c.bf16 %v5215_v20, %v5211_v33  ;;  %v7484_v30 = vld [vmem:[#allocation3 + $0x2] sm:$0x3]  ;;  %v7494_v33 = vld [vmem:[#allocation3 + $0xa] sm:$0x3] }
0x1e2d   :  { %7004 = vmatpush1.bf16.msra.mxu1 %v7003_v26  ;;  %v5216_v26 = vld [vmem:[#allocation13 + $0x3f0] sm:$0xff] }
0x1e2e   :  { %7006 = vmatprep.subr.bf16.mxu1 %v7005_v7  ;;  %7072 = vmatpush1.bf16.msra.mxu0 %v7071_v54  ;;  %v7087_v54 = vpack.c.bf16 %v5216_v26, %v5212_v42 }
0x1e2f   :  { %7074 = vmatprep.subr.bf16.mxu0 %v7073_v62 }
0x1e31   :  { %7008 = vmatpush1.bf16.msra.mxu1 %v7007_v23  ;;  %v7023_v23 = vpack.c.bf16 %v5214_v22, %v5210_v11 }
0x1e32   :  { %7010 = vmatprep.subr.bf16.mxu1 %v7009_v32  ;;  %7076 = vmatpush1.bf16.msra.mxu0 %v7075_v25  ;;  %v7489_v25 = vld [vmem:[#allocation2 + $0x6] sm:$0x3] }
0x1e33   :  { %7078 = vmatprep.subr.bf16.mxu0 %v7077_v56 }
0x1e35   :  { %7012 = vmatpush1.bf16.msra.mxu1 %v7011_v2 }
0x1e36   :  { %7014 = vmatprep.subr.bf16.mxu1 %v7013_v57  ;;  %7080 = vmatpush1.bf16.msra.mxu0 %v7079_v24 }
0x1e37   :  { %7082 = vmatprep.subr.bf16.mxu0 %v7081_v5  ;;  %v7493_v5 = vld [vmem:[#allocation2 + $0xa] sm:$0x3] }
0x1e39   :  { %7016 = vmatpush1.bf16.msra.mxu1 %v7015_v29 }
0x1e3a   :  { %7018 = vmatprep.subr.bf16.mxu1 %v7017_v6  ;;  %7084 = vmatpush1.bf16.msra.mxu0 %v7083_v17  ;;  %v7491_v6 = vld [vmem:[#allocation2 + $0x8] sm:$0x3] }
0x1e3b   :  { %7086 = vmatprep.subr.bf16.mxu0 %v7085_v16 }
0x1e3d   :  { %7020 = vmatpush1.bf16.msra.mxu1 %v7019_v10 }
0x1e3e   :  { %7022 = vmatprep.subr.bf16.mxu1 %v7021_v18  ;;  %7088 = vmatpush1.bf16.msra.mxu0 %v7087_v54 }
0x1e41   :  { %7024 = vmatpush1.bf16.msra.mxu1 %v7023_v23 }
0x1e42   :  { %7089 = vmatprep.subr.bf16.mxu1 %v7674_v21 }
0x1e62   :  { %v5007_v61 = vpop.permute.xlu1 %5006  ;;  %v5002_v7 = vpop.permute.xlu0 %5001 }
0x1e63   :  { %v5040_v36 = vmul.f32 %v7483_v58, %v5007_v61  ;;  %v5063_v35 = vmul.f32 %v7484_v30, %v5007_v61  ;;  %v5039_v3 = vmul.f32 %v7485_v46, %v5002_v7  ;;  %v5062_v53 = vmul.f32 %v7486_v47, %v5002_v7  ;;  %v7495_v7 = vld [vmem:[#allocation2 + $0xc] sm:$0x3]  ;;  %v7496_v58 = vld [vmem:[#allocation3 + $0xc] sm:$0x3]  ;;  %v7497_v30 = vld [vmem:[#allocation2 + $0xe] sm:$0x3] }
0x1e64   :  { %v7498_v46 = vld [vmem:[#allocation3 + $0xe] sm:$0x3] }
0x1e65   :  { %v5048_v32 = vsel %vm688_vm4, %v5040_v36, 0.0  ;;  %v5071_v60 = vsel %vm688_vm4, %v5063_v35, 0.0  ;;  %v5047_v4 = vsel %vm688_vm4, %v5039_v3, 0.0  ;;  %v5070_v41 = vsel %vm688_vm4, %v5062_v53, 0.0 }
0x1e66   :  { %v5049_v62 = vadd.f32 %v5048_v32, %v5047_v4  ;;  %v5012_v43 = vpop.permute.xlu1 %5011  ;;  %v5017_v51 = vpop.permute.xlu0 %5016  ;;  %v5072_v31 = vadd.f32 %v5071_v60, %v5070_v41 }
0x1e67   :  { %v5041_v50 = vmul.f32 %v7487_v0, %v5012_v43  ;;  %v5064_v2 = vmul.f32 %v7488_v38, %v5012_v43  ;;  %v5042_v57 = vmul.f32 %v7489_v25, %v5017_v51  ;;  %v5065_v19 = vmul.f32 %v7490_v37, %v5017_v51  ;;  %v5573_v51 = vld [vmem:[#allocation16] ss:$0 sm:$0xff] }
0x1e68   :  { %v9263_v0 = vadd.f32 %v5573_v51, %v9031_v55 }
0x1e69   :  { %v5050_v56 = vsel %vm688_vm4, %v5041_v50, 0.0  ;;  %v5073_v27 = vsel %vm688_vm4, %v5064_v2, 0.0  ;;  %v5052_v48 = vsel %vm688_vm4, %v5042_v57, 0.0  ;;  %v5075_v8 = vsel %vm688_vm4, %v5065_v19, 0.0 }
0x1e6a   :  { %v5051_v59 = vadd.f32 %v5050_v56, %v5049_v62  ;;  %v5074_v44 = vadd.f32 %v5073_v27, %v5072_v31  ;;  %v5022_v29 = vpop.permute.xlu1 %5021  ;;  %v5027_v24 = vpop.permute.xlu0 %5026  ;;  %v4049_v50 = vsel %vm3324_vm11, %v9263_v0, -inf }
0x1e6b   :  { %v5043_v28 = vmul.f32 %v7491_v6, %v5022_v29  ;;  %v5066_v52 = vmul.f32 %v7492_v14, %v5022_v29  ;;  %v5044_v39 = vmul.f32 %v7493_v5, %v5027_v24  ;;  %v5067_v20 = vmul.f32 %v7494_v33, %v5027_v24  ;;  %v5409_v5 = vld [vmem:[%s9370_s13 + $0x18] sm:$0xff]  ;;  %v5410_v33 = vld [vmem:[%s9370_s13 + $0x20] sm:$0xff] }
0x1e6c   :  { %v5053_v15 = vadd.f32 %v5052_v48, %v5051_v59  ;;  %v5076_v9 = vadd.f32 %v5075_v8, %v5074_v44 }
0x1e6d   :  { %v5054_v10 = vsel %vm688_vm4, %v5043_v28, 0.0  ;;  %v5077_v11 = vsel %vm688_vm4, %v5066_v52, 0.0  ;;  %v5056_v22 = vsel %vm688_vm4, %v5044_v39, 0.0  ;;  %v5079_v42 = vsel %vm688_vm4, %v5067_v20, 0.0  ;;  %v5407_v28 = vld [vmem:[%s9370_s13 + $0x8] sm:$0xff]  ;;  %v5408_v52 = vld [vmem:[%s9370_s13 + $0x10] sm:$0xff] }
0x1e6e   :  { %v5055_v17 = vadd.f32 %v5054_v10, %v5053_v15  ;;  %v5078_v18 = vadd.f32 %v5077_v11, %v5076_v9  ;;  %v5032_v26 = vpop.permute.xlu1 %5031  ;;  %v5037_v61 = vpop.permute.xlu0 %5036  ;;  %v7093_v39 = vpack.c.bf16 %v5409_v5, %v5408_v52  ;;  %v5411_v20 = vld [vmem:[%s9370_s13 + $0x28] sm:$0xff]  ;;  %v5412_v9 = vld [vmem:[%s9370_s13 + $0x30] sm:$0xff]  ;;  %v5413_v10 = vld [vmem:[%s9370_s13 + $0x38] sm:$0xff] }
0x1e6f   :  { %v5045_v16 = vmul.f32 %v7495_v7, %v5032_v26  ;;  %v5068_v36 = vmul.f32 %v7496_v58, %v5032_v26  ;;  %v5046_v35 = vmul.f32 %v7497_v30, %v5037_v61  ;;  %v5069_v3 = vmul.f32 %v7498_v46, %v5037_v61  ;;  %v5417_v26 = vld [vmem:[%s9370_s13 + $0x58] sm:$0xff]  ;;  %v5418_v61 = vld [vmem:[%s9370_s13 + $0x60] sm:$0xff]  ;;  %v5218_v46 = vld [vmem:[#allocation14] sm:$0xf] }
0x1e70   :  { %v5057_v47 = vadd.f32 %v5056_v22, %v5055_v17  ;;  %v5080_v53 = vadd.f32 %v5079_v42, %v5078_v18  ;;  %v7096_v15 = vpack.c.bf16 %v5411_v20, %v5410_v33  ;;  %v7099_v11 = vpack.c.bf16 %v5413_v10, %v5412_v9  ;;  %v5414_v17 = vld [vmem:[%s9370_s13 + $0x40] sm:$0xff]  ;;  %v5415_v18 = vld [vmem:[%s9370_s13 + $0x48] sm:$0xff]  ;;  %v5416_v42 = vld [vmem:[%s9370_s13 + $0x50] sm:$0xff] }
0x1e71   :  { %v5058_v23 = vsel %vm688_vm4, %v5045_v16, 0.0  ;;  %v5081_v54 = vsel %vm688_vm4, %v5068_v36, 0.0  ;;  %v5060_v4 = vsel %vm688_vm4, %v5046_v35, 0.0  ;;  %v5083_v41 = vsel %vm688_vm4, %v5069_v3, 0.0  ;;  %v5419_v16 = vld [vmem:[%s9370_s13 + $0x68] sm:$0xff]  ;;  %v5420_v36 = vld [vmem:[%s9370_s13 + $0x70] sm:$0xff] }
0x1e72   :  { %v5059_v32 = vadd.f32 %v5058_v23, %v5057_v47  ;;  %v5082_v60 = vadd.f32 %v5081_v54, %v5080_v53  ;;  %v7102_v22 = vpack.c.bf16 %v5415_v18, %v5414_v17  ;;  %v7105_v7 = vpack.c.bf16 %v5417_v26, %v5416_v42  ;;  %v5421_v30 = vld [vmem:[%s9370_s13 + $0x78] sm:$0xff] }
0x1e73   :  { %v7108_v58 = vpack.c.bf16 %v5419_v16, %v5418_v61  ;;  %v7111_v35 = vpack.c.bf16 %v5421_v30, %v5420_v36  ;;  %v5223_v3 = vrot.slane %v5218_v46, %v8141_v63  ;;  %v5227_v47 = vrot.slane %v5218_v46, %v8143_v1 }
0x1e74   :  { %v5061_v62 = vadd.f32 %v5060_v4, %v5059_v32  ;;  %v5084_v43 = vadd.f32 %v5083_v41, %v5082_v60 }
0x1e76   :  { %5086 = vrot.lane.b32.xlu1 %v5084_v43, %s7673_s28  ;;  %v5235_v43 = vrot.slane %v5218_v46, %v8149_v13 }
0x1e9a   :  { %4050 = vmax.xlane.f32.xlu1 %v4049_v50 }
0x1e9b   :  { %v3327_v38 = vpop.xlane.xlu0 %3326 }
0x1e9c   :  { %v3328_v2 = vsub.f32 %v9235_v40, %v3327_v38 }
0x1e9e   :  { %v3329_v25 = vmul.f32 1.442695, %v3328_v2 }
0x1e9f   :  { %v4776_v57 = vpop.xlane.xlu0 %4775 }
0x1ea0   :  { %7413 = vpow2.f32 %v3329_v25  ;;  %v4777_v37 = vsub.f32 %v9238_v34, %v4776_v57 }
0x1ea2   :  { %v4778_v19 = vmul.f32 1.442695, %v4777_v37 }
0x1ea4   :  { %7415 = vpow2.f32 %v4778_v19 }
0x1eaa   :  { %v7414_v31 = vpop.eup %7413 }
0x1eab   :  { %v3331_v56 = vsel %vm3324_vm11, %v7414_v31, 0.0 }
0x1eac   :  { %3332 = vadd.xlane.f32.xlu1 %v3331_v56 }
0x1eae   :  { %v7416_v55 = vpop.eup %7415 }
0x1eaf   :  { %v4780_v27 = vsel %vm3324_vm11, %v7416_v55, 0.0 }
0x1eb0   :  { %4781 = vadd.xlane.f32.xlu1 %v4780_v27 }
0x1ee8   :  { %v5087_v59 = vpop.permute.xlu1 %5086 }
0x1ee9   :  { %v5089_v44 = vsel %vm293_vm2, %v5061_v62, %v5087_v59 }
0x1eea   :  { %5305 = vmatmul.mubr.f32.vlgmr.msra.gmra.mrb[30].mxu1 %v5089_v44  ;;  %5376 = vmatmul.mubr.f32.vlgmr.msra.gmra.mrb[40].mxu0 %v5089_v44 }
0x1eeb   :  { %6078 = vmatprep.mubr.msk.f32.mxu1 %vm7675_vm6, %v7672_v49  ;;  %v5406_v49 = vld [vmem:[%s9370_s13] sm:$0xff] }
0x1eec   :  { %v7090_v14 = vpack.c.bf16 %v5407_v28, %v5406_v49 }
0x1eee   :  { %7091 = vmatpush3.bf16.msra.mxu1 %v7090_v14 }
0x1eef   :  { %7092 = vmatprep.subr.bf16.mxu1 %v7674_v21 }
0x1ef2   :  { %7094 = vmatpush3.bf16.msra.mxu1 %v7093_v39 }
0x1ef3   :  { %7095 = vmatprep.subr.bf16.mxu1 %v7674_v21 }
0x1ef6   :  { %7097 = vmatpush3.bf16.msra.mxu1 %v7096_v15 }
0x1ef7   :  { %7098 = vmatprep.subr.bf16.mxu1 %v7674_v21 }
0x1efa   :  { %7100 = vmatpush3.bf16.msra.mxu1 %v7099_v11 }
0x1efb   :  { %7101 = vmatprep.subr.bf16.mxu1 %v7674_v21 }
0x1efe   :  { %7103 = vmatpush3.bf16.msra.mxu1 %v7102_v22 }
0x1eff   :  { %7104 = vmatprep.subr.bf16.mxu1 %v7674_v21 }
0x1f02   :  { %7106 = vmatpush3.bf16.msra.mxu1 %v7105_v7 }
0x1f03   :  { %7107 = vmatprep.subr.bf16.mxu1 %v7674_v21 }
0x1f06   :  { %7109 = vmatpush3.bf16.msra.mxu1 %v7108_v58 }
0x1f07   :  { %7110 = vmatprep.subr.bf16.mxu1 %v7674_v21  ;;  %v5231_v21 = vrot.slane %v5218_v46, %v8147_v12 }
0x1f0a   :  { %7112 = vmatpush3.bf16.msra.mxu1 %v7111_v35 }
0x1f27   :  { %v9274_v40 = vpop.xlane.xlu1 %4050 }
0x1f39   :  { %v3333_v34 = vpop.xlane.xlu1 %3332 }
0x1f3a   :  { %7417 = vrcp.f32 %v3333_v34  ;;  %v4052_v34 = vsub.f32 %v9263_v0, %v9274_v40 }
0x1f3d   :  { %v4782_v48 = vpop.xlane.xlu1 %4781 }
0x1f3e   :  { %7419 = vrcp.f32 %v4782_v48  ;;  %v4053_v48 = vmul.f32 1.442695, %v4052_v34 }
0x1f44   :  { %v7418_v8 = vpop.eup %7417 }
0x1f45   :  { %v3335_v29 = vmul.f32 %v7418_v8, %v7414_v31  ;;  %v5585_v8 = vld [vmem:[#allocation16] ss:$0 sm:$0xff] }
0x1f47   :  { %3336 = vst.msk [vmem:[%s9372_s15] sm:$0x3] %vm3324_vm11, %v3335_v29 }
0x1f48   :  { %v7420_v24 = vpop.eup %7419 }
0x1f49   :  { %v4784_v6 = vmul.f32 %v7420_v24, %v7416_v55 }
0x1f4b   :  { %5580 = vst.msk [vmem:[%s9372_s15 + $0x4] sm:$0x3] %vm3324_vm11, %v4784_v6 }
0x1fbd   :  { %v5306_v53 = vpop.f32.mrb[30].mxu1  ;;  %v5377_v23 = vpop.f32.mrb[40].mxu0 }
0x1fbe   :  { %v5307_v54 = vadd.f32 %v5306_v53, %v5223_v3  ;;  %v5308_v32 = vpop.f32.mrb[31].mxu1  ;;  %v5379_v60 = vpop.f32.mrb[41].mxu0  ;;  %v5378_v38 = vadd.f32 %v5377_v23, %v5231_v21 }
0x1fbf   :  { %v5309_v4 = vadd.f32 %v5308_v32, %v5227_v47  ;;  %v5380_v51 = vadd.f32 %v5379_v60, %v5235_v43 }
0x1fc0   :  { %v5582_v41 = vmul.f32 -1.442695, %v5307_v54 }
0x1fc1   :  { %v5583_v62 = vmul.f32 -1.442695, %v5309_v4  ;;  %v5584_v50 = vmul.f32 -1.442695, %v5380_v51 }
0x1fc2   :  { %7421 = vpow2.f32 %v5582_v41 }
0x1fc3   :  { %7423 = vpow2.f32 %v5583_v62 }
0x1fc4   :  { %7425 = vpow2.f32 %v5584_v50 }
0x1fc5   :  { %7427 = vtanh.f32 %v5378_v38 }
0x1fcc   :  { %v7422_v63 = vpop.eup %7421 }
0x1fcd   :  { %v7424_v2 = vpop.eup %7423  ;;  %v5385_v1 = vadd.f32 1.0, %v7422_v63 }
0x1fce   :  { %v5391_v25 = vadd.f32 1.0, %v7424_v2  ;;  %v7426_v57 = vpop.eup %7425 }
0x1fcf   :  { %7429 = vrcp.f32 %v5385_v1  ;;  %v7428_v37 = vpop.eup %7427  ;;  %v5398_v56 = vadd.f32 1.0, %v7426_v57 }
0x1fd0   :  { %7431 = vrcp.f32 %v5391_v25 }
0x1fd1   :  { %7433 = vrcp.f32 %v5398_v56 }
0x1fd9   :  { %v7430_v19 = vpop.eup %7429 }
0x1fda   :  { %v7432_v31 = vpop.eup %7431  ;;  %v5402_v13 = vmul.f32 %v7430_v19, %v7428_v37 }
0x1fdb   :  { %v5401_v55 = vmul.f32 %v7432_v31, %v9196_v45  ;;  %v7434_v12 = vpop.eup %7433 }
0x1fdd   :  { %v5403_v27 = vadd.f32 %v5402_v13, %v5401_v55 }
0x1fdf   :  { %7435 = vtanh.f32 %v5403_v27 }
0x1fe0   :  { %7437 = vpow2.f32 %v4053_v48 }
0x1fe9   :  { %v7436_v59 = vpop.eup %7435 }
0x1fea   :  { %v5405_v44 = vmul.f32 %v7436_v59, %v7434_v12  ;;  %v7438_v28 = vpop.eup %7437 }
0x1feb   :  { %v4055_v45 = vsel %vm3324_vm11, %v7438_v28, 0.0 }
0x1fec   :  { %6079 = vmatmul.mubr.f32.vlgmr.msra.gmra.mrb[32].mxu1 %v5405_v44 }
0x20bf   :  { %v5495_v29 = vpop.f32.mrb[32].mxu1 }
0x20c0   :  { %v5496_v24 = vadd.f32 %v5585_v8, %v5495_v29  ;;  %v6080_v6 = vpop.f32.mrb[33].mxu1 }
0x20c2   :  { %v5499_v49 = vsel %vm3324_vm11, %v5496_v24, -inf }
0x20c3   :  { %5500 = vmax.xlane.f32.xlu0 %v5499_v49 }
0x20c7   :  { %4056 = vadd.xlane.f32.xlu0 %v4055_v45 }
0x2150   :  { %v5501_v14 = vpop.xlane.xlu0 %5500 }
0x2151   :  { %v5502_v52 = vsub.f32 %v5496_v24, %v5501_v14 }
0x2153   :  { %v5503_v5 = vmul.f32 1.442695, %v5502_v52 }
0x2154   :  { %v4057_v39 = vpop.xlane.xlu0 %4056 }
0x2155   :  { %7439 = vpow2.f32 %v5503_v5 }
0x2156   :  { %7441 = vrcp.f32 %v4057_v39 }
0x215f   :  { %v7440_v0 = vpop.eup %7439 }
0x2160   :  { %v7442_v40 = vpop.eup %7441  ;;  %v5505_v33 = vsel %vm3324_vm11, %v7440_v0, 0.0 }
0x2161   :  { %v4059_v20 = vmul.f32 %v7442_v40, %v7438_v28  ;;  %5506 = vadd.xlane.f32.xlu0 %v5505_v33 }
0x2163   :  { %5574 = vst.msk [vmem:[%s9372_s15 + $0x2] sm:$0x3] %vm3324_vm11, %v4059_v20 }
0x21ee   :  { %v5507_v15 = vpop.xlane.xlu0 %5506 }
0x21ef   :  { %7443 = vrcp.f32 %v5507_v15 }
0x21f9   :  { %v7444_v9 = vpop.eup %7443 }
0x21fa   :  { %v5509_v10 = vmul.f32 %v7444_v9, %v7440_v0 }
0x21fc   :  { %5586 = vst.msk [vmem:[%s9372_s15 + $0x6] sm:$0x3] %vm3324_vm11, %v5509_v10 }
0x21fd   :  { %5516 = vsyncpa [#allocation7], 1 }
0x21fe   :  { %5517 = vsyncpa [#allocation9], 1 }
0x21ff   :  { %5518 = vsyncpa [#allocation12], 1 }
0x2200   :  { %5519 = vsyncpa [#allocation15], 1 }

</bundles_post_ra>
